<compile_context>
chip_gen: v6e
topology: v6e:2x2x1
jax: 0.10.0
libtpu: 0.0.40
codegen_flags: <defaults>
</compile_context>

<pallas_src>
import jax
import jax.numpy as jnp
from jax import lax
from jax.experimental import pallas as pl
from jax.experimental.pallas import tpu as pltpu

EPS = 1e-5


def fused_kernel(gate_ref, x_ref, w_ref, gb_ref, x39_ref, out_ref):
    """One output-channel row tile of the fused block.

    gate_ref : [1, Cin]    pre-sigmoid gate (per input channel, N == 1)
    x_ref    : [Cin, P]    x45 in channel-major layout (full, fetched once)
    w_ref    : [TC, Cin]   conv-weight row tile (TC output channels)
    gb_ref   : [TC, 2]     packed (gamma, beta) columns for this row tile
    x39_ref  : [TC, P]     residual row tile
    out_ref  : [TC, P]
    """
    # Fold sigmoid(gate) into this tile's conv-weight rows (exact for N == 1);
    # cast both matmul operands to bf16 for the MXU, accumulate in f32.
    g = jax.nn.sigmoid(gate_ref[...])                        # [1, Cin]
    wg = (w_ref[...] * g).astype(jnp.bfloat16)               # [TC, Cin]
    xb = x_ref[...].astype(jnp.bfloat16)                     # [Cin, P]

    # 1x1 conv == matmul over input channels (MXU).
    y = jnp.dot(wg, xb, preferred_element_type=jnp.float32)  # [TC, P] f32

    # BatchNorm2d (training mode): per-output-channel batch stats over all P
    # positions, computed in one pass, then folded into a scale/shift FMA.
    inv_p = 1.0 / y.shape[1]
    s1 = jnp.sum(y, axis=1, keepdims=True)                   # [TC, 1]
    s2 = jnp.sum(y * y, axis=1, keepdims=True)               # [TC, 1]
    mean = s1 * inv_p
    var = s2 * inv_p - mean * mean                           # biased variance

    gb = gb_ref[...]                                         # [TC, 2]
    gamma = gb[:, 0:1]                                       # [TC, 1]
    beta = gb[:, 1:2]                                        # [TC, 1]
    scale = gamma * lax.rsqrt(var + EPS)                     # [TC, 1]
    shift = beta - mean * scale                              # [TC, 1]

    # Normalize + residual add + ReLU in a single fused pass.
    out_ref[...] = jnp.maximum(x39_ref[...] + y * scale + shift, 0.0)


def _pick_row_tile(c):
    """Largest multiple-of-8 divisor of c that is <= 256 (falls back to c)."""
    for t in range(256, 7, -8):
        if c % t == 0:
            return t
    return c


def module_forward(x49, x45, x39, conv_w, gamma, beta):
    """Mirrors M.forward. x49: [N,C,1,1], x45/x39: [N,C,H,W], conv_w: [C,C,1,1]."""
    N, C, H, W = x45.shape
    assert N == 1, "gate-into-weight folding assumes batch size 1 (module spec)"
    P = H * W

    # Native NCHW layout: with N == 1 these are metadata-only reshapes — no
    # transposes and no materialized gate broadcast in the wrapper.
    x45_cp = x45.reshape(C, P)                      # [Cin, P]
    x39_cp = x39.reshape(C, P)                      # [Cout, P]
    gate = x49.reshape(1, C)                        # [1, Cin]
    w = conv_w.reshape(C, C)                        # [Cout, Cin]
    gamma_beta = jnp.stack(                         # [Cout, 2] packed BN params
        [gamma.astype(jnp.float32), beta.astype(jnp.float32)], axis=1)

    TC = _pick_row_tile(C)                          # 232 for C = 696 -> 3 steps
    grid = (C // TC,)

    # Advisory cost hint for XLA scheduling around the custom call.
    flops = 2 * C * C * P
    bytes_accessed = 4 * (3 * C * P + C * C + C + 2 * C)
    cost = pl.CostEstimate(flops=flops, transcendentals=2 * C,
                           bytes_accessed=bytes_accessed)

    out_cp = pl.pallas_call(
        fused_kernel,
        out_shape=jax.ShapeDtypeStruct((C, P), jnp.float32),
        grid=grid,
        in_specs=[
            pl.BlockSpec((1, C), lambda i: (0, 0)),    # gate (tiny, resident)
            pl.BlockSpec((C, P), lambda i: (0, 0)),    # x45 full, fetched once
            pl.BlockSpec((TC, C), lambda i: (i, 0)),   # conv-weight row tile
            pl.BlockSpec((TC, 2), lambda i: (i, 0)),   # packed gamma/beta tile
            pl.BlockSpec((TC, P), lambda i: (i, 0)),   # residual row tile
        ],
        out_specs=pl.BlockSpec((TC, P), lambda i: (i, 0)),
        compiler_params=pltpu.CompilerParams(
            dimension_semantics=("parallel",),
            vmem_limit_bytes=40 << 20,     # fits v7x's 64 MiB with headroom
        ),
        cost_estimate=cost,
    )(gate, x45_cp, w, gamma_beta, x39_cp)

    # TODO(synk): BatchNorm2d running_mean/running_var buffer updates (training
    # mode side effect) are not materialized; only the forward output is produced.
    return out_cp.reshape(N, C, H, W)


def reference_forward(x49, x45, x39, conv_w, gamma, beta):
    """Pure-JAX f32 reference of the PyTorch module (training-mode BN)."""
    x50 = jax.nn.sigmoid(x49)
    x51 = x50 * x45
    x52 = jnp.einsum("nchw,oc->nohw", x51,
                     conv_w.reshape(conv_w.shape[0], conv_w.shape[1]))
    mean = jnp.mean(x52, axis=(0, 2, 3), keepdims=True)
    var = jnp.mean((x52 - mean) ** 2, axis=(0, 2, 3), keepdims=True)
    x53 = gamma.reshape(1, -1, 1, 1) * (x52 - mean) * lax.rsqrt(var + EPS) \
        + beta.reshape(1, -1, 1, 1)
    return jnp.maximum(x39 + x53, 0.0)


if __name__ == "__main__":
    N, C, H, W = 1, 696, 28, 28  # shapes implied by the module

    key = jax.random.PRNGKey(0)
    k49, k45, k39, kw, kg, kb = jax.random.split(key, 6)

    x49 = jax.random.normal(k49, (N, C, 1, 1), dtype=jnp.float32)
    x45 = jax.random.normal(k45, (N, C, H, W), dtype=jnp.float32)
    x39 = jax.random.normal(k39, (N, C, H, W), dtype=jnp.float32)

    conv_w = 0.05 * jax.random.normal(kw, (C, C, 1, 1), dtype=jnp.float32)
    gamma = 1.0 + 0.1 * jax.random.normal(kg, (C,), dtype=jnp.float32)
    beta = 0.1 * jax.random.normal(kb, (C,), dtype=jnp.float32)

    out = module_forward(x49, x45, x39, conv_w, gamma, beta)
    out = jax.block_until_ready(out)

    ref = reference_forward(x49, x45, x39, conv_w, gamma, beta)
    assert out.shape == (N, C, H, W)
    # bf16 MXU operands (f32 accumulation over Cin=696) vs. the pure-f32
    # reference -> allow ~1e-2 level tolerance.
    assert jnp.allclose(out, ref, atol=2e-2, rtol=2e-2), "mismatch vs reference"

    print("KERNEL_OK")
</pallas_src>

<mosaic_0001>
module attributes {stable_mosaic.version = 11 : i64} {
  func.func @fused_kernel(%arg0: i32, %arg1: memref<1x696xf32, #tpu.memory_space<vmem>>, %arg2: memref<696x784xf32, #tpu.memory_space<vmem>>, %arg3: memref<232x696xf32, #tpu.memory_space<vmem>>, %arg4: memref<232x2xf32, #tpu.memory_space<vmem>>, %arg5: memref<232x784xf32, #tpu.memory_space<vmem>>, %arg6: memref<232x784xf32, #tpu.memory_space<vmem>>) attributes {dimension_semantics = [#tpu.dimension_semantics<parallel>], iteration_bounds = array<i64: 3>, scalar_prefetch = 0 : i64, scratch_operands = 0 : i64, tpu.core_type = #tpu.core_type<tc>, window_params = [{pipeline_mode = #tpu.pipeline_mode<synchronous>, transform_indices = @transform_0, window_bounds = array<i64: 1, 696>}, {pipeline_mode = #tpu.pipeline_mode<synchronous>, transform_indices = @transform_1, window_bounds = array<i64: 696, 784>}, {transform_indices = @transform_2, window_bounds = array<i64: 232, 696>}, {transform_indices = @transform_3, window_bounds = array<i64: 232, 2>}, {transform_indices = @transform_4, window_bounds = array<i64: 232, 784>}, {transform_indices = @transform_5, window_bounds = array<i64: 232, 784>}]} {
    %c0 = arith.constant 0 : index
    %c0_0 = arith.constant 0 : index
    %0 = vector.load %arg1[%c0, %c0_0] : memref<1x696xf32, #tpu.memory_space<vmem>>, vector<1x696xf32>
    %1 = arith.negf %0 : vector<1x696xf32>
    %2 = math.exp %1 : vector<1x696xf32>
    %cst = arith.constant 1.000000e+00 : f32
    %3 = vector.broadcast %cst : f32 to vector<1x696xf32>
    %4 = arith.addf %3, %2 : vector<1x696xf32>
    %5 = arith.divf %3, %4 : vector<1x696xf32>
    %c0_1 = arith.constant 0 : index
    %c0_2 = arith.constant 0 : index
    %6 = vector.load %arg3[%c0_1, %c0_2] : memref<232x696xf32, #tpu.memory_space<vmem>>, vector<232x696xf32>
    %7 = vector.broadcast %5 : vector<1x696xf32> to vector<232x696xf32>
    %8 = arith.mulf %6, %7 : vector<232x696xf32>
    %9 = arith.truncf %8 : vector<232x696xf32> to vector<232x696xbf16>
    %c0_3 = arith.constant 0 : index
    %c0_4 = arith.constant 0 : index
    %10 = vector.load %arg2[%c0_3, %c0_4] : memref<696x784xf32, #tpu.memory_space<vmem>>, vector<696x784xf32>
    %11 = arith.truncf %10 : vector<696x784xf32> to vector<696x784xbf16>
    %cst_5 = arith.constant dense<0.000000e+00> : vector<232x784xf32>
    %12 = tpu.matmul %9, %11, %cst_5 {dimension_numbers = #tpu.dot_dimension_numbers<[1], [0], [0], [1], [0, 0, 1, 1], [], []>} : vector<232x696xbf16>, vector<696x784xbf16>, vector<232x784xf32> -> vector<232x784xf32>
    %cst_6 = arith.constant dense<0.000000e+00> : vector<232xf32>
    %13 = vector.multi_reduction <add>, %12, %cst_6 [1] : vector<232x784xf32> to vector<232xf32>
    %14 = vector.shape_cast %13 : vector<232xf32> to vector<232x1xf32>
    %15 = arith.mulf %12, %12 : vector<232x784xf32>
    %cst_7 = arith.constant dense<0.000000e+00> : vector<232xf32>
    %16 = vector.multi_reduction <add>, %15, %cst_7 [1] : vector<232x784xf32> to vector<232xf32>
    %17 = vector.shape_cast %16 : vector<232xf32> to vector<232x1xf32>
    %cst_8 = arith.constant 0.00127551018 : f32
    %18 = vector.broadcast %cst_8 : f32 to vector<232x1xf32>
    %19 = arith.mulf %14, %18 : vector<232x1xf32>
    %cst_9 = arith.constant 0.00127551018 : f32
    %20 = vector.broadcast %cst_9 : f32 to vector<232x1xf32>
    %21 = arith.mulf %17, %20 : vector<232x1xf32>
    %22 = arith.mulf %19, %19 : vector<232x1xf32>
    %23 = arith.subf %21, %22 : vector<232x1xf32>
    %c0_10 = arith.constant 0 : index
    %c0_11 = arith.constant 0 : index
    %24 = vector.load %arg4[%c0_10, %c0_11] : memref<232x2xf32, #tpu.memory_space<vmem>>, vector<232x2xf32>
    %25 = vector.extract_strided_slice %24 {offsets = [0, 0], sizes = [232, 1], strides = [1, 1]} : vector<232x2xf32> to vector<232x1xf32>
    %26 = vector.extract_strided_slice %24 {offsets = [0, 1], sizes = [232, 1], strides = [1, 1]} : vector<232x2xf32> to vector<232x1xf32>
    %cst_12 = arith.constant 9.99999974E-6 : f32
    %27 = vector.broadcast %cst_12 : f32 to vector<232x1xf32>
    %28 = arith.addf %23, %27 : vector<232x1xf32>
    %29 = math.rsqrt %28 : vector<232x1xf32>
    %30 = arith.mulf %25, %29 : vector<232x1xf32>
    %31 = arith.mulf %19, %30 : vector<232x1xf32>
    %32 = arith.subf %26, %31 : vector<232x1xf32>
    %c0_13 = arith.constant 0 : index
    %c0_14 = arith.constant 0 : index
    %33 = vector.load %arg5[%c0_13, %c0_14] : memref<232x784xf32, #tpu.memory_space<vmem>>, vector<232x784xf32>
    %34 = vector.broadcast %30 : vector<232x1xf32> to vector<232x784xf32>
    %35 = arith.mulf %12, %34 : vector<232x784xf32>
    %36 = arith.addf %33, %35 : vector<232x784xf32>
    %37 = vector.broadcast %32 : vector<232x1xf32> to vector<232x784xf32>
    %38 = arith.addf %36, %37 : vector<232x784xf32>
    %cst_15 = arith.constant 0.000000e+00 : f32
    %39 = vector.broadcast %cst_15 : f32 to vector<232x784xf32>
    %40 = arith.maximumf %38, %39 : vector<232x784xf32>
    %c0_16 = arith.constant 0 : index
    %c0_17 = arith.constant 0 : index
    %41 = vector.load %arg6[%c0_16, %c0_17] : memref<232x784xf32, #tpu.memory_space<vmem>>, vector<232x784xf32>
    tpu.vector_store %arg6[%c0_16, %c0_17], %40 {strides = array<i32>} : memref<232x784xf32, #tpu.memory_space<vmem>>, vector<232x784xf32>,
    return
  }
  func.func @transform_0(%arg0: i32) -> (i32, i32) {
    %c0_i32 = arith.constant 0 : i32
    %c0_i32_0 = arith.constant 0 : i32
    %c0_i32_1 = arith.constant 0 : i32
    return %c0_i32, %c0_i32_0 : i32, i32
  }
  func.func @transform_1(%arg0: i32) -> (i32, i32) {
    %c0_i32 = arith.constant 0 : i32
    %c0_i32_0 = arith.constant 0 : i32
    %c0_i32_1 = arith.constant 0 : i32
    return %c0_i32, %c0_i32_0 : i32, i32
  }
  func.func @transform_2(%arg0: i32) -> (i32, i32) {
    %c0_i32 = arith.constant 0 : i32
    %c0_i32_0 = arith.constant 0 : i32
    return %arg0, %c0_i32 : i32, i32
  }
  func.func @transform_3(%arg0: i32) -> (i32, i32) {
    %c0_i32 = arith.constant 0 : i32
    %c0_i32_0 = arith.constant 0 : i32
    return %arg0, %c0_i32 : i32, i32
  }
  func.func @transform_4(%arg0: i32) -> (i32, i32) {
    %c0_i32 = arith.constant 0 : i32
    %c0_i32_0 = arith.constant 0 : i32
    return %arg0, %c0_i32 : i32, i32
  }
  func.func @transform_5(%arg0: i32) -> (i32, i32) {
    %c0_i32 = arith.constant 0 : i32
    %c0_i32_0 = arith.constant 0 : i32
    return %arg0, %c0_i32 : i32, i32
  }
}

</mosaic_0001>

<bundles_post_ra>
// kernel: tpu_custom_call.1
= control target key start
LH: loop header
LB: loop body
LE: loop exit
PB: predicated region body
PF: predicated region fallthrough
CT: control target
= control target key end

     0   :  { %s6960_s18 = smov 0   ;;  %s13743_s0 = inlined_call_operand.vmem [shape: f32[1,696], index: 0, kind: input, shape index: {}]   ;;  %s13744_s1 = inlined_call_operand.vmem [shape: f32[696,784], index: 1, kind: input, shape index: {}]   ;;  %s13745_s2 = inlined_call_operand.vmem [shape: f32[696,696], index: 2, kind: input, shape index: {}]   ;;  %s13746_s3 = inlined_call_operand.vmem [shape: f32[696,2], index: 3, kind: input, shape index: {}]   ;;  %s13747_s4 = inlined_call_operand.vmem [shape: f32[696,784], index: 4, kind: input, shape index: {}]   ;;  %s13748_s5 = inlined_call_operand.vmem [shape: f32[696,784], index: 5, kind: output, shape index: {}]  }
   0x1 LB: > { %s6549_s19 = sadd.s32 4294967295, %s6925_s18   ;;  %p6553_p0 = scmp.ge.s32.totalorder %s6925_s18, 1  ;;  %s6925_s18 = sphi %s6960_s18, %s15_s18  }
   0x2   : > { %p212_p1 = scmp.lt.s32.totalorder %s6925_s18, 4 }
   0x4   : > { %p213_p2 = pnand %p6553_p0, %p212_p1 }
   0x6   : > { %216 = sbr.rel (%p213_p2) target bundleno = 1470 (0x5be), region = 40 }
   0xb   : > { %v856_v0 = vld [vmem:[%s13744_s1 + $0x318] sm:$0xff]  ;;  %v863_v1 = vld [vmem:[%s13744_s1 + $0x350] sm:$0xff]  ;;  %v862_v6 = vld [vmem:[%s13744_s1 + $0x348] sm:$0xff]  ;;  %s7330_s30 = smul.u32 29, %s6549_s19  ;;  %vm1720_vm0 = vcmask 1043456   ;;  %vm1674_vm1 = vcmask 457728  }
   0xc   : > { %v1080_v2 = vld [vmem:[%s13744_s1 + $0xa18] sm:$0xff]  ;;  %v1416_v3 = vpack.c.bf16 %v863_v1, %v856_v0  ;;  %v1087_v4 = vld [vmem:[%s13744_s1 + $0xa50] sm:$0xff]  ;;  %v1086_v10 = vld [vmem:[%s13744_s1 + $0xa48] sm:$0xff]  ;;  %vm3832_vm2 = vcmask 130048   ;;  %s6928_s25 = smov 1  }
   0xd   : > { %v855_v5 = vld [vmem:[%s13744_s1 + $0x310] sm:$0xff]  ;;  %v1528_v7 = vpack.c.bf16 %v1087_v4, %v1080_v2  ;;  %v842_v11 = vld [vmem:[%s13744_s1 + $0x2a8] sm:$0xff]  ;;  %v849_v13 = vld [vmem:[%s13744_s1 + $0x2e0] sm:$0xff]  ;;  %p254_p3 = scmp.lt.s32.totalorder %s7330_s30, 86 }
   0xe   : > { %v1415_v8 = vpack.c.bf16 %v862_v6, %v855_v5  ;;  %v1079_v9 = vld [vmem:[%s13744_s1 + $0xa10] sm:$0xff]  ;;  %1742 = vmatprep.subr.bf16.mxu0 %v1416_v3  ;;  %v1066_v14 = vld [vmem:[%s13744_s1 + $0x9a8] sm:$0xff]  ;;  %v1073_v15 = vld [vmem:[%s13744_s1 + $0x9e0] sm:$0xff]  ;;  %v1409_v16 = vpack.c.bf16 %v849_v13, %v842_v11 }
   0xf   : > { %v1527_v12 = vpack.c.bf16 %v1086_v10, %v1079_v9  ;;  %1923 = vmatprep.subr.bf16.mxu1 %v1528_v7  ;;  %v1521_v17 = vpack.c.bf16 %v1073_v15, %v1066_v14  ;;  %v841_v18 = vld [vmem:[%s13744_s1 + $0x2a0] sm:$0xff]  ;;  %v848_v19 = vld [vmem:[%s13744_s1 + $0x2d8] sm:$0xff]  ;;  %v835_v24 = vld [vmem:[%s13744_s1 + $0x270] sm:$0xff]  ;;  %s15666_s30 = smov (!%p254_p3, %s7330_s30), 86 }
  0x10   : > { %1743 = vmatpush1.bf16.msra.mxu0 %v1415_v8  ;;  %v1065_v20 = vld [vmem:[%s13744_s1 + $0x9a0] sm:$0xff]  ;;  %v1408_v21 = vpack.c.bf16 %v848_v19, %v841_v18  ;;  %v1072_v22 = vld [vmem:[%s13744_s1 + $0x9d8] sm:$0xff]  ;;  %v1059_v28 = vld [vmem:[%s13744_s1 + $0x970] sm:$0xff]  ;;  %s6836_s9 = smul.u32 48, %s15666_s30  ;;  %s6555_s21 = sshll.u32 %s15666_s30, 3 }
  0x11   : > { %1924 = vmatpush1.bf16.msra.mxu1 %v1527_v12  ;;  %v828_v23 = vld [vmem:[%s13744_s1 + $0x238] sm:$0xff]  ;;  %1744 = vmatprep.subr.bf16.mxu0 %v1409_v16  ;;  %v1520_v25 = vpack.c.bf16 %v1072_v22, %v1065_v20  ;;  %v827_v29 = vld [vmem:[%s13744_s1 + $0x230] sm:$0xff]  ;;  %v834_v31 = vld [vmem:[%s13744_s1 + $0x268] sm:$0xff]  ;;  %s11860_s24 = scalar_lea.vmem %s13746_s3, %s6555_s21  ;;  %s6837_s26 = smul.u32 56, %s15666_s30 }
  0x12   : > { %1925 = vmatprep.subr.bf16.mxu1 %v1521_v17  ;;  %v1402_v26 = vpack.c.bf16 %v835_v24, %v828_v23  ;;  %v1052_v27 = vld [vmem:[%s13744_s1 + $0x938] sm:$0xff]  ;;  %v1051_v32 = vld [vmem:[%s13744_s1 + $0x930] sm:$0xff]  ;;  %v1058_v33 = vld [vmem:[%s13744_s1 + $0x968] sm:$0xff]  ;;  %v1401_v34 = vpack.c.bf16 %v834_v31, %v827_v29  ;;  %s7381_s12 = scalar_lea.vmem %s13745_s2, %s6836_s9 }
  0x13   : > { %v1514_v30 = vpack.c.bf16 %v1059_v28, %v1052_v27  ;;  %v814_v35 = vld [vmem:[%s13744_s1 + $0x1c8] sm:$0xff]  ;;  %v821_v36 = vld [vmem:[%s13744_s1 + $0x200] sm:$0xff]  ;;  %v1513_v38 = vpack.c.bf16 %v1058_v33, %v1051_v32  ;;  %v820_v42 = vld [vmem:[%s13744_s1 + $0x1f8] sm:$0xff]  ;;  %s12143_s29 = scalar_lea.vmem %s13747_s4, %s6837_s26  ;;  %s12962_s8 = scalar_lea.vmem %s13748_s5, %s6837_s26 }
  0x14   : > { %1745 = vmatpush1.bf16.msra.mxu0 %v1408_v21  ;;  %v1038_v37 = vld [vmem:[%s13744_s1 + $0x8c8] sm:$0xff]  ;;  %v1395_v39 = vpack.c.bf16 %v821_v36, %v814_v35  ;;  %v1045_v40 = vld [vmem:[%s13744_s1 + $0x900] sm:$0xff]  ;;  %v1044_v45 = vld [vmem:[%s13744_s1 + $0x8f8] sm:$0xff] }
  0x15   : > { %1926 = vmatpush1.bf16.msra.mxu1 %v1520_v25  ;;  %1746 = vmatprep.subr.bf16.mxu0 %v1402_v26  ;;  %v813_v41 = vld [vmem:[%s13744_s1 + $0x1c0] sm:$0xff]  ;;  %v1507_v43 = vpack.c.bf16 %v1045_v40, %v1038_v37  ;;  %v800_v46 = vld [vmem:[%s13744_s1 + $0x158] sm:$0xff]  ;;  %v807_v47 = vld [vmem:[%s13744_s1 + $0x190] sm:$0xff] }
  0x16   : > { %1927 = vmatprep.subr.bf16.mxu1 %v1514_v30  ;;  %v1037_v44 = vld [vmem:[%s13744_s1 + $0x8c0] sm:$0xff]  ;;  %v1024_v48 = vld [vmem:[%s13744_s1 + $0x858] sm:$0xff]  ;;  %v1031_v49 = vld [vmem:[%s13744_s1 + $0x890] sm:$0xff]  ;;  %v1394_v50 = vpack.c.bf16 %v820_v42, %v813_v41  ;;  %v1388_v52 = vpack.c.bf16 %v807_v47, %v800_v46 }
  0x17   : > { %v1506_v51 = vpack.c.bf16 %v1044_v45, %v1037_v44  ;;  %v799_v53 = vld [vmem:[%s13744_s1 + $0x150] sm:$0xff]  ;;  %v806_v54 = vld [vmem:[%s13744_s1 + $0x188] sm:$0xff]  ;;  %v1500_v56 = vpack.c.bf16 %v1031_v49, %v1024_v48  ;;  %v793_v59 = vld [vmem:[%s13744_s1 + $0x120] sm:$0xff] }
  0x18   : > { %1747 = vmatpush1.bf16.msra.mxu0 %v1401_v34  ;;  %v1023_v55 = vld [vmem:[%s13744_s1 + $0x850] sm:$0xff]  ;;  %v1030_v57 = vld [vmem:[%s13744_s1 + $0x888] sm:$0xff]  ;;  %v1017_v61 = vld [vmem:[%s13744_s1 + $0x820] sm:$0xff]  ;;  %v1387_v62 = vpack.c.bf16 %v806_v54, %v799_v53 }
  0x19   : > { %1928 = vmatpush1.bf16.msra.mxu1 %v1513_v38  ;;  %1748 = vmatprep.subr.bf16.mxu0 %v1395_v39  ;;  %v786_v58 = vld [vmem:[%s13744_s1 + $0xe8] sm:$0xff]  ;;  %v1499_v63 = vpack.c.bf16 %v1030_v57, %v1023_v55  ;;  %v785_v1 = vld [vmem:[%s13744_s1 + $0xe0] sm:$0xff]  ;;  %v792_v2 = vld [vmem:[%s13744_s1 + $0x118] sm:$0xff] }
  0x1a   : > { %1929 = vmatprep.subr.bf16.mxu1 %v1507_v43  ;;  %v1010_v60 = vld [vmem:[%s13744_s1 + $0x7e8] sm:$0xff]  ;;  %v1381_v0 = vpack.c.bf16 %v793_v59, %v786_v58  ;;  %v1009_v3 = vld [vmem:[%s13744_s1 + $0x7e0] sm:$0xff]  ;;  %v1016_v5 = vld [vmem:[%s13744_s1 + $0x818] sm:$0xff]  ;;  %v1380_v10 = vpack.c.bf16 %v792_v2, %v785_v1 }
  0x1b   : > { %v1493_v4 = vpack.c.bf16 %v1017_v61, %v1010_v60  ;;  %v772_v6 = vld [vmem:[%s13744_s1 + $0x78] sm:$0xff]  ;;  %v779_v7 = vld [vmem:[%s13744_s1 + $0xb0] sm:$0xff]  ;;  %v1492_v11 = vpack.c.bf16 %v1016_v5, %v1009_v3  ;;  %v778_v14 = vld [vmem:[%s13744_s1 + $0xa8] sm:$0xff] }
  0x1c   : > { %1749 = vmatpush1.bf16.msra.mxu0 %v1394_v50  ;;  %v996_v8 = vld [vmem:[%s13744_s1 + $0x778] sm:$0xff]  ;;  %v1003_v9 = vld [vmem:[%s13744_s1 + $0x7b0] sm:$0xff]  ;;  %v1374_v12 = vpack.c.bf16 %v779_v7, %v772_v6  ;;  %v1002_v17 = vld [vmem:[%s13744_s1 + $0x7a8] sm:$0xff] }
  0x1d   : > { %1930 = vmatpush1.bf16.msra.mxu1 %v1506_v51  ;;  %1750 = vmatprep.subr.bf16.mxu0 %v1388_v52  ;;  %v771_v13 = vld [vmem:[%s13744_s1 + $0x70] sm:$0xff]  ;;  %v1486_v16 = vpack.c.bf16 %v1003_v9, %v996_v8  ;;  %v758_v18 = vld [vmem:[%s13744_s1 + $0x8] sm:$0xff]  ;;  %v765_v19 = vld [vmem:[%s13744_s1 + $0x40] sm:$0xff] }
  0x1e   : > { %1931 = vmatprep.subr.bf16.mxu1 %v1500_v56  ;;  %v995_v15 = vld [vmem:[%s13744_s1 + $0x770] sm:$0xff]  ;;  %v982_v20 = vld [vmem:[%s13744_s1 + $0x708] sm:$0xff]  ;;  %v989_v21 = vld [vmem:[%s13744_s1 + $0x740] sm:$0xff]  ;;  %v1373_v22 = vpack.c.bf16 %v778_v14, %v771_v13  ;;  %v1367_v24 = vpack.c.bf16 %v765_v19, %v758_v18 }
  0x1f   : > { %v1485_v23 = vpack.c.bf16 %v1002_v17, %v995_v15  ;;  %v757_v25 = vld [vmem:[%s13744_s1] sm:$0xff]  ;;  %v764_v26 = vld [vmem:[%s13744_s1 + $0x38] sm:$0xff]  ;;  %v1479_v28 = vpack.c.bf16 %v989_v21, %v982_v20  ;;  %v975_v31 = vld [vmem:[%s13744_s1 + $0x6d0] sm:$0xff] }
  0x20   : > { %1751 = vmatpush1.bf16.msra.mxu0 %v1387_v62  ;;  %v981_v27 = vld [vmem:[%s13744_s1 + $0x700] sm:$0xff]  ;;  %v988_v29 = vld [vmem:[%s13744_s1 + $0x738] sm:$0xff]  ;;  %v1199_v33 = vld [vmem:[%s13744_s1 + $0xdd0] sm:$0xff]  ;;  %v1366_v34 = vpack.c.bf16 %v764_v26, %v757_v25 }
  0x21   : > { %1932 = vmatpush1.bf16.msra.mxu1 %v1499_v63  ;;  %1752 = vmatprep.subr.bf16.mxu0 %v1381_v0  ;;  %v968_v30 = vld [vmem:[%s13744_s1 + $0x698] sm:$0xff]  ;;  %v1478_v35 = vpack.c.bf16 %v988_v29, %v981_v27  ;;  %v967_v37 = vld [vmem:[%s13744_s1 + $0x690] sm:$0xff]  ;;  %v974_v38 = vld [vmem:[%s13744_s1 + $0x6c8] sm:$0xff] }
  0x22   : > { %1933 = vmatprep.subr.bf16.mxu1 %v1493_v4  ;;  %v1192_v32 = vld [vmem:[%s13744_s1 + $0xd98] sm:$0xff]  ;;  %v1472_v36 = vpack.c.bf16 %v975_v31, %v968_v30  ;;  %v1191_v39 = vld [vmem:[%s13744_s1 + $0xd90] sm:$0xff]  ;;  %v1198_v41 = vld [vmem:[%s13744_s1 + $0xdc8] sm:$0xff]  ;;  %v1471_v46 = vpack.c.bf16 %v974_v38, %v967_v37 }
  0x23   : > { %v1584_v40 = vpack.c.bf16 %v1199_v33, %v1192_v32  ;;  %v954_v42 = vld [vmem:[%s13744_s1 + $0x628] sm:$0xff]  ;;  %v961_v43 = vld [vmem:[%s13744_s1 + $0x660] sm:$0xff]  ;;  %v1583_v47 = vpack.c.bf16 %v1198_v41, %v1191_v39  ;;  %v960_v50 = vld [vmem:[%s13744_s1 + $0x658] sm:$0xff] }
  0x24   : > { %1753 = vmatpush1.bf16.msra.mxu0 %v1380_v10  ;;  %v1178_v44 = vld [vmem:[%s13744_s1 + $0xd28] sm:$0xff]  ;;  %v1185_v45 = vld [vmem:[%s13744_s1 + $0xd60] sm:$0xff]  ;;  %v1465_v48 = vpack.c.bf16 %v961_v43, %v954_v42  ;;  %v1184_v53 = vld [vmem:[%s13744_s1 + $0xd58] sm:$0xff] }
  0x25   : > { %1934 = vmatpush1.bf16.msra.mxu1 %v1492_v11  ;;  %1754 = vmatprep.subr.bf16.mxu0 %v1374_v12  ;;  %v953_v49 = vld [vmem:[%s13744_s1 + $0x620] sm:$0xff]  ;;  %v1577_v52 = vpack.c.bf16 %v1185_v45, %v1178_v44  ;;  %v940_v54 = vld [vmem:[%s13744_s1 + $0x5b8] sm:$0xff]  ;;  %v947_v55 = vld [vmem:[%s13744_s1 + $0x5f0] sm:$0xff] }
  0x26   : > { %1935 = vmatprep.subr.bf16.mxu1 %v1486_v16  ;;  %v1177_v51 = vld [vmem:[%s13744_s1 + $0xd20] sm:$0xff]  ;;  %v1164_v56 = vld [vmem:[%s13744_s1 + $0xcb8] sm:$0xff]  ;;  %v1171_v57 = vld [vmem:[%s13744_s1 + $0xcf0] sm:$0xff]  ;;  %v1464_v58 = vpack.c.bf16 %v960_v50, %v953_v49  ;;  %v1458_v60 = vpack.c.bf16 %v947_v55, %v940_v54 }
  0x27   : > { %v1576_v59 = vpack.c.bf16 %v1184_v53, %v1177_v51  ;;  %v939_v61 = vld [vmem:[%s13744_s1 + $0x5b0] sm:$0xff]  ;;  %v946_v62 = vld [vmem:[%s13744_s1 + $0x5e8] sm:$0xff]  ;;  %v1570_v0 = vpack.c.bf16 %v1171_v57, %v1164_v56  ;;  %v933_v3 = vld [vmem:[%s13744_s1 + $0x580] sm:$0xff] }
  0x28   : > { %1755 = vmatpush1.bf16.msra.mxu0 %v1373_v22  ;;  %v1163_v63 = vld [vmem:[%s13744_s1 + $0xcb0] sm:$0xff]  ;;  %v1170_v1 = vld [vmem:[%s13744_s1 + $0xce8] sm:$0xff]  ;;  %v1157_v5 = vld [vmem:[%s13744_s1 + $0xc80] sm:$0xff]  ;;  %v1457_v6 = vpack.c.bf16 %v946_v62, %v939_v61 }
  0x29   : > { %1936 = vmatpush1.bf16.msra.mxu1 %v1485_v23  ;;  %1756 = vmatprep.subr.bf16.mxu0 %v1367_v24  ;;  %v926_v2 = vld [vmem:[%s13744_s1 + $0x548] sm:$0xff]  ;;  %v925_v7 = vld [vmem:[%s13744_s1 + $0x540] sm:$0xff]  ;;  %v1569_v8 = vpack.c.bf16 %v1170_v1, %v1163_v63  ;;  %v932_v10 = vld [vmem:[%s13744_s1 + $0x578] sm:$0xff] }
  0x2a   : > { %1937 = vmatprep.subr.bf16.mxu1 %v1479_v28  ;;  %v1150_v4 = vld [vmem:[%s13744_s1 + $0xc48] sm:$0xff]  ;;  %v1451_v9 = vpack.c.bf16 %v933_v3, %v926_v2  ;;  %v1149_v11 = vld [vmem:[%s13744_s1 + $0xc40] sm:$0xff]  ;;  %v1156_v12 = vld [vmem:[%s13744_s1 + $0xc78] sm:$0xff]  ;;  %v1450_v20 = vpack.c.bf16 %v932_v10, %v925_v7 }
  0x2b   : > { %v1563_v13 = vpack.c.bf16 %v1157_v5, %v1150_v4  ;;  %v912_v14 = vld [vmem:[%s13744_s1 + $0x4d8] sm:$0xff]  ;;  %v919_v15 = vld [vmem:[%s13744_s1 + $0x510] sm:$0xff]  ;;  %v281_v16 = vld [vmem:[%s13743_s0] sm:$0x3f]  ;;  %v1562_v21 = vpack.c.bf16 %v1156_v12, %v1149_v11 }
  0x2c   : > { %1757 = vmatpush1.bf16.msra.mxu0 %v1366_v34  ;;  %v1136_v17 = vld [vmem:[%s13744_s1 + $0xbd8] sm:$0xff]  ;;  %v1143_v18 = vld [vmem:[%s13744_s1 + $0xc10] sm:$0xff]  ;;  %v6558_v19 = vmul.f32 -1.442695, %v281_v16  ;;  %v1444_v22 = vpack.c.bf16 %v919_v15, %v912_v14  ;;  %v918_v24 = vld [vmem:[%s13744_s1 + $0x508] sm:$0xff] }
  0x2d   : > { %1938 = vmatpush1.bf16.msra.mxu1 %v1478_v35  ;;  %1758 = vmatprep.subr.bf16.mxu0 %v1472_v36  ;;  %v911_v23 = vld [vmem:[%s13744_s1 + $0x4d0] sm:$0xff]  ;;  %v1556_v26 = vpack.c.bf16 %v1143_v18, %v1136_v17  ;;  %v1142_v27 = vld [vmem:[%s13744_s1 + $0xc08] sm:$0xff]  ;;  %v905_v29 = vld [vmem:[%s13744_s1 + $0x4a0] sm:$0xff] }
  0x2e   : > { %1939 = vmatprep.subr.bf16.mxu1 %v1584_v40  ;;  %v1135_v25 = vld [vmem:[%s13744_s1 + $0xbd0] sm:$0xff]  ;;  %6853 = vpow2.f32 %v6558_v19  ;;  %v898_v28 = vld [vmem:[%s13744_s1 + $0x468] sm:$0xff]  ;;  %v1129_v31 = vld [vmem:[%s13744_s1 + $0xba0] sm:$0xff]  ;;  %v1443_v32 = vpack.c.bf16 %v918_v24, %v911_v23 }
  0x2f   : > { %v1122_v30 = vld [vmem:[%s13744_s1 + $0xb68] sm:$0xff]  ;;  %v1555_v33 = vpack.c.bf16 %v1142_v27, %v1135_v25  ;;  %v1437_v34 = vpack.c.bf16 %v905_v29, %v898_v28  ;;  %v897_v35 = vld [vmem:[%s13744_s1 + $0x460] sm:$0xff]  ;;  %v904_v36 = vld [vmem:[%s13744_s1 + $0x498] sm:$0xff] }
  0x30   : > { %1759 = vmatpush2.bf16.msra.mxu0 %v1471_v46  ;;  %v1121_v37 = vld [vmem:[%s13744_s1 + $0xb60] sm:$0xff]  ;;  %v1549_v38 = vpack.c.bf16 %v1129_v31, %v1122_v30  ;;  %v1128_v39 = vld [vmem:[%s13744_s1 + $0xb98] sm:$0xff]  ;;  %v891_v41 = vld [vmem:[%s13744_s1 + $0x430] sm:$0xff]  ;;  %v1436_v44 = vpack.c.bf16 %v904_v36, %v897_v35 }
  0x31   : > { %1940 = vmatpush2.bf16.msra.mxu1 %v1583_v47  ;;  %1760 = vmatprep.subr.bf16.mxu0 %v1465_v48  ;;  %v884_v40 = vld [vmem:[%s13744_s1 + $0x3f8] sm:$0xff]  ;;  %v1115_v43 = vld [vmem:[%s13744_s1 + $0xb30] sm:$0xff]  ;;  %v1548_v45 = vpack.c.bf16 %v1128_v39, %v1121_v37  ;;  %v890_v48 = vld [vmem:[%s13744_s1 + $0x428] sm:$0xff] }
  0x32   : > { %1941 = vmatprep.subr.bf16.mxu1 %v1577_v52  ;;  %v1108_v42 = vld [vmem:[%s13744_s1 + $0xaf8] sm:$0xff]  ;;  %v1430_v46 = vpack.c.bf16 %v891_v41, %v884_v40  ;;  %v883_v47 = vld [vmem:[%s13744_s1 + $0x3f0] sm:$0xff]  ;;  %v1114_v51 = vld [vmem:[%s13744_s1 + $0xb28] sm:$0xff] }
  0x33   : > { %v1107_v49 = vld [vmem:[%s13744_s1 + $0xaf0] sm:$0xff]  ;;  %v1542_v50 = vpack.c.bf16 %v1115_v43, %v1108_v42  ;;  %v870_v52 = vld [vmem:[%s13744_s1 + $0x388] sm:$0xff]  ;;  %v877_v53 = vld [vmem:[%s13744_s1 + $0x3c0] sm:$0xff]  ;;  %v1429_v56 = vpack.c.bf16 %v890_v48, %v883_v47 }
  0x34   : > { %1761 = vmatpush2.bf16.msra.mxu0 %v1464_v58  ;;  %v1094_v54 = vld [vmem:[%s13744_s1 + $0xa88] sm:$0xff]  ;;  %v1101_v55 = vld [vmem:[%s13744_s1 + $0xac0] sm:$0xff]  ;;  %v1541_v57 = vpack.c.bf16 %v1114_v51, %v1107_v49  ;;  %v1423_v58 = vpack.c.bf16 %v877_v53, %v870_v52  ;;  %v1304_v1 = vld [vmem:[%s13744_s1 + $0x1118] sm:$0xff] }
  0x35   : > { %1942 = vmatpush2.bf16.msra.mxu1 %v1576_v59  ;;  %1762 = vmatprep.subr.bf16.mxu0 %v1458_v60  ;;  %v869_v59 = vld [vmem:[%s13744_s1 + $0x380] sm:$0xff]  ;;  %v876_v60 = vld [vmem:[%s13744_s1 + $0x3b8] sm:$0xff]  ;;  %v1535_v63 = vpack.c.bf16 %v1101_v55, %v1094_v54  ;;  %v1311_v2 = vld [vmem:[%s13744_s1 + $0x1150] sm:$0xff] }
  0x36   : > { %1943 = vmatprep.subr.bf16.mxu1 %v1570_v0  ;;  %v1093_v61 = vld [vmem:[%s13744_s1 + $0xa80] sm:$0xff]  ;;  %v1100_v0 = vld [vmem:[%s13744_s1 + $0xab8] sm:$0xff]  ;;  %v858_v4 = vld [vmem:[%s13744_s1 + $0x328] sm:$0xff] }
  0x37   : > { %v865_v5 = vld [vmem:[%s13744_s1 + $0x360] sm:$0xff]  ;;  %v1534_v7 = vpack.c.bf16 %v1100_v0, %v1093_v61  ;;  %v7391_v14 = vld [vmem:[%s13744_s1 + $0x1148] sm:$0xff]  ;;  %v7401_v19 = vld [vmem:[%s13744_s1 + $0x358] sm:$0xff] }
  0x38   : > { %1763 = vmatpush2.bf16.msra.mxu0 %v1457_v6  ;;  %v1422_v6 = vpack.c.bf16 %v876_v60, %v869_v59  ;;  %v1418_v10 = vpack.c.bf16 %v865_v5, %v858_v4  ;;  %v7396_v15 = vld [vmem:[%s13744_s1 + $0x320] sm:$0xff]  ;;  %v295_v23 = vld [vmem:[%s7381_s12 + $0x38] sm:$0xff]  ;;  %v7433_v29 = vld [vmem:[%s13744_s1 + $0x2f0] sm:$0xff] }
  0x39   : > { %1944 = vmatpush2.bf16.msra.mxu1 %v1569_v8  ;;  %1764 = vmatprep.subr.bf16.mxu0 %v1451_v9  ;;  %v1640_v8 = vpack.c.bf16 %v1311_v2, %v1304_v1  ;;  %v463_v9 = vlaneseq  ;;  %v7418_v24 = vld [vmem:[%s13744_s1 + $0x10a0] sm:$0xff]  ;;  %v7423_v27 = vld [vmem:[%s13744_s1 + $0x10d8] sm:$0xff]  ;;  %v1417_v35 = vpack.c.bf16 %v7401_v19, %v7396_v15  ;;  %v294_v39 = vld [vmem:[%s7381_s12 + $0x30] sm:$0xff] }
  0x3a   : > { %1945 = vmatprep.subr.bf16.mxu1 %v1563_v13  ;;  %v7386_v13 = vld [vmem:[%s13744_s1 + $0x1110] sm:$0xff]  ;;  %v7428_v28 = vld [vmem:[%s13744_s1 + $0x2b8] sm:$0xff]  ;;  %v296_v42 = vld [vmem:[%s7381_s12 + $0x40] sm:$0xff] }
  0x3b   : > { %v6854_v62 = vpop.eup %6853  ;;  %v464_v11 = vshrl.u32 %v463_v9, 7  ;;  %v291_v31 = vld [vmem:[%s7381_s12 + $0x18] sm:$0xff]  ;;  %v290_v41 = vld [vmem:[%s7381_s12 + $0x10] sm:$0xff]  ;;  %v1411_v47 = vpack.c.bf16 %v7433_v29, %v7428_v28  ;;  %v309_v55 = vld [vmem:[%s7381_s12 + $0xa8] sm:$0xff] }
  0x3c   : > { %1765 = vmatpush2.bf16.msra.mxu0 %v1450_v20  ;;  %v285_v3 = vadd.f32 1.0, %v6854_v62  ;;  %v7406_v20 = vld [vmem:[%s13744_s1 + $0x10a8] sm:$0xff]  ;;  %v303_v54 = vld [vmem:[%s7381_s12 + $0x78] sm:$0xff]  ;;  %v300_v60 = vld [vmem:[%s7381_s12 + $0x60] sm:$0xff] }
  0x3d   : > { %1946 = vmatpush2.bf16.msra.mxu1 %v1562_v21  ;;  %1766 = vmatprep.subr.bf16.mxu0 %v1444_v22  ;;  %v469_v12 = vsub.s32 1, %v464_v11  ;;  %v477_v16 = vsub.s32 3, %v464_v11  ;;  %v465_v17 = vsub.s32 0, %v464_v11  ;;  %v473_v18 = vsub.s32 2, %v464_v11  ;;  %v7411_v21 = vld [vmem:[%s13744_s1 + $0x10e0] sm:$0xff]  ;;  %v289_v22 = vld [vmem:[%s7381_s12 + $0x8] sm:$0xff] }
  0x3e   : > { %1947 = vmatprep.subr.bf16.mxu1 %v1556_v26  ;;  %6855 = vrcp.f32 %v285_v3  ;;  %v485_v25 = vsub.s32 5, %v464_v11  ;;  %v481_v26 = vsub.s32 4, %v464_v11  ;;  %v1633_v36 = vpack.c.bf16 %v7411_v21, %v7406_v20  ;;  %v306_v61 = vld [vmem:[%s7381_s12 + $0x90] sm:$0xff]  ;;  %v308_v3 = vld [vmem:[%s7381_s12 + $0xa0] sm:$0xff]  ;;  %v313_v4 = vld [vmem:[%s7381_s12 + $0xc8] sm:$0xff] }
  0x3f   : > { %v302_v62 = vld [vmem:[%s7381_s12 + $0x70] sm:$0xff]  ;;  %v319_v5 = vld [vmem:[%s7381_s12 + $0xf8] sm:$0xff] }
  0x40   : > { %1767 = vmatpush2.bf16.msra.mxu0 %v1443_v32  ;;  %v297_v32 = vld [vmem:[%s7381_s12 + $0x48] sm:$0xff]  ;;  %v843_v11 = vld [vmem:[%s13744_s1 + $0x2b0] sm:$0xff]  ;;  %v816_v20 = vld [vmem:[%s13744_s1 + $0x1d8] sm:$0xff] }
  0x41   : > { %1948 = vmatpush2.bf16.msra.mxu1 %v1555_v33  ;;  %1768 = vmatprep.subr.bf16.mxu0 %v1437_v34  ;;  %v288_v33 = vld [vmem:[%s7381_s12] sm:$0xff]  ;;  %v1639_v34 = vpack.c.bf16 %v7391_v14, %v7386_v13 }
  0x42   : > { %1949 = vmatprep.subr.bf16.mxu1 %v1549_v38 }
  0x44   : > { %1769 = vmatpush2.bf16.msra.mxu0 %v1436_v44  ;;  %v301_v44 = vld [vmem:[%s7381_s12 + $0x68] sm:$0xff] }
  0x45   : > { %1950 = vmatpush2.bf16.msra.mxu1 %v1548_v45  ;;  %1770 = vmatprep.subr.bf16.mxu0 %v1430_v46  ;;  %v307_v45 = vld [vmem:[%s7381_s12 + $0x98] sm:$0xff]  ;;  %v1632_v46 = vpack.c.bf16 %v7423_v27, %v7418_v24  ;;  %v822_v24 = vld [vmem:[%s13744_s1 + $0x208] sm:$0xff] }
  0x46   : > { %1951 = vmatprep.subr.bf16.mxu1 %v1542_v50 }
  0x48   : > { %1771 = vmatpush2.bf16.msra.mxu0 %v1429_v56 }
  0x49   : > { %1952 = vmatpush2.bf16.msra.mxu1 %v1541_v57  ;;  %1772 = vmatprep.subr.bf16.mxu0 %v1423_v58 }
  0x4a   : > { %1953 = vmatprep.subr.bf16.mxu1 %v1535_v63 }
  0x4b   : > { %v6856_v30 = vpop.eup %6855 }
  0x4c   : > { %1773 = vmatpush2.bf16.msra.mxu0 %v1422_v6  ;;  %v7444_v37 = vrot.slane %v6856_v30, %v469_v12  ;;  %v7446_v38 = vrot.slane %v6856_v30, %v477_v16  ;;  %v7449_v40 = vrot.slane %v6856_v30, %v465_v17  ;;  %v7453_v43 = vrot.slane %v6856_v30, %v473_v18  ;;  %v850_v12 = vld [vmem:[%s13744_s1 + $0x2e8] sm:$0xff]  ;;  %v1276_v17 = vld [vmem:[%s13744_s1 + $0x1038] sm:$0xff]  ;;  %v1283_v18 = vld [vmem:[%s13744_s1 + $0x1070] sm:$0xff] }
  0x4d   : > { %1954 = vmatpush2.bf16.msra.mxu1 %v1534_v7  ;;  %2104 = vmatprep.subr.bf16.mxu0 %v1640_v8  ;;  %v7461_v48 = vrot.slane %v6856_v30, %v485_v25  ;;  %v7463_v49 = vrot.slane %v6856_v30, %v481_v26  ;;  %v321_v16 = vld [vmem:[%s7381_s12 + $0x108] sm:$0xff]  ;;  %v837_v26 = vld [vmem:[%s13744_s1 + $0x280] sm:$0xff]  ;;  %v1410_v30 = vpack.c.bf16 %v850_v12, %v843_v11  ;;  %v1248_v12 = vld [vmem:[%s13744_s1 + $0xf58] sm:$0xff] }
  0x4e   : > { %2285 = vmatprep.subr.bf16.mxu1 %v1418_v10  ;;  %v494_v50 = vmul.f32 %v7444_v37, %v289_v22  ;;  %v500_v51 = vmul.f32 %v7444_v37, %v295_v23  ;;  %v496_v52 = vmul.f32 %v7446_v38, %v291_v31  ;;  %v502_v53 = vmul.f32 %v7446_v38, %v297_v32  ;;  %v315_v10 = vld [vmem:[%s7381_s12 + $0xd8] sm:$0xff]  ;;  %v830_v25 = vld [vmem:[%s13744_s1 + $0x248] sm:$0xff]  ;;  %v809_v11 = vld [vmem:[%s13744_s1 + $0x1a0] sm:$0xff] }
  0x4f   : > { %v493_v56 = vmul.f32 %v7449_v40, %v288_v33  ;;  %v499_v57 = vmul.f32 %v7449_v40, %v294_v39  ;;  %v495_v58 = vmul.f32 %v7453_v43, %v290_v41  ;;  %v501_v59 = vmul.f32 %v7453_v43, %v296_v42  ;;  %v312_v33 = vld [vmem:[%s7381_s12 + $0xc0] sm:$0xff]  ;;  %v318_v39 = vld [vmem:[%s7381_s12 + $0xf0] sm:$0xff]  ;;  %v1282_v42 = vld [vmem:[%s13744_s1 + $0x1068] sm:$0xff] }
  0x50   : > { %v7478_v63 = vpack.c.bf16 %v500_v51, %v494_v50  ;;  %v7480_v0 = vpack.c.bf16 %v502_v53, %v496_v52  ;;  %v506_v1 = vmul.f32 %v7444_v37, %v301_v44  ;;  %v512_v2 = vmul.f32 %v7444_v37, %v307_v45  ;;  %v320_v44 = vld [vmem:[%s7381_s12 + $0x100] sm:$0xff]  ;;  %v836_v51 = vld [vmem:[%s13744_s1 + $0x278] sm:$0xff]  ;;  %v1262_v52 = vld [vmem:[%s13744_s1 + $0xfc8] sm:$0xff] }
  0x51   : > { %v7487_v6 = vpack.c.bf16 %v499_v57, %v493_v56  ;;  %v7489_v7 = vpack.c.bf16 %v501_v59, %v495_v58  ;;  %v508_v8 = vmul.f32 %v7446_v38, %v303_v54  ;;  %v514_v9 = vmul.f32 %v7446_v38, %v309_v55  ;;  %v829_v50 = vld [vmem:[%s13744_s1 + $0x240] sm:$0xff]  ;;  %v325_v56 = vld [vmem:[%s7381_s12 + $0x128] sm:$0xff]  ;;  %v331_v57 = vld [vmem:[%s7381_s12 + $0x158] sm:$0xff] }
  0x52   : > { %14309 = vst [vmem:[#allocation2_spill] sm:$0xff] %v7478_v63  ;;  %14310 = vst [vmem:[#allocation3_spill] sm:$0xff] %v7480_v0  ;;  %1774 = vmatprep.mubr.bf16.mxu0 %v7478_v63  ;;  %1955 = vmatprep.mubr.bf16.mxu1 %v7480_v0  ;;  %v7502_v13 = vpack.c.bf16 %v512_v2, %v506_v1  ;;  %v505_v14 = vmul.f32 %v7449_v40, %v300_v60  ;;  %v1269_v53 = vld [vmem:[%s13744_s1 + $0x1000] sm:$0xff]  ;;  %v327_v58 = vld [vmem:[%s7381_s12 + $0x138] sm:$0xff] }
  0x53   : > { %14311 = vst [vmem:[#allocation4_spill] sm:$0xff] %v7487_v6  ;;  %14312 = vst [vmem:[#allocation5_spill] sm:$0xff] %v7489_v7  ;;  %v511_v15 = vmul.f32 %v7449_v40, %v306_v61  ;;  %1775 = vmatmul.mubr.bf16.vlgmr.msra.gmra.mxu0 %v7487_v6  ;;  %1956 = vmatmul.mubr.bf16.vlgmr.msra.gmra.mxu1 %v7489_v7  ;;  %v7515_v19 = vpack.c.bf16 %v514_v9, %v508_v8  ;;  %v333_v61 = vld [vmem:[%s7381_s12 + $0x168] sm:$0xff] }
  0x54   : > { %14313 = vst [vmem:[#allocation6_spill] sm:$0xff] %v7502_v13  ;;  %v507_v22 = vmul.f32 %v7453_v43, %v302_v62  ;;  %v513_v23 = vmul.f32 %v7453_v43, %v308_v3  ;;  %2105 = vmatpush1.bf16.msra.mxu0 %v1639_v34  ;;  %1784 = vmatprep.mubr.bf16.mxu0 %v7502_v13  ;;  %v1275_v34 = vld [vmem:[%s13744_s1 + $0x1030] sm:$0xff]  ;;  %v1261_v3 = vld [vmem:[%s13744_s1 + $0xfc0] sm:$0xff] }
  0x55   : > { %14314 = vst [vmem:[#allocation7_spill] sm:$0xff] %v7515_v19  ;;  %v518_v28 = vmul.f32 %v7444_v37, %v313_v4  ;;  %v524_v29 = vmul.f32 %v7444_v37, %v319_v5  ;;  %1965 = vmatprep.mubr.bf16.mxu1 %v7515_v19  ;;  %2286 = vmatpush1.bf16.msra.mxu1 %v1417_v35  ;;  %v314_v35 = vld [vmem:[%s7381_s12 + $0xd0] sm:$0xff]  ;;  %v1268_v4 = vld [vmem:[%s13744_s1 + $0xff8] sm:$0xff]  ;;  %v802_v5 = vld [vmem:[%s13744_s1 + $0x168] sm:$0xff] }
  0x56   : > { %v520_v31 = vmul.f32 %v7446_v38, %v315_v10  ;;  %v526_v32 = vmul.f32 %v7446_v38, %v321_v16  ;;  %v1626_v41 = vpack.c.bf16 %v1283_v18, %v1276_v17  ;;  %2106 = vmatprep.subr.bf16.mxu0 %v1633_v36  ;;  %2287 = vmatprep.subr.bf16.mxu1 %v1411_v47  ;;  %v823_v47 = vld [vmem:[%s13744_s1 + $0x210] sm:$0xff]  ;;  %v324_v18 = vld [vmem:[%s7381_s12 + $0x120] sm:$0xff] }
  0x57   : > { %v1404_v45 = vpack.c.bf16 %v837_v26, %v830_v25  ;;  %v7553_v21 = vpack.c.bf16 %v511_v15, %v505_v14  ;;  %v7555_v36 = vpack.c.bf16 %v513_v23, %v507_v22  ;;  %v7569_v54 = vpack.c.bf16 %v524_v29, %v518_v28  ;;  %v815_v62 = vld [vmem:[%s13744_s1 + $0x1d0] sm:$0xff]  ;;  %v801_v25 = vld [vmem:[%s13744_s1 + $0x160] sm:$0xff]  ;;  %v808_v28 = vld [vmem:[%s13744_s1 + $0x198] sm:$0xff] }
  0x58   : > { %2107 = vmatpush1.bf16.msra.mxu0 %v1632_v46  ;;  %v7571_v55 = vpack.c.bf16 %v526_v32, %v520_v31  ;;  %v1625_v59 = vpack.c.bf16 %v1282_v42, %v1275_v34  ;;  %v1403_v60 = vpack.c.bf16 %v836_v51, %v829_v50  ;;  %v517_v27 = vmul.f32 %v7449_v40, %v312_v33  ;;  %v1255_v14 = vld [vmem:[%s13744_s1 + $0xf90] sm:$0xff]  ;;  %v1254_v31 = vld [vmem:[%s13744_s1 + $0xf88] sm:$0xff]  ;;  %v343_v51 = vld [vmem:[%s7381_s12 + $0x1b8] sm:$0xff] }
  0x59   : > { %14315 = vst [vmem:[#allocation8_spill] sm:$0xff] %v7553_v21  ;;  %14316 = vst [vmem:[#allocation9_spill] sm:$0xff] %v7555_v36  ;;  %2288 = vmatpush1.bf16.msra.mxu1 %v1410_v30  ;;  %2108 = vmatprep.subr.bf16.mxu0 %v1626_v41  ;;  %v523_v46 = vmul.f32 %v7449_v40, %v318_v39  ;;  %v1397_v1 = vpack.c.bf16 %v823_v47, %v816_v20  ;;  %v1247_v30 = vld [vmem:[%s13744_s1 + $0xf50] sm:$0xff]  ;;  %v788_v41 = vld [vmem:[%s13744_s1 + $0xf8] sm:$0xff] }
  0x5a   : > { %14317 = vst [vmem:[#allocation10_spill] sm:$0xff] %v7569_v54  ;;  %14318 = vst [vmem:[#allocation11_spill] sm:$0xff] %v7571_v55  ;;  %2289 = vmatprep.subr.bf16.mxu1 %v1404_v45  ;;  %v1619_v2 = vpack.c.bf16 %v1269_v53, %v1262_v52  ;;  %v519_v8 = vmul.f32 %v7453_v43, %v314_v35  ;;  %v525_v9 = vmul.f32 %v7453_v43, %v320_v44  ;;  %v330_v39 = vld [vmem:[%s7381_s12 + $0x150] sm:$0xff]  ;;  %v332_v45 = vld [vmem:[%s7381_s12 + $0x160] sm:$0xff] }
  0x5b   : > { %1785 = vmatmul.mubr.bf16.gmra.mxu0 %v7553_v21  ;;  %1966 = vmatmul.mubr.bf16.gmra.mxu1 %v7555_v36  ;;  %v530_v10 = vmul.f32 %v7444_v37, %v325_v56  ;;  %v536_v15 = vmul.f32 %v7444_v37, %v331_v57  ;;  %v532_v16 = vmul.f32 %v7446_v38, %v327_v58  ;;  %v795_v34 = vld [vmem:[%s13744_s1 + $0x130] sm:$0xff]  ;;  %v337_v50 = vld [vmem:[%s7381_s12 + $0x188] sm:$0xff]  ;;  %v339_v20 = vld [vmem:[%s7381_s12 + $0x198] sm:$0xff] }
  0x5c   : > { %1794 = vmatprep.mubr.bf16.mxu0 %v7569_v54  ;;  %1975 = vmatprep.mubr.bf16.mxu1 %v7571_v55  ;;  %v538_v17 = vmul.f32 %v7446_v38, %v333_v61  ;;  %v1396_v22 = vpack.c.bf16 %v822_v24, %v815_v62  ;;  %v1618_v23 = vpack.c.bf16 %v1268_v4, %v1261_v3  ;;  %v326_v44 = vld [vmem:[%s7381_s12 + $0x130] sm:$0xff]  ;;  %v345_v47 = vld [vmem:[%s7381_s12 + $0x1c8] sm:$0xff] }
  0x5d   : > { %2109 = vmatpush1.bf16.msra.mxu0 %v1625_v59  ;;  %2290 = vmatpush1.bf16.msra.mxu1 %v1403_v60  ;;  %v1390_v26 = vpack.c.bf16 %v809_v11, %v802_v5  ;;  %v1612_v29 = vpack.c.bf16 %v1255_v14, %v1248_v12  ;;  %v7626_v32 = vpack.c.bf16 %v523_v46, %v517_v27  ;;  %v787_v59 = vld [vmem:[%s13744_s1 + $0xf0] sm:$0xff]  ;;  %v794_v60 = vld [vmem:[%s13744_s1 + $0x128] sm:$0xff]  ;;  %v1241_v46 = vld [vmem:[%s13744_s1 + $0xf20] sm:$0xff] }
  0x5e   : > { %2291 = vmatprep.subr.bf16.mxu1 %v1397_v1  ;;  %2110 = vmatprep.subr.bf16.mxu0 %v1619_v2  ;;  %v7628_v33 = vpack.c.bf16 %v525_v9, %v519_v8  ;;  %v7637_v42 = vpack.c.bf16 %v536_v15, %v530_v10  ;;  %v7639_v35 = vpack.c.bf16 %v538_v17, %v532_v16  ;;  %v1234_v61 = vld [vmem:[%s13744_s1 + $0xee8] sm:$0xff]  ;;  %v1233_v1 = vld [vmem:[%s13744_s1 + $0xee0] sm:$0xff]  ;;  %v1240_v2 = vld [vmem:[%s13744_s1 + $0xf18] sm:$0xff] }
  0x5f   : > { %14319 = vst [vmem:[#allocation12_spill] sm:$0xff] %v7626_v32  ;;  %v1389_v52 = vpack.c.bf16 %v808_v28, %v801_v25  ;;  %v1611_v53 = vpack.c.bf16 %v1254_v31, %v1247_v30  ;;  %v529_v56 = vmul.f32 %v7449_v40, %v324_v18  ;;  %v535_v57 = vmul.f32 %v7449_v40, %v330_v39  ;;  %v774_v8 = vld [vmem:[%s13744_s1 + $0x88] sm:$0xff]  ;;  %v781_v9 = vld [vmem:[%s13744_s1 + $0xc0] sm:$0xff]  ;;  %v342_v11 = vld [vmem:[%s7381_s12 + $0x1b0] sm:$0xff] }
  0x60   : > { %14320 = vst [vmem:[#allocation13_spill] sm:$0xff] %v7628_v33  ;;  %14321 = vst [vmem:[#allocation14_spill] sm:$0xff] %v7637_v42  ;;  %v1383_v58 = vpack.c.bf16 %v795_v34, %v788_v41  ;;  %v531_v62 = vmul.f32 %v7453_v43, %v326_v44  ;;  %v537_v24 = vmul.f32 %v7453_v43, %v332_v45  ;;  %v336_v10 = vld [vmem:[%s7381_s12 + $0x180] sm:$0xff]  ;;  %v338_v12 = vld [vmem:[%s7381_s12 + $0x190] sm:$0xff] }
  0x61   : > { %14322 = vst [vmem:[#allocation15_spill] sm:$0xff] %v7639_v35  ;;  %2292 = vmatpush1.bf16.msra.mxu1 %v1396_v22  ;;  %2111 = vmatpush1.bf16.msra.mxu0 %v1618_v23  ;;  %v542_v27 = vmul.f32 %v7444_v37, %v337_v50  ;;  %v548_v3 = vmul.f32 %v7444_v37, %v343_v51  ;;  %v344_v15 = vld [vmem:[%s7381_s12 + $0x1c0] sm:$0xff]  ;;  %v780_v22 = vld [vmem:[%s13744_s1 + $0xb8] sm:$0xff]  ;;  %v1227_v31 = vld [vmem:[%s13744_s1 + $0xeb0] sm:$0xff] }
  0x62   : > { %2293 = vmatprep.subr.bf16.mxu1 %v1390_v26  ;;  %2112 = vmatprep.subr.bf16.mxu0 %v1612_v29  ;;  %v544_v4 = vmul.f32 %v7446_v38, %v339_v20  ;;  %v550_v5 = vmul.f32 %v7446_v38, %v345_v47  ;;  %v1382_v14 = vpack.c.bf16 %v794_v60, %v787_v59  ;;  %v773_v18 = vld [vmem:[%s13744_s1 + $0x80] sm:$0xff]  ;;  %v760_v23 = vld [vmem:[%s13744_s1 + $0x18] sm:$0xff]  ;;  %v767_v29 = vld [vmem:[%s13744_s1 + $0x50] sm:$0xff] }
  0x63   : > { %1795 = vmatmul.mubr.bf16.gmra.mxu0 %v7626_v32  ;;  %1976 = vmatmul.mubr.bf16.gmra.mxu1 %v7628_v33  ;;  %v1605_v16 = vpack.c.bf16 %v1241_v46, %v1234_v61  ;;  %v1604_v17 = vpack.c.bf16 %v1240_v2, %v1233_v1  ;;  %v7696_v25 = vpack.c.bf16 %v535_v57, %v529_v56  ;;  %v1220_v30 = vld [vmem:[%s13744_s1 + $0xe78] sm:$0xff]  ;;  %v349_v34 = vld [vmem:[%s7381_s12 + $0x1e8] sm:$0xff]  ;;  %v1219_v47 = vld [vmem:[%s13744_s1 + $0xe70] sm:$0xff] }
  0x64   : > { %1804 = vmatprep.mubr.bf16.mxu0 %v7637_v42  ;;  %1985 = vmatprep.mubr.bf16.mxu1 %v7639_v35  ;;  %v7698_v26 = vpack.c.bf16 %v537_v24, %v531_v62  ;;  %v1376_v28 = vpack.c.bf16 %v781_v9, %v774_v8  ;;  %v7709_v39 = vpack.c.bf16 %v548_v3, %v542_v27  ;;  %v355_v44 = vld [vmem:[%s7381_s12 + $0x218] sm:$0xff]  ;;  %v357_v51 = vld [vmem:[%s7381_s12 + $0x228] sm:$0xff]  ;;  %v759_v59 = vld [vmem:[%s13744_s1 + $0x10] sm:$0xff] }
  0x65   : > { %2294 = vmatpush1.bf16.msra.mxu1 %v1389_v52  ;;  %2113 = vmatpush1.bf16.msra.mxu0 %v1611_v53  ;;  %14323 = vst [vmem:[#allocation16_spill] sm:$0xff] %v7696_v25  ;;  %v7711_v41 = vpack.c.bf16 %v550_v5, %v544_v4  ;;  %v351_v45 = vld [vmem:[%s7381_s12 + $0x1f8] sm:$0xff]  ;;  %v541_v50 = vmul.f32 %v7449_v40, %v336_v10  ;;  %v1226_v52 = vld [vmem:[%s13744_s1 + $0xea8] sm:$0xff]  ;;  %v977_v3 = vld [vmem:[%s13744_s1 + $0x6e0] sm:$0xff] }
  0x66   : > { %2295 = vmatprep.subr.bf16.mxu1 %v1383_v58  ;;  %14324 = vst [vmem:[#allocation17_spill] sm:$0xff] %v7698_v26  ;;  %14325 = vst [vmem:[#allocation18_spill] sm:$0xff] %v7709_v39  ;;  %2114 = vmatprep.subr.bf16.mxu0 %v1605_v16  ;;  %v1375_v20 = vpack.c.bf16 %v780_v22, %v773_v18  ;;  %v547_v53 = vmul.f32 %v7449_v40, %v342_v11  ;;  %v766_v60 = vld [vmem:[%s13744_s1 + $0x48] sm:$0xff]  ;;  %v348_v4 = vld [vmem:[%s7381_s12 + $0x1e0] sm:$0xff] }
  0x67   : > { %14326 = vst [vmem:[#allocation19_spill] sm:$0xff] %v7711_v41  ;;  %v543_v56 = vmul.f32 %v7453_v43, %v338_v12  ;;  %v1369_v57 = vpack.c.bf16 %v767_v29, %v760_v23  ;;  %v1598_v58 = vpack.c.bf16 %v1227_v31, %v1220_v30  ;;  %v549_v61 = vmul.f32 %v7453_v43, %v344_v15  ;;  %v970_v2 = vld [vmem:[%s13744_s1 + $0x6a8] sm:$0xff]  ;;  %v969_v8 = vld [vmem:[%s13744_s1 + $0x6a0] sm:$0xff]  ;;  %v976_v11 = vld [vmem:[%s13744_s1 + $0x6d8] sm:$0xff] }
  0x68   : > { %v554_v62 = vmul.f32 %v7444_v37, %v349_v34  ;;  %v560_v24 = vmul.f32 %v7444_v37, %v355_v44  ;;  %v556_v27 = vmul.f32 %v7446_v38, %v351_v45  ;;  %v562_v46 = vmul.f32 %v7446_v38, %v357_v51  ;;  %v1206_v9 = vld [vmem:[%s13744_s1 + $0xe08] sm:$0xff]  ;;  %v1213_v10 = vld [vmem:[%s13744_s1 + $0xe40] sm:$0xff]  ;;  %v350_v18 = vld [vmem:[%s7381_s12 + $0x1f0] sm:$0xff] }
  0x69   : > { %2296 = vmatpush1.bf16.msra.mxu1 %v1382_v14  ;;  %2115 = vmatpush1.bf16.msra.mxu0 %v1604_v17  ;;  %v1597_v1 = vpack.c.bf16 %v1226_v52, %v1219_v47  ;;  %v1368_v5 = vpack.c.bf16 %v766_v60, %v759_v59  ;;  %v1205_v12 = vld [vmem:[%s13744_s1 + $0xe00] sm:$0xff]  ;;  %v1212_v14 = vld [vmem:[%s13744_s1 + $0xe38] sm:$0xff]  ;;  %v7766_v15 = vpack.c.bf16 %v547_v53, %v541_v50  ;;  %v354_v17 = vld [vmem:[%s7381_s12 + $0x210] sm:$0xff] }
  0x6a   : > { %2297 = vmatprep.subr.bf16.mxu1 %v1376_v28  ;;  %2116 = vmatprep.subr.bf16.mxu0 %v1598_v58  ;;  %v7768_v16 = vpack.c.bf16 %v549_v61, %v543_v56  ;;  %v356_v22 = vld [vmem:[%s7381_s12 + $0x220] sm:$0xff]  ;;  %v1474_v23 = vpack.c.bf16 %v977_v3, %v970_v2  ;;  %v7773_v28 = vpack.c.bf16 %v560_v24, %v554_v62  ;;  %v361_v30 = vld [vmem:[%s7381_s12 + $0x248] sm:$0xff]  ;;  %v367_v31 = vld [vmem:[%s7381_s12 + $0x278] sm:$0xff] }
  0x6b   : > { %1805 = vmatmul.mubr.bf16.gmra.mxu0 %v7696_v25  ;;  %1986 = vmatmul.mubr.bf16.gmra.mxu1 %v7698_v26  ;;  %14327 = vst [vmem:[#allocation20_spill] sm:$0xff] %v7766_v15  ;;  %v7775_v29 = vpack.c.bf16 %v562_v46, %v556_v27  ;;  %v363_v34 = vld [vmem:[%s7381_s12 + $0x258] sm:$0xff]  ;;  %v1591_v44 = vpack.c.bf16 %v1213_v10, %v1206_v9  ;;  %v369_v45 = vld [vmem:[%s7381_s12 + $0x288] sm:$0xff]  ;;  %v963_v47 = vld [vmem:[%s13744_s1 + $0x670] sm:$0xff] }
  0x6c   : > { %1814 = vmatprep.mubr.bf16.mxu0 %v7709_v39  ;;  %1995 = vmatprep.mubr.bf16.mxu1 %v7711_v41  ;;  %14328 = vst [vmem:[#allocation21_spill] sm:$0xff] %v7768_v16  ;;  %14329 = vst [vmem:[#allocation22_spill] sm:$0xff] %v7773_v28  ;;  %v1473_v51 = vpack.c.bf16 %v976_v11, %v969_v8  ;;  %v956_v50 = vld [vmem:[%s13744_s1 + $0x638] sm:$0xff]  ;;  %v553_v52 = vmul.f32 %v7449_v40, %v348_v4  ;;  %v962_v58 = vld [vmem:[%s13744_s1 + $0x668] sm:$0xff] }
  0x6d   : > { %2298 = vmatpush1.bf16.msra.mxu1 %v1375_v20  ;;  %2117 = vmatpush1.bf16.msra.mxu0 %v1597_v1  ;;  %14330 = vst [vmem:[#allocation23_spill] sm:$0xff] %v7775_v29  ;;  %v1590_v20 = vpack.c.bf16 %v1212_v14, %v1205_v12  ;;  %v559_v53 = vmul.f32 %v7449_v40, %v354_v17  ;;  %v1360_v46 = vld [vmem:[%s13744_s1 + $0x12d8] sm:$0xff]  ;;  %v1359_v2 = vld [vmem:[%s13744_s1 + $0x12d0] sm:$0xff]  ;;  %v942_v3 = vld [vmem:[%s13744_s1 + $0x5c8] sm:$0xff] }
  0x6e   : > { %2299 = vmatprep.subr.bf16.mxu1 %v1369_v57  ;;  %v555_v56 = vmul.f32 %v7453_v43, %v350_v18  ;;  %2118 = vmatprep.subr.bf16.mxu0 %v1591_v44  ;;  %v955_v57 = vld [vmem:[%s13744_s1 + $0x630] sm:$0xff]  ;;  %v561_v59 = vmul.f32 %v7453_v43, %v356_v22  ;;  %v566_v60 = vmul.f32 %v7444_v37, %v361_v30  ;;  %v949_v4 = vld [vmem:[%s13744_s1 + $0x600] sm:$0xff]  ;;  %v948_v9 = vld [vmem:[%s13744_s1 + $0x5f8] sm:$0xff] }
  0x6f   : > { %v572_v61 = vmul.f32 %v7444_v37, %v367_v31  ;;  %v568_v62 = vmul.f32 %v7446_v38, %v363_v34  ;;  %v574_v24 = vmul.f32 %v7446_v38, %v369_v45  ;;  %v1467_v27 = vpack.c.bf16 %v963_v47, %v956_v50  ;;  %v941_v8 = vld [vmem:[%s13744_s1 + $0x5c0] sm:$0xff]  ;;  %v366_v12 = vld [vmem:[%s7381_s12 + $0x270] sm:$0xff]  ;;  %v373_v30 = vld [vmem:[%s7381_s12 + $0x2a8] sm:$0xff] }
  0x70   : > { %v1466_v1 = vpack.c.bf16 %v962_v58, %v955_v57  ;;  %v7824_v10 = vpack.c.bf16 %v559_v53, %v553_v52  ;;  %v7826_v11 = vpack.c.bf16 %v561_v59, %v555_v56  ;;  %v362_v14 = vld [vmem:[%s7381_s12 + $0x250] sm:$0xff]  ;;  %v368_v17 = vld [vmem:[%s7381_s12 + $0x280] sm:$0xff]  ;;  %v1668_v18 = vpack.c.bf16 %v1360_v46, %v1360_v46  ;;  %v379_v31 = vld [vmem:[%s7381_s12 + $0x2d8] sm:$0xff] }
  0x71   : > { %2300 = vmatpush1.bf16.msra.mxu1 %v1368_v5  ;;  %2119 = vmatpush1.bf16.msra.mxu0 %v1590_v20  ;;  %v360_v5 = vld [vmem:[%s7381_s12 + $0x240] sm:$0xff]  ;;  %v7831_v22 = vpack.c.bf16 %v572_v61, %v566_v60  ;;  %v375_v34 = vld [vmem:[%s7381_s12 + $0x2b8] sm:$0xff]  ;;  %v1667_v44 = vpack.c.bf16 %v1359_v2, %v1359_v2  ;;  %v1460_v45 = vpack.c.bf16 %v949_v4, %v942_v3  ;;  %v935_v47 = vld [vmem:[%s13744_s1 + $0x590] sm:$0xff] }
  0x72   : > { %2301 = vmatprep.subr.bf16.mxu1 %v1474_v23  ;;  %14331 = vst [vmem:[#allocation24_spill] sm:$0xff] %v7824_v10  ;;  %14332 = vst [vmem:[#allocation25_spill] sm:$0xff] %v7826_v11  ;;  %v7833_v23 = vpack.c.bf16 %v574_v24, %v568_v62  ;;  %6559 = vmatprep.subr.msk.bf16.mxu0 %vm1720_vm0, %v1668_v18  ;;  %v1459_v20 = vpack.c.bf16 %v948_v9, %v941_v8  ;;  %v928_v50 = vld [vmem:[%s13744_s1 + $0x558] sm:$0xff]  ;;  %v1346_v57 = vld [vmem:[%s13744_s1 + $0x1268] sm:$0xff] }
  0x73   : > { %1815 = vmatmul.mubr.bf16.gmra.mxu0 %v7766_v15  ;;  %1996 = vmatmul.mubr.bf16.gmra.mxu1 %v7768_v16  ;;  %14333 = vst [vmem:[#allocation26_spill] sm:$0xff] %v7831_v22  ;;  %v565_v52 = vmul.f32 %v7449_v40, %v360_v5  ;;  %v571_v53 = vmul.f32 %v7449_v40, %v366_v12  ;;  %v1722_v56 = vsel %vm1720_vm0, %v1667_v44, 0  ;;  %v1353_v58 = vld [vmem:[%s13744_s1 + $0x12a0] sm:$0xff]  ;;  %v927_v59 = vld [vmem:[%s13744_s1 + $0x550] sm:$0xff]  ;;  %v934_v24 = vld [vmem:[%s13744_s1 + $0x588] sm:$0xff] }
  0x74   : > { %1824 = vmatprep.mubr.bf16.mxu0 %v7773_v28  ;;  %2005 = vmatprep.mubr.bf16.mxu1 %v7775_v29  ;;  %14334 = vst [vmem:[#allocation27_spill] sm:$0xff] %v7833_v23  ;;  %v567_v60 = vmul.f32 %v7453_v43, %v362_v14  ;;  %v573_v61 = vmul.f32 %v7453_v43, %v368_v17  ;;  %v1352_v46 = vld [vmem:[%s13744_s1 + $0x1298] sm:$0xff]  ;;  %v372_v4 = vld [vmem:[%s7381_s12 + $0x2a0] sm:$0xff]  ;;  %v378_v5 = vld [vmem:[%s7381_s12 + $0x2d0] sm:$0xff] }
  0x75   : > { %2302 = vmatpush2.bf16.msra.mxu1 %v1473_v51  ;;  %v381_v51 = vld [vmem:[%s7381_s12 + $0x2e8] sm:$0xff]  ;;  %v578_v62 = vmul.f32 %v7444_v37, %v373_v30  ;;  %v580_v2 = vmul.f32 %v7446_v38, %v375_v34  ;;  %v374_v8 = vld [vmem:[%s7381_s12 + $0x2b0] sm:$0xff]  ;;  %2129 = vmatpush2.bf16.msra.mxu0 %v1722_v56  ;;  %v1453_v9 = vpack.c.bf16 %v935_v47, %v928_v50  ;;  %v380_v14 = vld [vmem:[%s7381_s12 + $0x2e0] sm:$0xff] }
  0x76   : > { %2303 = vmatprep.subr.bf16.mxu1 %v1467_v27  ;;  %v1345_v27 = vld [vmem:[%s13744_s1 + $0x1260] sm:$0xff]  ;;  %v586_v3 = vmul.f32 %v7446_v38, %v381_v51  ;;  %v1661_v12 = vpack.c.bf16 %v1353_v58, %v1346_v57  ;;  %v1452_v17 = vpack.c.bf16 %v934_v24, %v927_v59  ;;  %v914_v30 = vld [vmem:[%s13744_s1 + $0x4e8] sm:$0xff]  ;;  %v7890_v44 = vpack.c.bf16 %v571_v53, %v565_v52  ;;  %v920_v51 = vld [vmem:[%s13744_s1 + $0x518] sm:$0xff] }
  0x77   : > { %v1660_v18 = vpack.c.bf16 %v1352_v46, %v1345_v27  ;;  %v913_v34 = vld [vmem:[%s13744_s1 + $0x4e0] sm:$0xff]  ;;  %v1339_v50 = vld [vmem:[%s13744_s1 + $0x1230] sm:$0xff]  ;;  %v385_v53 = vld [vmem:[%s7381_s12 + $0x308] sm:$0xff]  ;;  %v577_v58 = vmul.f32 %v7449_v40, %v372_v4  ;;  %v583_v24 = vmul.f32 %v7449_v40, %v378_v5  ;;  %v579_v27 = vmul.f32 %v7453_v43, %v374_v8 }
  0x78   : > { %14335 = vst [vmem:[#allocation28_spill] sm:$0xff] %v7890_v44  ;;  %2130 = vmatprep.subr.bf16.mxu0 %v1661_v12  ;;  %v7905_v52 = vpack.c.bf16 %v586_v3, %v580_v2  ;;  %v1331_v56 = vld [vmem:[%s13744_s1 + $0x11f0] sm:$0xff]  ;;  %v1338_v57 = vld [vmem:[%s13744_s1 + $0x1228] sm:$0xff]  ;;  %v391_v59 = vld [vmem:[%s7381_s12 + $0x338] sm:$0xff]  ;;  %v1445_v46 = vpack.c.bf16 %v920_v51, %v913_v34  ;;  %v585_v2 = vmul.f32 %v7453_v43, %v380_v14 }
  0x79   : > { %2304 = vmatpush2.bf16.msra.mxu1 %v1466_v1  ;;  %v584_v1 = vmul.f32 %v7444_v37, %v379_v31  ;;  %v921_v31 = vld [vmem:[%s13744_s1 + $0x520] sm:$0xff]  ;;  %2131 = vmatpush2.bf16.msra.mxu0 %v1660_v18  ;;  %v590_v3 = vmul.f32 %v7444_v37, %v385_v53  ;;  %v1653_v4 = vpack.c.bf16 %v1338_v57, %v1331_v56  ;;  %v907_v5 = vld [vmem:[%s13744_s1 + $0x4b0] sm:$0xff]  ;;  %v886_v57 = vld [vmem:[%s13744_s1 + $0x408] sm:$0xff] }
  0x7a   : > { %2305 = vmatprep.subr.bf16.mxu1 %v1460_v45  ;;  %v7892_v45 = vpack.c.bf16 %v573_v61, %v567_v60  ;;  %14338 = vst [vmem:[#allocation31_spill] sm:$0xff] %v7905_v52  ;;  %v387_v60 = vld [vmem:[%s7381_s12 + $0x318] sm:$0xff]  ;;  %v393_v61 = vld [vmem:[%s7381_s12 + $0x348] sm:$0xff]  ;;  %v899_v8 = vld [vmem:[%s13744_s1 + $0x470] sm:$0xff]  ;;  %v596_v12 = vmul.f32 %v7444_v37, %v391_v59 }
  0x7b   : > { %1825 = vmatmul.mubr.bf16.gmra.mxu0 %v7824_v10  ;;  %2006 = vmatmul.mubr.bf16.gmra.mxu1 %v7826_v11  ;;  %v7903_v47 = vpack.c.bf16 %v584_v1, %v578_v62  ;;  %v1446_v62 = vpack.c.bf16 %v921_v31, %v914_v30  ;;  %v592_v14 = vmul.f32 %v7446_v38, %v387_v60  ;;  %v384_v18 = vld [vmem:[%s7381_s12 + $0x300] sm:$0xff]  ;;  %v906_v30 = vld [vmem:[%s13744_s1 + $0x4a8] sm:$0xff]  ;;  %v390_v51 = vld [vmem:[%s7381_s12 + $0x330] sm:$0xff] }
  0x7c   : > { %1834 = vmatprep.mubr.bf16.mxu0 %v7831_v22  ;;  %2015 = vmatprep.mubr.bf16.mxu1 %v7833_v23  ;;  %14336 = vst [vmem:[#allocation29_spill] sm:$0xff] %v7892_v45  ;;  %v1318_v31 = vld [vmem:[%s13744_s1 + $0x1188] sm:$0xff]  ;;  %v1325_v34 = vld [vmem:[%s13744_s1 + $0x11c0] sm:$0xff]  ;;  %v386_v53 = vld [vmem:[%s7381_s12 + $0x310] sm:$0xff]  ;;  %v7962_v60 = vpack.c.bf16 %v583_v24, %v577_v58 }
  0x7d   : > { %2306 = vmatpush2.bf16.msra.mxu1 %v1459_v20  ;;  %v1332_v20 = vld [vmem:[%s13744_s1 + $0x11f8] sm:$0xff]  ;;  %14337 = vst [vmem:[#allocation30_spill] sm:$0xff] %v7903_v47  ;;  %v893_v59 = vld [vmem:[%s13744_s1 + $0x440] sm:$0xff]  ;;  %v397_v58 = vld [vmem:[%s7381_s12 + $0x368] sm:$0xff] }
  0x7e   : > { %2307 = vmatprep.subr.bf16.mxu1 %v1453_v9  ;;  %v1654_v1 = vpack.c.bf16 %v1339_v50, %v1332_v20  ;;  %v900_v9 = vld [vmem:[%s13744_s1 + $0x478] sm:$0xff]  ;;  %v1317_v20 = vld [vmem:[%s13744_s1 + $0x1180] sm:$0xff]  ;;  %14339 = vst [vmem:[#allocation32_spill] sm:$0xff] %v7962_v60  ;;  %v457_v23 = vld [vmem:[%s7381_s12 + $0x548] sm:$0xff] }
  0x7f   : > { %v1324_v50 = vld [vmem:[%s13744_s1 + $0x11b8] sm:$0xff]  ;;  %v1439_v56 = vpack.c.bf16 %v907_v5, %v900_v9  ;;  %v7973_v5 = vpack.c.bf16 %v596_v12, %v590_v3  ;;  %v1432_v3 = vpack.c.bf16 %v893_v59, %v886_v57  ;;  %v595_v12 = vmul.f32 %v7449_v40, %v390_v51  ;;  %v878_v57 = vld [vmem:[%s13744_s1 + $0x3c8] sm:$0xff] }
  0x80   : > { %2132 = vmatprep.subr.bf16.mxu0 %v1654_v1  ;;  %v1438_v1 = vpack.c.bf16 %v906_v30, %v899_v8  ;;  %v892_v9 = vld [vmem:[%s13744_s1 + $0x438] sm:$0xff]  ;;  %v1646_v24 = vpack.c.bf16 %v1324_v50, %v1317_v20  ;;  %v589_v8 = vmul.f32 %v7449_v40, %v384_v18  ;;  %v1082_v20 = vld [vmem:[%s13744_s1 + $0xa28] sm:$0xff]  ;;  %v1089_v18 = vld [vmem:[%s13744_s1 + $0xa60] sm:$0xff]  ;;  %v602_v51 = vmul.f32 %v7444_v37, %v397_v58 }
  0x81   : > { %2308 = vmatpush2.bf16.msra.mxu1 %v1452_v17  ;;  %v598_v17 = vmul.f32 %v7446_v38, %v393_v61  ;;  %2133 = vmatpush2.bf16.msra.mxu0 %v1653_v4  ;;  %v7964_v61 = vpack.c.bf16 %v585_v2, %v579_v27  ;;  %v885_v4 = vld [vmem:[%s13744_s1 + $0x400] sm:$0xff]  ;;  %14341 = vst [vmem:[#allocation34_spill] sm:$0xff] %v7973_v5  ;;  %v872_v27 = vld [vmem:[%s13744_s1 + $0x398] sm:$0xff]  ;;  %v879_v2 = vld [vmem:[%s13744_s1 + $0x3d0] sm:$0xff] }
  0x82   : > { %2309 = vmatprep.subr.bf16.mxu1 %v1446_v62  ;;  %v392_v62 = vld [vmem:[%s7381_s12 + $0x340] sm:$0xff]  ;;  %v403_v30 = vld [vmem:[%s7381_s12 + $0x398] sm:$0xff]  ;;  %v1054_v11 = vld [vmem:[%s13744_s1 + $0x948] sm:$0xff] }
  0x83   : > { %1835 = vmatmul.mubr.bf16.gmra.mxu0 %v7890_v44  ;;  %2016 = vmatmul.mubr.bf16.gmra.mxu1 %v7892_v45  ;;  %14340 = vst [vmem:[#allocation33_spill] sm:$0xff] %v7964_v61  ;;  %v597_v50 = vmul.f32 %v7453_v43, %v392_v62  ;;  %v608_v59 = vmul.f32 %v7444_v37, %v403_v30  ;;  %v1313_v58 = vld [vmem:[%s13744_s1 + $0x1160] sm:$0xff]  ;;  %v402_v30 = vld [vmem:[%s7381_s12 + $0x390] sm:$0xff]  ;;  %v447_v45 = vld [vmem:[%s7381_s12 + $0x4f8] sm:$0xff] }
  0x84   : > { %1844 = vmatprep.mubr.bf16.mxu0 %v7903_v47  ;;  %2025 = vmatprep.mubr.bf16.mxu1 %v7905_v52  ;;  %v7975_v52 = vpack.c.bf16 %v598_v17, %v592_v14  ;;  %v591_v14 = vmul.f32 %v7453_v43, %v386_v53  ;;  %v1431_v17 = vpack.c.bf16 %v892_v9, %v885_v4  ;;  %v1306_v9 = vld [vmem:[%s13744_s1 + $0x1128] sm:$0xff] }
  0x85   : > { %2310 = vmatpush2.bf16.msra.mxu1 %v1445_v46  ;;  %v1647_v46 = vpack.c.bf16 %v1325_v34, %v1318_v31  ;;  %v399_v31 = vld [vmem:[%s7381_s12 + $0x378] sm:$0xff]  ;;  %v405_v34 = vld [vmem:[%s7381_s12 + $0x3a8] sm:$0xff]  ;;  %v1425_v53 = vpack.c.bf16 %v879_v2, %v872_v27  ;;  %v396_v2 = vld [vmem:[%s7381_s12 + $0x360] sm:$0xff] }
  0x86   : > { %14342 = vst [vmem:[#allocation35_spill] sm:$0xff] %v7975_v52  ;;  %2311 = vmatprep.subr.bf16.mxu1 %v1439_v56  ;;  %v871_v56 = vld [vmem:[%s13744_s1 + $0x390] sm:$0xff]  ;;  %v604_v62 = vmul.f32 %v7446_v38, %v399_v31  ;;  %v8019_v27 = vpack.c.bf16 %v597_v50, %v591_v14  ;;  %v8023_v31 = vpack.c.bf16 %v608_v59, %v602_v51  ;;  %v1046_v16 = vld [vmem:[%s13744_s1 + $0x908] sm:$0xff] }
  0x87   : > { %2134 = vmatprep.subr.bf16.mxu0 %v1647_v46  ;;  %v1530_v46 = vpack.c.bf16 %v1089_v18, %v1082_v20  ;;  %v1424_v4 = vpack.c.bf16 %v878_v57, %v871_v56  ;;  %v409_v20 = vld [vmem:[%s7381_s12 + $0x3c8] sm:$0xff]  ;;  %v415_v18 = vld [vmem:[%s7381_s12 + $0x3f8] sm:$0xff] }
  0x88   : > { %2135 = vmatpush2.bf16.msra.mxu0 %v1646_v24  ;;  %v8017_v24 = vpack.c.bf16 %v595_v12, %v589_v8  ;;  %14344 = vst [vmem:[#allocation37_spill] sm:$0xff] %v8019_v27  ;;  %14345 = vst [vmem:[#allocation38_spill] sm:$0xff] %v8023_v31  ;;  %v411_v56 = vld [vmem:[%s7381_s12 + $0x3d8] sm:$0xff]  ;;  %v417_v57 = vld [vmem:[%s7381_s12 + $0x408] sm:$0xff]  ;;  %v601_v8 = vmul.f32 %v7449_v40, %v396_v2  ;;  %v607_v12 = vmul.f32 %v7449_v40, %v402_v30 }
  0x89   : > { %2312 = vmatpush2.bf16.msra.mxu1 %v1438_v1  ;;  %v610_v1 = vmul.f32 %v7446_v38, %v405_v34  ;;  %2466 = vmatprep.subr.bf16.mxu0 %v1530_v46  ;;  %v614_v51 = vmul.f32 %v7444_v37, %v409_v20  ;;  %v616_v59 = vmul.f32 %v7446_v38, %v411_v56  ;;  %v410_v30 = vld [vmem:[%s7381_s12 + $0x3d0] sm:$0xff]  ;;  %v427_v20 = vld [vmem:[%s7381_s12 + $0x458] sm:$0xff]  ;;  %v429_v56 = vld [vmem:[%s7381_s12 + $0x468] sm:$0xff] }
  0x8a   : > { %2313 = vmatprep.subr.bf16.mxu1 %v1432_v3  ;;  %14343 = vst [vmem:[#allocation36_spill] sm:$0xff] %v8017_v24  ;;  %v398_v3 = vld [vmem:[%s7381_s12 + $0x370] sm:$0xff] }
  0x8b   : > { %1845 = vmatmul.mubr.bf16.gmra.mxu0 %v7962_v60  ;;  %2026 = vmatmul.mubr.bf16.gmra.mxu1 %v7964_v61  ;;  %v8025_v34 = vpack.c.bf16 %v610_v1, %v604_v62  ;;  %v603_v14 = vmul.f32 %v7453_v43, %v398_v3  ;;  %v622_v62 = vmul.f32 %v7446_v38, %v417_v57  ;;  %v416_v3 = vld [vmem:[%s7381_s12 + $0x400] sm:$0xff]  ;;  %v445_v61 = vld [vmem:[%s7381_s12 + $0x4e8] sm:$0xff] }
  0x8c   : > { %1854 = vmatprep.mubr.bf16.mxu0 %v7973_v5  ;;  %2035 = vmatprep.mubr.bf16.mxu1 %v7975_v52  ;;  %v1642_v52 = vpack.c.bf16 %v1313_v58, %v1306_v9  ;;  %v8045_v1 = vpack.c.bf16 %v607_v12, %v601_v8  ;;  %v414_v9 = vld [vmem:[%s7381_s12 + $0x3f0] sm:$0xff]  ;;  %v615_v8 = vmul.f32 %v7453_v43, %v410_v30 }
  0x8d   : > { %2314 = vmatpush2.bf16.msra.mxu1 %v1431_v17  ;;  %14346 = vst [vmem:[#allocation39_spill] sm:$0xff] %v8025_v34  ;;  %v404_v17 = vld [vmem:[%s7381_s12 + $0x3a0] sm:$0xff]  ;;  %v8053_v2 = vpack.c.bf16 %v622_v62, %v616_v59  ;;  %v619_v57 = vmul.f32 %v7449_v40, %v414_v9  ;;  %v621_v12 = vmul.f32 %v7453_v43, %v416_v3  ;;  %v426_v9 = vld [vmem:[%s7381_s12 + $0x450] sm:$0xff] }
  0x8e   : > { %2315 = vmatprep.subr.bf16.mxu1 %v1425_v53  ;;  %v609_v50 = vmul.f32 %v7453_v43, %v404_v17  ;;  %v620_v53 = vmul.f32 %v7444_v37, %v415_v18  ;;  %14347 = vst [vmem:[#allocation40_spill] sm:$0xff] %v8045_v1  ;;  %v421_v17 = vld [vmem:[%s7381_s12 + $0x428] sm:$0xff]  ;;  %v423_v18 = vld [vmem:[%s7381_s12 + $0x438] sm:$0xff] }
  0x8f   : > { %14350 = vst [vmem:[#allocation43_spill] sm:$0xff] %v8053_v2  ;;  %v8075_v62 = vpack.c.bf16 %v621_v12, %v615_v8 }
  0x90   : > { %v8047_v46 = vpack.c.bf16 %v609_v50, %v603_v14  ;;  %v8051_v58 = vpack.c.bf16 %v620_v53, %v614_v51  ;;  %v626_v14 = vmul.f32 %v7444_v37, %v421_v17  ;;  %v632_v50 = vmul.f32 %v7444_v37, %v427_v20  ;;  %v422_v17 = vld [vmem:[%s7381_s12 + $0x430] sm:$0xff]  ;;  %v441_v20 = vld [vmem:[%s7381_s12 + $0x4c8] sm:$0xff] }
  0x91   : > { %2316 = vmatpush2.bf16.msra.mxu1 %v1424_v4  ;;  %v408_v4 = vld [vmem:[%s7381_s12 + $0x3c0] sm:$0xff]  ;;  %v628_v51 = vmul.f32 %v7446_v38, %v423_v18  ;;  %v634_v53 = vmul.f32 %v7446_v38, %v429_v56  ;;  %14352 = vst [vmem:[#allocation45_spill] sm:$0xff] %v8075_v62  ;;  %v631_v56 = vmul.f32 %v7449_v40, %v426_v9 }
  0x92   : > { %2647 = vmatprep.subr.bf16.mxu1 %v1642_v52  ;;  %14348 = vst [vmem:[#allocation41_spill] sm:$0xff] %v8047_v46  ;;  %14349 = vst [vmem:[#allocation42_spill] sm:$0xff] %v8051_v58  ;;  %v613_v52 = vmul.f32 %v7449_v40, %v408_v4  ;;  %v420_v4 = vld [vmem:[%s7381_s12 + $0x420] sm:$0xff]  ;;  %v8079_v30 = vpack.c.bf16 %v632_v50, %v626_v14  ;;  %v646_v50 = vmul.f32 %v7446_v38, %v441_v20 }
  0x93   : > { %1855 = vmatmul.mubr.bf16.gmra.mxu0 %v8017_v24  ;;  %2036 = vmatmul.mubr.bf16.gmra.mxu1 %v8019_v27  ;;  %v8081_v3 = vpack.c.bf16 %v634_v53, %v628_v51  ;;  %v435_v27 = vld [vmem:[%s7381_s12 + $0x498] sm:$0xff]  ;;  %v625_v18 = vmul.f32 %v7449_v40, %v420_v4  ;;  %v438_v4 = vld [vmem:[%s7381_s12 + $0x4b0] sm:$0xff] }
  0x94   : > { %1864 = vmatprep.mubr.bf16.mxu0 %v8023_v31  ;;  %2045 = vmatprep.mubr.bf16.mxu1 %v8025_v34  ;;  %v8073_v59 = vpack.c.bf16 %v619_v57, %v613_v52  ;;  %14353 = vst [vmem:[#allocation46_spill] sm:$0xff] %v8079_v30  ;;  %v433_v34 = vld [vmem:[%s7381_s12 + $0x488] sm:$0xff]  ;;  %v627_v52 = vmul.f32 %v7453_v43, %v422_v17  ;;  %v434_v17 = vld [vmem:[%s7381_s12 + $0x490] sm:$0xff] }
  0x95   : > { %14354 = vst [vmem:[#allocation47_spill] sm:$0xff] %v8081_v3  ;;  %v638_v8 = vmul.f32 %v7444_v37, %v433_v34  ;;  %v640_v14 = vmul.f32 %v7446_v38, %v435_v27  ;;  %v8101_v51 = vpack.c.bf16 %v631_v56, %v625_v18  ;;  %v643_v20 = vmul.f32 %v7449_v40, %v438_v4 }
  0x96   : > { %14351 = vst [vmem:[#allocation44_spill] sm:$0xff] %v8073_v59  ;;  %v639_v18 = vmul.f32 %v7453_v43, %v434_v17  ;;  %v446_v17 = vld [vmem:[%s7381_s12 + $0x4f0] sm:$0xff] }
  0x97   : > { %14355 = vst [vmem:[#allocation48_spill] sm:$0xff] %v8101_v51  ;;  %v8109_v34 = vpack.c.bf16 %v646_v50, %v640_v14 }
  0x99   : > { %14358 = vst [vmem:[#allocation51_spill] sm:$0xff] %v8109_v34 }
  0x9b   : > { %1865 = vmatmul.mubr.bf16.gmra.mxu0 %v8045_v1  ;;  %2046 = vmatmul.mubr.bf16.gmra.mxu1 %v8047_v46  ;;  %v428_v46 = vld [vmem:[%s7381_s12 + $0x460] sm:$0xff] }
  0x9c   : > { %1874 = vmatprep.mubr.bf16.mxu0 %v8051_v58  ;;  %2055 = vmatprep.mubr.bf16.mxu1 %v8053_v2  ;;  %v439_v2 = vld [vmem:[%s7381_s12 + $0x4b8] sm:$0xff]  ;;  %v633_v57 = vmul.f32 %v7453_v43, %v428_v46  ;;  %v432_v46 = vld [vmem:[%s7381_s12 + $0x480] sm:$0xff] }
  0x9d   : > { %v644_v12 = vmul.f32 %v7444_v37, %v439_v2  ;;  %v453_v2 = vld [vmem:[%s7381_s12 + $0x528] sm:$0xff]  ;;  %v637_v27 = vmul.f32 %v7449_v40, %v432_v46  ;;  %v444_v46 = vld [vmem:[%s7381_s12 + $0x4e0] sm:$0xff] }
  0x9e   : > { %v8103_v53 = vpack.c.bf16 %v633_v57, %v627_v52  ;;  %v650_v52 = vmul.f32 %v7444_v37, %v445_v61  ;;  %v450_v61 = vld [vmem:[%s7381_s12 + $0x510] sm:$0xff] }
  0x9f   : > { %v8107_v9 = vpack.c.bf16 %v644_v12, %v638_v8  ;;  %v652_v8 = vmul.f32 %v7446_v38, %v447_v45  ;;  %v658_v12 = vmul.f32 %v7446_v38, %v453_v2  ;;  %v8129_v14 = vpack.c.bf16 %v643_v20, %v637_v27 }
  0xa0   : > { %14356 = vst [vmem:[#allocation49_spill] sm:$0xff] %v8103_v53  ;;  %v649_v45 = vmul.f32 %v7449_v40, %v444_v46  ;;  %v651_v2 = vmul.f32 %v7453_v43, %v446_v17  ;;  %v662_v20 = vmul.f32 %v7444_v37, %v457_v23  ;;  %v293_v46 = vld [vmem:[%s7381_s12 + $0x28] sm:$0xff] }
  0xa1   : > { %14357 = vst [vmem:[#allocation50_spill] sm:$0xff] %v8107_v9  ;;  %14359 = vst [vmem:[#allocation52_spill] sm:$0xff] %v8129_v14  ;;  %v498_v23 = vmul.f32 %v7461_v48, %v293_v46  ;;  %v1081_v46 = vld [vmem:[%s13744_s1 + $0xa20] sm:$0xff] }
  0xa3   : > { %1875 = vmatmul.mubr.bf16.gmra.mxu0 %v8073_v59  ;;  %2056 = vmatmul.mubr.bf16.gmra.mxu1 %v8075_v62  ;;  %v440_v62 = vld [vmem:[%s7381_s12 + $0x4c0] sm:$0xff] }
  0xa4   : > { %1884 = vmatprep.mubr.bf16.mxu0 %v8079_v30  ;;  %2065 = vmatprep.mubr.bf16.mxu1 %v8081_v3  ;;  %v451_v3 = vld [vmem:[%s7381_s12 + $0x518] sm:$0xff]  ;;  %v645_v56 = vmul.f32 %v7453_v43, %v440_v62  ;;  %v8136_v62 = vpack.c.bf16 %v658_v12, %v652_v8  ;;  %v456_v12 = vld [vmem:[%s7381_s12 + $0x540] sm:$0xff] }
  0xa5   : > { %v656_v57 = vmul.f32 %v7444_v37, %v451_v3  ;;  %v655_v3 = vmul.f32 %v7449_v40, %v450_v61  ;;  %v299_v61 = vld [vmem:[%s7381_s12 + $0x58] sm:$0xff]  ;;  %v661_v37 = vmul.f32 %v7449_v40, %v456_v12  ;;  %v305_v40 = vld [vmem:[%s7381_s12 + $0x88] sm:$0xff] }
  0xa6   : > { %v8131_v50 = vpack.c.bf16 %v645_v56, %v639_v18  ;;  %14362 = vst [vmem:[#allocation55_spill] sm:$0xff] %v8136_v62  ;;  %v510_v12 = vmul.f32 %v7461_v48, %v305_v40  ;;  %v1292_v40 = vld [vmem:[%s13744_s1 + $0x10b8] sm:$0xff] }
  0xa7   : > { %v8134_v4 = vpack.c.bf16 %v656_v57, %v650_v52  ;;  %v8153_v56 = vpack.c.bf16 %v655_v3, %v649_v45  ;;  %v8157_v57 = vpack.c.bf16 %v662_v20, %v662_v20  ;;  %v8173_v17 = vpack.c.bf16 %v661_v37, %v661_v37  ;;  %v1305_v37 = vld [vmem:[%s13744_s1 + $0x1120] sm:$0xff] }
  0xa8   : > { %14360 = vst [vmem:[#allocation53_spill] sm:$0xff] %v8131_v50 }
  0xa9   : > { %14361 = vst [vmem:[#allocation54_spill] sm:$0xff] %v8134_v4  ;;  %14363 = vst [vmem:[#allocation56_spill] sm:$0xff] %v8153_v56 }
  0xaa   : > { %14365 = vst [vmem:[#allocation58_spill] sm:$0xff] %v8157_v57  ;;  %14367 = vst [vmem:[#allocation60_spill] sm:$0xff] %v8173_v17 }
  0xab   : > { %1885 = vmatmul.mubr.bf16.gmra.mxu0 %v8101_v51  ;;  %2066 = vmatmul.mubr.bf16.gmra.mxu1 %v8103_v53  ;;  %v452_v53 = vld [vmem:[%s7381_s12 + $0x520] sm:$0xff] }
  0xac   : > { %1894 = vmatprep.mubr.bf16.mxu0 %v8107_v9  ;;  %2075 = vmatprep.mubr.bf16.mxu1 %v8109_v34  ;;  %v459_v34 = vld [vmem:[%s7381_s12 + $0x558] sm:$0xff]  ;;  %v657_v27 = vmul.f32 %v7453_v43, %v452_v53  ;;  %v458_v53 = vld [vmem:[%s7381_s12 + $0x550] sm:$0xff] }
  0xad   : > { %v664_v18 = vmul.f32 %v7446_v38, %v459_v34  ;;  %v663_v38 = vmul.f32 %v7453_v43, %v458_v53  ;;  %v504_v34 = vmul.f32 %v7461_v48, %v299_v61  ;;  %v311_v43 = vld [vmem:[%s7381_s12 + $0xb8] sm:$0xff] }
  0xae   : > { %v8155_v52 = vpack.c.bf16 %v657_v27, %v651_v2  ;;  %v292_v2 = vld [vmem:[%s7381_s12 + $0x20] sm:$0xff]  ;;  %v298_v27 = vld [vmem:[%s7381_s12 + $0x50] sm:$0xff]  ;;  %v516_v53 = vmul.f32 %v7461_v48, %v311_v43  ;;  %v1088_v61 = vld [vmem:[%s13744_s1 + $0xa58] sm:$0xff] }
  0xaf   : > { %v8159_v8 = vpack.c.bf16 %v664_v18, %v664_v18  ;;  %v8175_v45 = vpack.c.bf16 %v663_v38, %v663_v38  ;;  %v8177_v3 = vpack.c.bf16 %v504_v34, %v498_v23  ;;  %v497_v20 = vmul.f32 %v7463_v49, %v292_v2  ;;  %v1312_v38 = vld [vmem:[%s13744_s1 + $0x1158] sm:$0xff]  ;;  %v304_v23 = vld [vmem:[%s7381_s12 + $0x80] sm:$0xff]  ;;  %v1299_v43 = vld [vmem:[%s13744_s1 + $0x10f0] sm:$0xff] }
  0xb0   : > { %14364 = vst [vmem:[#allocation57_spill] sm:$0xff] %v8155_v52  ;;  %v503_v18 = vmul.f32 %v7463_v49, %v298_v27  ;;  %v1068_v34 = vld [vmem:[%s13744_s1 + $0x9b8] sm:$0xff]  ;;  %v1075_v27 = vld [vmem:[%s13744_s1 + $0x9f0] sm:$0xff] }
  0xb1   : > { %14366 = vst [vmem:[#allocation59_spill] sm:$0xff] %v8159_v8  ;;  %14368 = vst [vmem:[#allocation61_spill] sm:$0xff] %v8175_v45  ;;  %v1523_v29 = vpack.c.bf16 %v1075_v27, %v1068_v34  ;;  %v1278_v34 = vld [vmem:[%s13744_s1 + $0x1048] sm:$0xff]  ;;  %v1285_v27 = vld [vmem:[%s13744_s1 + $0x1080] sm:$0xff] }
  0xb2   : > { %14369 = vst [vmem:[#allocation62_spill] sm:$0xff] %v8177_v3  ;;  %v8208_v2 = vpack.c.bf16 %v503_v18, %v497_v20  ;;  %v1067_v20 = vld [vmem:[%s13744_s1 + $0x9b0] sm:$0xff]  ;;  %v1074_v18 = vld [vmem:[%s13744_s1 + $0x9e8] sm:$0xff] }
  0xb3   : > { %1895 = vmatmul.mubr.bf16.gmra.mxu0 %v8129_v14  ;;  %2076 = vmatmul.mubr.bf16.gmra.mxu1 %v8131_v50  ;;  %v323_v50 = vld [vmem:[%s7381_s12 + $0x118] sm:$0xff] }
  0xb4   : > { %1904 = vmatprep.mubr.bf16.mxu0 %v8134_v4  ;;  %2085 = vmatprep.mubr.bf16.mxu1 %v8136_v62  ;;  %14370 = vst [vmem:[#allocation63_spill] sm:$0xff] %v8208_v2  ;;  %v317_v62 = vld [vmem:[%s7381_s12 + $0xe8] sm:$0xff] }
  0xbb   : > { %1905 = vmatmul.mubr.bf16.gmra.mxu0 %v8153_v56  ;;  %2086 = vmatmul.mubr.bf16.gmra.mxu1 %v8155_v52  ;;  %v1641_v52 = vpack.c.bf16 %v1312_v38, %v1305_v37  ;;  %v509_v37 = vmul.f32 %v7463_v49, %v304_v23  ;;  %v1053_v23 = vld [vmem:[%s13744_s1 + $0x940] sm:$0xff] }
  0xbc   : > { %1914 = vmatprep.mubr.bf16.mxu0 %v8157_v57  ;;  %2095 = vmatprep.mubr.bf16.mxu1 %v8159_v8  ;;  %v310_v8 = vld [vmem:[%s7381_s12 + $0xb0] sm:$0xff] }
  0xbd   : > { %v515_v38 = vmul.f32 %v7463_v49, %v310_v8 }
  0xc3   : > { %1915 = vmatmul.mubr.bf16.gmra.mxu0 %v8173_v17  ;;  %2096 = vmatmul.mubr.bf16.gmra.mxu1 %v8175_v45  ;;  %v8219_v45 = vpack.c.bf16 %v516_v53, %v510_v12  ;;  %v1061_v12 = vld [vmem:[%s13744_s1 + $0x980] sm:$0xff]  ;;  %v1635_v53 = vpack.c.bf16 %v1299_v43, %v1292_v40  ;;  %v1522_v40 = vpack.c.bf16 %v1074_v18, %v1067_v20 }
  0xc4   : > { %6560 = vmatprep.mubr.msk.bf16.mxu0 %vm1674_vm1, %v8177_v3  ;;  %2317 = vmatprep.mubr.bf16.mxu1 %v7478_v63  ;;  %v1529_v63 = vpack.c.bf16 %v1088_v61, %v1081_v46  ;;  %v1291_v46 = vld [vmem:[%s13744_s1 + $0x10b0] sm:$0xff]  ;;  %v1298_v61 = vld [vmem:[%s13744_s1 + $0x10e8] sm:$0xff]  ;;  %v522_v43 = vmul.f32 %v7461_v48, %v317_v62  ;;  %v1516_v8 = vpack.c.bf16 %v1061_v12, %v1054_v11  ;;  %v1277_v62 = vld [vmem:[%s13744_s1 + $0x1040] sm:$0xff] }
  0xc5   : > { %14371 = vst [vmem:[#allocation64_spill] sm:$0xff] %v8219_v45  ;;  %v1634_v20 = vpack.c.bf16 %v1298_v61, %v1291_v46  ;;  %v1628_v11 = vpack.c.bf16 %v1285_v27, %v1278_v34  ;;  %v8272_v18 = vpack.c.bf16 %v515_v38, %v509_v37  ;;  %v1264_v12 = vld [vmem:[%s13744_s1 + $0xfd8] sm:$0xff]  ;;  %v316_v61 = vld [vmem:[%s7381_s12 + $0xe0] sm:$0xff]  ;;  %v322_v34 = vld [vmem:[%s7381_s12 + $0x110] sm:$0xff] }
  0xc6   : > { %v329_v27 = vld [vmem:[%s7381_s12 + $0x148] sm:$0xff]  ;;  %v335_v38 = vld [vmem:[%s7381_s12 + $0x178] sm:$0xff] }
  0xc7   : > { %14372 = vst [vmem:[#allocation65_spill] sm:$0xff] %v8272_v18 }
  0xcb   : > { %2137 = vmatmul.mubr.bf16.vlgmr.msra.gmra.mxu0 %v8208_v2  ;;  %2318 = vmatmul.mubr.bf16.vlgmr.msra.gmra.mxu1 %v7487_v6  ;;  %v528_v6 = vmul.f32 %v7461_v48, %v323_v50  ;;  %v1040_v50 = vld [vmem:[%s13744_s1 + $0x8d8] sm:$0xff] }
  0xcc   : > { %2467 = vmatpush1.bf16.msra.mxu0 %v1529_v63  ;;  %6561 = vmatprep.mubr.msk.bf16.mxu0 %vm1674_vm1, %v8219_v45  ;;  %v1060_v63 = vld [vmem:[%s13744_s1 + $0x978] sm:$0xff] }
  0xcd   : > { %2327 = vmatprep.mubr.bf16.mxu1 %v7502_v13  ;;  %2648 = vmatpush1.bf16.msra.mxu1 %v1641_v52  ;;  %v1284_v52 = vld [vmem:[%s13744_s1 + $0x1078] sm:$0xff]  ;;  %v8283_v46 = vpack.c.bf16 %v528_v6, %v522_v43  ;;  %v1515_v37 = vpack.c.bf16 %v1060_v63, %v1053_v23  ;;  %v1039_v13 = vld [vmem:[%s13744_s1 + $0x8d0] sm:$0xff]  ;;  %v1026_v6 = vld [vmem:[%s13744_s1 + $0x868] sm:$0xff]  ;;  %v521_v23 = vmul.f32 %v7463_v49, %v316_v61 }
  0xce   : > { %2468 = vmatprep.subr.bf16.mxu0 %v1523_v29  ;;  %2649 = vmatprep.subr.bf16.mxu1 %v1635_v53  ;;  %v1047_v29 = vld [vmem:[%s13744_s1 + $0x910] sm:$0xff]  ;;  %v1627_v41 = vpack.c.bf16 %v1284_v52, %v1277_v62  ;;  %v527_v63 = vmul.f32 %v7463_v49, %v322_v34  ;;  %v534_v62 = vmul.f32 %v7461_v48, %v329_v27  ;;  %v1256_v27 = vld [vmem:[%s13744_s1 + $0xf98] sm:$0xff] }
  0xcf   : > { %v1271_v53 = vld [vmem:[%s13744_s1 + $0x1010] sm:$0xff]  ;;  %14373 = vst [vmem:[#allocation66_spill] sm:$0xff] %v8283_v46  ;;  %v1509_v26 = vpack.c.bf16 %v1047_v29, %v1040_v50  ;;  %v1250_v50 = vld [vmem:[%s13744_s1 + $0xf68] sm:$0xff]  ;;  %v540_v52 = vmul.f32 %v7461_v48, %v335_v38  ;;  %v1508_v29 = vpack.c.bf16 %v1046_v16, %v1039_v13  ;;  %v1012_v13 = vld [vmem:[%s13744_s1 + $0x7f8] sm:$0xff] }
  0xd0   : > { %2469 = vmatpush1.bf16.msra.mxu0 %v1522_v40  ;;  %v1621_v40 = vpack.c.bf16 %v1271_v53, %v1264_v12  ;;  %v1263_v43 = vld [vmem:[%s13744_s1 + $0xfd0] sm:$0xff]  ;;  %v1025_v12 = vld [vmem:[%s13744_s1 + $0x860] sm:$0xff]  ;;  %v1032_v53 = vld [vmem:[%s13744_s1 + $0x898] sm:$0xff] }
  0xd1   : > { %2470 = vmatprep.subr.bf16.mxu0 %v1516_v8  ;;  %2650 = vmatpush1.bf16.msra.mxu1 %v1634_v20  ;;  %v1270_v8 = vld [vmem:[%s13744_s1 + $0x1008] sm:$0xff]  ;;  %v1033_v20 = vld [vmem:[%s13744_s1 + $0x8a0] sm:$0xff]  ;;  %v1236_v38 = vld [vmem:[%s13744_s1 + $0xef8] sm:$0xff] }
  0xd2   : > { %2651 = vmatprep.subr.bf16.mxu1 %v1628_v11  ;;  %v1257_v11 = vld [vmem:[%s13744_s1 + $0xfa0] sm:$0xff]  ;;  %v1620_v61 = vpack.c.bf16 %v1270_v8, %v1263_v43  ;;  %v1502_v34 = vpack.c.bf16 %v1033_v20, %v1026_v6  ;;  %v1243_v6 = vld [vmem:[%s13744_s1 + $0xf30] sm:$0xff]  ;;  %v341_v20 = vld [vmem:[%s7381_s12 + $0x1a8] sm:$0xff] }
  0xd3   : > { %2147 = vmatmul.mubr.bf16.gmra.mxu0 %v8272_v18  ;;  %2328 = vmatmul.mubr.bf16.gmra.mxu1 %v7553_v21  ;;  %v1249_v16 = vld [vmem:[%s13744_s1 + $0xf60] sm:$0xff]  ;;  %v334_v8 = vld [vmem:[%s7381_s12 + $0x170] sm:$0xff] }
  0xd4   : > { %6562 = vmatprep.mubr.msk.bf16.mxu0 %vm1674_vm1, %v8283_v46  ;;  %2337 = vmatprep.mubr.bf16.mxu1 %v7569_v54  ;;  %v328_v43 = vld [vmem:[%s7381_s12 + $0x140] sm:$0xff]  ;;  %v1613_v54 = vpack.c.bf16 %v1256_v27, %v1249_v16  ;;  %v546_v16 = vmul.f32 %v7461_v48, %v341_v20  ;;  %v984_v20 = vld [vmem:[%s13744_s1 + $0x718] sm:$0xff] }
  0xd5   : > { %2471 = vmatpush1.bf16.msra.mxu0 %v1515_v37  ;;  %2652 = vmatpush1.bf16.msra.mxu1 %v1627_v41  ;;  %v1614_v41 = vpack.c.bf16 %v1257_v11, %v1250_v50  ;;  %v8337_v37 = vpack.c.bf16 %v527_v63, %v521_v23  ;;  %v347_v23 = vld [vmem:[%s7381_s12 + $0x1d8] sm:$0xff]  ;;  %v1501_v63 = vpack.c.bf16 %v1032_v53, %v1025_v12  ;;  %v1011_v50 = vld [vmem:[%s13744_s1 + $0x7f0] sm:$0xff]  ;;  %v1018_v11 = vld [vmem:[%s13744_s1 + $0x828] sm:$0xff] }
  0xd6   : > { %2472 = vmatprep.subr.bf16.mxu0 %v1509_v26  ;;  %2653 = vmatprep.subr.bf16.mxu1 %v1621_v40  ;;  %v1019_v26 = vld [vmem:[%s13744_s1 + $0x830] sm:$0xff]  ;;  %v8348_v40 = vpack.c.bf16 %v540_v52, %v534_v62  ;;  %v998_v62 = vld [vmem:[%s13744_s1 + $0x788] sm:$0xff]  ;;  %v1607_v52 = vpack.c.bf16 %v1243_v6, %v1236_v38  ;;  %v533_v53 = vmul.f32 %v7463_v49, %v328_v43  ;;  %v997_v38 = vld [vmem:[%s13744_s1 + $0x780] sm:$0xff] }
  0xd7   : > { %14374 = vst [vmem:[#allocation67_spill] sm:$0xff] %v8337_v37  ;;  %v1495_v21 = vpack.c.bf16 %v1019_v26, %v1012_v13  ;;  %v1242_v12 = vld [vmem:[%s13744_s1 + $0xf28] sm:$0xff]  ;;  %v552_v27 = vmul.f32 %v7461_v48, %v347_v23  ;;  %v1494_v26 = vpack.c.bf16 %v1018_v11, %v1011_v50  ;;  %v1004_v6 = vld [vmem:[%s13744_s1 + $0x7b8] sm:$0xff] }
  0xd8   : > { %14375 = vst [vmem:[#allocation68_spill] sm:$0xff] %v8348_v40  ;;  %v1222_v13 = vld [vmem:[%s13744_s1 + $0xe88] sm:$0xff]  ;;  %v1228_v50 = vld [vmem:[%s13744_s1 + $0xeb8] sm:$0xff] }
  0xd9   : > { %2473 = vmatpush1.bf16.msra.mxu0 %v1508_v29  ;;  %2654 = vmatpush1.bf16.msra.mxu1 %v1620_v61  ;;  %v1235_v29 = vld [vmem:[%s13744_s1 + $0xef0] sm:$0xff]  ;;  %v539_v61 = vmul.f32 %v7463_v49, %v334_v8  ;;  %v1208_v11 = vld [vmem:[%s13744_s1 + $0xe18] sm:$0xff] }
  0xda   : > { %2474 = vmatprep.subr.bf16.mxu0 %v1502_v34  ;;  %2655 = vmatprep.subr.bf16.mxu1 %v1614_v41  ;;  %v1005_v34 = vld [vmem:[%s13744_s1 + $0x7c0] sm:$0xff]  ;;  %v1606_v43 = vpack.c.bf16 %v1242_v12, %v1235_v29  ;;  %v346_v12 = vld [vmem:[%s7381_s12 + $0x1d0] sm:$0xff] }
  0xdb   : > { %2157 = vmatmul.mubr.bf16.gmra.mxu0 %v8337_v37  ;;  %2338 = vmatmul.mubr.bf16.gmra.mxu1 %v7626_v32  ;;  %v1229_v41 = vld [vmem:[%s13744_s1 + $0xec0] sm:$0xff]  ;;  %v1488_v8 = vpack.c.bf16 %v1005_v34, %v998_v62  ;;  %v1215_v62 = vld [vmem:[%s13744_s1 + $0xe50] sm:$0xff]  ;;  %v353_v34 = vld [vmem:[%s7381_s12 + $0x208] sm:$0xff] }
  0xdc   : > { %6563 = vmatprep.mubr.msk.bf16.mxu0 %vm1674_vm1, %v8348_v40  ;;  %2347 = vmatprep.mubr.bf16.mxu1 %v7637_v42  ;;  %v1600_v23 = vpack.c.bf16 %v1229_v41, %v1222_v13  ;;  %v340_v29 = vld [vmem:[%s7381_s12 + $0x1a0] sm:$0xff]  ;;  %v359_v13 = vld [vmem:[%s7381_s12 + $0x238] sm:$0xff]  ;;  %v990_v41 = vld [vmem:[%s13744_s1 + $0x748] sm:$0xff] }
  0xdd   : > { %2475 = vmatpush1.bf16.msra.mxu0 %v1501_v63  ;;  %2656 = vmatpush1.bf16.msra.mxu1 %v1613_v54  ;;  %v1221_v63 = vld [vmem:[%s13744_s1 + $0xe80] sm:$0xff]  ;;  %v8402_v54 = vpack.c.bf16 %v539_v61, %v533_v53  ;;  %v1487_v53 = vpack.c.bf16 %v1004_v6, %v997_v38  ;;  %v983_v61 = vld [vmem:[%s13744_s1 + $0x710] sm:$0xff]  ;;  %v1214_v38 = vld [vmem:[%s13744_s1 + $0xe48] sm:$0xff]  ;;  %v545_v6 = vmul.f32 %v7463_v49, %v340_v29 }
  0xde   : > { %2476 = vmatprep.subr.bf16.mxu0 %v1495_v21  ;;  %2657 = vmatprep.subr.bf16.mxu1 %v1607_v52  ;;  %v991_v21 = vld [vmem:[%s13744_s1 + $0x750] sm:$0xff]  ;;  %v8413_v52 = vpack.c.bf16 %v552_v27, %v546_v16  ;;  %v1599_v42 = vpack.c.bf16 %v1228_v50, %v1221_v63  ;;  %v1194_v16 = vld [vmem:[%s13744_s1 + $0xda8] sm:$0xff]  ;;  %v1593_v27 = vpack.c.bf16 %v1215_v62, %v1208_v11  ;;  %v1193_v29 = vld [vmem:[%s13744_s1 + $0xda0] sm:$0xff] }
  0xdf   : > { %14376 = vst [vmem:[#allocation69_spill] sm:$0xff] %v8402_v54  ;;  %v1481_v32 = vpack.c.bf16 %v991_v21, %v984_v20  ;;  %v1362_v20 = vld [vmem:[%s13744_s1 + $0x12e8] sm:$0xff]  ;;  %v558_v63 = vmul.f32 %v7461_v48, %v353_v34  ;;  %v564_v50 = vmul.f32 %v7461_v48, %v359_v13  ;;  %v1480_v21 = vpack.c.bf16 %v990_v41, %v983_v61  ;;  %v1180_v34 = vld [vmem:[%s13744_s1 + $0xd38] sm:$0xff]  ;;  %v1355_v41 = vld [vmem:[%s13744_s1 + $0x12b0] sm:$0xff] }
  0xe0   : > { %14377 = vst [vmem:[#allocation70_spill] sm:$0xff] %v8413_v52  ;;  %v1348_v61 = vld [vmem:[%s13744_s1 + $0x1278] sm:$0xff] }
  0xe1   : > { %2477 = vmatpush1.bf16.msra.mxu0 %v1494_v26  ;;  %2658 = vmatpush1.bf16.msra.mxu1 %v1606_v43  ;;  %v1207_v26 = vld [vmem:[%s13744_s1 + $0xe10] sm:$0xff]  ;;  %v551_v43 = vmul.f32 %v7463_v49, %v346_v12  ;;  %v1200_v12 = vld [vmem:[%s13744_s1 + $0xdd8] sm:$0xff] }
  0xe2   : > { %2478 = vmatprep.subr.bf16.mxu0 %v1488_v8  ;;  %2659 = vmatprep.subr.bf16.mxu1 %v1600_v23  ;;  %v1201_v8 = vld [vmem:[%s13744_s1 + $0xde0] sm:$0xff]  ;;  %v1592_v11 = vpack.c.bf16 %v1214_v38, %v1207_v26  ;;  %v365_v38 = vld [vmem:[%s7381_s12 + $0x268] sm:$0xff] }
  0xe3   : > { %2167 = vmatmul.mubr.bf16.gmra.mxu0 %v8402_v54  ;;  %2348 = vmatmul.mubr.bf16.gmra.mxu1 %v7696_v25  ;;  %v1361_v23 = vld [vmem:[%s13744_s1 + $0x12e0] sm:$0xff]  ;;  %v1586_v62 = vpack.c.bf16 %v1201_v8, %v1194_v16  ;;  %v8472_v16 = vpack.c.bf16 %v564_v50, %v558_v63  ;;  %v371_v8 = vld [vmem:[%s7381_s12 + $0x298] sm:$0xff]  ;;  %v1166_v63 = vld [vmem:[%s13744_s1 + $0xcc8] sm:$0xff] }
  0xe4   : > { %6564 = vmatprep.mubr.msk.bf16.mxu0 %vm1674_vm1, %v8413_v52  ;;  %2357 = vmatprep.mubr.bf16.mxu1 %v7709_v39  ;;  %v1669_v13 = vpack.c.bf16 %v1361_v23, %v1361_v23  ;;  %v352_v26 = vld [vmem:[%s7381_s12 + $0x200] sm:$0xff] }
  0xe5   : > { %2479 = vmatpush1.bf16.msra.mxu0 %v1487_v53  ;;  %2660 = vmatpush1.bf16.msra.mxu1 %v1599_v42  ;;  %v1670_v42 = vpack.c.bf16 %v1362_v20, %v1362_v20  ;;  %v8461_v53 = vpack.c.bf16 %v551_v43, %v545_v6  ;;  %14379 = vst [vmem:[#allocation72_spill] sm:$0xff] %v8472_v16  ;;  %v1179_v43 = vld [vmem:[%s13744_s1 + $0xd30] sm:$0xff]  ;;  %v1186_v20 = vld [vmem:[%s13744_s1 + $0xd68] sm:$0xff] }
  0xe6   : > { %2480 = vmatprep.subr.bf16.mxu0 %v1481_v32  ;;  %2661 = vmatprep.subr.bf16.mxu1 %v1593_v27  ;;  %v1187_v32 = vld [vmem:[%s13744_s1 + $0xd70] sm:$0xff]  ;;  %v1585_v6 = vpack.c.bf16 %v1200_v12, %v1193_v29  ;;  %v1728_v50 = vsel %vm1720_vm0, %v1669_v13, 0  ;;  %v1354_v12 = vld [vmem:[%s13744_s1 + $0x12a8] sm:$0xff]  ;;  %v1341_v13 = vld [vmem:[%s13744_s1 + $0x1240] sm:$0xff] }
  0xe7   : > { %14378 = vst [vmem:[#allocation71_spill] sm:$0xff] %v8461_v53  ;;  %v358_v27 = vld [vmem:[%s7381_s12 + $0x230] sm:$0xff]  ;;  %v1579_v23 = vpack.c.bf16 %v1187_v32, %v1180_v34  ;;  %v1173_v34 = vld [vmem:[%s13744_s1 + $0xd00] sm:$0xff]  ;;  %v570_v32 = vmul.f32 %v7461_v48, %v365_v38 }
  0xe8   : > { %v1347_v29 = vld [vmem:[%s13744_s1 + $0x1270] sm:$0xff]  ;;  %v1572_v38 = vpack.c.bf16 %v1173_v34, %v1166_v63  ;;  %v1320_v63 = vld [vmem:[%s13744_s1 + $0x1198] sm:$0xff] }
  0xe9   : > { %2481 = vmatpush1.bf16.msra.mxu0 %v1480_v21  ;;  %2662 = vmatpush1.bf16.msra.mxu1 %v1592_v11  ;;  %v1663_v21 = vpack.c.bf16 %v1355_v41, %v1348_v61  ;;  %v557_v11 = vmul.f32 %v7463_v49, %v352_v26  ;;  %v576_v61 = vmul.f32 %v7461_v48, %v371_v8  ;;  %v1165_v26 = vld [vmem:[%s13744_s1 + $0xcc0] sm:$0xff]  ;;  %v1152_v8 = vld [vmem:[%s13744_s1 + $0xc58] sm:$0xff]  ;;  %v370_v34 = vld [vmem:[%s7381_s12 + $0x290] sm:$0xff] }
  0xea   : > { %2482 = vmatprep.subr.bf16.mxu0 %v1586_v62  ;;  %6575 = vmatprep.subr.msk.bf16.mxu1 %vm1720_vm0, %v1670_v42  ;;  %v563_v62 = vmul.f32 %v7463_v49, %v358_v27  ;;  %v1334_v42 = vld [vmem:[%s13744_s1 + $0x1208] sm:$0xff]  ;;  %v1578_v41 = vpack.c.bf16 %v1186_v20, %v1179_v43  ;;  %v1172_v27 = vld [vmem:[%s13744_s1 + $0xcf8] sm:$0xff]  ;;  %v1333_v43 = vld [vmem:[%s13744_s1 + $0x1200] sm:$0xff] }
  0xeb   : > { %2177 = vmatmul.mubr.bf16.gmra.mxu0 %v8461_v53  ;;  %2358 = vmatmul.mubr.bf16.gmra.mxu1 %v7766_v15  ;;  %v1662_v15 = vpack.c.bf16 %v1354_v12, %v1347_v29  ;;  %v1340_v20 = vld [vmem:[%s13744_s1 + $0x1238] sm:$0xff]  ;;  %v8539_v29 = vpack.c.bf16 %v576_v61, %v570_v32  ;;  %v364_v12 = vld [vmem:[%s7381_s12 + $0x260] sm:$0xff]  ;;  %v1138_v32 = vld [vmem:[%s13744_s1 + $0xbe8] sm:$0xff] }
  0xec   : > { %6565 = vmatprep.mubr.msk.bf16.mxu0 %vm1674_vm1, %v8472_v16  ;;  %2367 = vmatprep.mubr.bf16.mxu1 %v7773_v28  ;;  %v1158_v28 = vld [vmem:[%s13744_s1 + $0xc88] sm:$0xff]  ;;  %v1655_v39 = vpack.c.bf16 %v1340_v20, %v1333_v43 }
  0xed   : > { %2483 = vmatpush2.bf16.msra.mxu0 %v1585_v6  ;;  %2672 = vmatpush2.bf16.msra.mxu1 %v1728_v50  ;;  %v1656_v6 = vpack.c.bf16 %v1341_v13, %v1334_v42  ;;  %v8528_v50 = vpack.c.bf16 %v563_v62, %v557_v11  ;;  %14381 = vst [vmem:[#allocation74_spill] sm:$0xff] %v8539_v29  ;;  %v377_v42 = vld [vmem:[%s7381_s12 + $0x2c8] sm:$0xff]  ;;  %v383_v13 = vld [vmem:[%s7381_s12 + $0x2f8] sm:$0xff]  ;;  %v1151_v62 = vld [vmem:[%s13744_s1 + $0xc50] sm:$0xff] }
  0xee   : > { %2484 = vmatprep.subr.bf16.mxu0 %v1579_v23  ;;  %2673 = vmatprep.subr.bf16.mxu1 %v1663_v21  ;;  %v1159_v23 = vld [vmem:[%s13744_s1 + $0xc90] sm:$0xff]  ;;  %v1571_v11 = vpack.c.bf16 %v1172_v27, %v1165_v26  ;;  %v1326_v26 = vld [vmem:[%s13744_s1 + $0x11c8] sm:$0xff]  ;;  %v575_v27 = vmul.f32 %v7463_v49, %v370_v34  ;;  %v582_v43 = vmul.f32 %v7461_v48, %v377_v42  ;;  %v1144_v34 = vld [vmem:[%s13744_s1 + $0xc18] sm:$0xff] }
  0xef   : > { %14380 = vst [vmem:[#allocation73_spill] sm:$0xff] %v8528_v50  ;;  %v1327_v21 = vld [vmem:[%s13744_s1 + $0x11d0] sm:$0xff]  ;;  %v1565_v25 = vpack.c.bf16 %v1159_v23, %v1152_v8  ;;  %v1084_v8 = vld [vmem:[%s13744_s1 + $0xa38] sm:$0xff]  ;;  %v588_v20 = vmul.f32 %v7461_v48, %v383_v13  ;;  %v1564_v23 = vpack.c.bf16 %v1158_v28, %v1151_v62 }
  0xf0   : > { %v1649_v61 = vpack.c.bf16 %v1327_v21, %v1320_v63  ;;  %v1124_v28 = vld [vmem:[%s13744_s1 + $0xb78] sm:$0xff]  ;;  %v382_v62 = vld [vmem:[%s7381_s12 + $0x2f0] sm:$0xff] }
  0xf1   : > { %2485 = vmatpush2.bf16.msra.mxu0 %v1578_v41  ;;  %2674 = vmatpush2.bf16.msra.mxu1 %v1662_v15  ;;  %v1319_v41 = vld [vmem:[%s13744_s1 + $0x1190] sm:$0xff]  ;;  %v569_v15 = vmul.f32 %v7463_v49, %v364_v12  ;;  %v1137_v12 = vld [vmem:[%s13744_s1 + $0xbe0] sm:$0xff] }
  0xf2   : > { %2486 = vmatprep.subr.bf16.mxu0 %v1572_v38  ;;  %2675 = vmatprep.subr.bf16.mxu1 %v1656_v6  ;;  %v1145_v38 = vld [vmem:[%s13744_s1 + $0xc20] sm:$0xff]  ;;  %v1091_v6 = vld [vmem:[%s13744_s1 + $0xa70] sm:$0xff]  ;;  %v1648_v63 = vpack.c.bf16 %v1326_v26, %v1319_v41  ;;  %v395_v41 = vld [vmem:[%s7381_s12 + $0x358] sm:$0xff]  ;;  %v1557_v26 = vpack.c.bf16 %v1144_v34, %v1137_v12 }
  0xf3   : > { %2187 = vmatmul.mubr.bf16.gmra.mxu0 %v8528_v50  ;;  %2368 = vmatmul.mubr.bf16.gmra.mxu1 %v7824_v10  ;;  %v1558_v21 = vpack.c.bf16 %v1145_v38, %v1138_v32  ;;  %v1532_v42 = vpack.c.bf16 %v1091_v6, %v1084_v8  ;;  %v8584_v13 = vpack.c.bf16 %v575_v27, %v569_v15  ;;  %v389_v32 = vld [vmem:[%s7381_s12 + $0x328] sm:$0xff]  ;;  %v1123_v15 = vld [vmem:[%s13744_s1 + $0xb70] sm:$0xff]  ;;  %v1109_v12 = vld [vmem:[%s13744_s1 + $0xb00] sm:$0xff] }
  0xf4   : > { %6566 = vmatprep.mubr.msk.bf16.mxu0 %vm1674_vm1, %v8539_v29  ;;  %2377 = vmatprep.mubr.bf16.mxu1 %v7831_v22  ;;  %v1130_v27 = vld [vmem:[%s13744_s1 + $0xba8] sm:$0xff]  ;;  %v587_v8 = vmul.f32 %v7463_v49, %v382_v62  ;;  %v1116_v34 = vld [vmem:[%s13744_s1 + $0xb38] sm:$0xff]  ;;  %v388_v62 = vld [vmem:[%s7381_s12 + $0x320] sm:$0xff] }
  0xf5   : > { %2487 = vmatpush2.bf16.msra.mxu0 %v1571_v11  ;;  %2676 = vmatpush2.bf16.msra.mxu1 %v1655_v39  ;;  %14382 = vst [vmem:[#allocation75_spill] sm:$0xff] %v8584_v13  ;;  %v8592_v39 = vpack.c.bf16 %v588_v20, %v582_v43  ;;  %v376_v11 = vld [vmem:[%s7381_s12 + $0x2c0] sm:$0xff]  ;;  %v1110_v6 = vld [vmem:[%s13744_s1 + $0xb08] sm:$0xff]  ;;  %v594_v20 = vmul.f32 %v7461_v48, %v389_v32  ;;  %v394_v32 = vld [vmem:[%s7381_s12 + $0x350] sm:$0xff] }
  0xf6   : > { %2488 = vmatprep.subr.bf16.mxu0 %v1565_v25  ;;  %2677 = vmatprep.subr.bf16.mxu1 %v1649_v61  ;;  %v1131_v25 = vld [vmem:[%s13744_s1 + $0xbb0] sm:$0xff]  ;;  %v581_v38 = vmul.f32 %v7463_v49, %v376_v11  ;;  %v1117_v43 = vld [vmem:[%s13744_s1 + $0xb40] sm:$0xff]  ;;  %v449_v22 = vld [vmem:[%s7381_s12 + $0x508] sm:$0xff] }
  0xf7   : > { %14383 = vst [vmem:[#allocation76_spill] sm:$0xff] %v8592_v39  ;;  %v1551_v61 = vpack.c.bf16 %v1131_v25, %v1124_v28  ;;  %v1096_v28 = vld [vmem:[%s13744_s1 + $0xa98] sm:$0xff]  ;;  %v1103_v25 = vld [vmem:[%s13744_s1 + $0xad0] sm:$0xff] }
  0xf9   : > { %2489 = vmatpush2.bf16.msra.mxu0 %v1564_v23  ;;  %2678 = vmatpush2.bf16.msra.mxu1 %v1648_v63  ;;  %v600_v23 = vmul.f32 %v7461_v48, %v395_v41  ;;  %v1550_v63 = vpack.c.bf16 %v1130_v27, %v1123_v15  ;;  %v401_v41 = vld [vmem:[%s7381_s12 + $0x388] sm:$0xff]  ;;  %v1537_v15 = vpack.c.bf16 %v1103_v25, %v1096_v28  ;;  %v1095_v27 = vld [vmem:[%s13744_s1 + $0xa90] sm:$0xff]  ;;  %v400_v25 = vld [vmem:[%s7381_s12 + $0x380] sm:$0xff] }
  0xfa   : > { %2490 = vmatprep.subr.bf16.mxu0 %v1558_v21  ;;  %3009 = vmatprep.subr.bf16.mxu1 %v1532_v42  ;;  %v1544_v21 = vpack.c.bf16 %v1117_v43, %v1110_v6  ;;  %v8625_v42 = vpack.c.bf16 %v587_v8, %v581_v38  ;;  %v1102_v38 = vld [vmem:[%s13744_s1 + $0xac8] sm:$0xff]  ;;  %v593_v8 = vmul.f32 %v7463_v49, %v388_v62  ;;  %v860_v43 = vld [vmem:[%s13744_s1 + $0x338] sm:$0xff]  ;;  %v406_v62 = vld [vmem:[%s7381_s12 + $0x3b0] sm:$0xff] }
  0xfb   : > { %2197 = vmatmul.mubr.bf16.gmra.mxu0 %v8584_v13  ;;  %2378 = vmatmul.mubr.bf16.gmra.mxu1 %v7890_v44  ;;  %v8633_v11 = vpack.c.bf16 %v600_v23, %v594_v20  ;;  %v599_v6 = vmul.f32 %v7463_v49, %v394_v32  ;;  %v867_v20 = vld [vmem:[%s13744_s1 + $0x370] sm:$0xff]  ;;  %v606_v23 = vmul.f32 %v7461_v48, %v401_v41  ;;  %v413_v32 = vld [vmem:[%s7381_s12 + $0x3e8] sm:$0xff] }
  0xfc   : > { %6567 = vmatprep.mubr.msk.bf16.mxu0 %vm1674_vm1, %v8592_v39  ;;  %2387 = vmatprep.mubr.bf16.mxu1 %v7903_v47  ;;  %14384 = vst [vmem:[#allocation77_spill] sm:$0xff] %v8625_v42  ;;  %v605_v41 = vmul.f32 %v7463_v49, %v400_v25 }
  0xfd   : > { %2491 = vmatpush2.bf16.msra.mxu0 %v1557_v26  ;;  %14385 = vst [vmem:[#allocation78_spill] sm:$0xff] %v8633_v11  ;;  %v407_v26 = vld [vmem:[%s7381_s12 + $0x3b8] sm:$0xff] }
  0xfe   : > { %2492 = vmatprep.subr.bf16.mxu0 %v1551_v61  ;;  %v1543_v61 = vpack.c.bf16 %v1116_v34, %v1109_v12  ;;  %v1420_v12 = vpack.c.bf16 %v867_v20, %v860_v43  ;;  %v8660_v34 = vpack.c.bf16 %v599_v6, %v593_v8  ;;  %v412_v8 = vld [vmem:[%s7381_s12 + $0x3e0] sm:$0xff]  ;;  %v418_v6 = vld [vmem:[%s7381_s12 + $0x410] sm:$0xff]  ;;  %v425_v43 = vld [vmem:[%s7381_s12 + $0x448] sm:$0xff] }
  0xff   : > { %v431_v20 = vld [vmem:[%s7381_s12 + $0x478] sm:$0xff]  ;;  %v630_v25 = vmul.f32 %v7461_v48, %v425_v43 }
 0x100   : > { %14386 = vst [vmem:[#allocation79_spill] sm:$0xff] %v8660_v34  ;;  %v443_v43 = vld [vmem:[%s7381_s12 + $0x4d8] sm:$0xff] }
 0x101   : > { %2493 = vmatpush2.bf16.msra.mxu0 %v1550_v63  ;;  %v612_v63 = vmul.f32 %v7461_v48, %v407_v26  ;;  %v611_v26 = vmul.f32 %v7463_v49, %v406_v62  ;;  %v636_v62 = vmul.f32 %v7461_v48, %v431_v20 }
 0x102   : > { %2494 = vmatprep.subr.bf16.mxu0 %v1544_v21  ;;  %v1536_v21 = vpack.c.bf16 %v1102_v38, %v1095_v27 }
 0x103   : > { %2207 = vmatmul.mubr.bf16.gmra.mxu0 %v8625_v42  ;;  %2388 = vmatmul.mubr.bf16.gmra.mxu1 %v7962_v60  ;;  %v8662_v28 = vpack.c.bf16 %v612_v63, %v606_v23  ;;  %v419_v60 = vld [vmem:[%s7381_s12 + $0x418] sm:$0xff]  ;;  %v8677_v27 = vpack.c.bf16 %v611_v26, %v605_v41 }
 0x104   : > { %6568 = vmatprep.mubr.msk.bf16.mxu0 %vm1674_vm1, %v8633_v11  ;;  %2397 = vmatprep.mubr.bf16.mxu1 %v7973_v5 }
 0x105   : > { %2495 = vmatpush2.bf16.msra.mxu0 %v1543_v61  ;;  %14387 = vst [vmem:[#allocation80_spill] sm:$0xff] %v8662_v28  ;;  %v618_v61 = vmul.f32 %v7461_v48, %v413_v32  ;;  %14388 = vst [vmem:[#allocation81_spill] sm:$0xff] %v8677_v27 }
 0x106   : > { %2496 = vmatprep.subr.bf16.mxu0 %v1537_v15  ;;  %v624_v15 = vmul.f32 %v7461_v48, %v419_v60  ;;  %v623_v60 = vmul.f32 %v7463_v49, %v418_v6 }
 0x108   : > { %v8679_v38 = vpack.c.bf16 %v624_v15, %v618_v61 }
 0x109   : > { %2497 = vmatpush2.bf16.msra.mxu0 %v1536_v21  ;;  %v617_v21 = vmul.f32 %v7463_v49, %v412_v8 }
 0x10a   : > { %2828 = vmatprep.subr.bf16.mxu0 %v1420_v12  ;;  %14389 = vst [vmem:[#allocation82_spill] sm:$0xff] %v8679_v38 }
 0x10b   : > { %2217 = vmatmul.mubr.bf16.gmra.mxu0 %v8660_v34  ;;  %2398 = vmatmul.mubr.bf16.gmra.mxu1 %v8017_v24  ;;  %v8698_v8 = vpack.c.bf16 %v623_v60, %v617_v21  ;;  %v437_v24 = vld [vmem:[%s7381_s12 + $0x4a8] sm:$0xff] }
 0x10c   : > { %6569 = vmatprep.mubr.msk.bf16.mxu0 %vm1674_vm1, %v8662_v28  ;;  %2407 = vmatprep.mubr.bf16.mxu1 %v8023_v31 }
 0x10d   : > { %14390 = vst [vmem:[#allocation83_spill] sm:$0xff] %v8698_v8 }
 0x113   : > { %v1776_v23 = vpop.f32.mrf.mxu0  ;;  %v1957_v63 = vpop.f32.mrf.mxu1  ;;  %2227 = vmatmul.mubr.bf16.gmra.mxu0 %v8677_v27  ;;  %2408 = vmatmul.mubr.bf16.gmra.mxu1 %v8045_v1  ;;  %v430_v1 = vld [vmem:[%s7381_s12 + $0x470] sm:$0xff] }
 0x114   : > { %v8689_v12 = vadd.f32 %v1957_v63, %v1776_v23  ;;  %6570 = vmatprep.mubr.msk.bf16.mxu0 %vm1674_vm1, %v8679_v38  ;;  %2417 = vmatprep.mubr.bf16.mxu1 %v8051_v58  ;;  %v8702_v23 = vpack.c.bf16 %v636_v62, %v630_v25  ;;  %v424_v63 = vld [vmem:[%s7381_s12 + $0x440] sm:$0xff]  ;;  %v635_v60 = vmul.f32 %v7463_v49, %v430_v1 }
 0x115   : > { %v1778_v32 = vpop.f32.mrf.mxu0  ;;  %v1959_v41 = vpop.f32.mrf.mxu1  ;;  %v629_v21 = vmul.f32 %v7463_v49, %v424_v63 }
 0x116   : > { %v8696_v26 = vadd.f32 %v1959_v41, %v1778_v32  ;;  %14391 = vst [vmem:[#allocation84_spill] sm:$0xff] %v8702_v23 }
 0x117   : > { %v1780_v61 = vpop.f32.mrf.mxu0  ;;  %v1961_v15 = vpop.f32.mrf.mxu1  ;;  %v8723_v1 = vpack.c.bf16 %v635_v60, %v629_v21 }
 0x118   : > { %v8700_v6 = vadd.f32 %v1961_v15, %v1780_v61 }
 0x119   : > { %v1782_v58 = vpop.f32.mrf.mxu0  ;;  %v1963_v31 = vpop.f32.mrf.mxu1  ;;  %14392 = vst [vmem:[#allocation85_spill] sm:$0xff] %v8723_v1 }
 0x11a   : > { %v8708_v5 = vadd.f32 %v1963_v31, %v1782_v58  ;;  %v642_v31 = vmul.f32 %v7461_v48, %v437_v24  ;;  %v648_v58 = vmul.f32 %v7461_v48, %v443_v43  ;;  %v455_v24 = vld [vmem:[%s7381_s12 + $0x538] sm:$0xff] }
 0x11b   : > { %v1786_v20 = vpop.f32.mrf.mxu0  ;;  %v1967_v47 = vpop.f32.mrf.mxu1  ;;  %2237 = vmatmul.mubr.bf16.gmra.mxu0 %v8698_v8  ;;  %2418 = vmatmul.mubr.bf16.gmra.mxu1 %v8073_v59  ;;  %v442_v59 = vld [vmem:[%s7381_s12 + $0x4d0] sm:$0xff] }
 0x11c   : > { %v8714_v25 = vadd.f32 %v1967_v47, %v1786_v20  ;;  %6571 = vmatprep.mubr.msk.bf16.mxu0 %vm1674_vm1, %v8702_v23  ;;  %2427 = vmatprep.mubr.bf16.mxu1 %v8079_v30  ;;  %v8727_v63 = vpack.c.bf16 %v648_v58, %v642_v31  ;;  %v436_v20 = vld [vmem:[%s7381_s12 + $0x4a0] sm:$0xff]  ;;  %v647_v60 = vmul.f32 %v7463_v49, %v442_v59 }
 0x11d   : > { %v1788_v62 = vpop.f32.mrf.mxu0  ;;  %v1969_v32 = vpop.f32.mrf.mxu1  ;;  %v641_v21 = vmul.f32 %v7463_v49, %v436_v20 }
 0x11e   : > { %v8721_v41 = vadd.f32 %v1969_v32, %v1788_v62  ;;  %14393 = vst [vmem:[#allocation86_spill] sm:$0xff] %v8727_v63 }
 0x11f   : > { %v1790_v61 = vpop.f32.mrf.mxu0  ;;  %v1971_v15 = vpop.f32.mrf.mxu1  ;;  %v8748_v20 = vpack.c.bf16 %v647_v60, %v641_v21 }
 0x120   : > { %v8725_v47 = vadd.f32 %v1971_v15, %v1790_v61 }
 0x121   : > { %v1792_v30 = vpop.f32.mrf.mxu0  ;;  %v1973_v44 = vpop.f32.mrf.mxu1  ;;  %14395 = vst [vmem:[#allocation88_spill] sm:$0xff] %v8748_v20 }
 0x122   : > { %v8733_v10 = vadd.f32 %v1973_v44, %v1792_v30  ;;  %v654_v44 = vmul.f32 %v7461_v48, %v449_v22  ;;  %v660_v30 = vmul.f32 %v7461_v48, %v455_v24 }
 0x123   : > { %v1796_v43 = vpop.f32.mrf.mxu0  ;;  %v1977_v23 = vpop.f32.mrf.mxu1  ;;  %2247 = vmatmul.mubr.bf16.gmra.mxu0 %v8723_v1  ;;  %2428 = vmatmul.mubr.bf16.gmra.mxu1 %v8101_v51  ;;  %v454_v51 = vld [vmem:[%s7381_s12 + $0x530] sm:$0xff] }
 0x124   : > { %v8739_v31 = vadd.f32 %v1977_v23, %v1796_v43  ;;  %6572 = vmatprep.mubr.msk.bf16.mxu0 %vm1674_vm1, %v8727_v63  ;;  %2437 = vmatprep.mubr.bf16.mxu1 %v8107_v9  ;;  %v8752_v23 = vpack.c.bf16 %v660_v30, %v654_v44  ;;  %v448_v43 = vld [vmem:[%s7381_s12 + $0x500] sm:$0xff]  ;;  %v659_v60 = vmul.f32 %v7463_v49, %v454_v51 }
 0x125   : > { %v1798_v58 = vpop.f32.mrf.mxu0  ;;  %v1979_v62 = vpop.f32.mrf.mxu1  ;;  %v653_v21 = vmul.f32 %v7463_v49, %v448_v43 }
 0x126   : > { %14394 = vst [vmem:[#allocation87_spill] sm:$0xff] %v8739_v31  ;;  %v8746_v32 = vadd.f32 %v1979_v62, %v1798_v58  ;;  %14396 = vst [vmem:[#allocation89_spill] sm:$0xff] %v8752_v23  ;;  %v461_v31 = vld [vmem:[%s7381_s12 + $0x568] sm:$0xff] }
 0x127   : > { %v1800_v61 = vpop.f32.mrf.mxu0  ;;  %v1981_v15 = vpop.f32.mrf.mxu1 }
 0x128   : > { %v8750_v59 = vadd.f32 %v1981_v15, %v1800_v61  ;;  %v8771_v15 = vpack.c.bf16 %v659_v60, %v653_v21 }
 0x129   : > { %v1802_v63 = vpop.f32.mrf.mxu0  ;;  %v1983_v9 = vpop.f32.mrf.mxu1 }
 0x12a   : > { %v8757_v22 = vadd.f32 %v1983_v9, %v1802_v63  ;;  %v666_v9 = vmul.f32 %v7461_v48, %v461_v31  ;;  %14398 = vst [vmem:[#allocation91_spill] sm:$0xff] %v8771_v15 }
 0x12b   : > { %v1806_v24 = vpop.f32.mrf.mxu0  ;;  %v1987_v1 = vpop.f32.mrf.mxu1  ;;  %2257 = vmatmul.mubr.bf16.gmra.mxu0 %v8748_v20  ;;  %2438 = vmatmul.mubr.bf16.gmra.mxu1 %v8129_v14 }
 0x12c   : > { %v8763_v44 = vadd.f32 %v1987_v1, %v1806_v24  ;;  %6573 = vmatprep.mubr.msk.bf16.mxu0 %vm1674_vm1, %v8752_v23  ;;  %2447 = vmatprep.mubr.bf16.mxu1 %v8134_v4  ;;  %v8775_v51 = vpack.c.bf16 %v666_v9, %v666_v9  ;;  %v460_v1 = vld [vmem:[%s7381_s12 + $0x560] sm:$0xff] }
 0x12d   : > { %v1808_v63 = vpop.f32.mrf.mxu0  ;;  %v1989_v30 = vpop.f32.mrf.mxu1  ;;  %v665_v48 = vmul.f32 %v7463_v49, %v460_v1 }
 0x12e   : > { %14397 = vst [vmem:[#allocation90_spill] sm:$0xff] %v8763_v44  ;;  %v8769_v58 = vadd.f32 %v1989_v30, %v1808_v63  ;;  %14399 = vst [vmem:[#allocation92_spill] sm:$0xff] %v8775_v51 }
 0x12f   : > { %v1810_v62 = vpop.f32.mrf.mxu0  ;;  %v1991_v61 = vpop.f32.mrf.mxu1  ;;  %v8790_v30 = vpack.c.bf16 %v665_v48, %v665_v48 }
 0x130   : > { %v8773_v43 = vadd.f32 %v1991_v61, %v1810_v62 }
 0x131   : > { %v1812_v24 = vpop.f32.mrf.mxu0  ;;  %v1993_v14 = vpop.f32.mrf.mxu1  ;;  %14401 = vst [vmem:[#allocation94_spill] sm:$0xff] %v8790_v30 }
 0x132   : > { %v8778_v23 = vadd.f32 %v1993_v14, %v1812_v24 }
 0x133   : > { %v1816_v4 = vpop.f32.mrf.mxu0  ;;  %v1997_v44 = vpop.f32.mrf.mxu1  ;;  %2267 = vmatmul.mubr.bf16.gmra.mxu0 %v8771_v15  ;;  %2448 = vmatmul.mubr.bf16.gmra.mxu1 %v8153_v56 }
 0x134   : > { %v8783_v31 = vadd.f32 %v1997_v44, %v1816_v4  ;;  %6574 = vmatprep.mubr.msk.bf16.mxu0 %vm1674_vm1, %v8775_v51  ;;  %2457 = vmatprep.mubr.bf16.mxu1 %v8157_v57 }
 0x135   : > { %v1818_v21 = vpop.f32.mrf.mxu0  ;;  %v1999_v60 = vpop.f32.mrf.mxu1 }
 0x136   : > { %v8788_v9 = vadd.f32 %v1999_v60, %v1818_v21  ;;  %v859_v60 = vld [vmem:[%s13744_s1 + $0x330] sm:$0xff] }
 0x137   : > { %v1820_v14 = vpop.f32.mrf.mxu0  ;;  %v2001_v63 = vpop.f32.mrf.mxu1 }
 0x138   : > { %14400 = vst [vmem:[#allocation93_spill] sm:$0xff] %v8788_v9  ;;  %v8792_v62 = vadd.f32 %v2001_v63, %v1820_v14  ;;  %v866_v14 = vld [vmem:[%s13744_s1 + $0x368] sm:$0xff] }
 0x139   : > { %v1822_v61 = vpop.f32.mrf.mxu0  ;;  %v2003_v24 = vpop.f32.mrf.mxu1  ;;  %v1419_v56 = vpack.c.bf16 %v866_v14, %v859_v60  ;;  %v839_v60 = vld [vmem:[%s13744_s1 + $0x290] sm:$0xff]  ;;  %v1069_v14 = vld [vmem:[%s13744_s1 + $0x9c0] sm:$0xff] }
 0x13a   : > { %14402 = vst [vmem:[#allocation95_spill] sm:$0xff] %v8792_v62  ;;  %v8794_v49 = vadd.f32 %v2003_v24, %v1822_v61  ;;  %v1083_v61 = vld [vmem:[%s13744_s1 + $0xa30] sm:$0xff]  ;;  %v1090_v24 = vld [vmem:[%s13744_s1 + $0xa68] sm:$0xff]  ;;  %v832_v62 = vld [vmem:[%s13744_s1 + $0x258] sm:$0xff] }
 0x13b   : > { %v1826_v4 = vpop.f32.mrf.mxu0  ;;  %v2007_v44 = vpop.f32.mrf.mxu1  ;;  %2277 = vmatmul.mubr.bf16.gmra.mxu0 %v8790_v30  ;;  %2458 = vmatmul.mubr.bf16.gmra.mxu1 %v8173_v17  ;;  %v853_v17 = vld [vmem:[%s13744_s1 + $0x300] sm:$0xff] }
 0x13c   : > { %14403 = vst [vmem:[#allocation96_spill] sm:$0xff] %v8794_v49  ;;  %v8798_v1 = vadd.f32 %v2007_v44, %v1826_v4  ;;  %2498 = vmatprep.mubr.bf16.mxu0 %v7480_v0  ;;  %6576 = vmatprep.mubr.msk.bf16.mxu1 %vm1674_vm1, %v8177_v3  ;;  %v846_v4 = vld [vmem:[%s13744_s1 + $0x2c8] sm:$0xff]  ;;  %v845_v30 = vld [vmem:[%s13744_s1 + $0x2c0] sm:$0xff]  ;;  %v852_v49 = vld [vmem:[%s13744_s1 + $0x2f8] sm:$0xff] }
 0x13d   : > { %v1828_v48 = vpop.f32.mrf.mxu0  ;;  %v2009_v21 = vpop.f32.mrf.mxu1 }
 0x13e   : > { %14404 = vst [vmem:[#allocation97_spill] sm:$0xff] %v8798_v1  ;;  %v8809_v63 = vadd.f32 %v2009_v21, %v1828_v48  ;;  %v1070_v48 = vld [vmem:[%s13744_s1 + $0x9c8] sm:$0xff]  ;;  %v1077_v21 = vld [vmem:[%s13744_s1 + $0xa00] sm:$0xff]  ;;  %v1531_v1 = vpack.c.bf16 %v1090_v24, %v1083_v61  ;;  %v1076_v61 = vld [vmem:[%s13744_s1 + $0x9f8] sm:$0xff] }
 0x13f   : > { %v1830_v44 = vpop.f32.mrf.mxu0  ;;  %v2011_v3 = vpop.f32.mrf.mxu1 }
 0x140   : > { %14405 = vst [vmem:[#allocation98_spill] sm:$0xff] %v8809_v63  ;;  %v8829_v57 = vadd.f32 %v2011_v3, %v1830_v44  ;;  %v1413_v3 = vpack.c.bf16 %v853_v17, %v846_v4  ;;  %v1525_v44 = vpack.c.bf16 %v1077_v21, %v1070_v48  ;;  %v1063_v17 = vld [vmem:[%s13744_s1 + $0x990] sm:$0xff]  ;;  %v1412_v4 = vpack.c.bf16 %v852_v49, %v845_v30 }
 0x141   : > { %v1832_v63 = vpop.f32.mrf.mxu0  ;;  %v2013_v0 = vpop.f32.mrf.mxu1  ;;  %v1055_v49 = vld [vmem:[%s13744_s1 + $0x950] sm:$0xff] }
 0x142   : > { %14406 = vst [vmem:[#allocation99_spill] sm:$0xff] %v8829_v57  ;;  %v8840_v9 = vadd.f32 %v2013_v0, %v1832_v63  ;;  %v1056_v0 = vld [vmem:[%s13744_s1 + $0x958] sm:$0xff] }
 0x143   : > { %v1836_v24 = vpop.f32.mrf.mxu0  ;;  %v2017_v57 = vpop.f32.mrf.mxu1  ;;  %2499 = vmatmul.mubr.bf16.vlgmr.msra.gmra.mxu0 %v7489_v7  ;;  %2680 = vmatmul.mubr.bf16.vlgmr.msra.gmra.mxu1 %v8208_v2  ;;  %v1406_v2 = vpack.c.bf16 %v839_v60, %v832_v62  ;;  %v1524_v7 = vpack.c.bf16 %v1076_v61, %v1069_v14  ;;  %v1518_v30 = vpack.c.bf16 %v1063_v17, %v1056_v0  ;;  %v1062_v62 = vld [vmem:[%s13744_s1 + $0x988] sm:$0xff]  ;;  %v1049_v61 = vld [vmem:[%s13744_s1 + $0x920] sm:$0xff] }
 0x144   : > { %14407 = vst [vmem:[#allocation100_spill] sm:$0xff] %v8840_v9  ;;  %v8859_v63 = vadd.f32 %v2017_v57, %v1836_v24  ;;  %2829 = vmatpush1.bf16.msra.mxu0 %v1419_v56  ;;  %2508 = vmatprep.mubr.bf16.mxu0 %v7515_v19  ;;  %v831_v9 = vld [vmem:[%s13744_s1 + $0x250] sm:$0xff]  ;;  %v838_v57 = vld [vmem:[%s13744_s1 + $0x288] sm:$0xff] }
 0x145   : > { %v1838_v48 = vpop.f32.mrf.mxu0  ;;  %v2019_v21 = vpop.f32.mrf.mxu1  ;;  %6577 = vmatprep.mubr.msk.bf16.mxu1 %vm1674_vm1, %v8219_v45  ;;  %3010 = vmatpush1.bf16.msra.mxu1 %v1531_v1  ;;  %v818_v1 = vld [vmem:[%s13744_s1 + $0x1e8] sm:$0xff]  ;;  %v817_v45 = vld [vmem:[%s13744_s1 + $0x1e0] sm:$0xff] }
 0x146   : > { %v8870_v56 = vadd.f32 %v2019_v21, %v1838_v48  ;;  %2830 = vmatprep.subr.bf16.mxu0 %v1413_v3  ;;  %3011 = vmatprep.subr.bf16.mxu1 %v1525_v44  ;;  %v825_v3 = vld [vmem:[%s13744_s1 + $0x220] sm:$0xff]  ;;  %v1042_v44 = vld [vmem:[%s13744_s1 + $0x8e8] sm:$0xff]  ;;  %v1405_v48 = vpack.c.bf16 %v838_v57, %v831_v9  ;;  %v1517_v21 = vpack.c.bf16 %v1062_v62, %v1055_v49  ;;  %v1048_v9 = vld [vmem:[%s13744_s1 + $0x918] sm:$0xff] }
 0x147   : > { %v1840_v60 = vpop.f32.mrf.mxu0  ;;  %v2021_v14 = vpop.f32.mrf.mxu1  ;;  %v1028_v49 = vld [vmem:[%s13744_s1 + $0x878] sm:$0xff]  ;;  %v1035_v62 = vld [vmem:[%s13744_s1 + $0x8b0] sm:$0xff] }
 0x148   : > { %14408 = vst [vmem:[#allocation101_spill] sm:$0xff] %v8870_v56  ;;  %v8890_v24 = vadd.f32 %v2021_v14, %v1840_v60  ;;  %2831 = vmatpush1.bf16.msra.mxu0 %v1412_v4  ;;  %v824_v56 = vld [vmem:[%s13744_s1 + $0x218] sm:$0xff]  ;;  %v1399_v60 = vpack.c.bf16 %v825_v3, %v818_v1  ;;  %v1511_v14 = vpack.c.bf16 %v1049_v61, %v1042_v44 }
 0x149   : > { %v1842_v0 = vpop.f32.mrf.mxu0  ;;  %v2023_v17 = vpop.f32.mrf.mxu1  ;;  %2832 = vmatprep.subr.bf16.mxu0 %v1406_v2  ;;  %3012 = vmatpush1.bf16.msra.mxu1 %v1524_v7  ;;  %v804_v2 = vld [vmem:[%s13744_s1 + $0x178] sm:$0xff]  ;;  %v1041_v7 = vld [vmem:[%s13744_s1 + $0x8e0] sm:$0xff]  ;;  %v1398_v61 = vpack.c.bf16 %v824_v56, %v817_v45  ;;  %v1034_v45 = vld [vmem:[%s13744_s1 + $0x8a8] sm:$0xff] }
 0x14a   : > { %v8898_v19 = vadd.f32 %v2023_v17, %v1842_v0  ;;  %3013 = vmatprep.subr.bf16.mxu1 %v1518_v30  ;;  %v811_v30 = vld [vmem:[%s13744_s1 + $0x1b0] sm:$0xff]  ;;  %v1510_v0 = vpack.c.bf16 %v1048_v9, %v1041_v7  ;;  %v790_v56 = vld [vmem:[%s13744_s1 + $0x108] sm:$0xff] }
 0x14b   : > { %v1846_v4 = vpop.f32.mrf.mxu0  ;;  %v2027_v57 = vpop.f32.mrf.mxu1  ;;  %2509 = vmatmul.mubr.bf16.gmra.mxu0 %v7555_v36  ;;  %2690 = vmatmul.mubr.bf16.gmra.mxu1 %v8272_v18  ;;  %v803_v17 = vld [vmem:[%s13744_s1 + $0x170] sm:$0xff]  ;;  %v1392_v18 = vpack.c.bf16 %v811_v30, %v804_v2  ;;  %v1021_v2 = vld [vmem:[%s13744_s1 + $0x840] sm:$0xff] }
 0x14c   : > { %v8920_v1 = vadd.f32 %v2027_v57, %v1846_v4  ;;  %2518 = vmatprep.mubr.bf16.mxu0 %v7571_v55  ;;  %6578 = vmatprep.mubr.msk.bf16.mxu1 %vm1674_vm1, %v8283_v46  ;;  %v810_v4 = vld [vmem:[%s13744_s1 + $0x1a8] sm:$0xff]  ;;  %v1504_v46 = vpack.c.bf16 %v1035_v62, %v1028_v49 }
 0x14d   : > { %v1848_v3 = vpop.f32.mrf.mxu0  ;;  %v2029_v44 = vpop.f32.mrf.mxu1  ;;  %2833 = vmatpush1.bf16.msra.mxu0 %v1405_v48  ;;  %3014 = vmatpush1.bf16.msra.mxu1 %v1517_v21  ;;  %v1027_v48 = vld [vmem:[%s13744_s1 + $0x870] sm:$0xff]  ;;  %v1391_v62 = vpack.c.bf16 %v810_v4, %v803_v17  ;;  %v1020_v17 = vld [vmem:[%s13744_s1 + $0x838] sm:$0xff] }
 0x14e   : > { %v8931_v57 = vadd.f32 %v2029_v44, %v1848_v3  ;;  %2834 = vmatprep.subr.bf16.mxu0 %v1399_v60  ;;  %3015 = vmatprep.subr.bf16.mxu1 %v1511_v14  ;;  %v797_v60 = vld [vmem:[%s13744_s1 + $0x140] sm:$0xff]  ;;  %v1014_v14 = vld [vmem:[%s13744_s1 + $0x808] sm:$0xff]  ;;  %v1503_v3 = vpack.c.bf16 %v1034_v45, %v1027_v48  ;;  %v1007_v45 = vld [vmem:[%s13744_s1 + $0x7d0] sm:$0xff] }
 0x14f   : > { %v1850_v21 = vpop.f32.mrf.mxu0  ;;  %v2031_v7 = vpop.f32.mrf.mxu1  ;;  %v789_v44 = vld [vmem:[%s13744_s1 + $0x100] sm:$0xff] }
 0x150   : > { %14409 = vst [vmem:[#allocation102_spill] sm:$0xff] %v8931_v57  ;;  %v8951_v9 = vadd.f32 %v2031_v7, %v1850_v21  ;;  %v796_v57 = vld [vmem:[%s13744_s1 + $0x138] sm:$0xff]  ;;  %v1385_v21 = vpack.c.bf16 %v797_v60, %v790_v56  ;;  %v1497_v7 = vpack.c.bf16 %v1021_v2, %v1014_v14 }
 0x151   : > { %v1852_v30 = vpop.f32.mrf.mxu0  ;;  %v2033_v49 = vpop.f32.mrf.mxu1  ;;  %2835 = vmatpush1.bf16.msra.mxu0 %v1398_v61  ;;  %3016 = vmatpush1.bf16.msra.mxu1 %v1510_v0  ;;  %v776_v61 = vld [vmem:[%s13744_s1 + $0x98] sm:$0xff]  ;;  %v1013_v0 = vld [vmem:[%s13744_s1 + $0x800] sm:$0xff]  ;;  %v1384_v2 = vpack.c.bf16 %v796_v57, %v789_v44  ;;  %v1006_v57 = vld [vmem:[%s13744_s1 + $0x7c8] sm:$0xff] }
 0x152   : > { %v8959_v55 = vadd.f32 %v2033_v49, %v1852_v30  ;;  %2836 = vmatprep.subr.bf16.mxu0 %v1392_v18  ;;  %3017 = vmatprep.subr.bf16.mxu1 %v1504_v46  ;;  %v783_v18 = vld [vmem:[%s13744_s1 + $0xd0] sm:$0xff]  ;;  %v1000_v46 = vld [vmem:[%s13744_s1 + $0x798] sm:$0xff]  ;;  %v1496_v30 = vpack.c.bf16 %v1020_v17, %v1013_v0 }
 0x153   : > { %v1856_v4 = vpop.f32.mrf.mxu0  ;;  %v2037_v48 = vpop.f32.mrf.mxu1  ;;  %2519 = vmatmul.mubr.bf16.gmra.mxu0 %v7628_v33  ;;  %2700 = vmatmul.mubr.bf16.gmra.mxu1 %v8337_v37  ;;  %v775_v49 = vld [vmem:[%s13744_s1 + $0x90] sm:$0xff]  ;;  %v1378_v37 = vpack.c.bf16 %v783_v18, %v776_v61  ;;  %v993_v61 = vld [vmem:[%s13744_s1 + $0x760] sm:$0xff] }
 0x154   : > { %v8981_v56 = vadd.f32 %v2037_v48, %v1856_v4  ;;  %2528 = vmatprep.mubr.bf16.mxu0 %v7639_v35  ;;  %6579 = vmatprep.mubr.msk.bf16.mxu1 %vm1674_vm1, %v8348_v40  ;;  %v782_v4 = vld [vmem:[%s13744_s1 + $0xc8] sm:$0xff]  ;;  %v1490_v40 = vpack.c.bf16 %v1007_v45, %v1000_v46 }
 0x155   : > { %v1858_v60 = vpop.f32.mrf.mxu0  ;;  %v2039_v14 = vpop.f32.mrf.mxu1  ;;  %2837 = vmatpush1.bf16.msra.mxu0 %v1391_v62  ;;  %3018 = vmatpush1.bf16.msra.mxu1 %v1503_v3  ;;  %v999_v62 = vld [vmem:[%s13744_s1 + $0x790] sm:$0xff]  ;;  %v762_v3 = vld [vmem:[%s13744_s1 + $0x28] sm:$0xff]  ;;  %v1377_v45 = vpack.c.bf16 %v782_v4, %v775_v49  ;;  %v992_v49 = vld [vmem:[%s13744_s1 + $0x758] sm:$0xff] }
 0x156   : > { %v8992_v48 = vadd.f32 %v2039_v14, %v1858_v60  ;;  %2838 = vmatprep.subr.bf16.mxu0 %v1385_v21  ;;  %3019 = vmatprep.subr.bf16.mxu1 %v1497_v7  ;;  %v769_v21 = vld [vmem:[%s13744_s1 + $0x60] sm:$0xff]  ;;  %v986_v7 = vld [vmem:[%s13744_s1 + $0x728] sm:$0xff]  ;;  %v1489_v60 = vpack.c.bf16 %v1006_v57, %v999_v62  ;;  %v14411_v57 = vld [vmem:[#allocation17_spill] sm:$0xff] }
 0x157   : > { %v1860_v44 = vpop.f32.mrf.mxu0  ;;  %v2041_v0 = vpop.f32.mrf.mxu1  ;;  %v761_v14 = vld [vmem:[%s13744_s1 + $0x20] sm:$0xff] }
 0x158   : > { %14410 = vst [vmem:[#allocation103_spill] sm:$0xff] %v8992_v48  ;;  %v9012_v17 = vadd.f32 %v2041_v0, %v1860_v44  ;;  %v768_v48 = vld [vmem:[%s13744_s1 + $0x58] sm:$0xff]  ;;  %v1371_v44 = vpack.c.bf16 %v769_v21, %v762_v3  ;;  %v1483_v0 = vpack.c.bf16 %v993_v61, %v986_v7  ;;  %v1203_v3 = vld [vmem:[%s13744_s1 + $0xdf0] sm:$0xff]  ;;  %v14413_v7 = vld [vmem:[#allocation19_spill] sm:$0xff] }
 0x159   : > { %v1862_v18 = vpop.f32.mrf.mxu0  ;;  %v2043_v46 = vpop.f32.mrf.mxu1  ;;  %2839 = vmatpush1.bf16.msra.mxu0 %v1384_v2  ;;  %3020 = vmatpush1.bf16.msra.mxu1 %v1496_v30  ;;  %v972_v2 = vld [vmem:[%s13744_s1 + $0x6b8] sm:$0xff]  ;;  %v985_v30 = vld [vmem:[%s13744_s1 + $0x720] sm:$0xff] }
 0x15a   : > { %v9020_v35 = vadd.f32 %v2043_v46, %v1862_v18  ;;  %2840 = vmatprep.subr.bf16.mxu0 %v1378_v37  ;;  %3021 = vmatprep.subr.bf16.mxu1 %v1490_v40  ;;  %v979_v37 = vld [vmem:[%s13744_s1 + $0x6f0] sm:$0xff]  ;;  %v1196_v40 = vld [vmem:[%s13744_s1 + $0xdb8] sm:$0xff]  ;;  %v1370_v46 = vpack.c.bf16 %v768_v48, %v761_v14  ;;  %v1202_v48 = vld [vmem:[%s13744_s1 + $0xde8] sm:$0xff] }
 0x15b   : > { %v1866_v4 = vpop.f32.mrf.mxu0  ;;  %v2047_v62 = vpop.f32.mrf.mxu1  ;;  %2529 = vmatmul.mubr.bf16.gmra.mxu0 %v14411_v57  ;;  %2710 = vmatmul.mubr.bf16.gmra.mxu1 %v8402_v54  ;;  %v1482_v54 = vpack.c.bf16 %v992_v49, %v985_v30  ;;  %v971_v57 = vld [vmem:[%s13744_s1 + $0x6b0] sm:$0xff] }
 0x15c   : > { %v9042_v21 = vadd.f32 %v2047_v62, %v1866_v4  ;;  %2538 = vmatprep.mubr.bf16.mxu0 %v14413_v7  ;;  %6580 = vmatprep.mubr.msk.bf16.mxu1 %vm1674_vm1, %v8413_v52  ;;  %v978_v4 = vld [vmem:[%s13744_s1 + $0x6e8] sm:$0xff]  ;;  %v1476_v7 = vpack.c.bf16 %v979_v37, %v972_v2  ;;  %v1588_v52 = vpack.c.bf16 %v1203_v3, %v1196_v40  ;;  %v1189_v2 = vld [vmem:[%s13744_s1 + $0xd80] sm:$0xff] }
 0x15d   : > { %v1868_v61 = vpop.f32.mrf.mxu0  ;;  %v2049_v18 = vpop.f32.mrf.mxu1  ;;  %2841 = vmatpush1.bf16.msra.mxu0 %v1377_v45  ;;  %3022 = vmatpush1.bf16.msra.mxu1 %v1489_v60  ;;  %v1195_v45 = vld [vmem:[%s13744_s1 + $0xdb0] sm:$0xff]  ;;  %v958_v60 = vld [vmem:[%s13744_s1 + $0x648] sm:$0xff]  ;;  %v1475_v3 = vpack.c.bf16 %v978_v4, %v971_v57  ;;  %v1181_v57 = vld [vmem:[%s13744_s1 + $0xd40] sm:$0xff] }
 0x15e   : > { %14412 = vst [vmem:[#allocation104_spill] sm:$0xff] %v9042_v21  ;;  %v9053_v62 = vadd.f32 %v2049_v18, %v1868_v61  ;;  %2842 = vmatprep.subr.bf16.mxu0 %v1371_v44  ;;  %3023 = vmatprep.subr.bf16.mxu1 %v1483_v0  ;;  %v965_v44 = vld [vmem:[%s13744_s1 + $0x680] sm:$0xff]  ;;  %v1182_v0 = vld [vmem:[%s13744_s1 + $0xd48] sm:$0xff]  ;;  %v1587_v61 = vpack.c.bf16 %v1202_v48, %v1195_v45  ;;  %v14415_v48 = vld [vmem:[#allocation21_spill] sm:$0xff] }
 0x15f   : > { %v1870_v14 = vpop.f32.mrf.mxu0  ;;  %v2051_v30 = vpop.f32.mrf.mxu1  ;;  %v957_v18 = vld [vmem:[%s13744_s1 + $0x640] sm:$0xff] }
 0x160   : > { %14414 = vst [vmem:[#allocation105_spill] sm:$0xff] %v9053_v62  ;;  %v9073_v49 = vadd.f32 %v2051_v30, %v1870_v14  ;;  %v964_v62 = vld [vmem:[%s13744_s1 + $0x678] sm:$0xff]  ;;  %v1469_v14 = vpack.c.bf16 %v965_v44, %v958_v60  ;;  %v1581_v30 = vpack.c.bf16 %v1189_v2, %v1182_v0  ;;  %v1175_v60 = vld [vmem:[%s13744_s1 + $0xd10] sm:$0xff]  ;;  %v14417_v0 = vld [vmem:[#allocation23_spill] sm:$0xff] }
 0x161   : > { %v1872_v37 = vpop.f32.mrf.mxu0  ;;  %v2053_v40 = vpop.f32.mrf.mxu1  ;;  %2843 = vmatpush1.bf16.msra.mxu0 %v1370_v46  ;;  %3024 = vmatpush1.bf16.msra.mxu1 %v1482_v54  ;;  %v944_v54 = vld [vmem:[%s13744_s1 + $0x5d8] sm:$0xff] }
 0x162   : > { %v9081_v21 = vadd.f32 %v2053_v40, %v1872_v37  ;;  %2844 = vmatprep.subr.bf16.mxu0 %v1476_v7  ;;  %3025 = vmatprep.subr.bf16.mxu1 %v1588_v52  ;;  %v1188_v46 = vld [vmem:[%s13744_s1 + $0xd78] sm:$0xff]  ;;  %v951_v52 = vld [vmem:[%s13744_s1 + $0x610] sm:$0xff]  ;;  %v1468_v40 = vpack.c.bf16 %v964_v62, %v957_v18  ;;  %v1174_v62 = vld [vmem:[%s13744_s1 + $0xd08] sm:$0xff] }
 0x163   : > { %v1876_v4 = vpop.f32.mrf.mxu0  ;;  %v2057_v45 = vpop.f32.mrf.mxu1  ;;  %2539 = vmatmul.mubr.bf16.gmra.mxu0 %v14415_v48  ;;  %2720 = vmatmul.mubr.bf16.gmra.mxu1 %v8461_v53  ;;  %v1168_v7 = vld [vmem:[%s13744_s1 + $0xcd8] sm:$0xff]  ;;  %v1580_v53 = vpack.c.bf16 %v1188_v46, %v1181_v57  ;;  %v943_v48 = vld [vmem:[%s13744_s1 + $0x5d0] sm:$0xff] }
 0x164   : > { %v9103_v44 = vadd.f32 %v2057_v45, %v1876_v4  ;;  %2548 = vmatprep.mubr.bf16.mxu0 %v14417_v0  ;;  %6581 = vmatprep.mubr.msk.bf16.mxu1 %vm1674_vm1, %v8472_v16  ;;  %v950_v4 = vld [vmem:[%s13744_s1 + $0x608] sm:$0xff]  ;;  %v1462_v0 = vpack.c.bf16 %v951_v52, %v944_v54  ;;  %v1574_v16 = vpack.c.bf16 %v1175_v60, %v1168_v7  ;;  %v1161_v54 = vld [vmem:[%s13744_s1 + $0xca0] sm:$0xff] }
 0x165   : > { %v1878_v2 = vpop.f32.mrf.mxu0  ;;  %v2059_v37 = vpop.f32.mrf.mxu1  ;;  %2845 = vmatpush2.bf16.msra.mxu0 %v1475_v3  ;;  %3026 = vmatpush2.bf16.msra.mxu1 %v1587_v61  ;;  %v1167_v3 = vld [vmem:[%s13744_s1 + $0xcd0] sm:$0xff]  ;;  %v930_v61 = vld [vmem:[%s13744_s1 + $0x568] sm:$0xff]  ;;  %v1461_v60 = vpack.c.bf16 %v950_v4, %v943_v48  ;;  %v1153_v48 = vld [vmem:[%s13744_s1 + $0xc60] sm:$0xff] }
 0x166   : > { %14416 = vst [vmem:[#allocation106_spill] sm:$0xff] %v9103_v44  ;;  %v9114_v45 = vadd.f32 %v2059_v37, %v1878_v2  ;;  %2846 = vmatprep.subr.bf16.mxu0 %v1469_v14  ;;  %3027 = vmatprep.subr.bf16.mxu1 %v1581_v30  ;;  %v937_v14 = vld [vmem:[%s13744_s1 + $0x5a0] sm:$0xff]  ;;  %v1154_v30 = vld [vmem:[%s13744_s1 + $0xc68] sm:$0xff]  ;;  %v1573_v2 = vpack.c.bf16 %v1174_v62, %v1167_v3  ;;  %v14419_v62 = vld [vmem:[#allocation25_spill] sm:$0xff] }
 0x167   : > { %v1880_v18 = vpop.f32.mrf.mxu0  ;;  %v2061_v57 = vpop.f32.mrf.mxu1  ;;  %v929_v37 = vld [vmem:[%s13744_s1 + $0x560] sm:$0xff] }
 0x168   : > { %14418 = vst [vmem:[#allocation107_spill] sm:$0xff] %v9114_v45  ;;  %v9134_v46 = vadd.f32 %v2061_v57, %v1880_v18  ;;  %v936_v45 = vld [vmem:[%s13744_s1 + $0x598] sm:$0xff]  ;;  %v1455_v18 = vpack.c.bf16 %v937_v14, %v930_v61  ;;  %v1567_v57 = vpack.c.bf16 %v1161_v54, %v1154_v30  ;;  %v1147_v61 = vld [vmem:[%s13744_s1 + $0xc30] sm:$0xff]  ;;  %v14421_v30 = vld [vmem:[#allocation27_spill] sm:$0xff] }
 0x169   : > { %v1882_v52 = vpop.f32.mrf.mxu0  ;;  %v2063_v7 = vpop.f32.mrf.mxu1  ;;  %2847 = vmatpush2.bf16.msra.mxu0 %v1468_v40  ;;  %3028 = vmatpush2.bf16.msra.mxu1 %v1580_v53  ;;  %v916_v53 = vld [vmem:[%s13744_s1 + $0x4f8] sm:$0xff] }
 0x16a   : > { %v9142_v44 = vadd.f32 %v2063_v7, %v1882_v52  ;;  %2848 = vmatprep.subr.bf16.mxu0 %v1462_v0  ;;  %3029 = vmatprep.subr.bf16.mxu1 %v1574_v16  ;;  %v1160_v40 = vld [vmem:[%s13744_s1 + $0xc98] sm:$0xff]  ;;  %v923_v16 = vld [vmem:[%s13744_s1 + $0x530] sm:$0xff]  ;;  %v1454_v7 = vpack.c.bf16 %v936_v45, %v929_v37  ;;  %v1146_v45 = vld [vmem:[%s13744_s1 + $0xc28] sm:$0xff] }
 0x16b   : > { %v1886_v4 = vpop.f32.mrf.mxu0  ;;  %v2067_v3 = vpop.f32.mrf.mxu1  ;;  %2549 = vmatmul.mubr.bf16.gmra.mxu0 %v14419_v62  ;;  %2730 = vmatmul.mubr.bf16.gmra.mxu1 %v8528_v50  ;;  %v1140_v0 = vld [vmem:[%s13744_s1 + $0xbf8] sm:$0xff]  ;;  %v1566_v50 = vpack.c.bf16 %v1160_v40, %v1153_v48  ;;  %v915_v62 = vld [vmem:[%s13744_s1 + $0x4f0] sm:$0xff] }
 0x16c   : > { %v9164_v14 = vadd.f32 %v2067_v3, %v1886_v4  ;;  %2558 = vmatprep.mubr.bf16.mxu0 %v14421_v30  ;;  %6582 = vmatprep.mubr.msk.bf16.mxu1 %vm1674_vm1, %v8539_v29  ;;  %v922_v4 = vld [vmem:[%s13744_s1 + $0x528] sm:$0xff]  ;;  %v1448_v30 = vpack.c.bf16 %v923_v16, %v916_v53  ;;  %v1560_v29 = vpack.c.bf16 %v1147_v61, %v1140_v0  ;;  %v1133_v53 = vld [vmem:[%s13744_s1 + $0xbc0] sm:$0xff] }
 0x16d   : > { %v1888_v54 = vpop.f32.mrf.mxu0  ;;  %v2069_v52 = vpop.f32.mrf.mxu1  ;;  %2849 = vmatpush2.bf16.msra.mxu0 %v1461_v60  ;;  %3030 = vmatpush2.bf16.msra.mxu1 %v1573_v2  ;;  %v1139_v60 = vld [vmem:[%s13744_s1 + $0xbf0] sm:$0xff]  ;;  %v902_v2 = vld [vmem:[%s13744_s1 + $0x488] sm:$0xff]  ;;  %v1447_v61 = vpack.c.bf16 %v922_v4, %v915_v62  ;;  %v1125_v62 = vld [vmem:[%s13744_s1 + $0xb80] sm:$0xff] }
 0x16e   : > { %14420 = vst [vmem:[#allocation108_spill] sm:$0xff] %v9164_v14  ;;  %v9175_v3 = vadd.f32 %v2069_v52, %v1888_v54  ;;  %2850 = vmatprep.subr.bf16.mxu0 %v1455_v18  ;;  %3031 = vmatprep.subr.bf16.mxu1 %v1567_v57  ;;  %v909_v18 = vld [vmem:[%s13744_s1 + $0x4c0] sm:$0xff]  ;;  %v1126_v57 = vld [vmem:[%s13744_s1 + $0xb88] sm:$0xff]  ;;  %v1559_v54 = vpack.c.bf16 %v1146_v45, %v1139_v60  ;;  %v14424_v45 = vld [vmem:[#allocation29_spill] sm:$0xff] }
 0x16f   : > { %v1890_v37 = vpop.f32.mrf.mxu0  ;;  %v2071_v48 = vpop.f32.mrf.mxu1  ;;  %v901_v52 = vld [vmem:[%s13744_s1 + $0x480] sm:$0xff] }
 0x170   : > { %14422 = vst [vmem:[#allocation109_spill] sm:$0xff] %v9175_v3  ;;  %v9195_v40 = vadd.f32 %v2071_v48, %v1890_v37  ;;  %v908_v3 = vld [vmem:[%s13744_s1 + $0x4b8] sm:$0xff]  ;;  %v1441_v37 = vpack.c.bf16 %v909_v18, %v902_v2  ;;  %v1553_v48 = vpack.c.bf16 %v1133_v53, %v1126_v57  ;;  %v1119_v2 = vld [vmem:[%s13744_s1 + $0xb50] sm:$0xff]  ;;  %v14426_v57 = vld [vmem:[#allocation31_spill] sm:$0xff] }
 0x171   : > { %v1892_v16 = vpop.f32.mrf.mxu0  ;;  %v2073_v0 = vpop.f32.mrf.mxu1  ;;  %2851 = vmatpush2.bf16.msra.mxu0 %v1454_v7  ;;  %3032 = vmatpush2.bf16.msra.mxu1 %v1566_v50  ;;  %v888_v50 = vld [vmem:[%s13744_s1 + $0x418] sm:$0xff] }
 0x172   : > { %v9203_v14 = vadd.f32 %v2073_v0, %v1892_v16  ;;  %2852 = vmatprep.subr.bf16.mxu0 %v1448_v30  ;;  %3033 = vmatprep.subr.bf16.mxu1 %v1560_v29  ;;  %v1132_v7 = vld [vmem:[%s13744_s1 + $0xbb8] sm:$0xff]  ;;  %v895_v29 = vld [vmem:[%s13744_s1 + $0x450] sm:$0xff]  ;;  %v1440_v0 = vpack.c.bf16 %v908_v3, %v901_v52  ;;  %v1118_v3 = vld [vmem:[%s13744_s1 + $0xb48] sm:$0xff] }
 0x173   : > { %v1896_v4 = vpop.f32.mrf.mxu0  ;;  %v2077_v60 = vpop.f32.mrf.mxu1  ;;  %2559 = vmatmul.mubr.bf16.gmra.mxu0 %v14424_v45  ;;  %2740 = vmatmul.mubr.bf16.gmra.mxu1 %v8584_v13  ;;  %v1112_v30 = vld [vmem:[%s13744_s1 + $0xb18] sm:$0xff]  ;;  %v1552_v13 = vpack.c.bf16 %v1132_v7, %v1125_v62  ;;  %v887_v45 = vld [vmem:[%s13744_s1 + $0x410] sm:$0xff] }
 0x174   : > { %14423 = vst [vmem:[#allocation110_spill] sm:$0xff] %v9203_v14  ;;  %v9225_v18 = vadd.f32 %v2077_v60, %v1896_v4  ;;  %2568 = vmatprep.mubr.bf16.mxu0 %v14426_v57  ;;  %6583 = vmatprep.mubr.msk.bf16.mxu1 %vm1674_vm1, %v8592_v39  ;;  %v894_v4 = vld [vmem:[%s13744_s1 + $0x448] sm:$0xff]  ;;  %v1434_v57 = vpack.c.bf16 %v895_v29, %v888_v50  ;;  %v1105_v50 = vld [vmem:[%s13744_s1 + $0xae0] sm:$0xff] }
 0x175   : > { %v1898_v53 = vpop.f32.mrf.mxu0  ;;  %v2079_v16 = vpop.f32.mrf.mxu1  ;;  %2853 = vmatpush2.bf16.msra.mxu0 %v1447_v61  ;;  %3034 = vmatpush2.bf16.msra.mxu1 %v1559_v54  ;;  %v1546_v39 = vpack.c.bf16 %v1119_v2, %v1112_v30  ;;  %v1111_v61 = vld [vmem:[%s13744_s1 + $0xb10] sm:$0xff]  ;;  %v874_v54 = vld [vmem:[%s13744_s1 + $0x3a8] sm:$0xff]  ;;  %v1433_v2 = vpack.c.bf16 %v894_v4, %v887_v45  ;;  %v1104_v45 = vld [vmem:[%s13744_s1 + $0xad8] sm:$0xff] }
 0x176   : > { %14425 = vst [vmem:[#allocation111_spill] sm:$0xff] %v9225_v18  ;;  %v9236_v60 = vadd.f32 %v2079_v16, %v1898_v53  ;;  %2854 = vmatprep.subr.bf16.mxu0 %v1441_v37  ;;  %3035 = vmatprep.subr.bf16.mxu1 %v1553_v48  ;;  %v881_v37 = vld [vmem:[%s13744_s1 + $0x3e0] sm:$0xff]  ;;  %v1098_v48 = vld [vmem:[%s13744_s1 + $0xaa8] sm:$0xff]  ;;  %v1545_v53 = vpack.c.bf16 %v1118_v3, %v1111_v61  ;;  %v14430_v3 = vld [vmem:[#allocation33_spill] sm:$0xff] }
 0x177   : > { %v1900_v52 = vpop.f32.mrf.mxu0  ;;  %v2081_v62 = vpop.f32.mrf.mxu1  ;;  %v873_v16 = vld [vmem:[%s13744_s1 + $0x3a0] sm:$0xff] }
 0x178   : > { %14427 = vst [vmem:[#allocation112_spill] sm:$0xff] %v9236_v60  ;;  %v9256_v7 = vadd.f32 %v2081_v62, %v1900_v52  ;;  %v880_v60 = vld [vmem:[%s13744_s1 + $0x3d8] sm:$0xff]  ;;  %v1427_v52 = vpack.c.bf16 %v881_v37, %v874_v54  ;;  %v1539_v62 = vpack.c.bf16 %v1105_v50, %v1098_v48  ;;  %v14432_v48 = vld [vmem:[#allocation35_spill] sm:$0xff] }
 0x179   : > { %v1902_v29 = vpop.f32.mrf.mxu0  ;;  %v2083_v30 = vpop.f32.mrf.mxu1  ;;  %2855 = vmatpush2.bf16.msra.mxu0 %v1440_v0  ;;  %3036 = vmatpush2.bf16.msra.mxu1 %v1552_v13  ;;  %v1097_v13 = vld [vmem:[%s13744_s1 + $0xaa0] sm:$0xff]  ;;  %v1308_v0 = vld [vmem:[%s13744_s1 + $0x1138] sm:$0xff] }
 0x17a   : > { %14428 = vst [vmem:[#allocation113_spill] sm:$0xff] %v9256_v7  ;;  %v9264_v18 = vadd.f32 %v2083_v30, %v1902_v29  ;;  %2856 = vmatprep.subr.bf16.mxu0 %v1434_v57  ;;  %3037 = vmatprep.subr.bf16.mxu1 %v1546_v39  ;;  %v1315_v39 = vld [vmem:[%s13744_s1 + $0x1170] sm:$0xff]  ;;  %v973_v57 = vld [vmem:[%s13744_s1 + $0x6c0] sm:$0xff]  ;;  %v980_v54 = vld [vmem:[%s13744_s1 + $0x6f8] sm:$0xff]  ;;  %v1426_v30 = vpack.c.bf16 %v880_v60, %v873_v16 }
 0x17b   : > { %v1906_v4 = vpop.f32.mrf.mxu0  ;;  %v2087_v61 = vpop.f32.mrf.mxu1  ;;  %2569 = vmatmul.mubr.bf16.gmra.mxu0 %v14430_v3  ;;  %2750 = vmatmul.mubr.bf16.gmra.mxu1 %v8625_v42  ;;  %v1538_v42 = vpack.c.bf16 %v1104_v45, %v1097_v13  ;;  %v1477_v7 = vpack.c.bf16 %v980_v54, %v973_v57  ;;  %v14435_v57 = vld [vmem:[#allocation41_spill] sm:$0xff] }
 0x17c   : > { %14429 = vst [vmem:[#allocation114_spill] sm:$0xff] %v9264_v18  ;;  %v9286_v37 = vadd.f32 %v2087_v61, %v1906_v4  ;;  %2578 = vmatprep.mubr.bf16.mxu0 %v14432_v48  ;;  %6584 = vmatprep.mubr.msk.bf16.mxu1 %vm1674_vm1, %v8633_v11  ;;  %v1644_v18 = vpack.c.bf16 %v1315_v39, %v1308_v0 }
 0x17d   : > { %v1908_v50 = vpop.f32.mrf.mxu0  ;;  %v2089_v29 = vpop.f32.mrf.mxu1  ;;  %2857 = vmatpush2.bf16.msra.mxu0 %v1433_v2  ;;  %3038 = vmatpush2.bf16.msra.mxu1 %v1545_v53  ;;  %v14433_v53 = vld [vmem:[#allocation37_spill] sm:$0xff] }
 0x17e   : > { %14431 = vst [vmem:[#allocation115_spill] sm:$0xff] %v9286_v37  ;;  %v9291_v3 = vadd.f32 %v2089_v29, %v1908_v50  ;;  %2858 = vmatprep.subr.bf16.mxu0 %v1427_v52  ;;  %3039 = vmatprep.subr.bf16.mxu1 %v1539_v62  ;;  %v14434_v52 = vld [vmem:[#allocation39_spill] sm:$0xff] }
 0x17f   : > { %v1910_v14 = vpop.f32.mrf.mxu0  ;;  %v2091_v4 = vpop.f32.mrf.mxu1 }
 0x180   : > { %v9293_v61 = vadd.f32 %v2091_v4, %v1910_v14 }
 0x181   : > { %v1912_v48 = vpop.f32.mrf.mxu0  ;;  %v2093_v37 = vpop.f32.mrf.mxu1  ;;  %2859 = vmatpush2.bf16.msra.mxu0 %v1426_v30  ;;  %3040 = vmatpush2.bf16.msra.mxu1 %v1538_v42 }
 0x182   : > { %v9295_v11 = vadd.f32 %v2093_v37, %v1912_v48  ;;  %3190 = vmatprep.subr.bf16.mxu0 %v1644_v18  ;;  %6624 = vmatprep.subr.bf16.mxu1 %v1477_v7  ;;  %v14437_v37 = vld [vmem:[#allocation43_spill] sm:$0xff] }
 0x183   : > { %v1916_v60 = vpop.f32.mrf.mxu0  ;;  %v2097_v2 = vpop.f32.mrf.mxu1  ;;  %2579 = vmatmul.mubr.bf16.gmra.mxu0 %v14433_v53  ;;  %2760 = vmatmul.mubr.bf16.gmra.mxu1 %v8660_v34 }
 0x184   : > { %v9299_v16 = vadd.f32 %v2097_v2, %v1916_v60  ;;  %2588 = vmatprep.mubr.bf16.mxu0 %v14434_v52  ;;  %6585 = vmatprep.mubr.msk.bf16.mxu1 %vm1674_vm1, %v8662_v28 }
 0x185   : > { %v1918_v14 = vpop.f32.mrf.mxu0  ;;  %v2099_v62 = vpop.f32.mrf.mxu1 }
 0x186   : > { %v9304_v42 = vadd.f32 %v2099_v62, %v1918_v14 }
 0x187   : > { %v1920_v13 = vpop.f32.mrf.mxu0  ;;  %v2101_v18 = vpop.f32.mrf.mxu1 }
 0x188   : > { %v14441_v18 = vld [vmem:[#allocation45_spill] sm:$0xff] }
 0x189   : > { %v1921_v7 = vpop.f32.mrf.mxu0  ;;  %v2102_v45 = vpop.f32.mrf.mxu1 }
 0x18a   : > { %v14443_v7 = vld [vmem:[#allocation47_spill] sm:$0xff] }
 0x18b   : > { %v2138_v0 = vpop.f32.mrf.mxu0  ;;  %v9306_v39 = vpop.f32.mrf.mxu1  ;;  %2589 = vmatmul.mubr.bf16.gmra.mxu0 %v14435_v57  ;;  %2770 = vmatmul.mubr.bf16.gmra.mxu1 %v8677_v27  ;;  %v14469_v27 = vld [vmem:[#allocation57_spill] sm:$0xff] }
 0x18c   : > { %v9311_v54 = vadd.f32 %v2138_v0, %v8689_v12  ;;  %2598 = vmatprep.mubr.bf16.mxu0 %v14437_v37  ;;  %6586 = vmatprep.mubr.msk.bf16.mxu1 %vm1674_vm1, %v8679_v38 }
 0x18d   : > { %v2140_v48 = vpop.f32.mrf.mxu0  ;;  %v9316_v50 = vpop.f32.mrf.mxu1 }
 0x18e   : > { %14436 = vst [vmem:[#allocation116_spill] sm:$0xff] %v9311_v54  ;;  %v9319_v29 = vadd.f32 %v2140_v48, %v8696_v26  ;;  %v14448_v54 = vld [vmem:[#allocation49_spill] sm:$0xff] }
 0x18f   : > { %v2142_v30 = vpop.f32.mrf.mxu0  ;;  %v9321_v4 = vpop.f32.mrf.mxu1 }
 0x190   : > { %14438 = vst [vmem:[#allocation117_spill] sm:$0xff] %v9319_v29  ;;  %v9324_v60 = vadd.f32 %v2142_v30, %v8700_v6  ;;  %v14444_v6 = vld [vmem:[#allocation84_spill] sm:$0xff]  ;;  %v14449_v29 = vld [vmem:[#allocation85_spill] sm:$0xff] }
 0x191   : > { %v2144_v2 = vpop.f32.mrf.mxu0  ;;  %v9326_v12 = vpop.f32.mrf.mxu1 }
 0x192   : > { %14439 = vst [vmem:[#allocation118_spill] sm:$0xff] %v9324_v60  ;;  %v9329_v14 = vadd.f32 %v2144_v2, %v8708_v5 }
 0x193   : > { %v2148_v62 = vpop.f32.mrf.mxu0  ;;  %v9331_v13 = vpop.f32.mrf.mxu1  ;;  %2599 = vmatmul.mubr.bf16.gmra.mxu0 %v14441_v18  ;;  %2780 = vmatmul.mubr.bf16.gmra.mxu1 %v8698_v8  ;;  %v14457_v8 = vld [vmem:[#allocation53_spill] sm:$0xff] }
 0x194   : > { %14440 = vst [vmem:[#allocation119_spill] sm:$0xff] %v9329_v14  ;;  %v9336_v26 = vadd.f32 %v2148_v62, %v8714_v25  ;;  %2608 = vmatprep.mubr.bf16.mxu0 %v14443_v7  ;;  %6587 = vmatprep.mubr.msk.bf16.mxu1 %vm1674_vm1, %v14444_v6 }
 0x195   : > { %v2150_v45 = vpop.f32.mrf.mxu0  ;;  %v9341_v0 = vpop.f32.mrf.mxu1 }
 0x196   : > { %14442 = vst [vmem:[#allocation120_spill] sm:$0xff] %v9336_v26  ;;  %v9344_v5 = vadd.f32 %v2150_v45, %v8721_v41  ;;  %v14450_v41 = vld [vmem:[#allocation87_spill] sm:$0xff] }
 0x197   : > { %v2152_v48 = vpop.f32.mrf.mxu0  ;;  %v9346_v30 = vpop.f32.mrf.mxu1 }
 0x198   : > { %14445 = vst [vmem:[#allocation121_spill] sm:$0xff] %v9344_v5  ;;  %v9349_v2 = vadd.f32 %v2152_v48, %v8725_v47  ;;  %v14452_v5 = vld [vmem:[#allocation51_spill] sm:$0xff]  ;;  %v14453_v47 = vld [vmem:[#allocation86_spill] sm:$0xff] }
 0x199   : > { %v2154_v60 = vpop.f32.mrf.mxu0  ;;  %v9351_v25 = vpop.f32.mrf.mxu1 }
 0x19a   : > { %14446 = vst [vmem:[#allocation122_spill] sm:$0xff] %v9349_v2  ;;  %v9354_v62 = vadd.f32 %v2154_v60, %v8733_v10 }
 0x19b   : > { %v2158_v26 = vpop.f32.mrf.mxu0  ;;  %v9356_v14 = vpop.f32.mrf.mxu1  ;;  %2609 = vmatmul.mubr.bf16.gmra.mxu0 %v14448_v54  ;;  %2790 = vmatmul.mubr.bf16.gmra.mxu1 %v14449_v29 }
 0x19c   : > { %14447 = vst [vmem:[#allocation123_spill] sm:$0xff] %v9354_v62  ;;  %v9361_v45 = vadd.f32 %v2158_v26, %v14450_v41  ;;  %2618 = vmatprep.mubr.bf16.mxu0 %v14452_v5  ;;  %6588 = vmatprep.mubr.msk.bf16.mxu1 %vm1674_vm1, %v14453_v47 }
 0x19d   : > { %v2160_v48 = vpop.f32.mrf.mxu0  ;;  %v9366_v2 = vpop.f32.mrf.mxu1 }
 0x19e   : > { %14451 = vst [vmem:[#allocation87_spill] sm:$0xff] %v9361_v45  ;;  %v9369_v10 = vadd.f32 %v2160_v48, %v8746_v32  ;;  %v14458_v32 = vld [vmem:[#allocation90_spill] sm:$0xff] }
 0x19f   : > { %v2162_v60 = vpop.f32.mrf.mxu0  ;;  %v9371_v62 = vpop.f32.mrf.mxu1 }
 0x1a0   : > { %14454 = vst [vmem:[#allocation124_spill] sm:$0xff] %v9369_v10  ;;  %v9374_v6 = vadd.f32 %v2162_v60, %v8750_v59  ;;  %v14460_v10 = vld [vmem:[#allocation55_spill] sm:$0xff]  ;;  %v14461_v59 = vld [vmem:[#allocation89_spill] sm:$0xff] }
 0x1a1   : > { %v2164_v29 = vpop.f32.mrf.mxu0  ;;  %v9376_v26 = vpop.f32.mrf.mxu1 }
 0x1a2   : > { %14455 = vst [vmem:[#allocation125_spill] sm:$0xff] %v9374_v6  ;;  %v9379_v41 = vadd.f32 %v2164_v29, %v8757_v22 }
 0x1a3   : > { %v2168_v45 = vpop.f32.mrf.mxu0  ;;  %v9381_v47 = vpop.f32.mrf.mxu1  ;;  %2619 = vmatmul.mubr.bf16.gmra.mxu0 %v14457_v8  ;;  %2800 = vmatmul.mubr.bf16.gmra.mxu1 %v8748_v20 }
 0x1a4   : > { %14456 = vst [vmem:[#allocation126_spill] sm:$0xff] %v9379_v41  ;;  %v9386_v48 = vadd.f32 %v2168_v45, %v14458_v32  ;;  %2628 = vmatprep.mubr.bf16.mxu0 %v14460_v10  ;;  %6589 = vmatprep.mubr.msk.bf16.mxu1 %vm1674_vm1, %v14461_v59  ;;  %v1279_v10 = vld [vmem:[%s13744_s1 + $0x1050] sm:$0xff] }
 0x1a5   : > { %v2170_v60 = vpop.f32.mrf.mxu0  ;;  %v9391_v6 = vpop.f32.mrf.mxu1 }
 0x1a6   : > { %14459 = vst [vmem:[#allocation90_spill] sm:$0xff] %v9386_v48  ;;  %14462 = vst [vmem:[#allocation127_spill] sm:$0xff] %v9391_v6  ;;  %v9394_v22 = vadd.f32 %v2170_v60, %v8769_v58  ;;  %v14471_v60 = vld [vmem:[#allocation59_spill] sm:$0xff]  ;;  %v14498_v6 = vld [vmem:[#allocation4_spill] sm:$0xff] }
 0x1a7   : > { %v2172_v29 = vpop.f32.mrf.mxu0  ;;  %v9396_v41 = vpop.f32.mrf.mxu1 }
 0x1a8   : > { %14463 = vst [vmem:[#allocation128_spill] sm:$0xff] %v9394_v22  ;;  %14464 = vst [vmem:[#allocation129_spill] sm:$0xff] %v9396_v41  ;;  %v9399_v38 = vadd.f32 %v2172_v29, %v8773_v43  ;;  %v14476_v22 = vld [vmem:[#allocation95_spill] sm:$0xff]  ;;  %v14495_v41 = vld [vmem:[#allocation100_spill] sm:$0xff] }
 0x1a9   : > { %v2174_v20 = vpop.f32.mrf.mxu0  ;;  %v9401_v45 = vpop.f32.mrf.mxu1 }
 0x1aa   : > { %14465 = vst [vmem:[#allocation130_spill] sm:$0xff] %v9399_v38  ;;  %14466 = vst [vmem:[#allocation131_spill] sm:$0xff] %v9401_v45  ;;  %v9404_v32 = vadd.f32 %v2174_v20, %v8778_v23  ;;  %v14473_v20 = vld [vmem:[#allocation93_spill] sm:$0xff] }
 0x1ab   : > { %v2178_v48 = vpop.f32.mrf.mxu0  ;;  %v9406_v59 = vpop.f32.mrf.mxu1  ;;  %2629 = vmatmul.mubr.bf16.gmra.mxu0 %v14469_v27  ;;  %2810 = vmatmul.mubr.bf16.gmra.mxu1 %v8771_v15  ;;  %v1300_v27 = vld [vmem:[%s13744_s1 + $0x10f8] sm:$0xff] }
 0x1ac   : > { %14467 = vst [vmem:[#allocation132_spill] sm:$0xff] %v9404_v32  ;;  %14468 = vst [vmem:[#allocation133_spill] sm:$0xff] %v9406_v59  ;;  %v9411_v58 = vadd.f32 %v2178_v48, %v8783_v31  ;;  %2638 = vmatprep.mubr.bf16.mxu0 %v14471_v60  ;;  %6590 = vmatprep.mubr.msk.bf16.mxu1 %vm1674_vm1, %v8775_v51  ;;  %v14479_v48 = vld [vmem:[#allocation96_spill] sm:$0xff]  ;;  %v14482_v60 = vld [vmem:[#allocation61_spill] sm:$0xff] }
 0x1ad   : > { %v2180_v43 = vpop.f32.mrf.mxu0  ;;  %v9416_v29 = vpop.f32.mrf.mxu1  ;;  %v1293_v59 = vld [vmem:[%s13744_s1 + $0x10c0] sm:$0xff]  ;;  %v1280_v45 = vld [vmem:[%s13744_s1 + $0x1058] sm:$0xff] }
 0x1ae   : > { %14470 = vst [vmem:[#allocation134_spill] sm:$0xff] %v9411_v58  ;;  %14472 = vst [vmem:[#allocation135_spill] sm:$0xff] %v9416_v29  ;;  %v9419_v23 = vadd.f32 %v2180_v43, %v14473_v20  ;;  %v14483_v29 = vld [vmem:[#allocation94_spill] sm:$0xff]  ;;  %v14484_v43 = vld [vmem:[#allocation97_spill] sm:$0xff] }
 0x1af   : > { %v2182_v38 = vpop.f32.mrf.mxu0  ;;  %v9421_v32 = vpop.f32.mrf.mxu1 }
 0x1b0   : > { %14474 = vst [vmem:[#allocation93_spill] sm:$0xff] %v9419_v23  ;;  %14475 = vst [vmem:[#allocation136_spill] sm:$0xff] %v9421_v32  ;;  %v9424_v28 = vadd.f32 %v2182_v38, %v14476_v22  ;;  %v14486_v23 = vld [vmem:[#allocation2_spill] sm:$0xff]  ;;  %v14487_v38 = vld [vmem:[#allocation3_spill] sm:$0xff] }
 0x1b1   : > { %v2184_v15 = vpop.f32.mrf.mxu0  ;;  %v9426_v31 = vpop.f32.mrf.mxu1 }
 0x1b2   : > { %14477 = vst [vmem:[#allocation95_spill] sm:$0xff] %v9424_v28  ;;  %14478 = vst [vmem:[#allocation137_spill] sm:$0xff] %v9426_v31  ;;  %v9429_v58 = vadd.f32 %v2184_v15, %v14479_v48  ;;  %v1307_v15 = vld [vmem:[%s13744_s1 + $0x1130] sm:$0xff]  ;;  %v1314_v48 = vld [vmem:[%s13744_s1 + $0x1168] sm:$0xff] }
 0x1b3   : > { %v2188_v34 = vpop.f32.mrf.mxu0  ;;  %v9431_v51 = vpop.f32.mrf.mxu1  ;;  %2639 = vmatmul.mubr.bf16.gmra.mxu0 %v14482_v60  ;;  %2820 = vmatmul.mubr.bf16.gmra.mxu1 %v14483_v29  ;;  %v1643_v60 = vpack.c.bf16 %v1314_v48, %v1307_v15  ;;  %v1287_v15 = vld [vmem:[%s13744_s1 + $0x1090] sm:$0xff] }
 0x1b4   : > { %14480 = vst [vmem:[#allocation96_spill] sm:$0xff] %v9429_v58  ;;  %14481 = vst [vmem:[#allocation138_spill] sm:$0xff] %v9431_v51  ;;  %v9436_v20 = vadd.f32 %v2188_v34, %v14484_v43  ;;  %2860 = vmatprep.mubr.bf16.mxu0 %v14486_v23  ;;  %3041 = vmatprep.mubr.bf16.mxu1 %v14487_v38  ;;  %v14489_v58 = vld [vmem:[#allocation98_spill] sm:$0xff]  ;;  %v868_v43 = vld [vmem:[%s13744_s1 + $0x378] sm:$0xff] }
 0x1b5   : > { %v2190_v22 = vpop.f32.mrf.mxu0  ;;  %v9440_v28 = vpop.f32.mrf.mxu1  ;;  %v861_v34 = vld [vmem:[%s13744_s1 + $0x340] sm:$0xff]  ;;  %v14492_v23 = vld [vmem:[#allocation99_spill] sm:$0xff] }
 0x1b6   : > { %14485 = vst [vmem:[#allocation97_spill] sm:$0xff] %v9436_v20  ;;  %14488 = vst [vmem:[#allocation139_spill] sm:$0xff] %v9440_v28  ;;  %v9449_v29 = vadd.f32 %v2190_v22, %v14489_v58  ;;  %v1294_v20 = vld [vmem:[%s13744_s1 + $0x10c8] sm:$0xff]  ;;  %v1301_v58 = vld [vmem:[%s13744_s1 + $0x1100] sm:$0xff] }
 0x1b7   : > { %v2192_v38 = vpop.f32.mrf.mxu0  ;;  %v9460_v28 = vpop.f32.mrf.mxu1  ;;  %v959_v22 = vld [vmem:[%s13744_s1 + $0x650] sm:$0xff] }
 0x1b8   : > { %14490 = vst [vmem:[#allocation98_spill] sm:$0xff] %v9449_v29  ;;  %14491 = vst [vmem:[#allocation140_spill] sm:$0xff] %v9460_v28  ;;  %v966_v29 = vld [vmem:[%s13744_s1 + $0x688] sm:$0xff]  ;;  %v9472_v51 = vadd.f32 %v2192_v38, %v14492_v23  ;;  %v1421_v28 = vpack.c.bf16 %v868_v43, %v861_v34  ;;  %v1637_v38 = vpack.c.bf16 %v1301_v58, %v1294_v20  ;;  %v847_v34 = vld [vmem:[%s13744_s1 + $0x2d0] sm:$0xff] }
 0x1b9   : > { %v2194_v31 = vpop.f32.mrf.mxu0  ;;  %v9474_v32 = vpop.f32.mrf.mxu1  ;;  %v1470_v48 = vpack.c.bf16 %v966_v29, %v959_v22  ;;  %v854_v43 = vld [vmem:[%s13744_s1 + $0x308] sm:$0xff]  ;;  %v952_v29 = vld [vmem:[%s13744_s1 + $0x618] sm:$0xff]  ;;  %v14501_v58 = vld [vmem:[#allocation6_spill] sm:$0xff]  ;;  %v1636_v22 = vpack.c.bf16 %v1300_v27, %v1293_v59 }
 0x1ba   : > { %14493 = vst [vmem:[#allocation99_spill] sm:$0xff] %v9472_v51  ;;  %14494 = vst [vmem:[#allocation141_spill] sm:$0xff] %v9474_v32  ;;  %v9486_v23 = vadd.f32 %v2194_v31, %v14495_v41  ;;  %v14499_v41 = vld [vmem:[#allocation5_spill] sm:$0xff]  ;;  %v945_v31 = vld [vmem:[%s13744_s1 + $0x5e0] sm:$0xff] }
 0x1bb   : > { %v2198_v51 = vpop.f32.mrf.mxu0  ;;  %v9497_v32 = vpop.f32.mrf.mxu1  ;;  %2861 = vmatmul.mubr.bf16.vlgmr.msra.gmra.mxu0 %v14498_v6  ;;  %3042 = vmatmul.mubr.bf16.vlgmr.msra.gmra.mxu1 %v14499_v41  ;;  %v14502_v6 = vld [vmem:[#allocation7_spill] sm:$0xff]  ;;  %v1630_v41 = vpack.c.bf16 %v1287_v15, %v1280_v45  ;;  %v833_v59 = vld [vmem:[%s13744_s1 + $0x260] sm:$0xff]  ;;  %v840_v45 = vld [vmem:[%s13744_s1 + $0x298] sm:$0xff] }
 0x1bc   : > { %14496 = vst [vmem:[#allocation100_spill] sm:$0xff] %v9486_v23  ;;  %14497 = vst [vmem:[#allocation142_spill] sm:$0xff] %v9497_v32  ;;  %v9508_v20 = vadd.f32 %v2198_v51, %v8859_v63  ;;  %3191 = vmatpush1.bf16.msra.mxu0 %v1643_v60  ;;  %2870 = vmatprep.mubr.bf16.mxu0 %v14501_v58  ;;  %v1286_v51 = vld [vmem:[%s13744_s1 + $0x1088] sm:$0xff]  ;;  %v1414_v63 = vpack.c.bf16 %v854_v43, %v847_v34  ;;  %v14503_v60 = vld [vmem:[#allocation101_spill] sm:$0xff] }
 0x1bd   : > { %v2200_v23 = vpop.f32.mrf.mxu0  ;;  %v9511_v32 = vpop.f32.mrf.mxu1  ;;  %3051 = vmatprep.mubr.bf16.mxu1 %v14502_v6  ;;  %6625 = vmatpush3.bf16.msra.mxu1 %v1421_v28  ;;  %v1266_v27 = vld [vmem:[%s13744_s1 + $0xfe8] sm:$0xff]  ;;  %v1463_v28 = vpack.c.bf16 %v952_v29, %v945_v31  ;;  %v1272_v6 = vld [vmem:[%s13744_s1 + $0x1018] sm:$0xff] }
 0x1be   : > { %14500 = vst [vmem:[#allocation143_spill] sm:$0xff] %v9508_v20  ;;  %v9521_v20 = vadd.f32 %v2200_v23, %v14503_v60  ;;  %3192 = vmatprep.subr.bf16.mxu0 %v1637_v38  ;;  %6626 = vmatprep.subr.bf16.mxu1 %v1470_v48  ;;  %v1273_v23 = vld [vmem:[%s13744_s1 + $0x1020] sm:$0xff]  ;;  %v931_v38 = vld [vmem:[%s13744_s1 + $0x570] sm:$0xff]  ;;  %v938_v48 = vld [vmem:[%s13744_s1 + $0x5a8] sm:$0xff]  ;;  %v1629_v60 = vpack.c.bf16 %v1286_v51, %v1279_v10 }
 0x1bf   : > { %v2202_v15 = vpop.f32.mrf.mxu0  ;;  %v9532_v34 = vpop.f32.mrf.mxu1  ;;  %v1456_v10 = vpack.c.bf16 %v938_v48, %v931_v38  ;;  %v826_v51 = vld [vmem:[%s13744_s1 + $0x228] sm:$0xff]  ;;  %v14510_v38 = vld [vmem:[#allocation10_spill] sm:$0xff] }
 0x1c0   : > { %14504 = vst [vmem:[#allocation101_spill] sm:$0xff] %v9521_v20  ;;  %14505 = vst [vmem:[#allocation144_spill] sm:$0xff] %v9532_v34  ;;  %v9544_v43 = vadd.f32 %v2202_v15, %v8890_v24  ;;  %3193 = vmatpush1.bf16.msra.mxu0 %v1636_v22  ;;  %v1265_v20 = vld [vmem:[%s13744_s1 + $0xfe0] sm:$0xff]  ;;  %v1407_v34 = vpack.c.bf16 %v840_v45, %v833_v59  ;;  %v1623_v24 = vpack.c.bf16 %v1273_v23, %v1266_v27  ;;  %v819_v22 = vld [vmem:[%s13744_s1 + $0x1f0] sm:$0xff] }
 0x1c1   : > { %v2204_v31 = vpop.f32.mrf.mxu0  ;;  %v9546_v29 = vpop.f32.mrf.mxu1  ;;  %3194 = vmatprep.subr.bf16.mxu0 %v1630_v41  ;;  %6627 = vmatpush3.bf16.msra.mxu1 %v1414_v63  ;;  %v1252_v41 = vld [vmem:[%s13744_s1 + $0xf78] sm:$0xff]  ;;  %v13951_v63 = vmov 0   ;;  %v14508_v27 = vld [vmem:[#allocation8_spill] sm:$0xff]  ;;  %v917_v45 = vld [vmem:[%s13744_s1 + $0x500] sm:$0xff] }
 0x1c2   : > { %14506 = vst [vmem:[#allocation145_spill] sm:$0xff] %v9544_v43  ;;  %v9555_v58 = vadd.f32 %v2204_v31, %v8898_v19  ;;  %6628 = vmatprep.subr.bf16.mxu1 %v1463_v28  ;;  %6849 = vset.pattern.permute.xlu1 %v13951_v63  ;;  %v1259_v28 = vld [vmem:[%s13744_s1 + $0xfb0] sm:$0xff]  ;;  %v924_v15 = vld [vmem:[%s13744_s1 + $0x538] sm:$0xff]  ;;  %v14511_v48 = vld [vmem:[#allocation11_spill] sm:$0xff]  ;;  %v1622_v43 = vpack.c.bf16 %v1272_v6, %v1265_v20 }
 0x1c3   : > { %v2208_v19 = vpop.f32.mrf.mxu0  ;;  %v9567_v59 = vpop.f32.mrf.mxu1  ;;  %2871 = vmatmul.mubr.bf16.gmra.mxu0 %v14508_v27  ;;  %3052 = vmatmul.mubr.bf16.gmra.mxu1 %v7555_v36  ;;  %v1258_v36 = vld [vmem:[%s13744_s1 + $0xfa8] sm:$0xff]  ;;  %v1449_v6 = vpack.c.bf16 %v924_v15, %v917_v45  ;;  %v805_v20 = vld [vmem:[%s13744_s1 + $0x180] sm:$0xff] }
 0x1c4   : > { %14507 = vst [vmem:[#allocation146_spill] sm:$0xff] %v9555_v58  ;;  %v9581_v23 = vadd.f32 %v2208_v19, %v8920_v1  ;;  %2880 = vmatprep.mubr.bf16.mxu0 %v14510_v38  ;;  %3061 = vmatprep.mubr.bf16.mxu1 %v14511_v48  ;;  %v1251_v58 = vld [vmem:[%s13744_s1 + $0xf70] sm:$0xff]  ;;  %v1400_v1 = vpack.c.bf16 %v826_v51, %v819_v22  ;;  %v14513_v19 = vld [vmem:[#allocation102_spill] sm:$0xff] }
 0x1c5   : > { %v2210_v31 = vpop.f32.mrf.mxu0  ;;  %v9585_v63 = vpop.f32.mrf.mxu1  ;;  %3195 = vmatpush1.bf16.msra.mxu0 %v1629_v60  ;;  %6629 = vmatpush3.bf16.msra.mxu1 %v1407_v34  ;;  %v1616_v48 = vpack.c.bf16 %v1259_v28, %v1252_v41  ;;  %v1238_v60 = vld [vmem:[%s13744_s1 + $0xf08] sm:$0xff]  ;;  %v812_v34 = vld [vmem:[%s13744_s1 + $0x1b8] sm:$0xff]  ;;  %v903_v41 = vld [vmem:[%s13744_s1 + $0x490] sm:$0xff]  ;;  %v14516_v28 = vmov 0  }
 0x1c6   : > { %14509 = vst [vmem:[#allocation8_spill] sm:$0xff] %v9581_v23  ;;  %14512 = vst [vmem:[#allocation147_spill] sm:$0xff] %v9585_v63  ;;  %v9594_v23 = vadd.f32 %v2210_v31, %v14513_v19  ;;  %3196 = vmatprep.subr.bf16.mxu0 %v1623_v24  ;;  %6630 = vmatprep.subr.bf16.mxu1 %v1456_v10  ;;  %v1245_v24 = vld [vmem:[%s13744_s1 + $0xf40] sm:$0xff]  ;;  %v910_v10 = vld [vmem:[%s13744_s1 + $0x4c8] sm:$0xff]  ;;  %v1615_v19 = vpack.c.bf16 %v1258_v36, %v1251_v58 }
 0x1c7   : > { %v2212_v22 = vpop.f32.mrf.mxu0  ;;  %v9605_v51 = vpop.f32.mrf.mxu1  ;;  %6850 = vset.pattern.permute.xlu0 %v14516_v28  ;;  %v1393_v63 = vpack.c.bf16 %v812_v34, %v805_v20  ;;  %v1442_v36 = vpack.c.bf16 %v910_v10, %v903_v41  ;;  %v791_v58 = vld [vmem:[%s13744_s1 + $0x110] sm:$0xff]  ;;  %v14522_v41 = vld [vmem:[#allocation15_spill] sm:$0xff] }
 0x1c8   : > { %14514 = vst [vmem:[#allocation102_spill] sm:$0xff] %v9594_v23  ;;  %14515 = vst [vmem:[#allocation148_spill] sm:$0xff] %v9605_v51  ;;  %v9618_v45 = vadd.f32 %v2212_v22, %v8951_v9  ;;  %v1237_v23 = vld [vmem:[%s13744_s1 + $0xf00] sm:$0xff]  ;;  %v1244_v51 = vld [vmem:[%s13744_s1 + $0xf38] sm:$0xff]  ;;  %v1609_v9 = vpack.c.bf16 %v1245_v24, %v1238_v60 }
 0x1c9   : > { %v2214_v15 = vpop.f32.mrf.mxu0  ;;  %v9620_v31 = vpop.f32.mrf.mxu1  ;;  %3197 = vmatpush1.bf16.msra.mxu0 %v1622_v43  ;;  %6631 = vmatpush3.bf16.msra.mxu1 %v1400_v1  ;;  %v1224_v43 = vld [vmem:[%s13744_s1 + $0xe98] sm:$0xff]  ;;  %v798_v1 = vld [vmem:[%s13744_s1 + $0x148] sm:$0xff]  ;;  %v889_v60 = vld [vmem:[%s13744_s1 + $0x420] sm:$0xff] }
 0x1ca   : > { %14517 = vst [vmem:[#allocation149_spill] sm:$0xff] %v9618_v45  ;;  %v9629_v38 = vadd.f32 %v2214_v15, %v8959_v55  ;;  %3198 = vmatprep.subr.bf16.mxu0 %v1616_v48  ;;  %6632 = vmatprep.subr.bf16.mxu1 %v1449_v6  ;;  %v14519_v55 = vld [vmem:[#allocation12_spill] sm:$0xff]  ;;  %v896_v6 = vld [vmem:[%s13744_s1 + $0x458] sm:$0xff]  ;;  %v14521_v24 = vld [vmem:[#allocation14_spill] sm:$0xff]  ;;  %v1608_v45 = vpack.c.bf16 %v1244_v51, %v1237_v23 }
 0x1cb   : > { %v2218_v20 = vpop.f32.mrf.mxu0  ;;  %v9640_v34 = vpop.f32.mrf.mxu1  ;;  %2881 = vmatmul.mubr.bf16.gmra.mxu0 %v14519_v55  ;;  %3062 = vmatmul.mubr.bf16.gmra.mxu1 %v7628_v33  ;;  %v1231_v48 = vld [vmem:[%s13744_s1 + $0xed0] sm:$0xff]  ;;  %v1230_v33 = vld [vmem:[%s13744_s1 + $0xec8] sm:$0xff]  ;;  %v1435_v23 = vpack.c.bf16 %v896_v6, %v889_v60  ;;  %v777_v51 = vld [vmem:[%s13744_s1 + $0xa0] sm:$0xff] }
 0x1cc   : > { %14518 = vst [vmem:[#allocation150_spill] sm:$0xff] %v9629_v38  ;;  %v9654_v22 = vadd.f32 %v2218_v20, %v8981_v56  ;;  %2890 = vmatprep.mubr.bf16.mxu0 %v14521_v24  ;;  %3071 = vmatprep.mubr.bf16.mxu1 %v14522_v41  ;;  %v1223_v38 = vld [vmem:[%s13744_s1 + $0xe90] sm:$0xff]  ;;  %v1386_v56 = vpack.c.bf16 %v798_v1, %v791_v58  ;;  %v14524_v20 = vld [vmem:[#allocation103_spill] sm:$0xff] }
 0x1cd   : > { %v2220_v10 = vpop.f32.mrf.mxu0  ;;  %v9658_v15 = vpop.f32.mrf.mxu1  ;;  %3199 = vmatpush1.bf16.msra.mxu0 %v1615_v19  ;;  %6633 = vmatpush3.bf16.msra.mxu1 %v1393_v63  ;;  %v1602_v41 = vpack.c.bf16 %v1231_v48, %v1224_v43  ;;  %v1210_v19 = vld [vmem:[%s13744_s1 + $0xe28] sm:$0xff]  ;;  %v784_v63 = vld [vmem:[%s13744_s1 + $0xd8] sm:$0xff]  ;;  %v875_v43 = vld [vmem:[%s13744_s1 + $0x3b0] sm:$0xff] }
 0x1ce   : > { %14520 = vst [vmem:[#allocation12_spill] sm:$0xff] %v9654_v22  ;;  %14523 = vst [vmem:[#allocation14_spill] sm:$0xff] %v9658_v15  ;;  %v9667_v22 = vadd.f32 %v2220_v10, %v14524_v20  ;;  %3200 = vmatprep.subr.bf16.mxu0 %v1609_v9  ;;  %6634 = vmatprep.subr.bf16.mxu1 %v1442_v36  ;;  %v1217_v9 = vld [vmem:[%s13744_s1 + $0xe60] sm:$0xff]  ;;  %v882_v36 = vld [vmem:[%s13744_s1 + $0x3e8] sm:$0xff]  ;;  %v1601_v10 = vpack.c.bf16 %v1230_v33, %v1223_v38 }
 0x1cf   : > { %v2222_v58 = vpop.f32.mrf.mxu0  ;;  %v9678_v1 = vpop.f32.mrf.mxu1  ;;  %v1209_v20 = vld [vmem:[%s13744_s1 + $0xe20] sm:$0xff]  ;;  %v1595_v15 = vpack.c.bf16 %v1217_v9, %v1210_v19  ;;  %v763_v33 = vld [vmem:[%s13744_s1 + $0x30] sm:$0xff]  ;;  %v770_v38 = vld [vmem:[%s13744_s1 + $0x68] sm:$0xff] }
 0x1d0   : > { %14525 = vst [vmem:[#allocation103_spill] sm:$0xff] %v9667_v22  ;;  %14526 = vst [vmem:[#allocation151_spill] sm:$0xff] %v9678_v1  ;;  %v9690_v48 = vadd.f32 %v2222_v58, %v9012_v17  ;;  %v1379_v22 = vpack.c.bf16 %v784_v63, %v777_v51  ;;  %v1216_v17 = vld [vmem:[%s13744_s1 + $0xe58] sm:$0xff]  ;;  %v1428_v58 = vpack.c.bf16 %v882_v36, %v875_v43  ;;  %v14533_v51 = vld [vmem:[#allocation104_spill] sm:$0xff] }
 0x1d1   : > { %v2224_v60 = vpop.f32.mrf.mxu0  ;;  %v9692_v6 = vpop.f32.mrf.mxu1  ;;  %3201 = vmatpush1.bf16.msra.mxu0 %v1608_v45  ;;  %6635 = vmatpush3.bf16.msra.mxu1 %v1386_v56  ;;  %v1364_v19 = vld [vmem:[%s13744_s1 + $0x12f8] sm:$0xff]  ;;  %v14535_v9 = vld [vmem:[#allocation18_spill] sm:$0xff]  ;;  %v14536_v43 = vld [vmem:[#allocation19_spill] sm:$0xff] }
 0x1d2   : > { %14527 = vst [vmem:[#allocation152_spill] sm:$0xff] %v9690_v48  ;;  %14528 = vst [vmem:[#allocation153_spill] sm:$0xff] %v9692_v6  ;;  %v9698_v1 = vadd.f32 %v2224_v60, %v9020_v35  ;;  %3202 = vmatprep.subr.bf16.mxu0 %v1602_v41  ;;  %6636 = vmatprep.subr.bf16.mxu1 %v1435_v23  ;;  %v14531_v35 = vld [vmem:[#allocation16_spill] sm:$0xff]  ;;  %v14532_v41 = vld [vmem:[#allocation17_spill] sm:$0xff]  ;;  %v1594_v48 = vpack.c.bf16 %v1216_v17, %v1209_v20 }
 0x1d3   : > { %v2228_v45 = vpop.f32.mrf.mxu0  ;;  %v9709_v56 = vpop.f32.mrf.mxu1  ;;  %2891 = vmatmul.mubr.bf16.gmra.mxu0 %v14531_v35  ;;  %3072 = vmatmul.mubr.bf16.gmra.mxu1 %v14532_v41  ;;  %v1363_v23 = vld [vmem:[%s13744_s1 + $0x12f0] sm:$0xff]  ;;  %v14537_v41 = vld [vmem:[#allocation105_spill] sm:$0xff]  ;;  %v1672_v35 = vpack.c.bf16 %v1364_v19, %v1364_v19  ;;  %v14543_v19 = vld [vmem:[#allocation106_spill] sm:$0xff] }
 0x1d4   : > { %14529 = vst [vmem:[#allocation154_spill] sm:$0xff] %v9698_v1  ;;  %14530 = vst [vmem:[#allocation155_spill] sm:$0xff] %v9709_v56  ;;  %v9720_v63 = vadd.f32 %v2228_v45, %v14533_v51  ;;  %2900 = vmatprep.mubr.bf16.mxu0 %v14535_v9  ;;  %3081 = vmatprep.mubr.bf16.mxu1 %v14536_v43  ;;  %v1372_v1 = vpack.c.bf16 %v770_v38, %v763_v33  ;;  %v1349_v38 = vld [vmem:[%s13744_s1 + $0x1280] sm:$0xff]  ;;  %v14560_v43 = vld [vmem:[#allocation109_spill] sm:$0xff] }
 0x1d5   : > { %v2230_v36 = vpop.f32.mrf.mxu0  ;;  %v9724_v60 = vpop.f32.mrf.mxu1  ;;  %3203 = vmatpush1.bf16.msra.mxu0 %v1601_v10  ;;  %6637 = vmatpush3.bf16.msra.mxu1 %v1379_v22  ;;  %v1671_v6 = vpack.c.bf16 %v1363_v23, %v1363_v23  ;;  %v1357_v10 = vld [vmem:[%s13744_s1 + $0x12c0] sm:$0xff] }
 0x1d6   : > { %14534 = vst [vmem:[#allocation104_spill] sm:$0xff] %v9720_v63  ;;  %v9727_v56 = vadd.f32 %v2230_v36, %v14537_v41  ;;  %3204 = vmatprep.subr.bf16.mxu0 %v1595_v15  ;;  %6638 = vmatprep.subr.bf16.mxu1 %v1428_v58  ;;  %v1350_v63 = vld [vmem:[%s13744_s1 + $0x1288] sm:$0xff]  ;;  %v14542_v41 = vld [vmem:[#allocation21_spill] sm:$0xff] }
 0x1d7   : > { %v2232_v45 = vpop.f32.mrf.mxu0  ;;  %v9729_v51 = vpop.f32.mrf.mxu1  ;;  %v1734_v58 = vsel %vm1720_vm0, %v1671_v6, 0  ;;  %v1665_v33 = vpack.c.bf16 %v1357_v10, %v1350_v63  ;;  %v1336_v6 = vld [vmem:[%s13744_s1 + $0x1218] sm:$0xff]  ;;  %v14545_v63 = vld [vmem:[#allocation22_spill] sm:$0xff]  ;;  %v14546_v36 = vld [vmem:[#allocation23_spill] sm:$0xff] }
 0x1d8   : > { %14538 = vst [vmem:[#allocation18_spill] sm:$0xff] %v9727_v56  ;;  %v9738_v22 = vadd.f32 %v2232_v45, %v9073_v49  ;;  %v1356_v49 = vld [vmem:[%s13744_s1 + $0x12b8] sm:$0xff] }
 0x1d9   : > { %v2234_v20 = vpop.f32.mrf.mxu0  ;;  %v9740_v17 = vpop.f32.mrf.mxu1  ;;  %3205 = vmatpush1.bf16.msra.mxu0 %v1594_v48  ;;  %6639 = vmatpush3.bf16.msra.mxu1 %v1372_v1 }
 0x1da   : > { %14539 = vst [vmem:[#allocation105_spill] sm:$0xff] %v9738_v22  ;;  %v9743_v15 = vadd.f32 %v2234_v20, %v9081_v21  ;;  %6591 = vmatprep.subr.msk.bf16.mxu0 %vm1720_vm0, %v1672_v35  ;;  %3675 = vmatprep.subr.bf16.mxu1 %v14516_v28  ;;  %v14541_v21 = vld [vmem:[#allocation20_spill] sm:$0xff]  ;;  %v1664_v20 = vpack.c.bf16 %v1356_v49, %v1349_v38  ;;  %v14547_v22 = vld [vmem:[#allocation107_spill] sm:$0xff] }
 0x1db   : > { %v2238_v48 = vpop.f32.mrf.mxu0  ;;  %v9754_v1 = vpop.f32.mrf.mxu1  ;;  %2901 = vmatmul.mubr.bf16.gmra.mxu0 %v14541_v21  ;;  %3082 = vmatmul.mubr.bf16.gmra.mxu1 %v14542_v41  ;;  %v1343_v35 = vld [vmem:[%s13744_s1 + $0x1250] sm:$0xff] }
 0x1dc   : > { %14540 = vst [vmem:[#allocation156_spill] sm:$0xff] %v9743_v15  ;;  %v9765_v23 = vadd.f32 %v2238_v48, %v14543_v19  ;;  %2910 = vmatprep.mubr.bf16.mxu0 %v14545_v63  ;;  %3091 = vmatprep.mubr.bf16.mxu1 %v14546_v36  ;;  %v1658_v56 = vpack.c.bf16 %v1343_v35, %v1336_v6  ;;  %v1335_v41 = vld [vmem:[%s13744_s1 + $0x1210] sm:$0xff]  ;;  %v1342_v48 = vld [vmem:[%s13744_s1 + $0x1248] sm:$0xff]  ;;  %v1328_v36 = vld [vmem:[%s13744_s1 + $0x11d8] sm:$0xff] }
 0x1dd   : > { %v2240_v45 = vpop.f32.mrf.mxu0  ;;  %v9769_v10 = vpop.f32.mrf.mxu1  ;;  %3215 = vmatpush2.bf16.msra.mxu0 %v1734_v58  ;;  %v1322_v58 = vld [vmem:[%s13744_s1 + $0x11a8] sm:$0xff]  ;;  %v1657_v6 = vpack.c.bf16 %v1342_v48, %v1335_v41  ;;  %v14556_v41 = vld [vmem:[#allocation108_spill] sm:$0xff] }
 0x1de   : > { %14544 = vst [vmem:[#allocation20_spill] sm:$0xff] %v9765_v23  ;;  %v9772_v15 = vadd.f32 %v2240_v45, %v14547_v22  ;;  %3216 = vmatprep.subr.bf16.mxu0 %v1665_v33  ;;  %v1329_v22 = vld [vmem:[%s13744_s1 + $0x11e0] sm:$0xff] }
 0x1df   : > { %v2242_v19 = vpop.f32.mrf.mxu0  ;;  %v9780_v23 = vpop.f32.mrf.mxu1  ;;  %v1651_v45 = vpack.c.bf16 %v1329_v22, %v1322_v58  ;;  %v14558_v58 = vld [vmem:[#allocation26_spill] sm:$0xff]  ;;  %v14559_v22 = vld [vmem:[#allocation27_spill] sm:$0xff] }
 0x1e0   : > { %14548 = vst [vmem:[#allocation106_spill] sm:$0xff] %v9772_v15  ;;  %14549 = vst [vmem:[#allocation22_spill] sm:$0xff] %v9780_v23  ;;  %v9789_v33 = vadd.f32 %v2242_v19, %v9134_v46  ;;  %v1321_v15 = vld [vmem:[%s13744_s1 + $0x11a0] sm:$0xff] }
 0x1e1   : > { %v2244_v38 = vpop.f32.mrf.mxu0  ;;  %v9791_v49 = vpop.f32.mrf.mxu1  ;;  %3217 = vmatpush2.bf16.msra.mxu0 %v1664_v20  ;;  %v14555_v20 = vld [vmem:[#allocation25_spill] sm:$0xff] }
 0x1e2   : > { %14550 = vst [vmem:[#allocation107_spill] sm:$0xff] %v9789_v33  ;;  %14551 = vst [vmem:[#allocation157_spill] sm:$0xff] %v9791_v49  ;;  %v9794_v35 = vadd.f32 %v2244_v38, %v9142_v44  ;;  %3218 = vmatprep.subr.bf16.mxu0 %v1658_v56  ;;  %v14554_v33 = vld [vmem:[#allocation24_spill] sm:$0xff]  ;;  %v1197_v44 = vld [vmem:[%s13744_s1 + $0xdc0] sm:$0xff] }
 0x1e3   : > { %v2248_v46 = vpop.f32.mrf.mxu0  ;;  %v9802_v19 = vpop.f32.mrf.mxu1  ;;  %2911 = vmatmul.mubr.bf16.gmra.mxu0 %v14554_v33  ;;  %3092 = vmatmul.mubr.bf16.gmra.mxu1 %v14555_v20  ;;  %v1204_v56 = vld [vmem:[%s13744_s1 + $0xdf8] sm:$0xff]  ;;  %v1650_v20 = vpack.c.bf16 %v1328_v36, %v1321_v15 }
 0x1e4   : > { %14552 = vst [vmem:[#allocation158_spill] sm:$0xff] %v9794_v35  ;;  %14553 = vst [vmem:[#allocation159_spill] sm:$0xff] %v9802_v19  ;;  %v9813_v48 = vadd.f32 %v2248_v46, %v14556_v41  ;;  %2920 = vmatprep.mubr.bf16.mxu0 %v14558_v58  ;;  %3101 = vmatprep.mubr.bf16.mxu1 %v14559_v22  ;;  %v1589_v33 = vpack.c.bf16 %v1204_v56, %v1197_v44  ;;  %v14563_v22 = vld [vmem:[#allocation110_spill] sm:$0xff] }
 0x1e5   : > { %v2250_v38 = vpop.f32.mrf.mxu0  ;;  %v9817_v35 = vpop.f32.mrf.mxu1  ;;  %3219 = vmatpush2.bf16.msra.mxu0 %v1657_v6  ;;  %v14566_v6 = vld [vmem:[#allocation29_spill] sm:$0xff] }
 0x1e6   : > { %14557 = vst [vmem:[#allocation108_spill] sm:$0xff] %v9813_v48  ;;  %v9820_v19 = vadd.f32 %v2250_v38, %v14560_v43  ;;  %3220 = vmatprep.subr.bf16.mxu0 %v1651_v45  ;;  %v14565_v43 = vld [vmem:[#allocation28_spill] sm:$0xff]  ;;  %v14567_v45 = vld [vmem:[#allocation111_spill] sm:$0xff] }
 0x1e7   : > { %v2252_v49 = vpop.f32.mrf.mxu0  ;;  %v9822_v23 = vpop.f32.mrf.mxu1 }
 0x1e8   : > { %14561 = vst [vmem:[#allocation109_spill] sm:$0xff] %v9820_v19  ;;  %v9825_v46 = vadd.f32 %v2252_v49, %v9195_v40  ;;  %v14569_v40 = vld [vmem:[#allocation30_spill] sm:$0xff]  ;;  %v14570_v49 = vld [vmem:[#allocation31_spill] sm:$0xff] }
 0x1e9   : > { %v2254_v41 = vpop.f32.mrf.mxu0  ;;  %v9827_v48 = vpop.f32.mrf.mxu1  ;;  %3221 = vmatpush2.bf16.msra.mxu0 %v1650_v20 }
 0x1ea   : > { %14562 = vst [vmem:[#allocation160_spill] sm:$0xff] %v9825_v46  ;;  %v9830_v58 = vadd.f32 %v2254_v41, %v14563_v22  ;;  %6730 = vmatprep.subr.bf16.mxu0 %v1589_v33  ;;  %v14572_v22 = vld [vmem:[#allocation112_spill] sm:$0xff]  ;;  %v14574_v46 = vld [vmem:[#allocation113_spill] sm:$0xff] }
 0x1eb   : > { %v2258_v15 = vpop.f32.mrf.mxu0  ;;  %v9832_v36 = vpop.f32.mrf.mxu1  ;;  %2921 = vmatmul.mubr.bf16.gmra.mxu0 %v14565_v43  ;;  %3102 = vmatmul.mubr.bf16.gmra.mxu1 %v14566_v6 }
 0x1ec   : > { %14564 = vst [vmem:[#allocation110_spill] sm:$0xff] %v9830_v58  ;;  %v9837_v44 = vadd.f32 %v2258_v15, %v14567_v45  ;;  %2930 = vmatprep.mubr.bf16.mxu0 %v14569_v40  ;;  %3111 = vmatprep.mubr.bf16.mxu1 %v14570_v49  ;;  %v14576_v15 = vld [vmem:[#allocation114_spill] sm:$0xff]  ;;  %v14579_v40 = vld [vmem:[#allocation32_spill] sm:$0xff] }
 0x1ed   : > { %v2260_v56 = vpop.f32.mrf.mxu0  ;;  %v9841_v20 = vpop.f32.mrf.mxu1 }
 0x1ee   : > { %14568 = vst [vmem:[#allocation28_spill] sm:$0xff] %v9837_v44  ;;  %14571 = vst [vmem:[#allocation111_spill] sm:$0xff] %v9841_v20  ;;  %v9844_v38 = vadd.f32 %v2260_v56, %v14572_v22  ;;  %v14580_v20 = vld [vmem:[#allocation33_spill] sm:$0xff]  ;;  %v14581_v56 = vld [vmem:[#allocation115_spill] sm:$0xff] }
 0x1ef   : > { %v2262_v33 = vpop.f32.mrf.mxu0  ;;  %v9846_v41 = vpop.f32.mrf.mxu1 }
 0x1f0   : > { %14573 = vst [vmem:[#allocation112_spill] sm:$0xff] %v9844_v38  ;;  %v9849_v58 = vadd.f32 %v2262_v33, %v14574_v46  ;;  %v14583_v38 = vld [vmem:[#allocation34_spill] sm:$0xff]  ;;  %v14584_v46 = vld [vmem:[#allocation35_spill] sm:$0xff] }
 0x1f1   : > { %v2264_v19 = vpop.f32.mrf.mxu0  ;;  %v9851_v6 = vpop.f32.mrf.mxu1 }
 0x1f2   : > { %14575 = vst [vmem:[#allocation113_spill] sm:$0xff] %v9849_v58  ;;  %v9854_v45 = vadd.f32 %v2264_v19, %v14576_v15 }
 0x1f3   : > { %v2268_v44 = vpop.f32.mrf.mxu0  ;;  %v9856_v49 = vpop.f32.mrf.mxu1  ;;  %2931 = vmatmul.mubr.bf16.gmra.mxu0 %v14579_v40  ;;  %3112 = vmatmul.mubr.bf16.gmra.mxu1 %v14580_v20 }
 0x1f4   : > { %14577 = vst [vmem:[#allocation114_spill] sm:$0xff] %v9854_v45  ;;  %14578 = vst [vmem:[#allocation161_spill] sm:$0xff] %v9856_v49  ;;  %v9861_v22 = vadd.f32 %v2268_v44, %v14581_v56  ;;  %2940 = vmatprep.mubr.bf16.mxu0 %v14583_v38  ;;  %3121 = vmatprep.mubr.bf16.mxu1 %v14584_v46  ;;  %v14589_v46 = vld [vmem:[#allocation36_spill] sm:$0xff] }
 0x1f5   : > { %v2270_v33 = vpop.f32.mrf.mxu0  ;;  %v9865_v58 = vpop.f32.mrf.mxu1 }
 0x1f6   : > { %14582 = vst [vmem:[#allocation115_spill] sm:$0xff] %v9861_v22  ;;  %v9868_v19 = vadd.f32 %v2270_v33, %v9291_v3  ;;  %v14591_v33 = vld [vmem:[#allocation38_spill] sm:$0xff] }
 0x1f7   : > { %v2272_v15 = vpop.f32.mrf.mxu0  ;;  %v9870_v45 = vpop.f32.mrf.mxu1 }
 0x1f8   : > { %14585 = vst [vmem:[#allocation34_spill] sm:$0xff] %v9868_v19  ;;  %v9873_v49 = vadd.f32 %v2272_v15, %v9293_v61 }
 0x1f9   : > { %v2274_v20 = vpop.f32.mrf.mxu0  ;;  %v9875_v40 = vpop.f32.mrf.mxu1 }
 0x1fa   : > { %14586 = vst [vmem:[#allocation162_spill] sm:$0xff] %v9873_v49  ;;  %v9878_v44 = vadd.f32 %v2274_v20, %v9295_v11 }
 0x1fb   : > { %v2278_v56 = vpop.f32.mrf.mxu0  ;;  %v9880_v22 = vpop.f32.mrf.mxu1  ;;  %2941 = vmatmul.mubr.bf16.gmra.mxu0 %v14589_v46  ;;  %3122 = vmatmul.mubr.bf16.gmra.mxu1 %v14433_v53  ;;  %v14593_v53 = vld [vmem:[#allocation40_spill] sm:$0xff] }
 0x1fc   : > { %14587 = vst [vmem:[#allocation163_spill] sm:$0xff] %v9878_v44  ;;  %14588 = vst [vmem:[#allocation164_spill] sm:$0xff] %v9880_v22  ;;  %v9885_v3 = vadd.f32 %v2278_v56, %v9299_v16  ;;  %2950 = vmatprep.mubr.bf16.mxu0 %v14591_v33  ;;  %3131 = vmatprep.mubr.bf16.mxu1 %v14434_v52  ;;  %v14594_v56 = vld [vmem:[#allocation42_spill] sm:$0xff] }
 0x1fd   : > { %v2280_v61 = vpop.f32.mrf.mxu0  ;;  %v9889_v15 = vpop.f32.mrf.mxu1 }
 0x1fe   : > { %14590 = vst [vmem:[#allocation165_spill] sm:$0xff] %v9885_v3  ;;  %v9892_v11 = vadd.f32 %v2280_v61, %v9304_v42 }
 0x1ff   : > { %v2282_v20 = vpop.f32.mrf.mxu0  ;;  %v2463_v49 = vpop.f32.mrf.mxu1 }
 0x200   : > { %14592 = vst [vmem:[#allocation38_spill] sm:$0xff] %v9892_v11 }
 0x201   : > { %v2283_v44 = vpop.f32.mrf.mxu0  ;;  %v2464_v19 = vpop.f32.mrf.mxu1 }
 0x203   : > { %v2500_v22 = vpop.f32.mrf.mxu0  ;;  %v2681_v46 = vpop.f32.mrf.mxu1  ;;  %2951 = vmatmul.mubr.bf16.gmra.mxu0 %v14593_v53  ;;  %3132 = vmatmul.mubr.bf16.gmra.mxu1 %v14435_v57 }
 0x204   : > { %v2501_v16 = vadd.f32 %v2500_v22, %v9306_v39  ;;  %2960 = vmatprep.mubr.bf16.mxu0 %v14594_v56  ;;  %3141 = vmatprep.mubr.bf16.mxu1 %v14437_v37  ;;  %v14598_v56 = vld [vmem:[#allocation44_spill] sm:$0xff] }
 0x205   : > { %v2502_v3 = vpop.f32.mrf.mxu0  ;;  %v2683_v52 = vpop.f32.mrf.mxu1 }
 0x206   : > { %v9899_v42 = vadd.f32 %v2681_v46, %v2501_v16  ;;  %v2503_v49 = vadd.f32 %v2502_v3, %v9316_v50  ;;  %v14599_v46 = vld [vmem:[#allocation46_spill] sm:$0xff] }
 0x207   : > { %v2504_v44 = vpop.f32.mrf.mxu0  ;;  %v2685_v19 = vpop.f32.mrf.mxu1 }
 0x208   : > { %14595 = vst [vmem:[#allocation166_spill] sm:$0xff] %v9899_v42  ;;  %v9902_v61 = vadd.f32 %v2683_v52, %v2503_v49  ;;  %v2505_v20 = vadd.f32 %v2504_v44, %v9321_v4 }
 0x209   : > { %v2506_v11 = vpop.f32.mrf.mxu0  ;;  %v2687_v57 = vpop.f32.mrf.mxu1 }
 0x20a   : > { %14596 = vst [vmem:[#allocation167_spill] sm:$0xff] %v9902_v61  ;;  %v9905_v53 = vadd.f32 %v2685_v19, %v2505_v20  ;;  %v2507_v39 = vadd.f32 %v2506_v11, %v9326_v12 }
 0x20b   : > { %v2510_v22 = vpop.f32.mrf.mxu0  ;;  %v2691_v37 = vpop.f32.mrf.mxu1  ;;  %2961 = vmatmul.mubr.bf16.gmra.mxu0 %v14598_v56  ;;  %3142 = vmatmul.mubr.bf16.gmra.mxu1 %v14441_v18  ;;  %v14648_v18 = vld [vmem:[#allocation64_spill] sm:$0xff] }
 0x20c   : > { %14597 = vst [vmem:[#allocation168_spill] sm:$0xff] %v9905_v53  ;;  %v2511_v50 = vadd.f32 %v2510_v22, %v9331_v13  ;;  %2970 = vmatprep.mubr.bf16.mxu0 %v14599_v46  ;;  %3151 = vmatprep.mubr.bf16.mxu1 %v14443_v7  ;;  %v9913_v52 = vadd.f32 %v2687_v57, %v2507_v39 }
 0x20d   : > { %v2512_v4 = vpop.f32.mrf.mxu0  ;;  %v2693_v3 = vpop.f32.mrf.mxu1 }
 0x20e   : > { %14600 = vst [vmem:[#allocation44_spill] sm:$0xff] %v9913_v52  ;;  %v9915_v16 = vadd.f32 %v2691_v37, %v2511_v50  ;;  %v2513_v12 = vadd.f32 %v2512_v4, %v9341_v0  ;;  %v14604_v52 = vld [vmem:[#allocation48_spill] sm:$0xff]  ;;  %v14605_v0 = vld [vmem:[#allocation50_spill] sm:$0xff] }
 0x20f   : > { %v2514_v11 = vpop.f32.mrf.mxu0  ;;  %v2695_v49 = vpop.f32.mrf.mxu1 }
 0x210   : > { %14601 = vst [vmem:[#allocation46_spill] sm:$0xff] %v9915_v16  ;;  %v9918_v44 = vadd.f32 %v2693_v3, %v2513_v12  ;;  %v2515_v19 = vadd.f32 %v2514_v11, %v9346_v30  ;;  %v14620_v16 = vld [vmem:[#allocation56_spill] sm:$0xff] }
 0x211   : > { %v2516_v20 = vpop.f32.mrf.mxu0  ;;  %v2697_v13 = vpop.f32.mrf.mxu1 }
 0x212   : > { %14602 = vst [vmem:[#allocation169_spill] sm:$0xff] %v9918_v44  ;;  %v9921_v22 = vadd.f32 %v2695_v49, %v2515_v19  ;;  %v2517_v61 = vadd.f32 %v2516_v20, %v9351_v25  ;;  %v14610_v44 = vld [vmem:[#allocation52_spill] sm:$0xff] }
 0x213   : > { %v2520_v57 = vpop.f32.mrf.mxu0  ;;  %v2701_v39 = vpop.f32.mrf.mxu1  ;;  %2971 = vmatmul.mubr.bf16.gmra.mxu0 %v14604_v52  ;;  %3152 = vmatmul.mubr.bf16.gmra.mxu1 %v14448_v54 }
 0x214   : > { %14603 = vst [vmem:[#allocation170_spill] sm:$0xff] %v9921_v22  ;;  %v2521_v37 = vadd.f32 %v2520_v57, %v9356_v14  ;;  %2980 = vmatprep.mubr.bf16.mxu0 %v14605_v0  ;;  %v9928_v50 = vadd.f32 %v2697_v13, %v2517_v61  ;;  %3161 = vmatprep.mubr.bf16.mxu1 %v14452_v5  ;;  %v14644_v5 = vld [vmem:[#allocation63_spill] sm:$0xff] }
 0x215   : > { %v2522_v4 = vpop.f32.mrf.mxu0  ;;  %v2703_v30 = vpop.f32.mrf.mxu1 }
 0x216   : > { %14606 = vst [vmem:[#allocation48_spill] sm:$0xff] %v9928_v50  ;;  %v9931_v3 = vadd.f32 %v2701_v39, %v2521_v37  ;;  %v2523_v25 = vadd.f32 %v2522_v4, %v9366_v2  ;;  %v14611_v39 = vld [vmem:[#allocation54_spill] sm:$0xff] }
 0x217   : > { %v2524_v12 = vpop.f32.mrf.mxu0  ;;  %v2705_v11 = vpop.f32.mrf.mxu1 }
 0x218   : > { %14607 = vst [vmem:[#allocation50_spill] sm:$0xff] %v9931_v3  ;;  %v9934_v49 = vadd.f32 %v2703_v30, %v2523_v25  ;;  %v2525_v19 = vadd.f32 %v2524_v12, %v9371_v62  ;;  %v14613_v30 = vld [vmem:[#allocation55_spill] sm:$0xff] }
 0x219   : > { %v2526_v20 = vpop.f32.mrf.mxu0  ;;  %v2707_v14 = vpop.f32.mrf.mxu1  ;;  %v14615_v12 = vld [vmem:[#allocation127_spill] sm:$0xff] }
 0x21a   : > { %14608 = vst [vmem:[#allocation171_spill] sm:$0xff] %v9934_v49  ;;  %v9937_v57 = vadd.f32 %v2705_v11, %v2525_v19  ;;  %v2527_v61 = vadd.f32 %v2526_v20, %v9376_v26 }
 0x21b   : > { %v2530_v13 = vpop.f32.mrf.mxu0  ;;  %v2711_v50 = vpop.f32.mrf.mxu1  ;;  %2981 = vmatmul.mubr.bf16.gmra.mxu0 %v14610_v44  ;;  %3162 = vmatmul.mubr.bf16.gmra.mxu1 %v14457_v8  ;;  %v1295_v8 = vld [vmem:[%s13744_s1 + $0x10d0] sm:$0xff] }
 0x21c   : > { %14609 = vst [vmem:[#allocation172_spill] sm:$0xff] %v9937_v57  ;;  %v2531_v2 = vadd.f32 %v2530_v13, %v9381_v47  ;;  %2990 = vmatprep.mubr.bf16.mxu0 %v14611_v39  ;;  %v9944_v37 = vadd.f32 %v2707_v14, %v2527_v61  ;;  %3171 = vmatprep.mubr.bf16.mxu1 %v14613_v30  ;;  %v14617_v57 = vld [vmem:[#allocation129_spill] sm:$0xff]  ;;  %v14619_v14 = vld [vmem:[#allocation131_spill] sm:$0xff]  ;;  %v14632_v30 = vld [vmem:[#allocation60_spill] sm:$0xff] }
 0x21d   : > { %v2532_v4 = vpop.f32.mrf.mxu0  ;;  %v2713_v62 = vpop.f32.mrf.mxu1 }
 0x21e   : > { %14612 = vst [vmem:[#allocation52_spill] sm:$0xff] %v9944_v37  ;;  %v9947_v25 = vadd.f32 %v2711_v50, %v2531_v2  ;;  %v2533_v26 = vadd.f32 %v2532_v4, %v14615_v12  ;;  %v14621_v50 = vld [vmem:[#allocation57_spill] sm:$0xff]  ;;  %v14623_v12 = vld [vmem:[#allocation58_spill] sm:$0xff] }
 0x21f   : > { %v2534_v11 = vpop.f32.mrf.mxu0  ;;  %v2715_v19 = vpop.f32.mrf.mxu1  ;;  %v14622_v2 = vld [vmem:[#allocation133_spill] sm:$0xff] }
 0x220   : > { %14614 = vst [vmem:[#allocation54_spill] sm:$0xff] %v9947_v25  ;;  %v9950_v20 = vadd.f32 %v2713_v62, %v2533_v26  ;;  %v2535_v49 = vadd.f32 %v2534_v11, %v14617_v57  ;;  %v14625_v11 = vld [vmem:[#allocation59_spill] sm:$0xff]  ;;  %v14629_v25 = vld [vmem:[#allocation136_spill] sm:$0xff] }
 0x221   : > { %v2536_v3 = vpop.f32.mrf.mxu0  ;;  %v2717_v47 = vpop.f32.mrf.mxu1 }
 0x222   : > { %14616 = vst [vmem:[#allocation127_spill] sm:$0xff] %v9950_v20  ;;  %v9953_v13 = vadd.f32 %v2715_v19, %v2535_v49  ;;  %v2537_v61 = vadd.f32 %v2536_v3, %v14619_v14  ;;  %v14627_v19 = vld [vmem:[#allocation135_spill] sm:$0xff] }
 0x223   : > { %v2540_v37 = vpop.f32.mrf.mxu0  ;;  %v2721_v22 = vpop.f32.mrf.mxu1  ;;  %2991 = vmatmul.mubr.bf16.gmra.mxu0 %v14620_v16  ;;  %3172 = vmatmul.mubr.bf16.gmra.mxu1 %v14621_v50 }
 0x224   : > { %14618 = vst [vmem:[#allocation129_spill] sm:$0xff] %v9953_v13  ;;  %v2541_v4 = vadd.f32 %v2540_v37, %v14622_v2  ;;  %3000 = vmatprep.mubr.bf16.mxu0 %v14623_v12  ;;  %v9960_v62 = vadd.f32 %v2717_v47, %v2537_v61  ;;  %3181 = vmatprep.mubr.bf16.mxu1 %v14625_v11  ;;  %v14631_v47 = vld [vmem:[#allocation137_spill] sm:$0xff]  ;;  %v1078_v11 = vld [vmem:[%s13744_s1 + $0xa08] sm:$0xff] }
 0x225   : > { %v2542_v26 = vpop.f32.mrf.mxu0  ;;  %v2723_v57 = vpop.f32.mrf.mxu1 }
 0x226   : > { %14624 = vst [vmem:[#allocation131_spill] sm:$0xff] %v9960_v62  ;;  %v9963_v49 = vadd.f32 %v2721_v22, %v2541_v4  ;;  %v2543_v3 = vadd.f32 %v2542_v26, %v14627_v19  ;;  %v14633_v22 = vld [vmem:[#allocation61_spill] sm:$0xff]  ;;  %v14634_v4 = vld [vmem:[#allocation138_spill] sm:$0xff] }
 0x227   : > { %v2544_v14 = vpop.f32.mrf.mxu0  ;;  %v2725_v20 = vpop.f32.mrf.mxu1  ;;  %v14635_v19 = vld [vmem:[#allocation62_spill] sm:$0xff] }
 0x228   : > { %14626 = vst [vmem:[#allocation56_spill] sm:$0xff] %v9963_v49  ;;  %v9966_v13 = vadd.f32 %v2723_v57, %v2543_v3  ;;  %v2545_v53 = vadd.f32 %v2544_v14, %v14629_v25  ;;  %v14637_v14 = vld [vmem:[#allocation2_spill] sm:$0xff] }
 0x229   : > { %v2546_v42 = vpop.f32.mrf.mxu0  ;;  %v2727_v37 = vpop.f32.mrf.mxu1 }
 0x22a   : > { %14628 = vst [vmem:[#allocation133_spill] sm:$0xff] %v9966_v13  ;;  %v9969_v2 = vadd.f32 %v2725_v20, %v2545_v53  ;;  %v2547_v61 = vadd.f32 %v2546_v42, %v14631_v47  ;;  %v1085_v53 = vld [vmem:[%s13744_s1 + $0xa40] sm:$0xff]  ;;  %v1092_v42 = vld [vmem:[%s13744_s1 + $0xa78] sm:$0xff] }
 0x22b   : > { %v2550_v62 = vpop.f32.mrf.mxu0  ;;  %v2731_v50 = vpop.f32.mrf.mxu1  ;;  %3001 = vmatmul.mubr.bf16.gmra.mxu0 %v14632_v30  ;;  %3182 = vmatmul.mubr.bf16.gmra.mxu1 %v14633_v22  ;;  %v1071_v22 = vld [vmem:[%s13744_s1 + $0x9d0] sm:$0xff]  ;;  %v14650_v30 = vld [vmem:[#allocation6_spill] sm:$0xff] }
 0x22c   : > { %14630 = vst [vmem:[#allocation58_spill] sm:$0xff] %v9969_v2  ;;  %v2551_v26 = vadd.f32 %v2550_v62, %v14634_v4  ;;  %6592 = vmatprep.mubr.msk.bf16.mxu0 %vm1674_vm1, %v14635_v19  ;;  %v9977_v57 = vadd.f32 %v2727_v37, %v2547_v61  ;;  %3403 = vmatprep.mubr.bf16.mxu1 %v14637_v14  ;;  %v14639_v62 = vld [vmem:[#allocation139_spill] sm:$0xff]  ;;  %v1309_v37 = vld [vmem:[%s13744_s1 + $0x1140] sm:$0xff]  ;;  %v1316_v61 = vld [vmem:[%s13744_s1 + $0x1178] sm:$0xff] }
 0x22d   : > { %v2552_v25 = vpop.f32.mrf.mxu0  ;;  %v2733_v3 = vpop.f32.mrf.mxu1  ;;  %v1645_v49 = vpack.c.bf16 %v1316_v61, %v1309_v37  ;;  %v1176_v37 = vld [vmem:[%s13744_s1 + $0xd18] sm:$0xff] }
 0x22e   : > { %14636 = vst [vmem:[#allocation135_spill] sm:$0xff] %v9977_v57  ;;  %v9986_v20 = vadd.f32 %v2731_v50, %v2551_v26  ;;  %v2553_v47 = vadd.f32 %v2552_v25, %v14639_v62  ;;  %v1183_v57 = vld [vmem:[%s13744_s1 + $0xd50] sm:$0xff]  ;;  %v1190_v50 = vld [vmem:[%s13744_s1 + $0xd88] sm:$0xff]  ;;  %v14643_v61 = vld [vmem:[#allocation141_spill] sm:$0xff] }
 0x22f   : > { %v2554_v4 = vpop.f32.mrf.mxu0  ;;  %v2735_v14 = vpop.f32.mrf.mxu1  ;;  %v14641_v25 = vld [vmem:[#allocation140_spill] sm:$0xff] }
 0x230   : > { %14638 = vst [vmem:[#allocation136_spill] sm:$0xff] %v9986_v20  ;;  %v10001_v26 = vadd.f32 %v2733_v3, %v2553_v47  ;;  %v2555_v62 = vadd.f32 %v2554_v4, %v14641_v25  ;;  %v1533_v20 = vpack.c.bf16 %v1092_v42, %v1085_v53  ;;  %v1582_v47 = vpack.c.bf16 %v1190_v50, %v1183_v57  ;;  %v1302_v53 = vld [vmem:[%s13744_s1 + $0x1108] sm:$0xff]  ;;  %v1169_v42 = vld [vmem:[%s13744_s1 + $0xce0] sm:$0xff] }
 0x231   : > { %v2556_v13 = vpop.f32.mrf.mxu0  ;;  %v2737_v2 = vpop.f32.mrf.mxu1  ;;  %v14646_v57 = vld [vmem:[#allocation142_spill] sm:$0xff]  ;;  %v1638_v19 = vpack.c.bf16 %v1302_v53, %v1295_v8 }
 0x232   : > { %14640 = vst [vmem:[#allocation137_spill] sm:$0xff] %v10001_v26  ;;  %v10013_v3 = vadd.f32 %v2735_v14, %v2555_v62  ;;  %v2557_v4 = vadd.f32 %v2556_v13, %v14643_v61  ;;  %v14645_v14 = vld [vmem:[#allocation4_spill] sm:$0xff]  ;;  %v1526_v62 = vpack.c.bf16 %v1078_v11, %v1071_v22  ;;  %v1575_v13 = vpack.c.bf16 %v1176_v37, %v1169_v42  ;;  %v1281_v11 = vld [vmem:[%s13744_s1 + $0x1060] sm:$0xff] }
 0x233   : > { %v2560_v25 = vpop.f32.mrf.mxu0  ;;  %v2741_v26 = vpop.f32.mrf.mxu1  ;;  %3223 = vmatmul.mubr.bf16.vlgmr.msra.gmra.mxu0 %v14644_v5  ;;  %3404 = vmatmul.mubr.bf16.vlgmr.msra.gmra.mxu1 %v14645_v14  ;;  %v1057_v8 = vld [vmem:[%s13744_s1 + $0x960] sm:$0xff] }
 0x234   : > { %14642 = vst [vmem:[#allocation138_spill] sm:$0xff] %v10013_v3  ;;  %v2561_v50 = vadd.f32 %v2560_v25, %v14646_v57  ;;  %6731 = vmatpush3.bf16.msra.mxu0 %v1533_v20  ;;  %v10028_v3 = vadd.f32 %v2737_v2, %v2557_v4  ;;  %6593 = vmatprep.mubr.msk.bf16.mxu0 %vm1674_vm1, %v14648_v18  ;;  %v1288_v2 = vld [vmem:[%s13744_s1 + $0x1098] sm:$0xff]  ;;  %v1274_v25 = vld [vmem:[%s13744_s1 + $0x1028] sm:$0xff] }
 0x235   : > { %v2562_v54 = vpop.f32.mrf.mxu0  ;;  %v2743_v7 = vpop.f32.mrf.mxu1  ;;  %3676 = vmatpush1.bf16.msra.mxu1 %v1645_v49  ;;  %3411 = vmatprep.mubr.bf16.mxu1 %v14650_v30  ;;  %v14652_v30 = vld [vmem:[#allocation144_spill] sm:$0xff]  ;;  %v1631_v37 = vpack.c.bf16 %v1288_v2, %v1281_v11  ;;  %v1050_v11 = vld [vmem:[%s13744_s1 + $0x928] sm:$0xff] }
 0x236   : > { %14647 = vst [vmem:[#allocation2_spill] sm:$0xff] %v10028_v3  ;;  %v10032_v61 = vadd.f32 %v2741_v26, %v2561_v50  ;;  %v2563_v5 = vadd.f32 %v2562_v54, %v9511_v32  ;;  %6732 = vmatprep.subr.bf16.mxu0 %v1582_v47  ;;  %3677 = vmatprep.subr.bf16.mxu1 %v14516_v28  ;;  %v1064_v54 = vld [vmem:[%s13744_s1 + $0x998] sm:$0xff]  ;;  %v1155_v26 = vld [vmem:[%s13744_s1 + $0xc70] sm:$0xff]  ;;  %v1162_v47 = vld [vmem:[%s13744_s1 + $0xca8] sm:$0xff] }
 0x237   : > { %v2564_v22 = vpop.f32.mrf.mxu0  ;;  %v2745_v20 = vpop.f32.mrf.mxu1 }
 0x238   : > { %14649 = vst [vmem:[#allocation139_spill] sm:$0xff] %v10032_v61  ;;  %v10049_v32 = vadd.f32 %v2743_v7, %v2563_v5  ;;  %v2565_v49 = vadd.f32 %v2564_v22, %v14652_v30  ;;  %6733 = vmatpush3.bf16.msra.mxu0 %v1526_v62  ;;  %v1519_v7 = vpack.c.bf16 %v1064_v54, %v1057_v8  ;;  %v1267_v5 = vld [vmem:[%s13744_s1 + $0xff0] sm:$0xff]  ;;  %v14655_v22 = vld [vmem:[#allocation66_spill] sm:$0xff] }
 0x239   : > { %v2566_v53 = vpop.f32.mrf.mxu0  ;;  %v2747_v42 = vpop.f32.mrf.mxu1  ;;  %3678 = vmatpush1.bf16.msra.mxu1 %v1638_v19  ;;  %6734 = vmatprep.subr.bf16.mxu0 %v1575_v13  ;;  %v14654_v19 = vld [vmem:[#allocation65_spill] sm:$0xff]  ;;  %v1568_v62 = vpack.c.bf16 %v1162_v47, %v1155_v26  ;;  %v1043_v13 = vld [vmem:[%s13744_s1 + $0x8f0] sm:$0xff]  ;;  %v14657_v54 = vld [vmem:[#allocation10_spill] sm:$0xff] }
 0x23a   : > { %14651 = vst [vmem:[#allocation140_spill] sm:$0xff] %v10049_v32  ;;  %v10058_v4 = vadd.f32 %v2745_v20, %v2565_v49  ;;  %3679 = vmatprep.subr.bf16.mxu1 %v14516_v28  ;;  %v2567_v14 = vadd.f32 %v2566_v53, %v9546_v29  ;;  %v14659_v49 = vld [vmem:[#allocation147_spill] sm:$0xff]  ;;  %v1512_v47 = vpack.c.bf16 %v1050_v11, %v1043_v13 }
 0x23b   : > { %v2570_v57 = vpop.f32.mrf.mxu0  ;;  %v2751_v50 = vpop.f32.mrf.mxu1  ;;  %3233 = vmatmul.mubr.bf16.gmra.mxu0 %v14654_v19  ;;  %3412 = vmatmul.mubr.bf16.gmra.mxu1 %v14508_v27  ;;  %v1624_v27 = vpack.c.bf16 %v1274_v25, %v1267_v5  ;;  %v1141_v5 = vld [vmem:[%s13744_s1 + $0xc00] sm:$0xff] }
 0x23c   : > { %14653 = vst [vmem:[#allocation141_spill] sm:$0xff] %v10058_v4  ;;  %v2571_v2 = vadd.f32 %v2570_v57, %v9567_v59  ;;  %6594 = vmatprep.mubr.msk.bf16.mxu0 %vm1674_vm1, %v14655_v22  ;;  %v10079_v29 = vadd.f32 %v2747_v42, %v2567_v14  ;;  %3419 = vmatprep.mubr.bf16.mxu1 %v14657_v54  ;;  %v1253_v59 = vld [vmem:[%s13744_s1 + $0xf80] sm:$0xff]  ;;  %v14661_v14 = vld [vmem:[#allocation148_spill] sm:$0xff] }
 0x23d   : > { %v2572_v20 = vpop.f32.mrf.mxu0  ;;  %v2753_v8 = vpop.f32.mrf.mxu1  ;;  %3680 = vmatpush1.bf16.msra.mxu1 %v1631_v37  ;;  %6735 = vmatpush3.bf16.msra.mxu0 %v1519_v7  ;;  %v1260_v37 = vld [vmem:[%s13744_s1 + $0xfb8] sm:$0xff] }
 0x23e   : > { %14656 = vst [vmem:[#allocation4_spill] sm:$0xff] %v10079_v29  ;;  %v10082_v30 = vadd.f32 %v2751_v50, %v2571_v2  ;;  %v2573_v26 = vadd.f32 %v2572_v20, %v14659_v49  ;;  %3681 = vmatprep.subr.bf16.mxu1 %v14516_v28  ;;  %6736 = vmatprep.subr.bf16.mxu0 %v1568_v62  ;;  %v1148_v7 = vld [vmem:[%s13744_s1 + $0xc38] sm:$0xff]  ;;  %v1029_v50 = vld [vmem:[%s13744_s1 + $0x880] sm:$0xff]  ;;  %v1127_v2 = vld [vmem:[%s13744_s1 + $0xb90] sm:$0xff] }
 0x23f   : > { %v2574_v53 = vpop.f32.mrf.mxu0  ;;  %v2755_v42 = vpop.f32.mrf.mxu1  ;;  %v1036_v62 = vld [vmem:[%s13744_s1 + $0x8b8] sm:$0xff]  ;;  %v1134_v20 = vld [vmem:[%s13744_s1 + $0xbc8] sm:$0xff]  ;;  %v1617_v54 = vpack.c.bf16 %v1260_v37, %v1253_v59  ;;  %v1561_v49 = vpack.c.bf16 %v1148_v7, %v1141_v5  ;;  %v14664_v59 = vld [vmem:[#allocation68_spill] sm:$0xff] }
 0x240   : > { %14658 = vst [vmem:[#allocation142_spill] sm:$0xff] %v10082_v30  ;;  %v10098_v25 = vadd.f32 %v2753_v8, %v2573_v26  ;;  %v2575_v57 = vadd.f32 %v2574_v53, %v14661_v14 }
 0x241   : > { %v2576_v13 = vpop.f32.mrf.mxu0  ;;  %v2757_v11 = vpop.f32.mrf.mxu1  ;;  %3682 = vmatpush1.bf16.msra.mxu1 %v1624_v27  ;;  %6737 = vmatpush3.bf16.msra.mxu0 %v1512_v47  ;;  %v1239_v27 = vld [vmem:[%s13744_s1 + $0xf10] sm:$0xff] }
 0x242   : > { %14660 = vst [vmem:[#allocation64_spill] sm:$0xff] %v10098_v25  ;;  %v10113_v8 = vadd.f32 %v2755_v42, %v2575_v57  ;;  %v2577_v26 = vadd.f32 %v2576_v13, %v9620_v31  ;;  %v14663_v25 = vld [vmem:[#allocation67_spill] sm:$0xff]  ;;  %v1505_v57 = vpack.c.bf16 %v1036_v62, %v1029_v50  ;;  %v1554_v31 = vpack.c.bf16 %v1134_v20, %v1127_v2  ;;  %v14667_v13 = vld [vmem:[#allocation14_spill] sm:$0xff]  ;;  %v1015_v2 = vld [vmem:[%s13744_s1 + $0x810] sm:$0xff] }
 0x243   : > { %v2580_v53 = vpop.f32.mrf.mxu0  ;;  %v2761_v14 = vpop.f32.mrf.mxu1  ;;  %3243 = vmatmul.mubr.bf16.gmra.mxu0 %v14663_v25  ;;  %3420 = vmatmul.mubr.bf16.gmra.mxu1 %v14519_v55  ;;  %v1246_v42 = vld [vmem:[%s13744_s1 + $0xf48] sm:$0xff] }
 0x244   : > { %14662 = vst [vmem:[#allocation6_spill] sm:$0xff] %v10113_v8  ;;  %v2581_v47 = vadd.f32 %v2580_v53, %v9640_v34  ;;  %6595 = vmatprep.mubr.msk.bf16.mxu0 %vm1674_vm1, %v14664_v59  ;;  %v10127_v37 = vadd.f32 %v2757_v11, %v2577_v26  ;;  %3427 = vmatprep.mubr.bf16.mxu1 %v14521_v24  ;;  %v1225_v34 = vld [vmem:[%s13744_s1 + $0xea0] sm:$0xff]  ;;  %v1232_v24 = vld [vmem:[%s13744_s1 + $0xed8] sm:$0xff]  ;;  %v1022_v20 = vld [vmem:[%s13744_s1 + $0x848] sm:$0xff] }
 0x245   : > { %v2582_v5 = vpop.f32.mrf.mxu0  ;;  %v2763_v7 = vpop.f32.mrf.mxu1  ;;  %3683 = vmatprep.subr.bf16.mxu1 %v14516_v28  ;;  %v1610_v50 = vpack.c.bf16 %v1246_v42, %v1239_v27  ;;  %6738 = vmatprep.subr.bf16.mxu0 %v1561_v49  ;;  %v14669_v49 = vld [vmem:[#allocation151_spill] sm:$0xff]  ;;  %v1113_v53 = vld [vmem:[%s13744_s1 + $0xb20] sm:$0xff] }
 0x246   : > { %14665 = vst [vmem:[#allocation144_spill] sm:$0xff] %v10127_v37  ;;  %v10131_v55 = vadd.f32 %v2761_v14, %v2581_v47  ;;  %v2583_v8 = vadd.f32 %v2582_v5, %v14667_v13  ;;  %3684 = vmatpush1.bf16.msra.mxu1 %v1617_v54  ;;  %6739 = vmatpush3.bf16.msra.mxu0 %v1505_v57  ;;  %v1120_v14 = vld [vmem:[%s13744_s1 + $0xb58] sm:$0xff] }
 0x247   : > { %v2584_v62 = vpop.f32.mrf.mxu0  ;;  %v2765_v11 = vpop.f32.mrf.mxu1  ;;  %3685 = vmatprep.subr.bf16.mxu1 %v14516_v28  ;;  %6740 = vmatprep.subr.bf16.mxu0 %v1554_v31  ;;  %v1603_v47 = vpack.c.bf16 %v1232_v24, %v1225_v34  ;;  %v1498_v5 = vpack.c.bf16 %v1022_v20, %v1015_v2  ;;  %v14672_v31 = vld [vmem:[#allocation69_spill] sm:$0xff]  ;;  %v14675_v24 = vld [vmem:[#allocation70_spill] sm:$0xff] }
 0x248   : > { %14666 = vst [vmem:[#allocation65_spill] sm:$0xff] %v10131_v55  ;;  %v10147_v54 = vadd.f32 %v2763_v7, %v2583_v8  ;;  %v2585_v26 = vadd.f32 %v2584_v62, %v14669_v49  ;;  %v14671_v8 = vld [vmem:[#allocation153_spill] sm:$0xff]  ;;  %v14673_v49 = vld [vmem:[#allocation16_spill] sm:$0xff]  ;;  %v1365_v2 = vld [vmem:[%s13744_s1 + $0x1300] sm:$0xff] }
 0x249   : > { %v2586_v27 = vpop.f32.mrf.mxu0  ;;  %v2767_v42 = vpop.f32.mrf.mxu1  ;;  %v1673_v37 = vpack.c.bf16 %v1365_v2, %v1365_v2  ;;  %v14733_v55 = vld [vmem:[#allocation60_spill] sm:$0xff] }
 0x24a   : > { %14668 = vst [vmem:[#allocation66_spill] sm:$0xff] %v10147_v54  ;;  %v10156_v57 = vadd.f32 %v2765_v11, %v2585_v26  ;;  %3686 = vmatpush1.bf16.msra.mxu1 %v1610_v50  ;;  %v2587_v7 = vadd.f32 %v2586_v27, %v14671_v8  ;;  %v1211_v54 = vld [vmem:[%s13744_s1 + $0xe30] sm:$0xff]  ;;  %v1218_v11 = vld [vmem:[%s13744_s1 + $0xe68] sm:$0xff]  ;;  %v1547_v26 = vpack.c.bf16 %v1120_v14, %v1113_v53 }
 0x24b   : > { %v2590_v13 = vpop.f32.mrf.mxu0  ;;  %v2771_v62 = vpop.f32.mrf.mxu1  ;;  %3253 = vmatmul.mubr.bf16.gmra.mxu0 %v14672_v31  ;;  %3428 = vmatmul.mubr.bf16.gmra.mxu1 %v14673_v49  ;;  %v14674_v50 = vld [vmem:[#allocation155_spill] sm:$0xff]  ;;  %v1596_v14 = vpack.c.bf16 %v1218_v11, %v1211_v54  ;;  %v1099_v54 = vld [vmem:[%s13744_s1 + $0xab0] sm:$0xff] }
 0x24c   : > { %14670 = vst [vmem:[#allocation10_spill] sm:$0xff] %v10156_v57  ;;  %v2591_v34 = vadd.f32 %v2590_v13, %v14674_v50  ;;  %6596 = vmatprep.mubr.msk.bf16.mxu0 %vm1674_vm1, %v14675_v24  ;;  %v10173_v20 = vadd.f32 %v2767_v42, %v2587_v7  ;;  %3435 = vmatprep.mubr.bf16.mxu1 %v14535_v9  ;;  %v1001_v42 = vld [vmem:[%s13744_s1 + $0x7a0] sm:$0xff]  ;;  %v1008_v9 = vld [vmem:[%s13744_s1 + $0x7d8] sm:$0xff] }
 0x24d   : > { %v2592_v27 = vpop.f32.mrf.mxu0  ;;  %v2773_v8 = vpop.f32.mrf.mxu1  ;;  %3687 = vmatprep.subr.bf16.mxu1 %v14516_v28  ;;  %6741 = vmatpush3.bf16.msra.mxu0 %v1498_v5 }
 0x24e   : > { %14676 = vst [vmem:[#allocation147_spill] sm:$0xff] %v10173_v20  ;;  %v10177_v49 = vadd.f32 %v2771_v62, %v2591_v34  ;;  %v2593_v53 = vadd.f32 %v2592_v27, %v9724_v60  ;;  %3688 = vmatpush1.bf16.msra.mxu1 %v1603_v47  ;;  %6742 = vmatprep.subr.bf16.mxu0 %v1547_v26  ;;  %v1106_v47 = vld [vmem:[%s13744_s1 + $0xae8] sm:$0xff] }
 0x24f   : > { %v2594_v13 = vpop.f32.mrf.mxu0  ;;  %v2775_v50 = vpop.f32.mrf.mxu1  ;;  %3689 = vmatprep.subr.bf16.mxu1 %v14516_v28  ;;  %v1491_v26 = vpack.c.bf16 %v1008_v9, %v1001_v42 }
 0x250   : > { %14677 = vst [vmem:[#allocation148_spill] sm:$0xff] %v10177_v49  ;;  %v10187_v7 = vadd.f32 %v2773_v8, %v2593_v53  ;;  %v2595_v60 = vadd.f32 %v2594_v13, %v9729_v51  ;;  %v14680_v8 = vld [vmem:[#allocation71_spill] sm:$0xff]  ;;  %v1740_v51 = vsel %vm1720_vm0, %v1673_v37, 0  ;;  %v1351_v53 = vld [vmem:[%s13744_s1 + $0x1290] sm:$0xff] }
 0x251   : > { %v2596_v5 = vpop.f32.mrf.mxu0  ;;  %v2777_v62 = vpop.f32.mrf.mxu1  ;;  %v1358_v13 = vld [vmem:[%s13744_s1 + $0x12c8] sm:$0xff]  ;;  %6743 = vmatpush3.bf16.msra.mxu0 %v1491_v26  ;;  %v1337_v26 = vld [vmem:[%s13744_s1 + $0x1220] sm:$0xff] }
 0x252   : > { %14678 = vst [vmem:[#allocation67_spill] sm:$0xff] %v10187_v7  ;;  %v10196_v11 = vadd.f32 %v2775_v50, %v2595_v60  ;;  %3690 = vmatpush1.bf16.msra.mxu1 %v1596_v14  ;;  %v2597_v34 = vadd.f32 %v2596_v5, %v9740_v17  ;;  %v1540_v14 = vpack.c.bf16 %v1106_v47, %v1099_v54  ;;  %v14681_v17 = vld [vmem:[#allocation72_spill] sm:$0xff]  ;;  %v994_v47 = vld [vmem:[%s13744_s1 + $0x768] sm:$0xff] }
 0x253   : > { %v2600_v2 = vpop.f32.mrf.mxu0  ;;  %v2781_v27 = vpop.f32.mrf.mxu1  ;;  %3263 = vmatmul.mubr.bf16.gmra.mxu0 %v14680_v8  ;;  %3436 = vmatmul.mubr.bf16.gmra.mxu1 %v14541_v21  ;;  %v1666_v54 = vpack.c.bf16 %v1358_v13, %v1351_v53 }
 0x254   : > { %14679 = vst [vmem:[#allocation68_spill] sm:$0xff] %v10196_v11  ;;  %v2601_v50 = vadd.f32 %v2600_v2, %v9754_v1  ;;  %6597 = vmatprep.mubr.msk.bf16.mxu0 %vm1674_vm1, %v14681_v17  ;;  %v10211_v42 = vadd.f32 %v2777_v62, %v2597_v34  ;;  %3443 = vmatprep.mubr.bf16.mxu1 %v14545_v63  ;;  %v987_v1 = vld [vmem:[%s13744_s1 + $0x730] sm:$0xff]  ;;  %v14685_v34 = vld [vmem:[#allocation22_spill] sm:$0xff]  ;;  %v1344_v2 = vld [vmem:[%s13744_s1 + $0x1258] sm:$0xff] }
 0x255   : > { %v2602_v9 = vpop.f32.mrf.mxu0  ;;  %v2783_v21 = vpop.f32.mrf.mxu1  ;;  %3699 = vmatprep.subr.bf16.mxu1 %v14516_v28  ;;  %6744 = vmatprep.subr.bf16.mxu0 %v1540_v14  ;;  %v1484_v53 = vpack.c.bf16 %v994_v47, %v987_v1 }
 0x256   : > { %14682 = vst [vmem:[#allocation14_spill] sm:$0xff] %v10211_v42  ;;  %v10215_v37 = vadd.f32 %v2781_v27, %v2601_v50  ;;  %v2603_v60 = vadd.f32 %v2602_v9, %v9769_v10  ;;  %3700 = vmatpush2.bf16.msra.mxu1 %v1740_v51  ;;  %v14687_v50 = vld [vmem:[#allocation157_spill] sm:$0xff]  ;;  %v14691_v42 = vld [vmem:[#allocation74_spill] sm:$0xff] }
 0x257   : > { %v2604_v5 = vpop.f32.mrf.mxu0  ;;  %v2785_v62 = vpop.f32.mrf.mxu1  ;;  %3701 = vmatprep.subr.bf16.mxu1 %v14516_v28  ;;  %6745 = vmatpush3.bf16.msra.mxu0 %v1484_v53 }
 0x258   : > { %14683 = vst [vmem:[#allocation151_spill] sm:$0xff] %v10215_v37  ;;  %v10225_v63 = vadd.f32 %v2783_v21, %v2603_v60  ;;  %v2605_v10 = vadd.f32 %v2604_v5, %v14685_v34  ;;  %v14688_v60 = vld [vmem:[#allocation73_spill] sm:$0xff]  ;;  %v14689_v5 = vld [vmem:[#allocation24_spill] sm:$0xff]  ;;  %v1659_v34 = vpack.c.bf16 %v1344_v2, %v1337_v26  ;;  %v1330_v26 = vld [vmem:[%s13744_s1 + $0x11e8] sm:$0xff] }
 0x259   : > { %v2606_v27 = vpop.f32.mrf.mxu0  ;;  %v2787_v51 = vpop.f32.mrf.mxu1 }
 0x25a   : > { %14684 = vst [vmem:[#allocation153_spill] sm:$0xff] %v10225_v63  ;;  %v10234_v13 = vadd.f32 %v2785_v62, %v2605_v10  ;;  %3702 = vmatpush2.bf16.msra.mxu1 %v1666_v54  ;;  %v2607_v14 = vadd.f32 %v2606_v27, %v14687_v50  ;;  %v14690_v63 = vld [vmem:[#allocation159_spill] sm:$0xff]  ;;  %v14693_v62 = vld [vmem:[#allocation26_spill] sm:$0xff] }
 0x25b   : > { %v2610_v9 = vpop.f32.mrf.mxu0  ;;  %v2791_v21 = vpop.f32.mrf.mxu1  ;;  %3273 = vmatmul.mubr.bf16.gmra.mxu0 %v14688_v60  ;;  %3444 = vmatmul.mubr.bf16.gmra.mxu1 %v14689_v5 }
 0x25c   : > { %14686 = vst [vmem:[#allocation69_spill] sm:$0xff] %v10234_v13  ;;  %v2611_v37 = vadd.f32 %v2610_v9, %v14690_v63  ;;  %6598 = vmatprep.mubr.msk.bf16.mxu0 %vm1674_vm1, %v14691_v42  ;;  %v10242_v11 = vadd.f32 %v2787_v51, %v2607_v14  ;;  %3451 = vmatprep.mubr.bf16.mxu1 %v14693_v62  ;;  %v1323_v63 = vld [vmem:[%s13744_s1 + $0x11b0] sm:$0xff] }
 0x25d   : > { %v2612_v1 = vpop.f32.mrf.mxu0  ;;  %v2793_v47 = vpop.f32.mrf.mxu1  ;;  %3703 = vmatprep.subr.bf16.mxu1 %v14516_v28  ;;  %v1652_v50 = vpack.c.bf16 %v1330_v26, %v1323_v63 }
 0x25e   : > { %14692 = vst [vmem:[#allocation16_spill] sm:$0xff] %v10242_v11  ;;  %v10245_v54 = vadd.f32 %v2791_v21, %v2611_v37  ;;  %v2613_v10 = vadd.f32 %v2612_v1, %v9817_v35  ;;  %3704 = vmatpush2.bf16.msra.mxu1 %v1659_v34  ;;  %v14697_v1 = vld [vmem:[#allocation75_spill] sm:$0xff] }
 0x25f   : > { %v2614_v2 = vpop.f32.mrf.mxu0  ;;  %v2795_v27 = vpop.f32.mrf.mxu1  ;;  %3705 = vmatprep.subr.bf16.mxu1 %v14516_v28 }
 0x260   : > { %14694 = vst [vmem:[#allocation155_spill] sm:$0xff] %v10245_v54  ;;  %v10255_v51 = vadd.f32 %v2793_v47, %v2613_v10  ;;  %v2615_v37 = vadd.f32 %v2614_v2, %v9822_v23  ;;  %v14698_v47 = vld [vmem:[#allocation76_spill] sm:$0xff]  ;;  %v14700_v10 = vld [vmem:[#allocation30_spill] sm:$0xff] }
 0x261   : > { %v2616_v35 = vpop.f32.mrf.mxu0  ;;  %v2797_v53 = vpop.f32.mrf.mxu1 }
 0x262   : > { %14695 = vst [vmem:[#allocation70_spill] sm:$0xff] %v10255_v51  ;;  %v10259_v14 = vadd.f32 %v2795_v27, %v2615_v37  ;;  %v2617_v9 = vadd.f32 %v2616_v35, %v9827_v48  ;;  %3706 = vmatpush2.bf16.msra.mxu1 %v1652_v50  ;;  %v14702_v48 = vld [vmem:[#allocation111_spill] sm:$0xff]  ;;  %v14706_v50 = vld [vmem:[#allocation32_spill] sm:$0xff] }
 0x263   : > { %v2620_v21 = vpop.f32.mrf.mxu0  ;;  %v2801_v5 = vpop.f32.mrf.mxu1  ;;  %3283 = vmatmul.mubr.bf16.gmra.mxu0 %v14697_v1  ;;  %3452 = vmatmul.mubr.bf16.gmra.mxu1 %v14565_v43 }
 0x264   : > { %14696 = vst [vmem:[#allocation71_spill] sm:$0xff] %v10259_v14  ;;  %v2621_v34 = vadd.f32 %v2620_v21, %v9832_v36  ;;  %6599 = vmatprep.mubr.msk.bf16.mxu0 %vm1674_vm1, %v14698_v47  ;;  %v10267_v23 = vadd.f32 %v2797_v53, %v2617_v9  ;;  %3459 = vmatprep.mubr.bf16.mxu1 %v14700_v10  ;;  %v14705_v10 = vld [vmem:[#allocation77_spill] sm:$0xff] }
 0x265   : > { %v2622_v28 = vpop.f32.mrf.mxu0  ;;  %v2803_v62 = vpop.f32.mrf.mxu1 }
 0x266   : > { %14699 = vst [vmem:[#allocation72_spill] sm:$0xff] %v10267_v23  ;;  %v10270_v63 = vadd.f32 %v2801_v5, %v2621_v34  ;;  %v2623_v26 = vadd.f32 %v2622_v28, %v14702_v48  ;;  %v14707_v5 = vld [vmem:[#allocation161_spill] sm:$0xff]  ;;  %v14708_v28 = vld [vmem:[#allocation78_spill] sm:$0xff] }
 0x267   : > { %v2624_v2 = vpop.f32.mrf.mxu0  ;;  %v2805_v27 = vpop.f32.mrf.mxu1 }
 0x268   : > { %14701 = vst [vmem:[#allocation22_spill] sm:$0xff] %v10270_v63  ;;  %v10273_v37 = vadd.f32 %v2803_v62, %v2623_v26  ;;  %v2625_v36 = vadd.f32 %v2624_v2, %v9846_v41 }
 0x269   : > { %v2626_v43 = vpop.f32.mrf.mxu0  ;;  %v2807_v35 = vpop.f32.mrf.mxu1 }
 0x26a   : > { %14703 = vst [vmem:[#allocation157_spill] sm:$0xff] %v10273_v37  ;;  %v10276_v21 = vadd.f32 %v2805_v27, %v2625_v36  ;;  %v2627_v53 = vadd.f32 %v2626_v43, %v9851_v6 }
 0x26b   : > { %v2630_v9 = vpop.f32.mrf.mxu0  ;;  %v2811_v23 = vpop.f32.mrf.mxu1  ;;  %3293 = vmatmul.mubr.bf16.gmra.mxu0 %v14705_v10  ;;  %3460 = vmatmul.mubr.bf16.gmra.mxu1 %v14706_v50 }
 0x26c   : > { %14704 = vst [vmem:[#allocation73_spill] sm:$0xff] %v10276_v21  ;;  %v2631_v34 = vadd.f32 %v2630_v9, %v14707_v5  ;;  %6600 = vmatprep.mubr.msk.bf16.mxu0 %vm1674_vm1, %v14708_v28  ;;  %v10284_v62 = vadd.f32 %v2807_v35, %v2627_v53  ;;  %3467 = vmatprep.mubr.bf16.mxu1 %v14583_v38  ;;  %v14713_v21 = vld [vmem:[#allocation79_spill] sm:$0xff]  ;;  %v14714_v38 = vld [vmem:[#allocation36_spill] sm:$0xff] }
 0x26d   : > { %v2632_v41 = vpop.f32.mrf.mxu0  ;;  %v2813_v48 = vpop.f32.mrf.mxu1 }
 0x26e   : > { %14709 = vst [vmem:[#allocation24_spill] sm:$0xff] %v10284_v62  ;;  %v10287_v26 = vadd.f32 %v2811_v23, %v2631_v34  ;;  %v2633_v6 = vadd.f32 %v2632_v41, %v9865_v58  ;;  %v14715_v23 = vld [vmem:[#allocation164_spill] sm:$0xff] }
 0x26f   : > { %v2634_v2 = vpop.f32.mrf.mxu0  ;;  %v2815_v27 = vpop.f32.mrf.mxu1  ;;  %v14716_v34 = vld [vmem:[#allocation80_spill] sm:$0xff] }
 0x270   : > { %14710 = vst [vmem:[#allocation159_spill] sm:$0xff] %v10287_v26  ;;  %v10290_v36 = vadd.f32 %v2813_v48, %v2633_v6  ;;  %v2635_v43 = vadd.f32 %v2634_v2, %v9870_v45 }
 0x271   : > { %v2636_v9 = vpop.f32.mrf.mxu0  ;;  %v2817_v50 = vpop.f32.mrf.mxu1 }
 0x272   : > { %14711 = vst [vmem:[#allocation74_spill] sm:$0xff] %v10290_v36  ;;  %v10293_v5 = vadd.f32 %v2815_v27, %v2635_v43  ;;  %v2637_v35 = vadd.f32 %v2636_v9, %v9875_v40 }
 0x273   : > { %v2640_v53 = vpop.f32.mrf.mxu0  ;;  %v2821_v62 = vpop.f32.mrf.mxu1  ;;  %3303 = vmatmul.mubr.bf16.gmra.mxu0 %v14713_v21  ;;  %3468 = vmatmul.mubr.bf16.gmra.mxu1 %v14714_v38 }
 0x274   : > { %14712 = vst [vmem:[#allocation26_spill] sm:$0xff] %v10293_v5  ;;  %v2641_v58 = vadd.f32 %v2640_v53, %v14715_v23  ;;  %6601 = vmatprep.mubr.msk.bf16.mxu0 %vm1674_vm1, %v14716_v34  ;;  %v10301_v41 = vadd.f32 %v2817_v50, %v2637_v35  ;;  %3475 = vmatprep.mubr.bf16.mxu1 %v14591_v33  ;;  %v14720_v5 = vld [vmem:[#allocation81_spill] sm:$0xff]  ;;  %v14721_v50 = vld [vmem:[#allocation40_spill] sm:$0xff]  ;;  %v14723_v33 = vld [vmem:[#allocation42_spill] sm:$0xff] }
 0x275   : > { %v2642_v45 = vpop.f32.mrf.mxu0  ;;  %v2823_v48 = vpop.f32.mrf.mxu1 }
 0x276   : > { %14717 = vst [vmem:[#allocation75_spill] sm:$0xff] %v10301_v41  ;;  %v10304_v6 = vadd.f32 %v2821_v62, %v2641_v58  ;;  %v2643_v40 = vadd.f32 %v2642_v45, %v9889_v15  ;;  %v14722_v41 = vld [vmem:[#allocation82_spill] sm:$0xff] }
 0x277   : > { %v2644_v2 = vpop.f32.mrf.mxu0  ;;  %v2825_v27 = vpop.f32.mrf.mxu1 }
 0x278   : > { %14718 = vst [vmem:[#allocation76_spill] sm:$0xff] %v10304_v6  ;;  %v10307_v43 = vadd.f32 %v2823_v48, %v2643_v40 }
 0x279   : > { %v2645_v9 = vpop.f32.mrf.mxu0  ;;  %v2826_v38 = vpop.f32.mrf.mxu1 }
 0x27a   : > { %14719 = vst [vmem:[#allocation30_spill] sm:$0xff] %v10307_v43 }
 0x27b   : > { %v2862_v53 = vpop.f32.mrf.mxu0  ;;  %v3043_v23 = vpop.f32.mrf.mxu1  ;;  %3313 = vmatmul.mubr.bf16.gmra.mxu0 %v14720_v5  ;;  %3476 = vmatmul.mubr.bf16.gmra.mxu1 %v14721_v50 }
 0x27c   : > { %v10311_v35 = vadd.f32 %v3043_v23, %v2862_v53  ;;  %6602 = vmatprep.mubr.msk.bf16.mxu0 %vm1674_vm1, %v14722_v41  ;;  %3483 = vmatprep.mubr.bf16.mxu1 %v14723_v33  ;;  %v14724_v23 = vld [vmem:[#allocation83_spill] sm:$0xff]  ;;  %v14725_v33 = vld [vmem:[#allocation84_spill] sm:$0xff] }
 0x27d   : > { %v2864_v15 = vpop.f32.mrf.mxu0  ;;  %v3045_v62 = vpop.f32.mrf.mxu1 }
 0x27e   : > { %v10316_v58 = vadd.f32 %v3045_v62, %v2864_v15 }
 0x27f   : > { %v2866_v45 = vpop.f32.mrf.mxu0  ;;  %v3047_v48 = vpop.f32.mrf.mxu1 }
 0x280   : > { %v10318_v40 = vadd.f32 %v3047_v48, %v2866_v45 }
 0x281   : > { %v2868_v2 = vpop.f32.mrf.mxu0  ;;  %v3049_v27 = vpop.f32.mrf.mxu1 }
 0x282   : > { %v10320_v9 = vadd.f32 %v3049_v27, %v2868_v2 }
 0x283   : > { %v2872_v38 = vpop.f32.mrf.mxu0  ;;  %v3053_v53 = vpop.f32.mrf.mxu1  ;;  %3323 = vmatmul.mubr.bf16.gmra.mxu0 %v14724_v23  ;;  %3484 = vmatmul.mubr.bf16.gmra.mxu1 %v14598_v56 }
 0x284   : > { %v10324_v50 = vadd.f32 %v3053_v53, %v2872_v38  ;;  %6603 = vmatprep.mubr.msk.bf16.mxu0 %vm1674_vm1, %v14725_v33  ;;  %3491 = vmatprep.mubr.bf16.mxu1 %v14599_v46  ;;  %v14726_v53 = vld [vmem:[#allocation85_spill] sm:$0xff]  ;;  %v14727_v46 = vld [vmem:[#allocation86_spill] sm:$0xff] }
 0x285   : > { %v2874_v15 = vpop.f32.mrf.mxu0  ;;  %v3055_v62 = vpop.f32.mrf.mxu1 }
 0x286   : > { %v10329_v45 = vadd.f32 %v3055_v62, %v2874_v15 }
 0x287   : > { %v2876_v48 = vpop.f32.mrf.mxu0  ;;  %v3057_v2 = vpop.f32.mrf.mxu1 }
 0x288   : > { %v10331_v27 = vadd.f32 %v3057_v2, %v2876_v48 }
 0x289   : > { %v2878_v43 = vpop.f32.mrf.mxu0  ;;  %v3059_v6 = vpop.f32.mrf.mxu1 }
 0x28a   : > { %v10333_v36 = vadd.f32 %v3059_v6, %v2878_v43 }
 0x28b   : > { %v2882_v56 = vpop.f32.mrf.mxu0  ;;  %v3063_v38 = vpop.f32.mrf.mxu1  ;;  %3333 = vmatmul.mubr.bf16.gmra.mxu0 %v14726_v53  ;;  %3492 = vmatmul.mubr.bf16.gmra.mxu1 %v14604_v52 }
 0x28c   : > { %v10337_v26 = vadd.f32 %v3063_v38, %v2882_v56  ;;  %6604 = vmatprep.mubr.msk.bf16.mxu0 %vm1674_vm1, %v14727_v46  ;;  %3499 = vmatprep.mubr.bf16.mxu1 %v14605_v0  ;;  %v14728_v38 = vld [vmem:[#allocation88_spill] sm:$0xff]  ;;  %v14729_v0 = vld [vmem:[#allocation89_spill] sm:$0xff] }
 0x28d   : > { %v2884_v15 = vpop.f32.mrf.mxu0  ;;  %v3065_v62 = vpop.f32.mrf.mxu1 }
 0x28e   : > { %v10342_v48 = vadd.f32 %v3065_v62, %v2884_v15 }
 0x28f   : > { %v2886_v2 = vpop.f32.mrf.mxu0  ;;  %v3067_v6 = vpop.f32.mrf.mxu1 }
 0x290   : > { %v10344_v43 = vadd.f32 %v3067_v6, %v2886_v2 }
 0x291   : > { %v2888_v37 = vpop.f32.mrf.mxu0  ;;  %v3069_v63 = vpop.f32.mrf.mxu1 }
 0x292   : > { %v10346_v14 = vadd.f32 %v3069_v63, %v2888_v37 }
 0x293   : > { %v2892_v52 = vpop.f32.mrf.mxu0  ;;  %v3073_v56 = vpop.f32.mrf.mxu1  ;;  %3343 = vmatmul.mubr.bf16.gmra.mxu0 %v14728_v38  ;;  %3500 = vmatmul.mubr.bf16.gmra.mxu1 %v14610_v44 }
 0x294   : > { %v10350_v51 = vadd.f32 %v3073_v56, %v2892_v52  ;;  %6605 = vmatprep.mubr.msk.bf16.mxu0 %vm1674_vm1, %v14729_v0  ;;  %3507 = vmatprep.mubr.bf16.mxu1 %v14611_v39  ;;  %v14730_v56 = vld [vmem:[#allocation91_spill] sm:$0xff]  ;;  %v14731_v39 = vld [vmem:[#allocation92_spill] sm:$0xff] }
 0x295   : > { %v2894_v15 = vpop.f32.mrf.mxu0  ;;  %v3075_v62 = vpop.f32.mrf.mxu1 }
 0x296   : > { %v10355_v2 = vadd.f32 %v3075_v62, %v2894_v15 }
 0x297   : > { %v2896_v6 = vpop.f32.mrf.mxu0  ;;  %v3077_v63 = vpop.f32.mrf.mxu1 }
 0x298   : > { %v10357_v37 = vadd.f32 %v3077_v63, %v2896_v6 }
 0x299   : > { %v2898_v54 = vpop.f32.mrf.mxu0  ;;  %v3079_v11 = vpop.f32.mrf.mxu1 }
 0x29a   : > { %v10359_v13 = vadd.f32 %v3079_v11, %v2898_v54 }
 0x29b   : > { %v2902_v44 = vpop.f32.mrf.mxu0  ;;  %v3083_v52 = vpop.f32.mrf.mxu1  ;;  %3353 = vmatmul.mubr.bf16.gmra.mxu0 %v14730_v56  ;;  %3508 = vmatmul.mubr.bf16.gmra.mxu1 %v14620_v16 }
 0x29c   : > { %v10363_v7 = vadd.f32 %v3083_v52, %v2902_v44  ;;  %6606 = vmatprep.mubr.msk.bf16.mxu0 %vm1674_vm1, %v14731_v39  ;;  %3515 = vmatprep.mubr.bf16.mxu1 %v14623_v12  ;;  %v14732_v52 = vld [vmem:[#allocation94_spill] sm:$0xff]  ;;  %v14734_v12 = vld [vmem:[#allocation3_spill] sm:$0xff] }
 0x29d   : > { %v2904_v15 = vpop.f32.mrf.mxu0  ;;  %v3085_v62 = vpop.f32.mrf.mxu1 }
 0x29e   : > { %v10368_v6 = vadd.f32 %v3085_v62, %v2904_v15  ;;  %v14735_v15 = vld [vmem:[#allocation62_spill] sm:$0xff] }
 0x29f   : > { %v2906_v63 = vpop.f32.mrf.mxu0  ;;  %v3087_v11 = vpop.f32.mrf.mxu1 }
 0x2a0   : > { %v10370_v54 = vadd.f32 %v3087_v11, %v2906_v63 }
 0x2a1   : > { %v2908_v20 = vpop.f32.mrf.mxu0  ;;  %v3089_v49 = vpop.f32.mrf.mxu1 }
 0x2a2   : > { %v10372_v57 = vadd.f32 %v3089_v49, %v2908_v20 }
 0x2a3   : > { %v2912_v16 = vpop.f32.mrf.mxu0  ;;  %v3093_v44 = vpop.f32.mrf.mxu1  ;;  %3363 = vmatmul.mubr.bf16.gmra.mxu0 %v14732_v52  ;;  %3516 = vmatmul.mubr.bf16.gmra.mxu1 %v14733_v55 }
 0x2a4   : > { %v10376_v29 = vadd.f32 %v3093_v44, %v2912_v16  ;;  %3555 = vmatprep.mubr.bf16.mxu0 %v14734_v12  ;;  %6607 = vmatprep.mubr.msk.bf16.mxu1 %vm1674_vm1, %v14735_v15  ;;  %v14738_v44 = vld [vmem:[#allocation5_spill] sm:$0xff]  ;;  %v14739_v12 = vld [vmem:[#allocation63_spill] sm:$0xff] }
 0x2a5   : > { %v2914_v62 = vpop.f32.mrf.mxu0  ;;  %v3095_v63 = vpop.f32.mrf.mxu1  ;;  %v14740_v15 = vld [vmem:[#allocation7_spill] sm:$0xff] }
 0x2a6   : > { %v10381_v11 = vadd.f32 %v3095_v63, %v2914_v62 }
 0x2a7   : > { %v2916_v30 = vpop.f32.mrf.mxu0  ;;  %v3097_v20 = vpop.f32.mrf.mxu1 }
 0x2a8   : > { %v10383_v49 = vadd.f32 %v3097_v20, %v2916_v30 }
 0x2a9   : > { %v2918_v32 = vpop.f32.mrf.mxu0  ;;  %v3099_v3 = vpop.f32.mrf.mxu1 }
 0x2aa   : > { %14736 = vst [vmem:[#allocation111_spill] sm:$0xff] %v10383_v49  ;;  %v10385_v4 = vadd.f32 %v3099_v3, %v2918_v32 }
 0x2ab   : > { %v2922_v55 = vpop.f32.mrf.mxu0  ;;  %v3103_v16 = vpop.f32.mrf.mxu1  ;;  %3556 = vmatmul.mubr.bf16.vlgmr.msra.gmra.mxu0 %v14738_v44  ;;  %3708 = vmatmul.mubr.bf16.vlgmr.msra.gmra.mxu1 %v14739_v12 }
 0x2ac   : > { %14737 = vst [vmem:[#allocation77_spill] sm:$0xff] %v10385_v4  ;;  %v10389_v61 = vadd.f32 %v3103_v16, %v2922_v55  ;;  %3563 = vmatprep.mubr.bf16.mxu0 %v14740_v15  ;;  %6608 = vmatprep.mubr.msk.bf16.mxu1 %vm1674_vm1, %v14648_v18  ;;  %v14743_v16 = vld [vmem:[#allocation9_spill] sm:$0xff]  ;;  %v14744_v18 = vld [vmem:[#allocation11_spill] sm:$0xff] }
 0x2ad   : > { %v2924_v62 = vpop.f32.mrf.mxu0  ;;  %v3105_v30 = vpop.f32.mrf.mxu1 }
 0x2ae   : > { %v10394_v63 = vadd.f32 %v3105_v30, %v2924_v62 }
 0x2af   : > { %v2926_v20 = vpop.f32.mrf.mxu0  ;;  %v3107_v3 = vpop.f32.mrf.mxu1 }
 0x2b0   : > { %v10396_v32 = vadd.f32 %v3107_v3, %v2926_v20 }
 0x2b1   : > { %v2928_v4 = vpop.f32.mrf.mxu0  ;;  %v3109_v49 = vpop.f32.mrf.mxu1 }
 0x2b2   : > { %14741 = vst [vmem:[#allocation32_spill] sm:$0xff] %v10396_v32  ;;  %v10398_v44 = vadd.f32 %v3109_v49, %v2928_v4 }
 0x2b3   : > { %v2932_v12 = vpop.f32.mrf.mxu0  ;;  %v3113_v55 = vpop.f32.mrf.mxu1  ;;  %3564 = vmatmul.mubr.bf16.gmra.mxu0 %v14743_v16  ;;  %3716 = vmatmul.mubr.bf16.gmra.mxu1 %v14654_v19 }
 0x2b4   : > { %14742 = vst [vmem:[#allocation161_spill] sm:$0xff] %v10398_v44  ;;  %v10402_v15 = vadd.f32 %v3113_v55, %v2932_v12  ;;  %3571 = vmatprep.mubr.bf16.mxu0 %v14744_v18  ;;  %6609 = vmatprep.mubr.msk.bf16.mxu1 %vm1674_vm1, %v14655_v22  ;;  %v14747_v55 = vld [vmem:[#allocation13_spill] sm:$0xff]  ;;  %v14748_v22 = vld [vmem:[#allocation15_spill] sm:$0xff] }
 0x2b5   : > { %v2934_v62 = vpop.f32.mrf.mxu0  ;;  %v3115_v30 = vpop.f32.mrf.mxu1 }
 0x2b6   : > { %v10407_v20 = vadd.f32 %v3115_v30, %v2934_v62 }
 0x2b7   : > { %v2936_v3 = vpop.f32.mrf.mxu0  ;;  %v3117_v4 = vpop.f32.mrf.mxu1 }
 0x2b8   : > { %v10409_v49 = vadd.f32 %v3117_v4, %v2936_v3 }
 0x2b9   : > { %v2938_v44 = vpop.f32.mrf.mxu0  ;;  %v3119_v32 = vpop.f32.mrf.mxu1 }
 0x2ba   : > { %14745 = vst [vmem:[#allocation78_spill] sm:$0xff] %v10409_v49  ;;  %v10411_v16 = vadd.f32 %v3119_v32, %v2938_v44 }
 0x2bb   : > { %v2942_v19 = vpop.f32.mrf.mxu0  ;;  %v3123_v12 = vpop.f32.mrf.mxu1  ;;  %3572 = vmatmul.mubr.bf16.gmra.mxu0 %v14747_v55  ;;  %3724 = vmatmul.mubr.bf16.gmra.mxu1 %v14663_v25 }
 0x2bc   : > { %14746 = vst [vmem:[#allocation79_spill] sm:$0xff] %v10411_v16  ;;  %v10415_v18 = vadd.f32 %v3123_v12, %v2942_v19  ;;  %3579 = vmatprep.mubr.bf16.mxu0 %v14748_v22  ;;  %6610 = vmatprep.mubr.msk.bf16.mxu1 %vm1674_vm1, %v14664_v59  ;;  %v14751_v12 = vld [vmem:[#allocation17_spill] sm:$0xff]  ;;  %v14752_v59 = vld [vmem:[#allocation19_spill] sm:$0xff] }
 0x2bd   : > { %v2944_v62 = vpop.f32.mrf.mxu0  ;;  %v3125_v30 = vpop.f32.mrf.mxu1 }
 0x2be   : > { %v10420_v3 = vadd.f32 %v3125_v30, %v2944_v62 }
 0x2bf   : > { %v2946_v4 = vpop.f32.mrf.mxu0  ;;  %v3127_v32 = vpop.f32.mrf.mxu1 }
 0x2c0   : > { %v10422_v44 = vadd.f32 %v3127_v32, %v2946_v4 }
 0x2c1   : > { %v2948_v16 = vpop.f32.mrf.mxu0  ;;  %v3129_v49 = vpop.f32.mrf.mxu1 }
 0x2c2   : > { %14749 = vst [vmem:[#allocation36_spill] sm:$0xff] %v10422_v44  ;;  %v10424_v55 = vadd.f32 %v3129_v49, %v2948_v16 }
 0x2c3   : > { %v2952_v25 = vpop.f32.mrf.mxu0  ;;  %v3133_v19 = vpop.f32.mrf.mxu1  ;;  %3580 = vmatmul.mubr.bf16.gmra.mxu0 %v14751_v12  ;;  %3732 = vmatmul.mubr.bf16.gmra.mxu1 %v14672_v31 }
 0x2c4   : > { %14750 = vst [vmem:[#allocation164_spill] sm:$0xff] %v10424_v55  ;;  %v10428_v22 = vadd.f32 %v3133_v19, %v2952_v25  ;;  %3587 = vmatprep.mubr.bf16.mxu0 %v14752_v59  ;;  %6611 = vmatprep.mubr.msk.bf16.mxu1 %vm1674_vm1, %v14675_v24  ;;  %v14755_v19 = vld [vmem:[#allocation21_spill] sm:$0xff]  ;;  %v14756_v24 = vld [vmem:[#allocation23_spill] sm:$0xff] }
 0x2c5   : > { %v2954_v62 = vpop.f32.mrf.mxu0  ;;  %v3135_v30 = vpop.f32.mrf.mxu1 }
 0x2c6   : > { %v10433_v4 = vadd.f32 %v3135_v30, %v2954_v62 }
 0x2c7   : > { %v2956_v32 = vpop.f32.mrf.mxu0  ;;  %v3137_v49 = vpop.f32.mrf.mxu1 }
 0x2c8   : > { %v10435_v16 = vadd.f32 %v3137_v49, %v2956_v32 }
 0x2c9   : > { %v2958_v55 = vpop.f32.mrf.mxu0  ;;  %v3139_v44 = vpop.f32.mrf.mxu1 }
 0x2ca   : > { %14753 = vst [vmem:[#allocation80_spill] sm:$0xff] %v10435_v16  ;;  %v10437_v12 = vadd.f32 %v3139_v44, %v2958_v55 }
 0x2cb   : > { %v2962_v31 = vpop.f32.mrf.mxu0  ;;  %v3143_v25 = vpop.f32.mrf.mxu1  ;;  %3588 = vmatmul.mubr.bf16.gmra.mxu0 %v14755_v19  ;;  %3740 = vmatmul.mubr.bf16.gmra.mxu1 %v14680_v8 }
 0x2cc   : > { %14754 = vst [vmem:[#allocation81_spill] sm:$0xff] %v10437_v12  ;;  %v10441_v59 = vadd.f32 %v3143_v25, %v2962_v31  ;;  %3595 = vmatprep.mubr.bf16.mxu0 %v14756_v24  ;;  %6612 = vmatprep.mubr.msk.bf16.mxu1 %vm1674_vm1, %v14681_v17  ;;  %v14759_v25 = vld [vmem:[#allocation25_spill] sm:$0xff]  ;;  %v14760_v17 = vld [vmem:[#allocation27_spill] sm:$0xff] }
 0x2cd   : > { %v2964_v62 = vpop.f32.mrf.mxu0  ;;  %v3145_v30 = vpop.f32.mrf.mxu1 }
 0x2ce   : > { %v10446_v32 = vadd.f32 %v3145_v30, %v2964_v62 }
 0x2cf   : > { %v2966_v49 = vpop.f32.mrf.mxu0  ;;  %v3147_v44 = vpop.f32.mrf.mxu1 }
 0x2d0   : > { %v10448_v55 = vadd.f32 %v3147_v44, %v2966_v49 }
 0x2d1   : > { %v2968_v12 = vpop.f32.mrf.mxu0  ;;  %v3149_v16 = vpop.f32.mrf.mxu1 }
 0x2d2   : > { %14757 = vst [vmem:[#allocation40_spill] sm:$0xff] %v10448_v55  ;;  %v10450_v19 = vadd.f32 %v3149_v16, %v2968_v12 }
 0x2d3   : > { %v2972_v8 = vpop.f32.mrf.mxu0  ;;  %v3153_v31 = vpop.f32.mrf.mxu1  ;;  %3596 = vmatmul.mubr.bf16.gmra.mxu0 %v14759_v25  ;;  %3748 = vmatmul.mubr.bf16.gmra.mxu1 %v14688_v60 }
 0x2d4   : > { %14758 = vst [vmem:[#allocation82_spill] sm:$0xff] %v10450_v19  ;;  %v10454_v24 = vadd.f32 %v3153_v31, %v2972_v8  ;;  %3603 = vmatprep.mubr.bf16.mxu0 %v14760_v17  ;;  %6613 = vmatprep.mubr.msk.bf16.mxu1 %vm1674_vm1, %v14691_v42  ;;  %v14763_v31 = vld [vmem:[#allocation29_spill] sm:$0xff]  ;;  %v14764_v42 = vld [vmem:[#allocation31_spill] sm:$0xff] }
 0x2d5   : > { %v2974_v62 = vpop.f32.mrf.mxu0  ;;  %v3155_v30 = vpop.f32.mrf.mxu1 }
 0x2d6   : > { %v10459_v49 = vadd.f32 %v3155_v30, %v2974_v62 }
 0x2d7   : > { %v2976_v44 = vpop.f32.mrf.mxu0  ;;  %v3157_v16 = vpop.f32.mrf.mxu1 }
 0x2d8   : > { %v10461_v12 = vadd.f32 %v3157_v16, %v2976_v44 }
 0x2d9   : > { %v2978_v19 = vpop.f32.mrf.mxu0  ;;  %v3159_v55 = vpop.f32.mrf.mxu1 }
 0x2da   : > { %14761 = vst [vmem:[#allocation42_spill] sm:$0xff] %v10461_v12  ;;  %v10463_v25 = vadd.f32 %v3159_v55, %v2978_v19 }
 0x2db   : > { %v2982_v60 = vpop.f32.mrf.mxu0  ;;  %v3163_v8 = vpop.f32.mrf.mxu1  ;;  %3604 = vmatmul.mubr.bf16.gmra.mxu0 %v14763_v31  ;;  %3756 = vmatmul.mubr.bf16.gmra.mxu1 %v14697_v1 }
 0x2dc   : > { %14762 = vst [vmem:[#allocation83_spill] sm:$0xff] %v10463_v25  ;;  %v10467_v17 = vadd.f32 %v3163_v8, %v2982_v60  ;;  %3611 = vmatprep.mubr.bf16.mxu0 %v14764_v42  ;;  %6614 = vmatprep.mubr.msk.bf16.mxu1 %vm1674_vm1, %v14698_v47  ;;  %v14767_v8 = vld [vmem:[#allocation33_spill] sm:$0xff]  ;;  %v14768_v47 = vld [vmem:[#allocation35_spill] sm:$0xff] }
 0x2dd   : > { %v2984_v62 = vpop.f32.mrf.mxu0  ;;  %v3165_v30 = vpop.f32.mrf.mxu1 }
 0x2de   : > { %v10472_v44 = vadd.f32 %v3165_v30, %v2984_v62 }
 0x2df   : > { %v2986_v16 = vpop.f32.mrf.mxu0  ;;  %v3167_v55 = vpop.f32.mrf.mxu1 }
 0x2e0   : > { %v10474_v19 = vadd.f32 %v3167_v55, %v2986_v16 }
 0x2e1   : > { %v2988_v25 = vpop.f32.mrf.mxu0  ;;  %v3169_v12 = vpop.f32.mrf.mxu1 }
 0x2e2   : > { %14765 = vst [vmem:[#allocation84_spill] sm:$0xff] %v10474_v19  ;;  %v10476_v31 = vadd.f32 %v3169_v12, %v2988_v25 }
 0x2e3   : > { %v2992_v1 = vpop.f32.mrf.mxu0  ;;  %v3173_v60 = vpop.f32.mrf.mxu1  ;;  %3612 = vmatmul.mubr.bf16.gmra.mxu0 %v14767_v8  ;;  %3764 = vmatmul.mubr.bf16.gmra.mxu1 %v14705_v10 }
 0x2e4   : > { %14766 = vst [vmem:[#allocation85_spill] sm:$0xff] %v10476_v31  ;;  %v10480_v42 = vadd.f32 %v3173_v60, %v2992_v1  ;;  %3619 = vmatprep.mubr.bf16.mxu0 %v14768_v47  ;;  %6615 = vmatprep.mubr.msk.bf16.mxu1 %vm1674_vm1, %v14708_v28  ;;  %v14772_v60 = vld [vmem:[#allocation37_spill] sm:$0xff]  ;;  %v14773_v28 = vld [vmem:[#allocation39_spill] sm:$0xff] }
 0x2e5   : > { %v2994_v62 = vpop.f32.mrf.mxu0  ;;  %v3175_v30 = vpop.f32.mrf.mxu1 }
 0x2e6   : > { %v10485_v16 = vadd.f32 %v3175_v30, %v2994_v62 }
 0x2e7   : > { %v2996_v55 = vpop.f32.mrf.mxu0  ;;  %v3177_v12 = vpop.f32.mrf.mxu1 }
 0x2e8   : > { %14769 = vst [vmem:[#allocation86_spill] sm:$0xff] %v10485_v16  ;;  %v10487_v25 = vadd.f32 %v3177_v12, %v2996_v55  ;;  %v14774_v16 = vld [vmem:[#allocation41_spill] sm:$0xff] }
 0x2e9   : > { %v2998_v31 = vpop.f32.mrf.mxu0  ;;  %v3179_v19 = vpop.f32.mrf.mxu1 }
 0x2ea   : > { %14770 = vst [vmem:[#allocation88_spill] sm:$0xff] %v10487_v25  ;;  %v10489_v8 = vadd.f32 %v3179_v19, %v2998_v31 }
 0x2eb   : > { %v3002_v10 = vpop.f32.mrf.mxu0  ;;  %v3183_v1 = vpop.f32.mrf.mxu1  ;;  %3620 = vmatmul.mubr.bf16.gmra.mxu0 %v14772_v60  ;;  %3772 = vmatmul.mubr.bf16.gmra.mxu1 %v14713_v21 }
 0x2ec   : > { %14771 = vst [vmem:[#allocation89_spill] sm:$0xff] %v10489_v8  ;;  %v10493_v47 = vadd.f32 %v3183_v1, %v3002_v10  ;;  %3627 = vmatprep.mubr.bf16.mxu0 %v14773_v28  ;;  %6616 = vmatprep.mubr.msk.bf16.mxu1 %vm1674_vm1, %v14716_v34  ;;  %v14776_v10 = vld [vmem:[#allocation43_spill] sm:$0xff] }
 0x2ed   : > { %v3004_v62 = vpop.f32.mrf.mxu0  ;;  %v3185_v30 = vpop.f32.mrf.mxu1 }
 0x2ee   : > { %v10498_v55 = vadd.f32 %v3185_v30, %v3004_v62 }
 0x2ef   : > { %v3006_v12 = vpop.f32.mrf.mxu0  ;;  %v3187_v19 = vpop.f32.mrf.mxu1 }
 0x2f0   : > { %v14782_v19 = vld [vmem:[#allocation45_spill] sm:$0xff] }
 0x2f1   : > { %v3007_v31 = vpop.f32.mrf.mxu0  ;;  %v3188_v8 = vpop.f32.mrf.mxu1 }
 0x2f3   : > { %v3224_v25 = vpop.f32.mrf.mxu0  ;;  %3628 = vmatmul.mubr.bf16.gmra.mxu0 %v14774_v16  ;;  %v6640_v60 = vpop.f32.mrf.mxu1  ;;  %3780 = vmatmul.mubr.bf16.gmra.mxu1 %v14720_v5 }
 0x2f4   : > { %v10503_v21 = vadd.f32 %v3224_v25, %v10311_v35  ;;  %3635 = vmatprep.mubr.bf16.mxu0 %v14776_v10  ;;  %6617 = vmatprep.mubr.msk.bf16.mxu1 %vm1674_vm1, %v14722_v41 }
 0x2f5   : > { %v3226_v34 = vpop.f32.mrf.mxu0  ;;  %v6641_v1 = vpop.f32.mrf.mxu1 }
 0x2f6   : > { %14775 = vst [vmem:[#allocation91_spill] sm:$0xff] %v10503_v21  ;;  %v10509_v28 = vadd.f32 %v3226_v34, %v10316_v58  ;;  %v10511_v8 = vadd.f32 %v6641_v1, %v6640_v60  ;;  %v14784_v60 = vld [vmem:[#allocation47_spill] sm:$0xff]  ;;  %v14895_v21 = vld [vmem:[#allocation106_spill] sm:$0xff] }
 0x2f7   : > { %v3228_v62 = vpop.f32.mrf.mxu0  ;;  %v6643_v16 = vpop.f32.mrf.mxu1 }
 0x2f8   : > { %14777 = vst [vmem:[#allocation92_spill] sm:$0xff] %v10509_v28  ;;  %14778 = vst [vmem:[#allocation94_spill] sm:$0xff] %v10511_v8  ;;  %v10514_v30 = vadd.f32 %v3228_v62, %v10318_v40 }
 0x2f9   : > { %v3230_v5 = vpop.f32.mrf.mxu0  ;;  %v6644_v35 = vpop.f32.mrf.mxu1 }
 0x2fa   : > { %14779 = vst [vmem:[#allocation60_spill] sm:$0xff] %v10514_v30  ;;  %v10517_v25 = vadd.f32 %v3230_v5, %v10320_v9  ;;  %v10519_v12 = vadd.f32 %v6644_v35, %v6643_v16 }
 0x2fb   : > { %v3234_v41 = vpop.f32.mrf.mxu0  ;;  %3636 = vmatmul.mubr.bf16.gmra.mxu0 %v14782_v19  ;;  %v6646_v31 = vpop.f32.mrf.mxu1  ;;  %3788 = vmatmul.mubr.bf16.gmra.mxu1 %v14724_v23 }
 0x2fc   : > { %14780 = vst [vmem:[#allocation3_spill] sm:$0xff] %v10517_v25  ;;  %14781 = vst [vmem:[#allocation62_spill] sm:$0xff] %v10519_v12  ;;  %v10524_v58 = vadd.f32 %v3234_v41, %v10324_v50  ;;  %3643 = vmatprep.mubr.bf16.mxu0 %v14784_v60  ;;  %6618 = vmatprep.mubr.msk.bf16.mxu1 %vm1674_vm1, %v14725_v33  ;;  %v14790_v41 = vld [vmem:[#allocation49_spill] sm:$0xff]  ;;  %v14885_v25 = vld [vmem:[#allocation18_spill] sm:$0xff] }
 0x2fd   : > { %v3236_v40 = vpop.f32.mrf.mxu0  ;;  %v6647_v10 = vpop.f32.mrf.mxu1  ;;  %v4216_v12 = vmul.f32 %v14885_v25, %v14885_v25 }
 0x2fe   : > { %14783 = vst [vmem:[#allocation5_spill] sm:$0xff] %v10524_v58  ;;  %v10530_v9 = vadd.f32 %v3236_v40, %v10329_v45  ;;  %v10532_v34 = vadd.f32 %v6647_v10, %v6646_v31  ;;  %v14792_v31 = vld [vmem:[#allocation51_spill] sm:$0xff]  ;;  %v14881_v58 = vld [vmem:[#allocation154_spill] sm:$0xff] }
 0x2ff   : > { %v3238_v1 = vpop.f32.mrf.mxu0  ;;  %v6649_v62 = vpop.f32.mrf.mxu1 }
 0x300   : > { %14785 = vst [vmem:[#allocation63_spill] sm:$0xff] %v10530_v9  ;;  %14786 = vst [vmem:[#allocation7_spill] sm:$0xff] %v10532_v34  ;;  %v10535_v16 = vadd.f32 %v3238_v1, %v10331_v27  ;;  %v14875_v9 = vld [vmem:[#allocation102_spill] sm:$0xff] }
 0x301   : > { %v3240_v23 = vpop.f32.mrf.mxu0  ;;  %v6650_v50 = vpop.f32.mrf.mxu1 }
 0x302   : > { %14787 = vst [vmem:[#allocation9_spill] sm:$0xff] %v10535_v16  ;;  %v10538_v5 = vadd.f32 %v3240_v23, %v10333_v36  ;;  %v10540_v35 = vadd.f32 %v6650_v50, %v6649_v62 }
 0x303   : > { %v3244_v33 = vpop.f32.mrf.mxu0  ;;  %3644 = vmatmul.mubr.bf16.gmra.mxu0 %v14790_v41  ;;  %v6652_v19 = vpop.f32.mrf.mxu1  ;;  %3796 = vmatmul.mubr.bf16.gmra.mxu1 %v14726_v53 }
 0x304   : > { %14788 = vst [vmem:[#allocation11_spill] sm:$0xff] %v10538_v5  ;;  %14789 = vst [vmem:[#allocation13_spill] sm:$0xff] %v10540_v35  ;;  %v10545_v45 = vadd.f32 %v3244_v33, %v10337_v26  ;;  %3651 = vmatprep.mubr.bf16.mxu0 %v14792_v31  ;;  %6619 = vmatprep.mubr.msk.bf16.mxu1 %vm1674_vm1, %v14727_v46  ;;  %v14798_v33 = vld [vmem:[#allocation53_spill] sm:$0xff] }
 0x305   : > { %v3246_v27 = vpop.f32.mrf.mxu0  ;;  %v6653_v60 = vpop.f32.mrf.mxu1  ;;  %v14874_v5 = vld [vmem:[#allocation145_spill] sm:$0xff] }
 0x306   : > { %14791 = vst [vmem:[#allocation15_spill] sm:$0xff] %v10545_v45  ;;  %v10551_v36 = vadd.f32 %v3246_v27, %v10342_v48  ;;  %v10553_v40 = vadd.f32 %v6653_v60, %v6652_v19  ;;  %v14800_v19 = vld [vmem:[#allocation55_spill] sm:$0xff]  ;;  %v14869_v45 = vld [vmem:[#allocation146_spill] sm:$0xff]  ;;  %v4180_v35 = vmul.f32 %v14874_v5, %v14874_v5 }
 0x307   : > { %v3248_v10 = vpop.f32.mrf.mxu0  ;;  %v6655_v1 = vpop.f32.mrf.mxu1 }
 0x308   : > { %14793 = vst [vmem:[#allocation17_spill] sm:$0xff] %v10551_v36  ;;  %14794 = vst [vmem:[#allocation19_spill] sm:$0xff] %v10553_v40  ;;  %v10556_v62 = vadd.f32 %v3248_v10, %v10344_v43  ;;  %v14860_v36 = vld [vmem:[#allocation95_spill] sm:$0xff] }
 0x309   : > { %v3250_v53 = vpop.f32.mrf.mxu0  ;;  %v6656_v26 = vpop.f32.mrf.mxu1 }
 0x30a   : > { %14795 = vst [vmem:[#allocation21_spill] sm:$0xff] %v10556_v62  ;;  %v10559_v23 = vadd.f32 %v3250_v53, %v10346_v14  ;;  %v10561_v50 = vadd.f32 %v6656_v26, %v6655_v1  ;;  %v14864_v62 = vld [vmem:[#allocation100_spill] sm:$0xff] }
 0x30b   : > { %v3254_v46 = vpop.f32.mrf.mxu0  ;;  %3652 = vmatmul.mubr.bf16.gmra.mxu0 %v14798_v33  ;;  %v6658_v41 = vpop.f32.mrf.mxu1  ;;  %3804 = vmatmul.mubr.bf16.gmra.mxu1 %v14728_v38 }
 0x30c   : > { %14796 = vst [vmem:[#allocation23_spill] sm:$0xff] %v10559_v23  ;;  %14797 = vst [vmem:[#allocation25_spill] sm:$0xff] %v10561_v50  ;;  %v10566_v48 = vadd.f32 %v3254_v46, %v10350_v51  ;;  %3659 = vmatprep.mubr.bf16.mxu0 %v14800_v19  ;;  %6620 = vmatprep.mubr.msk.bf16.mxu1 %vm1674_vm1, %v14729_v0  ;;  %v14806_v46 = vld [vmem:[#allocation57_spill] sm:$0xff] }
 0x30d   : > { %v3256_v43 = vpop.f32.mrf.mxu0  ;;  %v6659_v31 = vpop.f32.mrf.mxu1 }
 0x30e   : > { %14799 = vst [vmem:[#allocation27_spill] sm:$0xff] %v10566_v48  ;;  %v10572_v14 = vadd.f32 %v3256_v43, %v10355_v2  ;;  %v10574_v27 = vadd.f32 %v6659_v31, %v6658_v41  ;;  %v14808_v41 = vld [vmem:[#allocation59_spill] sm:$0xff] }
 0x30f   : > { %v3258_v60 = vpop.f32.mrf.mxu0  ;;  %v6661_v10 = vpop.f32.mrf.mxu1 }
 0x310   : > { %14801 = vst [vmem:[#allocation29_spill] sm:$0xff] %v10572_v14  ;;  %14802 = vst [vmem:[#allocation31_spill] sm:$0xff] %v10574_v27  ;;  %v10577_v1 = vadd.f32 %v3258_v60, %v10357_v37 }
 0x311   : > { %v3260_v38 = vpop.f32.mrf.mxu0  ;;  %v6662_v51 = vpop.f32.mrf.mxu1 }
 0x312   : > { %14803 = vst [vmem:[#allocation33_spill] sm:$0xff] %v10577_v1  ;;  %v10580_v53 = vadd.f32 %v3260_v38, %v10359_v13  ;;  %v10582_v26 = vadd.f32 %v6662_v51, %v6661_v10  ;;  %v14854_v1 = vld [vmem:[#allocation93_spill] sm:$0xff] }
 0x313   : > { %v3264_v0 = vpop.f32.mrf.mxu0  ;;  %3660 = vmatmul.mubr.bf16.gmra.mxu0 %v14806_v46  ;;  %v6664_v33 = vpop.f32.mrf.mxu1  ;;  %3812 = vmatmul.mubr.bf16.gmra.mxu1 %v14730_v56 }
 0x314   : > { %14804 = vst [vmem:[#allocation35_spill] sm:$0xff] %v10580_v53  ;;  %14805 = vst [vmem:[#allocation37_spill] sm:$0xff] %v10582_v26  ;;  %v10587_v2 = vadd.f32 %v3264_v0, %v10363_v7  ;;  %3667 = vmatprep.mubr.bf16.mxu0 %v14808_v41  ;;  %6621 = vmatprep.mubr.msk.bf16.mxu1 %vm1674_vm1, %v14731_v39  ;;  %v14814_v0 = vld [vmem:[#allocation61_spill] sm:$0xff]  ;;  %v14849_v26 = vld [vmem:[#allocation132_spill] sm:$0xff] }
 0x315   : > { %v3266_v37 = vpop.f32.mrf.mxu0  ;;  %v6665_v19 = vpop.f32.mrf.mxu1 }
 0x316   : > { %14807 = vst [vmem:[#allocation39_spill] sm:$0xff] %v10587_v2  ;;  %v10593_v13 = vadd.f32 %v3266_v37, %v10368_v6  ;;  %v10595_v43 = vadd.f32 %v6665_v19, %v6664_v33 }
 0x317   : > { %v3268_v31 = vpop.f32.mrf.mxu0  ;;  %v6667_v60 = vpop.f32.mrf.mxu1 }
 0x318   : > { %14809 = vst [vmem:[#allocation41_spill] sm:$0xff] %v10593_v13  ;;  %14810 = vst [vmem:[#allocation43_spill] sm:$0xff] %v10595_v43  ;;  %v10598_v10 = vadd.f32 %v3268_v31, %v10370_v54  ;;  %v14818_v31 = vld [vmem:[#allocation111_spill] sm:$0xff]  ;;  %v14843_v13 = vld [vmem:[#allocation126_spill] sm:$0xff] }
 0x319   : > { %v3270_v56 = vpop.f32.mrf.mxu0  ;;  %v6668_v7 = vpop.f32.mrf.mxu1 }
 0x31a   : > { %14811 = vst [vmem:[#allocation45_spill] sm:$0xff] %v10598_v10  ;;  %v10601_v38 = vadd.f32 %v3270_v56, %v10372_v57  ;;  %v10603_v51 = vadd.f32 %v6668_v7, %v6667_v60  ;;  %v4125_v10 = vmul.f32 %v14843_v13, %v14843_v13 }
 0x31b   : > { %v3274_v39 = vpop.f32.mrf.mxu0  ;;  %3668 = vmatmul.mubr.bf16.gmra.mxu0 %v14814_v0  ;;  %v6670_v46 = vpop.f32.mrf.mxu1  ;;  %3820 = vmatmul.mubr.bf16.gmra.mxu1 %v14732_v52  ;;  %v14820_v0 = vld [vmem:[#allocation77_spill] sm:$0xff] }
 0x31c   : > { %14812 = vst [vmem:[#allocation47_spill] sm:$0xff] %v10601_v38  ;;  %14813 = vst [vmem:[#allocation49_spill] sm:$0xff] %v10603_v51  ;;  %v10608_v6 = vadd.f32 %v3274_v39, %v10376_v29  ;;  %v14839_v51 = vld [vmem:[#allocation124_spill] sm:$0xff] }
 0x31d   : > { %v3276_v33 = vpop.f32.mrf.mxu0  ;;  %v6671_v41 = vpop.f32.mrf.mxu1 }
 0x31e   : > { %14815 = vst [vmem:[#allocation51_spill] sm:$0xff] %v10608_v6  ;;  %v10611_v54 = vadd.f32 %v3276_v33, %v10381_v11  ;;  %v10613_v37 = vadd.f32 %v6671_v41, %v6670_v46 }
 0x31f   : > { %v3278_v57 = vpop.f32.mrf.mxu0  ;;  %v6673_v19 = vpop.f32.mrf.mxu1 }
 0x320   : > { %14816 = vst [vmem:[#allocation53_spill] sm:$0xff] %v10611_v54  ;;  %14817 = vst [vmem:[#allocation55_spill] sm:$0xff] %v10613_v37  ;;  %v10616_v60 = vadd.f32 %v3278_v57, %v14818_v31  ;;  %v14826_v54 = vld [vmem:[#allocation32_spill] sm:$0xff] }
 0x321   : > { %v3280_v56 = vpop.f32.mrf.mxu0  ;;  %v6674_v7 = vpop.f32.mrf.mxu1 }
 0x322   : > { %14819 = vst [vmem:[#allocation57_spill] sm:$0xff] %v10616_v60  ;;  %v10619_v38 = vadd.f32 %v3280_v56, %v14820_v0  ;;  %v10621_v52 = vadd.f32 %v6674_v7, %v6673_v19  ;;  %v14828_v56 = vld [vmem:[#allocation117_spill] sm:$0xff] }
 0x323   : > { %v3284_v29 = vpop.f32.mrf.mxu0  ;;  %v6676_v39 = vpop.f32.mrf.mxu1  ;;  %v4090_v19 = vmul.f32 %v14828_v56, %v14828_v56 }
 0x324   : > { %14821 = vst [vmem:[#allocation59_spill] sm:$0xff] %v10619_v38  ;;  %14822 = vst [vmem:[#allocation61_spill] sm:$0xff] %v10621_v52  ;;  %v10624_v6 = vadd.f32 %v3284_v29, %v10389_v61  ;;  %v14829_v38 = vld [vmem:[#allocation161_spill] sm:$0xff]  ;;  %v14838_v52 = vld [vmem:[#allocation120_spill] sm:$0xff] }
 0x325   : > { %v3286_v11 = vpop.f32.mrf.mxu0  ;;  %v6677_v46 = vpop.f32.mrf.mxu1  ;;  %v4103_v37 = vmul.f32 %v14838_v52, %v14838_v52 }
 0x326   : > { %14823 = vst [vmem:[#allocation111_spill] sm:$0xff] %v10624_v6  ;;  %v10627_v33 = vadd.f32 %v3286_v11, %v10394_v63  ;;  %v10629_v41 = vadd.f32 %v6677_v46, %v6676_v39  ;;  %v14832_v6 = vld [vmem:[#allocation116_spill] sm:$0xff]  ;;  %v14833_v39 = vld [vmem:[#allocation119_spill] sm:$0xff] }
 0x327   : > { %v3288_v57 = vpop.f32.mrf.mxu0  ;;  %v6679_v31 = vpop.f32.mrf.mxu1  ;;  %v4089_v63 = vmul.f32 %v14832_v6, %v14832_v6  ;;  %v4097_v11 = vmul.f32 %v14833_v39, %v14833_v39 }
 0x328   : > { %14824 = vst [vmem:[#allocation77_spill] sm:$0xff] %v10627_v33  ;;  %14825 = vst [vmem:[#allocation173_spill] sm:$0xff] %v10629_v41  ;;  %v10632_v60 = vadd.f32 %v3288_v57, %v14826_v54  ;;  %v10647_v54 = vadd.f32 %v14828_v56, %v14832_v6  ;;  %v14834_v57 = vld [vmem:[#allocation121_spill] sm:$0xff] }
 0x329   : > { %v3290_v7 = vpop.f32.mrf.mxu0  ;;  %v6680_v0 = vpop.f32.mrf.mxu1 }
 0x32a   : > { %14827 = vst [vmem:[#allocation32_spill] sm:$0xff] %v10632_v60  ;;  %v10637_v61 = vadd.f32 %v3290_v7, %v14829_v38  ;;  %v10639_v29 = vadd.f32 %v6680_v0, %v6679_v31  ;;  %v4104_v60 = vmul.f32 %v14834_v57, %v14834_v57  ;;  %v10654_v31 = vadd.f32 %v4090_v19, %v4089_v63  ;;  %v14836_v7 = vld [vmem:[#allocation118_spill] sm:$0xff] }
 0x32b   : > { %v3294_v46 = vpop.f32.mrf.mxu0  ;;  %v6682_v33 = vpop.f32.mrf.mxu1  ;;  %v4096_v0 = vmul.f32 %v14836_v7, %v14836_v7 }
 0x32c   : > { %14830 = vst [vmem:[#allocation161_spill] sm:$0xff] %v10637_v61  ;;  %14831 = vst [vmem:[#allocation174_spill] sm:$0xff] %v10639_v29  ;;  %v10652_v38 = vadd.f32 %v3294_v46, %v10402_v15  ;;  %v10660_v61 = vadd.f32 %v14833_v39, %v14836_v7  ;;  %v14837_v29 = vld [vmem:[#allocation123_spill] sm:$0xff]  ;;  %v4118_v15 = vmul.f32 %v14839_v51, %v14839_v51  ;;  %v14842_v7 = vld [vmem:[#allocation122_spill] sm:$0xff] }
 0x32d   : > { %v4111_v41 = vmul.f32 %v14837_v29, %v14837_v29  ;;  %v3296_v56 = vpop.f32.mrf.mxu0  ;;  %v6683_v6 = vpop.f32.mrf.mxu1  ;;  %v10673_v46 = vadd.f32 %v4097_v11, %v4096_v0  ;;  %v10677_v39 = vadd.f32 %v14834_v57, %v14838_v52  ;;  %v10683_v53 = vadd.f32 %v4104_v60, %v4103_v37  ;;  %v14847_v52 = vld [vmem:[#allocation125_spill] sm:$0xff]  ;;  %v14848_v60 = vld [vmem:[#allocation128_spill] sm:$0xff] }
 0x32e   : > { %14835 = vst [vmem:[#allocation175_spill] sm:$0xff] %v10652_v38  ;;  %v10669_v19 = vadd.f32 %v3296_v56, %v10407_v20  ;;  %v10671_v63 = vadd.f32 %v6683_v6, %v6682_v33  ;;  %v4110_v38 = vmul.f32 %v14842_v7, %v14842_v7  ;;  %v10687_v20 = vadd.f32 %v14837_v29, %v14842_v7  ;;  %v14844_v6 = vld [vmem:[#allocation87_spill] sm:$0xff]  ;;  %v14845_v56 = vld [vmem:[#allocation78_spill] sm:$0xff] }
 0x32f   : > { %v3298_v43 = vpop.f32.mrf.mxu0  ;;  %v6685_v2 = vpop.f32.mrf.mxu1  ;;  %v4117_v33 = vmul.f32 %v14844_v6, %v14844_v6  ;;  %v10698_v57 = vadd.f32 %v14839_v51, %v14844_v6  ;;  %v4124_v37 = vmul.f32 %v14847_v52, %v14847_v52  ;;  %v10715_v51 = vadd.f32 %v14843_v13, %v14847_v52 }
 0x330   : > { %14840 = vst [vmem:[#allocation176_spill] sm:$0xff] %v10669_v19  ;;  %14841 = vst [vmem:[#allocation177_spill] sm:$0xff] %v10671_v63  ;;  %v10692_v11 = vadd.f32 %v3298_v43, %v14845_v56  ;;  %v10694_v0 = vadd.f32 %v4111_v41, %v4110_v38  ;;  %v4132_v19 = vmul.f32 %v14848_v60, %v14848_v60  ;;  %v14850_v56 = vld [vmem:[#allocation79_spill] sm:$0xff] }
 0x331   : > { %v3300_v29 = vpop.f32.mrf.mxu0  ;;  %v6686_v7 = vpop.f32.mrf.mxu1  ;;  %v10704_v63 = vadd.f32 %v4118_v15, %v4117_v33  ;;  %v4139_v43 = vmul.f32 %v14849_v26, %v14849_v26  ;;  %v10717_v6 = vadd.f32 %v4125_v10, %v4124_v37  ;;  %v4146_v15 = vmul.f32 %v14854_v1, %v14854_v1 }
 0x332   : > { %14846 = vst [vmem:[#allocation78_spill] sm:$0xff] %v10692_v11  ;;  %v10709_v41 = vadd.f32 %v3300_v29, %v14850_v56  ;;  %v10711_v38 = vadd.f32 %v6686_v7, %v6685_v2  ;;  %v14853_v11 = vld [vmem:[#allocation90_spill] sm:$0xff]  ;;  %v14856_v56 = vld [vmem:[#allocation96_spill] sm:$0xff] }
 0x333   : > { %v4131_v14 = vmul.f32 %v14853_v11, %v14853_v11  ;;  %v3304_v33 = vpop.f32.mrf.mxu0  ;;  %v6688_v27 = vpop.f32.mrf.mxu1  ;;  %v10725_v29 = vadd.f32 %v14848_v60, %v14853_v11  ;;  %v14855_v2 = vld [vmem:[#allocation130_spill] sm:$0xff]  ;;  %v4153_v13 = vmul.f32 %v14856_v56, %v14856_v56 }
 0x334   : > { %14851 = vst [vmem:[#allocation79_spill] sm:$0xff] %v10709_v41  ;;  %14852 = vst [vmem:[#allocation178_spill] sm:$0xff] %v10711_v38  ;;  %v4138_v7 = vmul.f32 %v14855_v2, %v14855_v2  ;;  %v10732_v10 = vadd.f32 %v3304_v33, %v10415_v18  ;;  %v10738_v52 = vadd.f32 %v14849_v26, %v14855_v2  ;;  %v14858_v41 = vld [vmem:[#allocation134_spill] sm:$0xff]  ;;  %v14863_v2 = vld [vmem:[#allocation97_spill] sm:$0xff] }
 0x335   : > { %v10734_v37 = vadd.f32 %v4132_v19, %v4131_v14  ;;  %v4145_v38 = vmul.f32 %v14858_v41, %v14858_v41  ;;  %v14859_v60 = vld [vmem:[#allocation98_spill] sm:$0xff]  ;;  %v3306_v48 = vpop.f32.mrf.mxu0  ;;  %v6689_v23 = vpop.f32.mrf.mxu1  ;;  %v4152_v18 = vmul.f32 %v14860_v36, %v14860_v36  ;;  %v10755_v33 = vadd.f32 %v14854_v1, %v14858_v41  ;;  %v14866_v1 = vld [vmem:[#allocation36_spill] sm:$0xff] }
 0x336   : > { %14857 = vst [vmem:[#allocation179_spill] sm:$0xff] %v10732_v10  ;;  %v4160_v11 = vmul.f32 %v14859_v60, %v14859_v60  ;;  %v10744_v50 = vadd.f32 %v4139_v43, %v4138_v7  ;;  %v10749_v14 = vadd.f32 %v3306_v48, %v10420_v3  ;;  %v10751_v19 = vadd.f32 %v6689_v23, %v6688_v27  ;;  %v14865_v48 = vld [vmem:[#allocation101_spill] sm:$0xff] }
 0x337   : > { %v10757_v26 = vadd.f32 %v4146_v15, %v4145_v38  ;;  %v4159_v10 = vmul.f32 %v14863_v2, %v14863_v2  ;;  %v4167_v43 = vmul.f32 %v14864_v62, %v14864_v62  ;;  %v3308_v7 = vpop.f32.mrf.mxu0  ;;  %v6691_v40 = vpop.f32.mrf.mxu1  ;;  %v10765_v3 = vadd.f32 %v14856_v56, %v14860_v36 }
 0x338   : > { %14861 = vst [vmem:[#allocation180_spill] sm:$0xff] %v10749_v14  ;;  %14862 = vst [vmem:[#allocation181_spill] sm:$0xff] %v10751_v19  ;;  %v10767_v23 = vadd.f32 %v4153_v13, %v4152_v18  ;;  %v4174_v27 = vmul.f32 %v14865_v48, %v14865_v48  ;;  %v10772_v38 = vadd.f32 %v3308_v7, %v14866_v1  ;;  %v14868_v14 = vld [vmem:[#allocation99_spill] sm:$0xff] }
 0x339   : > { %v10776_v15 = vadd.f32 %v14859_v60, %v14863_v2  ;;  %v10778_v41 = vadd.f32 %v4160_v11, %v4159_v10  ;;  %v4166_v19 = vmul.f32 %v14868_v14, %v14868_v14  ;;  %v4181_v56 = vmul.f32 %v14869_v45, %v14869_v45  ;;  %v3310_v13 = vpop.f32.mrf.mxu0  ;;  %v6692_v18 = vpop.f32.mrf.mxu1  ;;  %v14870_v1 = vld [vmem:[#allocation143_spill] sm:$0xff] }
 0x33a   : > { %14867 = vst [vmem:[#allocation36_spill] sm:$0xff] %v10772_v38  ;;  %v10786_v36 = vadd.f32 %v14864_v62, %v14868_v14  ;;  %v4173_v7 = vmul.f32 %v14870_v1, %v14870_v1  ;;  %v14871_v38 = vld [vmem:[#allocation164_spill] sm:$0xff]  ;;  %v10793_v11 = vadd.f32 %v6692_v18, %v6691_v40  ;;  %v10799_v2 = vadd.f32 %v14865_v48, %v14870_v1 }
 0x33b   : > { %v10791_v60 = vadd.f32 %v3310_v13, %v14871_v38  ;;  %v10795_v10 = vadd.f32 %v4167_v43, %v4166_v19  ;;  %v4188_v62 = vmul.f32 %v14875_v9, %v14875_v9  ;;  %v3314_v14 = vpop.f32.mrf.mxu0  ;;  %v6694_v16 = vpop.f32.mrf.mxu1  ;;  %v10809_v40 = vadd.f32 %v14869_v45, %v14874_v5  ;;  %v14876_v19 = vld [vmem:[#allocation150_spill] sm:$0xff]  ;;  %v14878_v18 = vld [vmem:[#allocation8_spill] sm:$0xff] }
 0x33c   : > { %14873 = vst [vmem:[#allocation182_spill] sm:$0xff] %v10793_v11  ;;  %v10805_v34 = vadd.f32 %v4174_v27, %v4173_v7  ;;  %v4195_v43 = vmul.f32 %v14876_v19, %v14876_v19  ;;  %v10814_v38 = vadd.f32 %v3314_v14, %v10428_v22  ;;  %v10816_v13 = vadd.f32 %v4181_v56, %v4180_v35  ;;  %v14879_v27 = vld [vmem:[#allocation103_spill] sm:$0xff] }
 0x33d   : > { %14872 = vst [vmem:[#allocation164_spill] sm:$0xff] %v10791_v60  ;;  %v4187_v48 = vmul.f32 %v14878_v18, %v14878_v18  ;;  %v10822_v1 = vadd.f32 %v14875_v9, %v14878_v18  ;;  %v4202_v7 = vmul.f32 %v14879_v27, %v14879_v27  ;;  %v3316_v45 = vpop.f32.mrf.mxu0  ;;  %v6695_v5 = vpop.f32.mrf.mxu1  ;;  %v14880_v60 = vld [vmem:[#allocation149_spill] sm:$0xff]  ;;  %v4209_v22 = vmul.f32 %v14881_v58, %v14881_v58  ;;  %v14884_v18 = vld [vmem:[#allocation12_spill] sm:$0xff] }
 0x33e   : > { %14877 = vst [vmem:[#allocation183_spill] sm:$0xff] %v10814_v38  ;;  %v4194_v11 = vmul.f32 %v14880_v60, %v14880_v60  ;;  %v10831_v35 = vadd.f32 %v3316_v45, %v10433_v4  ;;  %v10833_v56 = vadd.f32 %v6695_v5, %v6694_v16  ;;  %v10839_v9 = vadd.f32 %v14876_v19, %v14880_v60  ;;  %v14887_v16 = vld [vmem:[#allocation152_spill] sm:$0xff] }
 0x33f   : > { %v10835_v14 = vadd.f32 %v4188_v62, %v4187_v48  ;;  %v4201_v38 = vmul.f32 %v14884_v18, %v14884_v18  ;;  %v3318_v28 = vpop.f32.mrf.mxu0  ;;  %v6697_v30 = vpop.f32.mrf.mxu1  ;;  %v10849_v4 = vadd.f32 %v14879_v27, %v14884_v18  ;;  %v4208_v5 = vmul.f32 %v14887_v16, %v14887_v16  ;;  %v14888_v45 = vld [vmem:[#allocation80_spill] sm:$0xff] }
 0x340   : > { %14882 = vst [vmem:[#allocation184_spill] sm:$0xff] %v10831_v35  ;;  %14883 = vst [vmem:[#allocation185_spill] sm:$0xff] %v10833_v56  ;;  %v10845_v8 = vadd.f32 %v4195_v43, %v4194_v11  ;;  %v10854_v62 = vadd.f32 %v3318_v28, %v14888_v45  ;;  %v10860_v19 = vadd.f32 %v14881_v58, %v14887_v16  ;;  %v14892_v60 = vld [vmem:[#allocation104_spill] sm:$0xff]  ;;  %v14896_v45 = vld [vmem:[#allocation81_spill] sm:$0xff] }
 0x341   : > { %14886 = vst [vmem:[#allocation186_spill] sm:$0xff] %v10849_v4  ;;  %v10856_v48 = vadd.f32 %v4202_v7, %v4201_v38  ;;  %v4215_v11 = vmul.f32 %v14892_v60, %v14892_v60  ;;  %v14893_v43 = vld [vmem:[#allocation156_spill] sm:$0xff]  ;;  %v3320_v27 = vpop.f32.mrf.mxu0  ;;  %v6698_v18 = vpop.f32.mrf.mxu1  ;;  %v10866_v56 = vadd.f32 %v4209_v22, %v4208_v5  ;;  %v4230_v28 = vmul.f32 %v14895_v21, %v14895_v21 }
 0x342   : > { %14889 = vst [vmem:[#allocation80_spill] sm:$0xff] %v10854_v62  ;;  %14891 = vst [vmem:[#allocation188_spill] sm:$0xff] %v10860_v19  ;;  %v4223_v35 = vmul.f32 %v14893_v43, %v14893_v43  ;;  %v10871_v38 = vadd.f32 %v3320_v27, %v14896_v45  ;;  %v10873_v7 = vadd.f32 %v6698_v18, %v6697_v30  ;;  %v14901_v62 = vld [vmem:[#allocation105_spill] sm:$0xff]  ;;  %v14904_v30 = vld [vmem:[#allocation20_spill] sm:$0xff] }
 0x343   : > { %14890 = vst [vmem:[#allocation187_spill] sm:$0xff] %v10856_v48  ;;  %14894 = vst [vmem:[#allocation189_spill] sm:$0xff] %v10866_v56  ;;  %v10877_v58 = vadd.f32 %v14885_v25, %v14892_v60  ;;  %v10879_v16 = vadd.f32 %v4216_v12, %v4215_v11  ;;  %v4222_v19 = vmul.f32 %v14901_v62, %v14901_v62  ;;  %v14902_v48 = vld [vmem:[#allocation158_spill] sm:$0xff]  ;;  %v3324_v5 = vpop.f32.mrf.mxu0  ;;  %v6700_v56 = vpop.f32.mrf.mxu1  ;;  %v14905_v45 = vld [vmem:[#allocation109_spill] sm:$0xff] }
 0x344   : > { %14897 = vst [vmem:[#allocation81_spill] sm:$0xff] %v10871_v38  ;;  %14898 = vst [vmem:[#allocation190_spill] sm:$0xff] %v10873_v7  ;;  %v4237_v22 = vmul.f32 %v14902_v48, %v14902_v48  ;;  %v10887_v27 = vadd.f32 %v14893_v43, %v14901_v62  ;;  %v4229_v18 = vmul.f32 %v14904_v30, %v14904_v30  ;;  %v14908_v38 = vld [vmem:[#allocation107_spill] sm:$0xff]  ;;  %v14909_v43 = vld [vmem:[#allocation110_spill] sm:$0xff] }
 0x345   : > { %14899 = vst [vmem:[#allocation191_spill] sm:$0xff] %v10877_v58  ;;  %14900 = vst [vmem:[#allocation192_spill] sm:$0xff] %v10879_v16  ;;  %v4244_v25 = vmul.f32 %v14905_v45, %v14905_v45  ;;  %v10894_v12 = vadd.f32 %v3324_v5, %v10441_v59  ;;  %v10896_v11 = vadd.f32 %v4223_v35, %v4222_v19  ;;  %v6701_v16 = vpop.f32.mrf.mxu1  ;;  %v14911_v4 = vld [vmem:[#allocation108_spill] sm:$0xff] }
 0x346   : > { %14903 = vst [vmem:[#allocation193_spill] sm:$0xff] %v10887_v27  ;;  %v10900_v60 = vadd.f32 %v14895_v21, %v14904_v30  ;;  %v4236_v7 = vmul.f32 %v14908_v38, %v14908_v38  ;;  %v4251_v62 = vmul.f32 %v14909_v43, %v14909_v43  ;;  %v3326_v27 = vpop.f32.mrf.mxu0  ;;  %v10906_v58 = vadd.f32 %v4230_v28, %v4229_v18  ;;  %v14915_v30 = vld [vmem:[#allocation160_spill] sm:$0xff] }
 0x347   : > { %14906 = vst [vmem:[#allocation194_spill] sm:$0xff] %v10894_v12  ;;  %v4243_v59 = vmul.f32 %v14911_v4, %v14911_v4  ;;  %v10911_v19 = vadd.f32 %v3326_v27, %v10446_v32  ;;  %v10913_v35 = vadd.f32 %v6701_v16, %v6700_v56  ;;  %v10917_v5 = vadd.f32 %v14902_v48, %v14908_v38  ;;  %v14919_v16 = vld [vmem:[#allocation114_spill] sm:$0xff]  ;;  %v14920_v48 = vld [vmem:[#allocation40_spill] sm:$0xff] }
 0x348   : > { %14907 = vst [vmem:[#allocation195_spill] sm:$0xff] %v10900_v60  ;;  %14910 = vst [vmem:[#allocation196_spill] sm:$0xff] %v10906_v58  ;;  %v10919_v21 = vadd.f32 %v4237_v22, %v4236_v7  ;;  %v4250_v12 = vmul.f32 %v14915_v30, %v14915_v30  ;;  %v14916_v60 = vld [vmem:[#allocation112_spill] sm:$0xff]  ;;  %v3328_v18 = vpop.f32.mrf.mxu0  ;;  %v6703_v58 = vpop.f32.mrf.mxu1  ;;  %v10927_v32 = vadd.f32 %v14905_v45, %v14911_v4 }
 0x349   : > { %14912 = vst [vmem:[#allocation197_spill] sm:$0xff] %v10911_v19  ;;  %14913 = vst [vmem:[#allocation198_spill] sm:$0xff] %v10913_v35  ;;  %v4258_v28 = vmul.f32 %v14916_v60, %v14916_v60  ;;  %v10929_v56 = vadd.f32 %v4244_v25, %v4243_v59  ;;  %v4265_v27 = vmul.f32 %v14919_v16, %v14919_v16  ;;  %v14924_v19 = vld [vmem:[#allocation28_spill] sm:$0xff] }
 0x34a   : > { %14914 = vst [vmem:[#allocation199_spill] sm:$0xff] %v10919_v21  ;;  %14917 = vst [vmem:[#allocation200_spill] sm:$0xff] %v10927_v32  ;;  %v10934_v7 = vadd.f32 %v3328_v18, %v14920_v48  ;;  %v10938_v22 = vadd.f32 %v14909_v43, %v14915_v30  ;;  %v10940_v38 = vadd.f32 %v4251_v62, %v4250_v12  ;;  %v14925_v21 = vld [vmem:[#allocation34_spill] sm:$0xff]  ;;  %v3330_v25 = vpop.f32.mrf.mxu0  ;;  %v6704_v59 = vpop.f32.mrf.mxu1  ;;  %v14927_v48 = vld [vmem:[#allocation113_spill] sm:$0xff] }
 0x34b   : > { %14918 = vst [vmem:[#allocation201_spill] sm:$0xff] %v10929_v56  ;;  %v4257_v35 = vmul.f32 %v14924_v19, %v14924_v19  ;;  %v4272_v45 = vmul.f32 %v14925_v21, %v14925_v21  ;;  %v10948_v4 = vadd.f32 %v14916_v60, %v14924_v19  ;;  %v4264_v18 = vmul.f32 %v14927_v48, %v14927_v48  ;;  %v14933_v56 = vld [vmem:[#allocation166_spill] sm:$0xff] }
 0x34c   : > { %14921 = vst [vmem:[#allocation40_spill] sm:$0xff] %v10934_v7  ;;  %14922 = vst [vmem:[#allocation202_spill] sm:$0xff] %v10938_v22  ;;  %v14928_v7 = vld [vmem:[#allocation82_spill] sm:$0xff]  ;;  %v10955_v62 = vadd.f32 %v6704_v59, %v6703_v58  ;;  %v10961_v30 = vadd.f32 %v14919_v16, %v14927_v48  ;;  %v4091_v60 = vmul.f32 %v14933_v56, %v14933_v56  ;;  %v3334_v19 = vpop.f32.mrf.mxu0 }
 0x34d   : > { %14923 = vst [vmem:[#allocation203_spill] sm:$0xff] %v10940_v38  ;;  %14926 = vst [vmem:[#allocation204_spill] sm:$0xff] %v10948_v4  ;;  %v10953_v43 = vadd.f32 %v3330_v25, %v14928_v7  ;;  %v10957_v12 = vadd.f32 %v4258_v28, %v4257_v35  ;;  %v14932_v38 = vld [vmem:[#allocation115_spill] sm:$0xff]  ;;  %v6706_v4 = vpop.f32.mrf.mxu1  ;;  %v10967_v32 = vadd.f32 %v4265_v27, %v4264_v18  ;;  %v14939_v59 = vld [vmem:[#allocation162_spill] sm:$0xff] }
 0x34e   : > { %14930 = vst [vmem:[#allocation205_spill] sm:$0xff] %v10955_v62  ;;  %14931 = vst [vmem:[#allocation206_spill] sm:$0xff] %v10961_v30  ;;  %v4271_v22 = vmul.f32 %v14932_v38, %v14932_v38  ;;  %v10971_v58 = vadd.f32 %v14925_v21, %v14932_v38  ;;  %v14936_v35 = vld [vmem:[#allocation163_spill] sm:$0xff]  ;;  %v10976_v7 = vadd.f32 %v3334_v19, %v10454_v24  ;;  %v14940_v48 = vld [vmem:[#allocation38_spill] sm:$0xff]  ;;  %v3336_v18 = vpop.f32.mrf.mxu0 }
 0x34f   : > { %14929 = vst [vmem:[#allocation82_spill] sm:$0xff] %v10953_v43  ;;  %14934 = vst [vmem:[#allocation207_spill] sm:$0xff] %v10967_v32  ;;  %v4279_v28 = vmul.f32 %v14936_v35, %v14936_v35  ;;  %v4278_v16 = vmul.f32 %v14939_v59, %v14939_v59  ;;  %v4286_v43 = vmul.f32 %v14940_v48, %v14940_v48  ;;  %v6707_v21 = vpop.f32.mrf.mxu1  ;;  %v14942_v62 = vld [vmem:[#allocation168_spill] sm:$0xff] }
 0x350   : > { %14935 = vst [vmem:[#allocation208_spill] sm:$0xff] %v10971_v58  ;;  %14937 = vst [vmem:[#allocation209_spill] sm:$0xff] %v10976_v7  ;;  %v10978_v25 = vadd.f32 %v4272_v45, %v4271_v22  ;;  %v3828_v27 = vadd.f32 %v10647_v54, %v14933_v56  ;;  %v10988_v38 = vadd.f32 %v14936_v35, %v14939_v59  ;;  %v14945_v22 = vld [vmem:[#allocation165_spill] sm:$0xff]  ;;  %v14946_v54 = vld [vmem:[#allocation167_spill] sm:$0xff]  ;;  %v3338_v59 = vpop.f32.mrf.mxu0 }
 0x351   : > { %v4098_v24 = vmul.f32 %v14942_v62, %v14942_v62  ;;  %v10993_v45 = vadd.f32 %v3336_v18, %v10459_v49  ;;  %v10995_v19 = vadd.f32 %v6707_v21, %v6706_v4  ;;  %v4285_v7 = vmul.f32 %v14945_v22, %v14945_v22  ;;  %v14947_v58 = vld [vmem:[#allocation46_spill] sm:$0xff] }
 0x352   : > { %14938 = vst [vmem:[#allocation210_spill] sm:$0xff] %v10978_v25  ;;  %14941 = vst [vmem:[#allocation211_spill] sm:$0xff] %v10988_v38  ;;  %v4293_v25 = vadd.f32 %v10654_v31, %v4091_v60  ;;  %v4092_v56 = vmul.f32 %v14946_v54, %v14946_v54  ;;  %v4105_v35 = vmul.f32 %v14947_v58, %v14947_v58  ;;  %v6709_v38 = vpop.f32.mrf.mxu1  ;;  %v14950_v21 = vld [vmem:[#allocation170_spill] sm:$0xff] }
 0x353   : > { %14943 = vst [vmem:[#allocation212_spill] sm:$0xff] %v10993_v45  ;;  %14944 = vst [vmem:[#allocation213_spill] sm:$0xff] %v10995_v19  ;;  %v11004_v32 = vadd.f32 %v4279_v28, %v4278_v16  ;;  %v11008_v49 = vadd.f32 %v14940_v48, %v14945_v22  ;;  %v4112_v4 = vmul.f32 %v14950_v21, %v14950_v21  ;;  %v14951_v18 = vld [vmem:[#allocation42_spill] sm:$0xff] }
 0x354   : > { %v11013_v45 = vadd.f32 %v3338_v59, %v14951_v18  ;;  %v11015_v31 = vadd.f32 %v4286_v43, %v4285_v7  ;;  %v11018_v60 = vadd.f32 %v3828_v27, %v14946_v54  ;;  %v3838_v19 = vadd.f32 %v10660_v61, %v14942_v62  ;;  %v14954_v16 = vld [vmem:[#allocation50_spill] sm:$0xff]  ;;  %v6710_v48 = vpop.f32.mrf.mxu1  ;;  %v14956_v59 = vld [vmem:[#allocation83_spill] sm:$0xff]  ;;  %v14959_v27 = vld [vmem:[#allocation169_spill] sm:$0xff] }
 0x355   : > { %14948 = vst [vmem:[#allocation214_spill] sm:$0xff] %v11004_v32  ;;  %14949 = vst [vmem:[#allocation215_spill] sm:$0xff] %v11008_v49  ;;  %v4119_v28 = vmul.f32 %v14954_v16, %v14954_v16  ;;  %v3340_v32 = vpop.f32.mrf.mxu0  ;;  %v4302_v22 = vadd.f32 %v10673_v46, %v4098_v24  ;;  %v14955_v49 = vld [vmem:[#allocation44_spill] sm:$0xff]  ;;  %v11030_v43 = vadd.f32 %v6710_v48, %v6709_v38 }
 0x356   : > { %14952 = vst [vmem:[#allocation42_spill] sm:$0xff] %v11013_v45  ;;  %14953 = vst [vmem:[#allocation216_spill] sm:$0xff] %v11015_v31  ;;  %v4099_v30 = vmul.f32 %v14955_v49, %v14955_v49  ;;  %v11028_v18 = vadd.f32 %v3340_v32, %v14956_v59  ;;  %v3847_v7 = vadd.f32 %v10677_v39, %v14947_v58  ;;  %v6712_v31 = vpop.f32.mrf.mxu1  ;;  %v14960_v24 = vld [vmem:[#allocation48_spill] sm:$0xff] }
 0x357   : > { %14958 = vst [vmem:[#allocation217_spill] sm:$0xff] %v11030_v43  ;;  %v4311_v61 = vadd.f32 %v10683_v53, %v4105_v35  ;;  %v4106_v62 = vmul.f32 %v14959_v27, %v14959_v27  ;;  %v3344_v54 = vpop.f32.mrf.mxu0  ;;  %v11037_v45 = vadd.f32 %v4293_v25, %v4092_v56  ;;  %v3856_v46 = vadd.f32 %v10687_v20, %v14950_v21  ;;  %v14962_v35 = vld [vmem:[#allocation171_spill] sm:$0xff]  ;;  %v14963_v25 = vld [vmem:[#allocation172_spill] sm:$0xff] }
 0x358   : > { %14957 = vst [vmem:[#allocation83_spill] sm:$0xff] %v11028_v18  ;;  %v4320_v32 = vadd.f32 %v10694_v0, %v4112_v4  ;;  %v4113_v38 = vmul.f32 %v14960_v24, %v14960_v24  ;;  %v11045_v48 = vadd.f32 %v3344_v54, %v10467_v17  ;;  %v3865_v53 = vadd.f32 %v10698_v57, %v14954_v16  ;;  %v6713_v21 = vpop.f32.mrf.mxu1  ;;  %v14966_v16 = vld [vmem:[#allocation54_spill] sm:$0xff]  ;;  %v15018_v18 = vld [vmem:[#allocation67_spill] sm:$0xff] }
 0x359   : > { %v4329_v39 = vadd.f32 %v10704_v63, %v4119_v28  ;;  %v4120_v56 = vmul.f32 %v14962_v35, %v14962_v35  ;;  %v4126_v59 = vmul.f32 %v14963_v25, %v14963_v25  ;;  %v3346_v20 = vpop.f32.mrf.mxu0  ;;  %v11055_v0 = vadd.f32 %v3838_v19, %v14955_v49 }
 0x35a   : > { %14961 = vst [vmem:[#allocation218_spill] sm:$0xff] %v11045_v48  ;;  %v11058_v4 = vadd.f32 %v3346_v20, %v10472_v44  ;;  %v11060_v17 = vadd.f32 %v6713_v21, %v6712_v31  ;;  %v11062_v54 = vadd.f32 %v4302_v22, %v4099_v30  ;;  %v11065_v57 = vadd.f32 %v3847_v7, %v14959_v27  ;;  %v6715_v49 = vpop.f32.mrf.mxu1  ;;  %v14967_v21 = vld [vmem:[#allocation129_spill] sm:$0xff]  ;;  %v14968_v22 = vld [vmem:[#allocation84_spill] sm:$0xff] }
 0x35b   : > { %v11067_v63 = vadd.f32 %v4311_v61, %v4106_v62  ;;  %v3874_v28 = vadd.f32 %v10715_v51, %v14963_v25  ;;  %v4133_v58 = vmul.f32 %v14966_v16, %v14966_v16  ;;  %v3348_v19 = vpop.f32.mrf.mxu0  ;;  %v11074_v44 = vadd.f32 %v3856_v46, %v14960_v24  ;;  %v14970_v20 = vld [vmem:[#allocation56_spill] sm:$0xff] }
 0x35c   : > { %14964 = vst [vmem:[#allocation219_spill] sm:$0xff] %v11058_v4  ;;  %14965 = vst [vmem:[#allocation220_spill] sm:$0xff] %v11060_v17  ;;  %v4140_v30 = vmul.f32 %v14967_v21, %v14967_v21  ;;  %v11079_v31 = vadd.f32 %v3348_v19, %v14968_v22  ;;  %v11081_v7 = vadd.f32 %v4320_v32, %v4113_v38  ;;  %v6716_v24 = vpop.f32.mrf.mxu1  ;;  %v14971_v27 = vld [vmem:[#allocation52_spill] sm:$0xff]  ;;  %v14972_v32 = vld [vmem:[#allocation85_spill] sm:$0xff] }
 0x35d   : > { %v11084_v62 = vadd.f32 %v3865_v53, %v14962_v35  ;;  %v11086_v51 = vadd.f32 %v4329_v39, %v4120_v56  ;;  %v4338_v61 = vadd.f32 %v10717_v6, %v4126_v59  ;;  %v4147_v25 = vmul.f32 %v14970_v20, %v14970_v20  ;;  %v3350_v46 = vpop.f32.mrf.mxu0  ;;  %v14975_v56 = vld [vmem:[#allocation127_spill] sm:$0xff]  ;;  %v14976_v22 = vld [vmem:[#allocation58_spill] sm:$0xff] }
 0x35e   : > { %14969 = vst [vmem:[#allocation84_spill] sm:$0xff] %v11079_v31  ;;  %v4127_v4 = vmul.f32 %v14971_v27, %v14971_v27  ;;  %v3883_v19 = vadd.f32 %v10725_v29, %v14966_v16  ;;  %v11096_v38 = vadd.f32 %v3350_v46, %v14972_v32  ;;  %v11098_v53 = vadd.f32 %v6716_v24, %v6715_v49  ;;  %v6718_v17 = vpop.f32.mrf.mxu1  ;;  %v14977_v49 = vld [vmem:[#allocation131_spill] sm:$0xff]  ;;  %v14979_v32 = vld [vmem:[#allocation133_spill] sm:$0xff] }
 0x35f   : > { %v11101_v39 = vadd.f32 %v3874_v28, %v14971_v27  ;;  %v4347_v6 = vadd.f32 %v10734_v37, %v4133_v58  ;;  %v4134_v59 = vmul.f32 %v14975_v56, %v14975_v56  ;;  %v4154_v35 = vmul.f32 %v14976_v22, %v14976_v22  ;;  %v3354_v31 = vpop.f32.mrf.mxu0 }
 0x360   : > { %14973 = vst [vmem:[#allocation85_spill] sm:$0xff] %v11096_v38  ;;  %14974 = vst [vmem:[#allocation221_spill] sm:$0xff] %v11098_v53  ;;  %v3892_v29 = vadd.f32 %v10738_v52, %v14967_v21  ;;  %v4356_v46 = vadd.f32 %v10744_v50, %v4140_v30  ;;  %v4141_v24 = vmul.f32 %v14977_v49, %v14977_v49  ;;  %v6719_v21 = vpop.f32.mrf.mxu1  ;;  %v14980_v30 = vld [vmem:[#allocation86_spill] sm:$0xff] }
 0x361   : > { %v11114_v28 = vadd.f32 %v3354_v31, %v10480_v42  ;;  %v3901_v37 = vadd.f32 %v10755_v33, %v14970_v20  ;;  %v4365_v58 = vadd.f32 %v10757_v26, %v4147_v25  ;;  %v4148_v27 = vmul.f32 %v14979_v32, %v14979_v32  ;;  %v3356_v52 = vpop.f32.mrf.mxu0  ;;  %v14983_v25 = vld [vmem:[#allocation135_spill] sm:$0xff] }
 0x362   : > { %v3910_v16 = vadd.f32 %v10765_v3, %v14976_v22  ;;  %v11124_v50 = vadd.f32 %v3883_v19, %v14975_v56  ;;  %v11127_v38 = vadd.f32 %v3356_v52, %v14980_v30  ;;  %v11129_v42 = vadd.f32 %v6719_v21, %v6718_v17  ;;  %v14984_v3 = vld [vmem:[#allocation136_spill] sm:$0xff]  ;;  %v6721_v19 = vpop.f32.mrf.mxu1  ;;  %v14985_v52 = vld [vmem:[#allocation138_spill] sm:$0xff] }
 0x363   : > { %14978 = vst [vmem:[#allocation222_spill] sm:$0xff] %v11114_v28  ;;  %v11131_v31 = vadd.f32 %v4338_v61, %v4127_v4  ;;  %v11133_v33 = vadd.f32 %v4347_v6, %v4134_v59  ;;  %v4374_v26 = vadd.f32 %v10767_v23, %v4154_v35  ;;  %v4155_v20 = vmul.f32 %v14983_v25, %v14983_v25  ;;  %v3358_v28 = vpop.f32.mrf.mxu0  ;;  %v14986_v4 = vld [vmem:[#allocation88_spill] sm:$0xff]  ;;  %v14988_v59 = vld [vmem:[#allocation139_spill] sm:$0xff] }
 0x364   : > { %14981 = vst [vmem:[#allocation86_spill] sm:$0xff] %v11127_v38  ;;  %14982 = vst [vmem:[#allocation223_spill] sm:$0xff] %v11129_v42  ;;  %v4161_v22 = vmul.f32 %v14984_v3, %v14984_v3  ;;  %v11141_v56 = vadd.f32 %v3892_v29, %v14977_v49  ;;  %v4168_v17 = vmul.f32 %v14985_v52, %v14985_v52  ;;  %v6722_v49 = vpop.f32.mrf.mxu1 }
 0x365   : > { %v11146_v21 = vadd.f32 %v3358_v28, %v14986_v4  ;;  %v11148_v61 = vadd.f32 %v4356_v46, %v4141_v24  ;;  %v11151_v23 = vadd.f32 %v3901_v37, %v14979_v32  ;;  %v11153_v35 = vadd.f32 %v4365_v58, %v4148_v27  ;;  %v3360_v30 = vpop.f32.mrf.mxu0  ;;  %v14989_v28 = vld [vmem:[#allocation141_spill] sm:$0xff] }
 0x366   : > { %v11156_v6 = vadd.f32 %v3910_v16, %v14983_v25  ;;  %v4175_v29 = vmul.f32 %v14988_v59, %v14988_v59  ;;  %v3919_v38 = vadd.f32 %v10776_v15, %v14984_v3  ;;  %v4182_v46 = vmul.f32 %v14989_v28, %v14989_v28  ;;  %v14990_v24 = vld [vmem:[#allocation89_spill] sm:$0xff]  ;;  %v14994_v3 = vld [vmem:[#allocation2_spill] sm:$0xff] }
 0x367   : > { %14987 = vst [vmem:[#allocation88_spill] sm:$0xff] %v11146_v21  ;;  %v11165_v4 = vadd.f32 %v3360_v30, %v14990_v24  ;;  %v11167_v37 = vadd.f32 %v6722_v49, %v6721_v19  ;;  %v4383_v27 = vadd.f32 %v10778_v41, %v4161_v22  ;;  %v14993_v16 = vld [vmem:[#allocation137_spill] sm:$0xff]  ;;  %v3928_v25 = vadd.f32 %v10786_v36, %v14985_v52  ;;  %v3364_v32 = vpop.f32.mrf.mxu0  ;;  %v6724_v21 = vpop.f32.mrf.mxu1  ;;  %v14996_v19 = vld [vmem:[#allocation140_spill] sm:$0xff] }
 0x368   : > { %v4162_v58 = vmul.f32 %v14993_v16, %v14993_v16  ;;  %v11174_v42 = vadd.f32 %v4374_v26, %v4155_v20  ;;  %v4392_v15 = vadd.f32 %v10795_v10, %v4168_v17  ;;  %v4169_v30 = vmul.f32 %v14994_v3, %v14994_v3  ;;  %v14997_v26 = vld [vmem:[#allocation142_spill] sm:$0xff] }
 0x369   : > { %14991 = vst [vmem:[#allocation89_spill] sm:$0xff] %v11165_v4  ;;  %14992 = vst [vmem:[#allocation224_spill] sm:$0xff] %v11167_v37  ;;  %v3937_v49 = vadd.f32 %v10799_v2, %v14988_v59  ;;  %v11182_v41 = vadd.f32 %v3364_v32, %v10493_v47  ;;  %v4401_v22 = vadd.f32 %v10805_v34, %v4175_v29  ;;  %v3366_v17 = vpop.f32.mrf.mxu0  ;;  %v6725_v24 = vpop.f32.mrf.mxu1  ;;  %v14998_v4 = vld [vmem:[#allocation4_spill] sm:$0xff]  ;;  %v15002_v59 = vld [vmem:[#allocation65_spill] sm:$0xff] }
 0x36a   : > { %v4176_v36 = vmul.f32 %v14996_v19, %v14996_v19  ;;  %v3946_v20 = vadd.f32 %v10809_v40, %v14989_v28  ;;  %v4189_v10 = vmul.f32 %v14997_v26, %v14997_v26  ;;  %v4410_v52 = vadd.f32 %v10816_v13, %v4182_v46  ;;  %v15001_v40 = vld [vmem:[#allocation6_spill] sm:$0xff] }
 0x36b   : > { %14995 = vst [vmem:[#allocation225_spill] sm:$0xff] %v11182_v41  ;;  %v4183_v2 = vmul.f32 %v14998_v4, %v14998_v4  ;;  %v11195_v47 = vadd.f32 %v3366_v17, %v10498_v55  ;;  %v11197_v34 = vadd.f32 %v6725_v24, %v6724_v21  ;;  %v11200_v32 = vadd.f32 %v3919_v38, %v14993_v16  ;;  %v3368_v13 = vpop.f32.mrf.mxu0  ;;  %v6727_v46 = vpop.f32.mrf.mxu1  ;;  %v15003_v21 = vld [vmem:[#allocation10_spill] sm:$0xff]  ;;  %v15004_v24 = vld [vmem:[#allocation64_spill] sm:$0xff] }
 0x36c   : > { %v11202_v29 = vadd.f32 %v4383_v27, %v4162_v58  ;;  %v4196_v28 = vmul.f32 %v15001_v40, %v15001_v40  ;;  %v4203_v41 = vmul.f32 %v15002_v59, %v15002_v59  ;;  %v11209_v37 = vadd.f32 %v3928_v25, %v14994_v3 }
 0x36d   : > { %14999 = vst [vmem:[#allocation226_spill] sm:$0xff] %v11195_v47  ;;  %15000 = vst [vmem:[#allocation227_spill] sm:$0xff] %v11197_v34  ;;  %v11212_v55 = vadd.f32 %v3937_v49, %v14996_v19  ;;  %v4210_v38 = vmul.f32 %v15003_v21, %v15003_v21  ;;  %v11216_v17 = vadd.f32 %v4392_v15, %v4169_v30  ;;  %v3369_v46 = vpop.f32.mrf.mxu0  ;;  %v6728_v3 = vpop.f32.mrf.mxu1  ;;  %v15005_v15 = vld [vmem:[#allocation148_spill] sm:$0xff]  ;;  %v15012_v34 = vld [vmem:[#allocation147_spill] sm:$0xff] }
 0x36e   : > { %v3955_v27 = vadd.f32 %v10822_v1, %v14997_v26  ;;  %v4419_v58 = vadd.f32 %v10835_v14, %v4189_v10  ;;  %v4190_v13 = vmul.f32 %v15004_v24, %v15004_v24  ;;  %v3964_v25 = vadd.f32 %v10839_v9, %v15001_v40  ;;  %v15006_v14 = vld [vmem:[#allocation144_spill] sm:$0xff]  ;;  %v15007_v26 = vld [vmem:[#allocation186_spill] sm:$0xff]  ;;  %v15008_v46 = vld [vmem:[#allocation187_spill] sm:$0xff] }
 0x36f   : > { %v11225_v49 = vadd.f32 %v4401_v22, %v4176_v36  ;;  %v11228_v19 = vadd.f32 %v3946_v20, %v14998_v4  ;;  %v4217_v30 = vmul.f32 %v15005_v15, %v15005_v15  ;;  %v11232_v16 = vadd.f32 %v4410_v52, %v4183_v2  ;;  %v6746_v22 = vpop.f32.mrf.mxu0  ;;  %v3709_v36 = vpop.f32.mrf.mxu1  ;;  %v15009_v40 = vld [vmem:[#allocation66_spill] sm:$0xff]  ;;  %v15010_v4 = vld [vmem:[#allocation188_spill] sm:$0xff]  ;;  %v15011_v52 = vld [vmem:[#allocation189_spill] sm:$0xff] }
 0x370   : > { %v4428_v1 = vadd.f32 %v10845_v8, %v4196_v28  ;;  %v4197_v10 = vmul.f32 %v15006_v14, %v15006_v14  ;;  %v3973_v9 = vadd.f32 %v15007_v26, %v15002_v59  ;;  %v4437_v3 = vadd.f32 %v15008_v46, %v4203_v41  ;;  %v15015_v26 = vld [vmem:[#allocation91_spill] sm:$0xff] }
 0x371   : > { %v4204_v20 = vmul.f32 %v15009_v40, %v15009_v40  ;;  %v3982_v47 = vadd.f32 %v15010_v4, %v15003_v21  ;;  %v4446_v2 = vadd.f32 %v15011_v52, %v4210_v38  ;;  %v4211_v8 = vmul.f32 %v15012_v34, %v15012_v34  ;;  %v6747_v59 = vpop.f32.mrf.mxu0  ;;  %v3711_v48 = vpop.f32.mrf.mxu1  ;;  %v15016_v4 = vld [vmem:[#allocation191_spill] sm:$0xff]  ;;  %v15017_v38 = vld [vmem:[#allocation192_spill] sm:$0xff] }
 0x372   : > { %v11248_v28 = vadd.f32 %v3955_v27, %v15004_v24  ;;  %v11250_v53 = vadd.f32 %v4419_v58, %v4190_v13  ;;  %v11253_v41 = vadd.f32 %v3964_v25, %v15006_v14  ;;  %v4093_v46 = vmul.f32 %v15015_v26, %v15015_v26  ;;  %v15020_v13 = vld [vmem:[#allocation68_spill] sm:$0xff] }
 0x373   : > { %v3991_v21 = vadd.f32 %v15016_v4, %v15005_v15  ;;  %v4455_v52 = vadd.f32 %v15017_v38, %v4217_v30  ;;  %v4218_v43 = vmul.f32 %v15018_v18, %v15018_v18  ;;  %v6748_v27 = vadd.f32 %v6747_v59, %v6746_v22  ;;  %v6749_v14 = vpop.f32.mrf.mxu0  ;;  %v3712_v24 = vpop.f32.mrf.mxu1  ;;  %v15021_v38 = vld [vmem:[#allocation94_spill] sm:$0xff] }
 0x374   : > { %15013 = vst [vmem:[#allocation186_spill] sm:$0xff] %v11250_v53  ;;  %15014 = vst [vmem:[#allocation187_spill] sm:$0xff] %v11253_v41  ;;  %v11263_v58 = vadd.f32 %v3973_v9, %v15009_v40  ;;  %v4224_v25 = vmul.f32 %v15020_v13, %v15020_v13  ;;  %v3830_v48 = vadd.f32 %v11018_v60, %v15015_v26  ;;  %v15022_v9 = vld [vmem:[#allocation60_spill] sm:$0xff] }
 0x375   : > { %v11269_v41 = vadd.f32 %v4428_v1, %v4197_v10  ;;  %v11271_v4 = vadd.f32 %v4437_v3, %v4204_v20  ;;  %v11274_v30 = vadd.f32 %v3982_v47, %v15012_v34  ;;  %v3558_v59 = vadd.f32 %v6748_v27, %v15021_v38  ;;  %v6750_v40 = vpop.f32.mrf.mxu0  ;;  %v15023_v53 = vld [vmem:[#allocation92_spill] sm:$0xff]  ;;  %v15030_v34 = vld [vmem:[#allocation3_spill] sm:$0xff] }
 0x376   : > { %15019 = vst [vmem:[#allocation188_spill] sm:$0xff] %v11263_v58  ;;  %v11277_v22 = vadd.f32 %v4446_v2, %v4211_v8  ;;  %v3840_v15 = vadd.f32 %v11055_v0, %v15022_v9  ;;  %v3714_v58 = vpop.f32.mrf.mxu1  ;;  %v4094_v60 = vmul.f32 %v15023_v53, %v15023_v53  ;;  %v4295_v1 = vadd.f32 %v11037_v45, %v4093_v46  ;;  %v15026_v2 = vld [vmem:[#allocation193_spill] sm:$0xff]  ;;  %v15027_v46 = vld [vmem:[#allocation14_spill] sm:$0xff] }
 0x377   : > { %v11285_v10 = vadd.f32 %v3991_v21, %v15018_v18  ;;  %v11287_v47 = vadd.f32 %v4455_v52, %v4218_v43  ;;  %v11289_v3 = vadd.f32 %v3709_v36, %v3558_v59  ;;  %v6751_v20 = vadd.f32 %v6750_v40, %v6749_v14  ;;  %v6752_v58 = vpop.f32.mrf.mxu0  ;;  %v15028_v43 = vld [vmem:[#allocation62_spill] sm:$0xff]  ;;  %v15029_v36 = vld [vmem:[#allocation151_spill] sm:$0xff] }
 0x378   : > { %v4000_v8 = vadd.f32 %v15026_v2, %v15020_v13  ;;  %v4464_v0 = vadd.f32 %v10896_v11, %v4224_v25  ;;  %v4100_v27 = vmul.f32 %v15022_v9, %v15022_v9  ;;  %v3717_v38 = vpop.f32.mrf.mxu1  ;;  %v3831_v45 = vadd.f32 %v3830_v48, %v15023_v53  ;;  %v15032_v53 = vld [vmem:[#allocation5_spill] sm:$0xff] }
 0x379   : > { %15024 = vst [vmem:[#allocation189_spill] sm:$0xff] %v11287_v47  ;;  %15025 = vst [vmem:[#allocation191_spill] sm:$0xff] %v11289_v3  ;;  %v4225_v21 = vmul.f32 %v15027_v46, %v15027_v46  ;;  %v3561_v52 = vadd.f32 %v6751_v20, %v15028_v43  ;;  %v3833_v40 = vsel %vm3832_vm2, %v11289_v3, 0.0  ;;  %v4095_v14 = vmul.f32 %v11289_v3, %v11289_v3  ;;  %v6753_v25 = vpop.f32.mrf.mxu0 }
 0x37a   : > { %v4231_v11 = vmul.f32 %v15029_v36, %v15029_v36  ;;  %v3834_v59 = vadd.f32 %v3833_v40, %v3831_v45  ;;  %v3719_v2 = vpop.f32.mrf.mxu1  ;;  %v4296_v13 = vadd.f32 %v4295_v1, %v4094_v60  ;;  %v3841_v48 = vadd.f32 %v3840_v15, %v15030_v34  ;;  %v15033_v1 = vld [vmem:[#allocation7_spill] sm:$0xff] }
 0x37b   : > { %v11307_v18 = vadd.f32 %v3712_v24, %v3561_v52  ;;  %v6754_v9 = vadd.f32 %v6753_v25, %v6752_v58  ;;  %v4297_v20 = vsel %vm3832_vm2, %v4095_v14, 0.0  ;;  %v4101_v43 = vmul.f32 %v15030_v34, %v15030_v34  ;;  %v6755_v47 = vpop.f32.mrf.mxu0  ;;  %v15034_v40 = vld [vmem:[#allocation195_spill] sm:$0xff]  ;;  %v15035_v25 = vld [vmem:[#allocation9_spill] sm:$0xff]  ;;  %v15036_v2 = vld [vmem:[#allocation196_spill] sm:$0xff] }
 0x37c   : > { %v3849_v3 = vadd.f32 %v11065_v57, %v15032_v53  ;;  %v4107_v26 = vmul.f32 %v15032_v53, %v15032_v53  ;;  %3835 = vadd.xlane.f32.xlu0 %v3834_v59  ;;  %v4298_v45 = vadd.f32 %v4297_v20, %v4296_v13  ;;  %v3720_v60 = vpop.f32.mrf.mxu1  ;;  %v4304_v15 = vadd.f32 %v11062_v54, %v4100_v27  ;;  %v15038_v53 = vld [vmem:[#allocation63_spill] sm:$0xff] }
 0x37d   : > { %15031 = vst [vmem:[#allocation192_spill] sm:$0xff] %v11307_v18  ;;  %v11318_v24 = vadd.f32 %v4000_v8, %v15027_v46  ;;  %v3566_v58 = vadd.f32 %v6754_v9, %v15033_v1  ;;  %v3842_v52 = vsel %vm3832_vm2, %v11307_v18, 0.0  ;;  %v4102_v57 = vmul.f32 %v11307_v18, %v11307_v18  ;;  %v6756_v59 = vpop.f32.mrf.mxu0 }
 0x37e   : > { %v4009_v14 = vadd.f32 %v15034_v40, %v15029_v36  ;;  %v4114_v13 = vmul.f32 %v15035_v25, %v15035_v25  ;;  %4299 = vadd.xlane.f32.xlu1 %v4298_v45  ;;  %v3843_v54 = vadd.f32 %v3842_v52, %v3841_v48  ;;  %v3722_v27 = vpop.f32.mrf.mxu1  ;;  %v11329_v8 = vadd.f32 %v4464_v0, %v4225_v21  ;;  %v15039_v0 = vld [vmem:[#allocation153_spill] sm:$0xff] }
 0x37f   : > { %v4473_v9 = vadd.f32 %v15036_v2, %v4231_v11  ;;  %v11332_v20 = vadd.f32 %v3717_v38, %v3566_v58  ;;  %v6757_v1 = vadd.f32 %v6756_v59, %v6755_v47  ;;  %v4306_v46 = vsel %vm3832_vm2, %v4102_v57, 0.0  ;;  %v6758_v40 = vpop.f32.mrf.mxu0  ;;  %v15040_v11 = vld [vmem:[#allocation13_spill] sm:$0xff] }
 0x380   : > { %v4108_v18 = vmul.f32 %v15038_v53, %v15038_v53  ;;  %3844 = vadd.xlane.f32.xlu0 %v3843_v54  ;;  %v3850_v36 = vadd.f32 %v3849_v3, %v15038_v53  ;;  %v4305_v34 = vadd.f32 %v4304_v15, %v4101_v43  ;;  %v3725_v45 = vpop.f32.mrf.mxu1  ;;  %v4313_v48 = vadd.f32 %v11067_v63, %v4107_v26  ;;  %v15041_v3 = vld [vmem:[#allocation11_spill] sm:$0xff] }
 0x381   : > { %15037 = vst [vmem:[#allocation94_spill] sm:$0xff] %v11332_v20  ;;  %v4232_v21 = vmul.f32 %v15039_v0, %v15039_v0  ;;  %v3569_v38 = vadd.f32 %v6757_v1, %v15040_v11  ;;  %v3851_v47 = vsel %vm3832_vm2, %v11332_v20, 0.0  ;;  %v4109_v58 = vmul.f32 %v11332_v20, %v11332_v20  ;;  %v6759_v52 = vpop.f32.mrf.mxu0  ;;  %v15043_v11 = vld [vmem:[#allocation15_spill] sm:$0xff] }
 0x382   : > { %v3852_v57 = vadd.f32 %v3851_v47, %v3850_v36  ;;  %v4307_v59 = vadd.f32 %v4306_v46, %v4305_v34  ;;  %v3727_v54 = vpop.f32.mrf.mxu1  ;;  %v4115_v43 = vmul.f32 %v15041_v3, %v15041_v3  ;;  %v4322_v63 = vadd.f32 %v11081_v7, %v4114_v13  ;;  %v15045_v13 = vld [vmem:[#allocation19_spill] sm:$0xff] }
 0x383   : > { %v11350_v26 = vadd.f32 %v4009_v14, %v15039_v0  ;;  %v11352_v15 = vadd.f32 %v3720_v60, %v3569_v38  ;;  %v6760_v27 = vadd.f32 %v6759_v52, %v6758_v40  ;;  %v4315_v2 = vsel %vm3832_vm2, %v4109_v58, 0.0  ;;  %v6761_v46 = vpop.f32.mrf.mxu0  ;;  %v15044_v14 = vld [vmem:[#allocation69_spill] sm:$0xff] }
 0x384   : > { %v3858_v1 = vadd.f32 %v11074_v44, %v15035_v25  ;;  %v4121_v34 = vmul.f32 %v15043_v11, %v15043_v11  ;;  %3853 = vadd.xlane.f32.xlu1 %v3852_v57  ;;  %4308 = vadd.xlane.f32.xlu0 %v4307_v59  ;;  %v4314_v36 = vadd.f32 %v4313_v48, %v4108_v18  ;;  %v3728_v47 = vpop.f32.mrf.mxu1  ;;  %v15046_v58 = vld [vmem:[#allocation21_spill] sm:$0xff] }
 0x385   : > { %15042 = vst [vmem:[#allocation193_spill] sm:$0xff] %v11352_v15  ;;  %v11359_v7 = vadd.f32 %v4473_v9, %v4232_v21  ;;  %v4238_v60 = vmul.f32 %v15044_v14, %v15044_v14  ;;  %v3574_v40 = vadd.f32 %v6760_v27, %v15045_v13  ;;  %v4116_v38 = vmul.f32 %v11352_v15, %v11352_v15  ;;  %v6762_v57 = vpop.f32.mrf.mxu0  ;;  %v15047_v13 = vld [vmem:[#allocation17_spill] sm:$0xff] }
 0x386   : > { %v3867_v44 = vadd.f32 %v11084_v62, %v15043_v11  ;;  %v4128_v52 = vmul.f32 %v15046_v58, %v15046_v58  ;;  %v4316_v59 = vadd.f32 %v4315_v2, %v4314_v36  ;;  %v4323_v18 = vadd.f32 %v4322_v63, %v4115_v43  ;;  %v3730_v48 = vpop.f32.mrf.mxu1  ;;  %v15048_v63 = vld [vmem:[#allocation25_spill] sm:$0xff] }
 0x387   : > { %v6763_v9 = vadd.f32 %v6762_v57, %v6761_v46  ;;  %v11370_v21 = vadd.f32 %v3725_v45, %v3574_v40  ;;  %v4324_v54 = vsel %vm3832_vm2, %v4116_v38, 0.0  ;;  %v3860_v27 = vsel %vm3832_vm2, %v11352_v15, 0.0  ;;  %v6764_v25 = vpop.f32.mrf.mxu0  ;;  %v15049_v40 = vld [vmem:[#allocation23_spill] sm:$0xff] }
 0x388   : > { %v4122_v0 = vmul.f32 %v15047_v13, %v15047_v13  ;;  %4317 = vadd.xlane.f32.xlu1 %v4316_v59  ;;  %v4325_v62 = vadd.f32 %v4324_v54, %v4323_v18  ;;  %v3859_v11 = vadd.f32 %v3858_v1, %v15041_v3  ;;  %v3733_v20 = vpop.f32.mrf.mxu1  ;;  %v4331_v43 = vadd.f32 %v11086_v51, %v4121_v34 }
 0x389   : > { %v4018_v45 = vadd.f32 %v10917_v5, %v15044_v14  ;;  %v3577_v2 = vadd.f32 %v6763_v9, %v15048_v63  ;;  %v3869_v46 = vsel %vm3832_vm2, %v11370_v21, 0.0  ;;  %v4123_v36 = vmul.f32 %v11370_v21, %v11370_v21  ;;  %v6765_v57 = vpop.f32.mrf.mxu0  ;;  %v15050_v5 = vld [vmem:[#allocation199_spill] sm:$0xff] }
 0x38a   : > { %v4129_v38 = vmul.f32 %v15049_v40, %v15049_v40  ;;  %4326 = vadd.xlane.f32.xlu0 %v4325_v62  ;;  %v3861_v1 = vadd.f32 %v3860_v27, %v3859_v11  ;;  %v3868_v59 = vadd.f32 %v3867_v44, %v15047_v13  ;;  %v3735_v51 = vpop.f32.mrf.mxu1  ;;  %v4340_v34 = vadd.f32 %v11131_v31, %v4128_v52  ;;  %v15052_v14 = vld [vmem:[#allocation27_spill] sm:$0xff] }
 0x38b   : > { %v4482_v18 = vadd.f32 %v15050_v5, %v4238_v60  ;;  %v6766_v48 = vadd.f32 %v6765_v57, %v6764_v25  ;;  %v11391_v9 = vadd.f32 %v3728_v47, %v3577_v2  ;;  %v4333_v54 = vsel %vm3832_vm2, %v4123_v36, 0.0  ;;  %v6767_v62 = vpop.f32.mrf.mxu0  ;;  %v15053_v51 = vld [vmem:[#allocation16_spill] sm:$0xff]  ;;  %v15054_v47 = vld [vmem:[#allocation31_spill] sm:$0xff]  ;;  %v15055_v2 = vld [vmem:[#allocation33_spill] sm:$0xff] }
 0x38c   : > { %v3876_v63 = vadd.f32 %v11101_v39, %v15046_v58  ;;  %v4135_v15 = vmul.f32 %v15052_v14, %v15052_v14  ;;  %3862 = vadd.xlane.f32.xlu1 %v3861_v1  ;;  %v3870_v11 = vadd.f32 %v3869_v46, %v3868_v59  ;;  %v4332_v44 = vadd.f32 %v4331_v43, %v4122_v0  ;;  %v3736_v27 = vpop.f32.mrf.mxu1 }
 0x38d   : > { %15051 = vst [vmem:[#allocation62_spill] sm:$0xff] %v11391_v9  ;;  %v11399_v31 = vadd.f32 %v4018_v45, %v15053_v51  ;;  %v4239_v25 = vmul.f32 %v15053_v51, %v15053_v51  ;;  %v3582_v60 = vadd.f32 %v6766_v48, %v15054_v47  ;;  %v4130_v52 = vmul.f32 %v11391_v9, %v11391_v9  ;;  %v6768_v46 = vpop.f32.mrf.mxu0  ;;  %v15057_v48 = vld [vmem:[#allocation29_spill] sm:$0xff] }
 0x38e   : > { %v3885_v39 = vadd.f32 %v11124_v50, %v15052_v14  ;;  %v4142_v36 = vmul.f32 %v15055_v2, %v15055_v2  ;;  %3871 = vadd.xlane.f32.xlu0 %v3870_v11  ;;  %v4334_v0 = vadd.f32 %v4333_v54, %v4332_v44  ;;  %v4341_v43 = vadd.f32 %v4340_v34, %v4129_v38  ;;  %v3738_v45 = vpop.f32.mrf.mxu1  ;;  %v15058_v34 = vld [vmem:[#allocation155_spill] sm:$0xff]  ;;  %v15059_v54 = vld [vmem:[#allocation37_spill] sm:$0xff] }
 0x38f   : > { %v6769_v57 = vadd.f32 %v6768_v46, %v6767_v62  ;;  %v11410_v1 = vadd.f32 %v3733_v20, %v3582_v60  ;;  %v4342_v59 = vsel %vm3832_vm2, %v4130_v52, 0.0  ;;  %v3878_v5 = vsel %vm3832_vm2, %v11391_v9, 0.0  ;;  %v6770_v50 = vpop.f32.mrf.mxu0  ;;  %v15060_v52 = vld [vmem:[#allocation35_spill] sm:$0xff]  ;;  %v15061_v45 = vld [vmem:[#allocation200_spill] sm:$0xff] }
 0x390   : > { %v4136_v47 = vmul.f32 %v15057_v48, %v15057_v48  ;;  %4335 = vadd.xlane.f32.xlu1 %v4334_v0  ;;  %v4343_v51 = vadd.f32 %v4342_v59, %v4341_v43  ;;  %v3877_v58 = vadd.f32 %v3876_v63, %v15049_v40  ;;  %v3741_v11 = vpop.f32.mrf.mxu1  ;;  %v4349_v38 = vadd.f32 %v11133_v33, %v4135_v15 }
 0x391   : > { %15056 = vst [vmem:[#allocation7_spill] sm:$0xff] %v11410_v1  ;;  %v4245_v20 = vmul.f32 %v15058_v34, %v15058_v34  ;;  %v3585_v62 = vadd.f32 %v6769_v57, %v15059_v54  ;;  %v3887_v44 = vsel %vm3832_vm2, %v11410_v1, 0.0  ;;  %v4137_v60 = vmul.f32 %v11410_v1, %v11410_v1  ;;  %v6771_v0 = vpop.f32.mrf.mxu0  ;;  %v15063_v1 = vld [vmem:[#allocation39_spill] sm:$0xff] }
 0x392   : > { %v4143_v46 = vmul.f32 %v15060_v52, %v15060_v52  ;;  %4344 = vadd.xlane.f32.xlu0 %v4343_v51  ;;  %v3879_v63 = vadd.f32 %v3878_v5, %v3877_v58  ;;  %v3886_v43 = vadd.f32 %v3885_v39, %v15057_v48  ;;  %v3743_v33 = vpop.f32.mrf.mxu1  ;;  %v4358_v15 = vadd.f32 %v11148_v61, %v4142_v36  ;;  %v15064_v61 = vld [vmem:[#allocation201_spill] sm:$0xff]  ;;  %v15065_v48 = vld [vmem:[#allocation43_spill] sm:$0xff] }
 0x393   : > { %v4027_v57 = vadd.f32 %v15061_v45, %v15058_v34  ;;  %v6772_v59 = vadd.f32 %v6771_v0, %v6770_v50  ;;  %v11432_v54 = vadd.f32 %v3736_v27, %v3585_v62  ;;  %v4351_v9 = vsel %vm3832_vm2, %v4137_v60, 0.0  ;;  %v6773_v58 = vpop.f32.mrf.mxu0  ;;  %v15066_v62 = vld [vmem:[#allocation45_spill] sm:$0xff] }
 0x394   : > { %v3894_v40 = vadd.f32 %v11141_v56, %v15055_v2  ;;  %v4149_v51 = vmul.f32 %v15063_v1, %v15063_v1  ;;  %3880 = vadd.xlane.f32.xlu1 %v3879_v63  ;;  %v3888_v39 = vadd.f32 %v3887_v44, %v3886_v43  ;;  %v4350_v5 = vadd.f32 %v4349_v38, %v4136_v47  ;;  %v3744_v33 = vpop.f32.mrf.mxu1 }
 0x395   : > { %15062 = vst [vmem:[#allocation195_spill] sm:$0xff] %v11432_v54  ;;  %v4491_v36 = vadd.f32 %v15064_v61, %v4245_v20  ;;  %v3590_v45 = vadd.f32 %v6772_v59, %v15065_v48  ;;  %v4144_v27 = vmul.f32 %v11432_v54, %v11432_v54  ;;  %v11443_v50 = vadd.f32 %v4482_v18, %v4239_v25  ;;  %v6774_v0 = vpop.f32.mrf.mxu0  ;;  %v15067_v25 = vld [vmem:[#allocation41_spill] sm:$0xff] }
 0x396   : > { %v3903_v56 = vadd.f32 %v11151_v23, %v15063_v1  ;;  %v4156_v60 = vmul.f32 %v15066_v62, %v15066_v62  ;;  %3889 = vadd.xlane.f32.xlu0 %v3888_v39  ;;  %v4352_v44 = vadd.f32 %v4351_v9, %v4350_v5  ;;  %v4359_v47 = vadd.f32 %v4358_v15, %v4143_v46  ;;  %v3746_v38 = vpop.f32.mrf.mxu1  ;;  %v15068_v46 = vld [vmem:[#allocation70_spill] sm:$0xff]  ;;  %v15069_v15 = vld [vmem:[#allocation49_spill] sm:$0xff] }
 0x397   : > { %v6775_v63 = vadd.f32 %v6774_v0, %v6773_v58  ;;  %v11449_v20 = vadd.f32 %v3741_v11, %v3590_v45  ;;  %v4360_v48 = vsel %vm3832_vm2, %v4144_v27, 0.0  ;;  %v3896_v18 = vsel %vm3832_vm2, %v11432_v54, 0.0  ;;  %v6776_v23 = vpop.f32.mrf.mxu0  ;;  %v15070_v27 = vld [vmem:[#allocation47_spill] sm:$0xff] }
 0x398   : > { %v4150_v43 = vmul.f32 %v15067_v25, %v15067_v25  ;;  %4353 = vadd.xlane.f32.xlu1 %v4352_v44  ;;  %v4361_v59 = vadd.f32 %v4360_v48, %v4359_v47  ;;  %v3895_v61 = vadd.f32 %v3894_v40, %v15060_v52  ;;  %v3749_v39 = vpop.f32.mrf.mxu1  ;;  %v4367_v9 = vadd.f32 %v11153_v35, %v4149_v51  ;;  %v15072_v54 = vld [vmem:[#allocation51_spill] sm:$0xff] }
 0x399   : > { %v4246_v11 = vmul.f32 %v15068_v46, %v15068_v46  ;;  %v3593_v58 = vadd.f32 %v6775_v63, %v15069_v15  ;;  %v3905_v5 = vsel %vm3832_vm2, %v11449_v20, 0.0  ;;  %v4151_v45 = vmul.f32 %v11449_v20, %v11449_v20  ;;  %v6777_v44 = vpop.f32.mrf.mxu0 }
 0x39a   : > { %v4157_v0 = vmul.f32 %v15070_v27, %v15070_v27  ;;  %4362 = vadd.xlane.f32.xlu0 %v4361_v59  ;;  %v3897_v40 = vadd.f32 %v3896_v18, %v3895_v61  ;;  %v3904_v47 = vadd.f32 %v3903_v56, %v15067_v25  ;;  %v3751_v35 = vpop.f32.mrf.mxu1  ;;  %v4376_v51 = vadd.f32 %v11174_v42, %v4156_v60 }
 0x39b   : > { %v11470_v38 = vadd.f32 %v4027_v57, %v15068_v46  ;;  %v6778_v63 = vadd.f32 %v6777_v44, %v6776_v23  ;;  %v11472_v48 = vadd.f32 %v3744_v33, %v3593_v58  ;;  %v4369_v15 = vsel %vm3832_vm2, %v4151_v45, 0.0  ;;  %v6779_v18 = vpop.f32.mrf.mxu0  ;;  %v15073_v57 = vld [vmem:[#allocation71_spill] sm:$0xff]  ;;  %v15075_v45 = vld [vmem:[#allocation57_spill] sm:$0xff] }
 0x39c   : > { %v3912_v34 = vadd.f32 %v11156_v6, %v15066_v62  ;;  %v4163_v59 = vmul.f32 %v15072_v54, %v15072_v54  ;;  %3898 = vadd.xlane.f32.xlu1 %v3897_v40  ;;  %v3906_v56 = vadd.f32 %v3905_v5, %v3904_v47  ;;  %v4368_v61 = vadd.f32 %v4367_v9, %v4150_v43  ;;  %v3752_v35 = vpop.f32.mrf.mxu1  ;;  %v15074_v33 = vld [vmem:[#allocation55_spill] sm:$0xff] }
 0x39d   : > { %15071 = vst [vmem:[#allocation196_spill] sm:$0xff] %v11472_v48  ;;  %v11479_v42 = vadd.f32 %v4491_v36, %v4246_v11  ;;  %v4252_v60 = vmul.f32 %v15073_v57, %v15073_v57  ;;  %v3598_v23 = vadd.f32 %v6778_v63, %v15074_v33  ;;  %v4158_v58 = vmul.f32 %v11472_v48, %v11472_v48  ;;  %v6780_v40 = vpop.f32.mrf.mxu0  ;;  %v15076_v33 = vld [vmem:[#allocation53_spill] sm:$0xff] }
 0x39e   : > { %v3921_v6 = vadd.f32 %v11200_v32, %v15072_v54  ;;  %v4170_v44 = vmul.f32 %v15075_v45, %v15075_v45  ;;  %3907 = vadd.xlane.f32.xlu0 %v3906_v56  ;;  %v4370_v43 = vadd.f32 %v4369_v15, %v4368_v61  ;;  %v4377_v9 = vadd.f32 %v4376_v51, %v4157_v0  ;;  %v3754_v36 = vpop.f32.mrf.mxu1  ;;  %v15077_v51 = vld [vmem:[#allocation202_spill] sm:$0xff]  ;;  %v15078_v15 = vld [vmem:[#allocation61_spill] sm:$0xff] }
 0x39f   : > { %v6781_v11 = vadd.f32 %v6780_v40, %v6779_v18  ;;  %v11490_v5 = vadd.f32 %v3749_v39, %v3598_v23  ;;  %v4378_v47 = vsel %vm3832_vm2, %v4158_v58, 0.0  ;;  %v3914_v63 = vsel %vm3832_vm2, %v11472_v48, 0.0  ;;  %v6782_v32 = vpop.f32.mrf.mxu0  ;;  %v15079_v58 = vld [vmem:[#allocation59_spill] sm:$0xff] }
 0x3a0   : > { %v4164_v46 = vmul.f32 %v15076_v33, %v15076_v33  ;;  %4371 = vadd.xlane.f32.xlu1 %v4370_v43  ;;  %v4379_v62 = vadd.f32 %v4378_v47, %v4377_v9  ;;  %v3913_v54 = vadd.f32 %v3912_v34, %v15070_v27  ;;  %v3757_v56 = vpop.f32.mrf.mxu1  ;;  %v4385_v0 = vadd.f32 %v11202_v29, %v4163_v59  ;;  %v15080_v36 = vld [vmem:[#allocation203_spill] sm:$0xff] }
 0x3a1   : > { %v4036_v39 = vadd.f32 %v15077_v51, %v15073_v57  ;;  %v3601_v18 = vadd.f32 %v6781_v11, %v15078_v15  ;;  %v3923_v61 = vsel %vm3832_vm2, %v11490_v5, 0.0  ;;  %v4165_v23 = vmul.f32 %v11490_v5, %v11490_v5  ;;  %v6783_v43 = vpop.f32.mrf.mxu0  ;;  %v15082_v48 = vld [vmem:[#allocation111_spill] sm:$0xff] }
 0x3a2   : > { %v4171_v40 = vmul.f32 %v15079_v58, %v15079_v58  ;;  %4380 = vadd.xlane.f32.xlu0 %v4379_v62  ;;  %v3915_v34 = vadd.f32 %v3914_v63, %v3913_v54  ;;  %v3922_v9 = vadd.f32 %v3921_v6, %v15076_v33  ;;  %v3759_v29 = vpop.f32.mrf.mxu1  ;;  %v4394_v59 = vadd.f32 %v11216_v17, %v4170_v44 }
 0x3a3   : > { %v4500_v47 = vadd.f32 %v15080_v36, %v4252_v60  ;;  %v6784_v11 = vadd.f32 %v6783_v43, %v6782_v32  ;;  %v11511_v51 = vadd.f32 %v3752_v35, %v3601_v18  ;;  %v4387_v15 = vsel %vm3832_vm2, %v4165_v23, 0.0  ;;  %v6785_v62 = vpop.f32.mrf.mxu0  ;;  %v15083_v29 = vld [vmem:[#allocation72_spill] sm:$0xff]  ;;  %v15084_v60 = vld [vmem:[#allocation173_spill] sm:$0xff] }
 0x3a4   : > { %v3930_v57 = vadd.f32 %v11209_v37, %v15075_v45  ;;  %v4177_v27 = vmul.f32 %v15082_v48, %v15082_v48  ;;  %3916 = vadd.xlane.f32.xlu1 %v3915_v34  ;;  %v3924_v54 = vadd.f32 %v3923_v61, %v3922_v9  ;;  %v4386_v6 = vadd.f32 %v4385_v0, %v4164_v46  ;;  %v3760_v63 = vpop.f32.mrf.mxu1  ;;  %v15085_v18 = vld [vmem:[#allocation32_spill] sm:$0xff] }
 0x3a5   : > { %15081 = vst [vmem:[#allocation63_spill] sm:$0xff] %v11511_v51  ;;  %v11519_v17 = vadd.f32 %v4036_v39, %v15083_v29  ;;  %v4253_v35 = vmul.f32 %v15083_v29, %v15083_v29  ;;  %v3606_v44 = vadd.f32 %v6784_v11, %v15084_v60  ;;  %v4172_v32 = vmul.f32 %v11511_v51, %v11511_v51  ;;  %v6786_v61 = vpop.f32.mrf.mxu0  ;;  %v15087_v11 = vld [vmem:[#allocation77_spill] sm:$0xff] }
 0x3a6   : > { %v3939_v37 = vadd.f32 %v11212_v55, %v15082_v48  ;;  %v4184_v23 = vmul.f32 %v15085_v18, %v15085_v18  ;;  %3925 = vadd.xlane.f32.xlu0 %v3924_v54  ;;  %v4388_v46 = vadd.f32 %v4387_v15, %v4386_v6  ;;  %v4395_v0 = vadd.f32 %v4394_v59, %v4171_v40  ;;  %v3762_v39 = vpop.f32.mrf.mxu1  ;;  %v15088_v59 = vld [vmem:[#allocation22_spill] sm:$0xff] }
 0x3a7   : > { %v6787_v43 = vadd.f32 %v6786_v61, %v6785_v62  ;;  %v11530_v34 = vadd.f32 %v3757_v56, %v3606_v44  ;;  %v4396_v9 = vsel %vm3832_vm2, %v4172_v32, 0.0  ;;  %v3932_v36 = vsel %vm3832_vm2, %v11511_v51, 0.0  ;;  %v6788_v55 = vpop.f32.mrf.mxu0  ;;  %v15089_v15 = vld [vmem:[#allocation174_spill] sm:$0xff]  ;;  %v15090_v32 = vld [vmem:[#allocation161_spill] sm:$0xff]  ;;  %v15091_v39 = vld [vmem:[#allocation204_spill] sm:$0xff] }
 0x3a8   : > { %v4178_v60 = vmul.f32 %v15087_v11, %v15087_v11  ;;  %4389 = vadd.xlane.f32.xlu1 %v4388_v46  ;;  %v4397_v29 = vadd.f32 %v4396_v9, %v4395_v0  ;;  %v3931_v45 = vadd.f32 %v3930_v57, %v15079_v58  ;;  %v3765_v54 = vpop.f32.mrf.mxu1  ;;  %v4403_v40 = vadd.f32 %v11225_v49, %v4177_v27 }
 0x3a9   : > { %15086 = vst [vmem:[#allocation13_spill] sm:$0xff] %v11530_v34  ;;  %v4259_v56 = vmul.f32 %v15088_v59, %v15088_v59  ;;  %v3609_v62 = vadd.f32 %v6787_v43, %v15089_v15  ;;  %v3941_v6 = vsel %vm3832_vm2, %v11530_v34, 0.0  ;;  %v4179_v44 = vmul.f32 %v11530_v34, %v11530_v34  ;;  %v6789_v46 = vpop.f32.mrf.mxu0  ;;  %v15093_v34 = vld [vmem:[#allocation175_spill] sm:$0xff] }
 0x3aa   : > { %v4185_v61 = vmul.f32 %v15090_v32, %v15090_v32  ;;  %4398 = vadd.xlane.f32.xlu0 %v4397_v29  ;;  %v3933_v57 = vadd.f32 %v3932_v36, %v3931_v45  ;;  %v3940_v0 = vadd.f32 %v3939_v37, %v15087_v11  ;;  %v3767_v49 = vpop.f32.mrf.mxu1  ;;  %v4412_v27 = vadd.f32 %v11232_v16, %v4184_v23  ;;  %v15094_v23 = vld [vmem:[#allocation177_spill] sm:$0xff]  ;;  %v4975_v11 = vld [vmem:[%s12143_s29 + $0x80] sm:$0xff] }
 0x3ab   : > { %v4045_v43 = vadd.f32 %v15091_v39, %v15088_v59  ;;  %v6790_v9 = vadd.f32 %v6789_v46, %v6788_v55  ;;  %v11552_v15 = vadd.f32 %v3760_v63, %v3609_v62  ;;  %v4405_v51 = vsel %vm3832_vm2, %v4179_v44, 0.0  ;;  %v6791_v45 = vpop.f32.mrf.mxu0  ;;  %v15095_v62 = vld [vmem:[#allocation78_spill] sm:$0xff] }
 0x3ac   : > { %v3948_v58 = vadd.f32 %v11228_v19, %v15085_v18  ;;  %v4191_v29 = vmul.f32 %v15093_v34, %v15093_v34  ;;  %3934 = vadd.xlane.f32.xlu1 %v3933_v57  ;;  %v3942_v37 = vadd.f32 %v3941_v6, %v3940_v0  ;;  %v4404_v36 = vadd.f32 %v4403_v40, %v4178_v60  ;;  %v3768_v49 = vpop.f32.mrf.mxu1  ;;  %v15104_v18 = vld [vmem:[#allocation179_spill] sm:$0xff] }
 0x3ad   : > { %15092 = vst [vmem:[#allocation11_spill] sm:$0xff] %v11552_v15  ;;  %v4509_v16 = vadd.f32 %v10957_v12, %v4259_v56  ;;  %v3614_v39 = vadd.f32 %v6790_v9, %v15094_v23  ;;  %v4186_v63 = vmul.f32 %v11552_v15, %v11552_v15  ;;  %v11563_v55 = vadd.f32 %v4500_v47, %v4253_v35  ;;  %v6792_v46 = vpop.f32.mrf.mxu0  ;;  %v15097_v35 = vld [vmem:[#allocation176_spill] sm:$0xff] }
 0x3ae   : > { %v3957_v19 = vadd.f32 %v11248_v28, %v15093_v34  ;;  %v4198_v44 = vmul.f32 %v15095_v62, %v15095_v62  ;;  %3943 = vadd.xlane.f32.xlu0 %v3942_v37  ;;  %v4406_v6 = vadd.f32 %v4405_v51, %v4404_v36  ;;  %v4413_v60 = vadd.f32 %v4412_v27, %v4185_v61  ;;  %v3770_v40 = vpop.f32.mrf.mxu1  ;;  %v15098_v51 = vld [vmem:[#allocation186_spill] sm:$0xff]  ;;  %v15099_v27 = vld [vmem:[#allocation157_spill] sm:$0xff] }
 0x3af   : > { %v6793_v57 = vadd.f32 %v6792_v46, %v6791_v45  ;;  %v11569_v12 = vadd.f32 %v3765_v54, %v3614_v39  ;;  %v4414_v56 = vsel %vm3832_vm2, %v4186_v63, 0.0  ;;  %v3950_v47 = vsel %vm3832_vm2, %v11552_v15, 0.0  ;;  %v6794_v28 = vpop.f32.mrf.mxu0  ;;  %v15100_v45 = vld [vmem:[#allocation178_spill] sm:$0xff]  ;;  %v15101_v46 = vld [vmem:[#allocation79_spill] sm:$0xff]  ;;  %v15203_v34 = vld [vmem:[#allocation5_spill] sm:$0xff] }
 0x3b0   : > { %v4192_v0 = vmul.f32 %v15097_v35, %v15097_v35  ;;  %4407 = vadd.xlane.f32.xlu1 %v4406_v6  ;;  %v4415_v9 = vadd.f32 %v4414_v56, %v4413_v60  ;;  %v3949_v23 = vadd.f32 %v3948_v58, %v15090_v32  ;;  %v3773_v37 = vpop.f32.mrf.mxu1  ;;  %v4421_v61 = vadd.f32 %v15098_v51, %v4191_v29  ;;  %v15103_v15 = vld [vmem:[#allocation187_spill] sm:$0xff] }
 0x3b1   : > { %15096 = vst [vmem:[#allocation19_spill] sm:$0xff] %v11569_v12  ;;  %v4260_v54 = vmul.f32 %v15099_v27, %v15099_v27  ;;  %v3617_v36 = vadd.f32 %v6793_v57, %v15100_v45  ;;  %v3959_v39 = vsel %vm3832_vm2, %v11569_v12, 0.0  ;;  %v4193_v63 = vmul.f32 %v11569_v12, %v11569_v12  ;;  %v6795_v60 = vpop.f32.mrf.mxu0 }
 0x3b2   : > { %v4199_v6 = vmul.f32 %v15101_v46, %v15101_v46  ;;  %4416 = vadd.xlane.f32.xlu0 %v4415_v9  ;;  %v3951_v58 = vadd.f32 %v3950_v47, %v3949_v23  ;;  %v3958_v40 = vadd.f32 %v3957_v19, %v15097_v35  ;;  %v3775_v29 = vpop.f32.mrf.mxu1  ;;  %v4430_v56 = vadd.f32 %v11269_v41, %v4198_v44 }
 0x3b3   : > { %v11590_v51 = vadd.f32 %v4045_v43, %v15099_v27  ;;  %v6796_v57 = vadd.f32 %v6795_v60, %v6794_v28  ;;  %v11592_v45 = vadd.f32 %v3768_v49, %v3617_v36  ;;  %v4423_v59 = vsel %vm3832_vm2, %v4193_v63, 0.0  ;;  %v6797_v47 = vpop.f32.mrf.mxu0  ;;  %v15105_v43 = vld [vmem:[#allocation73_spill] sm:$0xff]  ;;  %v15108_v60 = vld [vmem:[#allocation36_spill] sm:$0xff] }
 0x3b4   : > { %v3966_v32 = vadd.f32 %v15103_v15, %v15095_v62  ;;  %v4205_v9 = vmul.f32 %v15104_v18, %v15104_v18  ;;  %3952 = vadd.xlane.f32.xlu1 %v3951_v58  ;;  %v3960_v19 = vadd.f32 %v3959_v39, %v3958_v40  ;;  %v4422_v23 = vadd.f32 %v4421_v61, %v4192_v0  ;;  %v3776_v29 = vpop.f32.mrf.mxu1  ;;  %v15106_v49 = vld [vmem:[#allocation181_spill] sm:$0xff]  ;;  %v15107_v15 = vld [vmem:[#allocation188_spill] sm:$0xff] }
 0x3b5   : > { %15102 = vst [vmem:[#allocation17_spill] sm:$0xff] %v11592_v45  ;;  %v11599_v41 = vadd.f32 %v4509_v16, %v4260_v54  ;;  %v4266_v44 = vmul.f32 %v15105_v43, %v15105_v43  ;;  %v3622_v28 = vadd.f32 %v6796_v57, %v15106_v49  ;;  %v4200_v36 = vmul.f32 %v11592_v45, %v11592_v45  ;;  %v6798_v58 = vpop.f32.mrf.mxu0  ;;  %v15110_v49 = vld [vmem:[#allocation180_spill] sm:$0xff] }
 0x3b6   : > { %v3975_v63 = vadd.f32 %v15107_v15, %v15104_v18  ;;  %v4212_v27 = vmul.f32 %v15108_v60, %v15108_v60  ;;  %3961 = vadd.xlane.f32.xlu0 %v3960_v19  ;;  %v4424_v0 = vadd.f32 %v4423_v59, %v4422_v23  ;;  %v4431_v61 = vadd.f32 %v4430_v56, %v4199_v6  ;;  %v3778_v16 = vpop.f32.mrf.mxu1  ;;  %v15111_v6 = vld [vmem:[#allocation206_spill] sm:$0xff] }
 0x3b7   : > { %v6799_v54 = vadd.f32 %v6798_v58, %v6797_v47  ;;  %v11610_v39 = vadd.f32 %v3773_v37, %v3622_v28  ;;  %v4432_v40 = vsel %vm3832_vm2, %v4200_v36, 0.0  ;;  %v3968_v57 = vsel %vm3832_vm2, %v11592_v45, 0.0  ;;  %v6800_v15 = vpop.f32.mrf.mxu0  ;;  %v15112_v56 = vld [vmem:[#allocation182_spill] sm:$0xff]  ;;  %v15113_v36 = vld [vmem:[#allocation164_spill] sm:$0xff]  ;;  %v15114_v16 = vld [vmem:[#allocation207_spill] sm:$0xff] }
 0x3b8   : > { %v4206_v62 = vmul.f32 %v15110_v49, %v15110_v49  ;;  %4425 = vadd.xlane.f32.xlu1 %v4424_v0  ;;  %v4433_v18 = vadd.f32 %v4432_v40, %v4431_v61  ;;  %v3967_v12 = vadd.f32 %v3966_v32, %v15101_v46  ;;  %v3781_v19 = vpop.f32.mrf.mxu1  ;;  %v4439_v59 = vadd.f32 %v11271_v4, %v4205_v9  ;;  %v15116_v45 = vld [vmem:[#allocation183_spill] sm:$0xff] }
 0x3b9   : > { %15109 = vst [vmem:[#allocation25_spill] sm:$0xff] %v11610_v39  ;;  %v4054_v37 = vadd.f32 %v15111_v6, %v15105_v43  ;;  %v3625_v47 = vadd.f32 %v6799_v54, %v15112_v56  ;;  %v3977_v23 = vsel %vm3832_vm2, %v11610_v39, 0.0  ;;  %v4207_v28 = vmul.f32 %v11610_v39, %v11610_v39  ;;  %v6801_v0 = vpop.f32.mrf.mxu0 }
 0x3ba   : > { %v4213_v58 = vmul.f32 %v15113_v36, %v15113_v36  ;;  %4434 = vadd.xlane.f32.xlu0 %v4433_v18  ;;  %v3969_v32 = vadd.f32 %v3968_v57, %v3967_v12  ;;  %v3976_v61 = vadd.f32 %v3975_v63, %v15110_v49  ;;  %v3783_v4 = vpop.f32.mrf.mxu1  ;;  %v4448_v9 = vadd.f32 %v11277_v22, %v4212_v27  ;;  %v12096_v49 = vld [vmem:[%s11860_s24 + $0xb8] sm:$0xff] }
 0x3bb   : > { %v4518_v40 = vadd.f32 %v15114_v16, %v4266_v44  ;;  %v6802_v54 = vadd.f32 %v6801_v0, %v6800_v15  ;;  %v11631_v6 = vadd.f32 %v3776_v29, %v3625_v47  ;;  %v4441_v56 = vsel %vm3832_vm2, %v4207_v28, 0.0  ;;  %v6803_v18 = vpop.f32.mrf.mxu0  ;;  %v15117_v4 = vld [vmem:[#allocation24_spill] sm:$0xff]  ;;  %v15118_v29 = vld [vmem:[#allocation185_spill] sm:$0xff]  ;;  %15179 = vst [vmem:[#allocation173_spill] sm:$0xff] %v12096_v49 }
 0x3bc   : > { %v3984_v43 = vadd.f32 %v11274_v30, %v15108_v60  ;;  %v4219_v46 = vmul.f32 %v15116_v45, %v15116_v45  ;;  %3970 = vadd.xlane.f32.xlu1 %v3969_v32  ;;  %v3978_v12 = vadd.f32 %v3977_v23, %v3976_v61  ;;  %v4440_v63 = vadd.f32 %v4439_v59, %v4206_v62  ;;  %v3784_v57 = vpop.f32.mrf.mxu1  ;;  %v15119_v47 = vld [vmem:[#allocation80_spill] sm:$0xff] }
 0x3bd   : > { %15115 = vst [vmem:[#allocation199_spill] sm:$0xff] %v11631_v6  ;;  %v11639_v22 = vadd.f32 %v4054_v37, %v15117_v4  ;;  %v4267_v27 = vmul.f32 %v15117_v4, %v15117_v4  ;;  %v3630_v44 = vadd.f32 %v6802_v54, %v15118_v29  ;;  %v4214_v15 = vmul.f32 %v11631_v6, %v11631_v6  ;;  %v6804_v23 = vpop.f32.mrf.mxu0  ;;  %v15121_v54 = vld [vmem:[#allocation184_spill] sm:$0xff] }
 0x3be   : > { %v3993_v30 = vadd.f32 %v11285_v10, %v15116_v45  ;;  %v4226_v28 = vmul.f32 %v15119_v47, %v15119_v47  ;;  %3979 = vadd.xlane.f32.xlu0 %v3978_v12  ;;  %v4442_v62 = vadd.f32 %v4441_v56, %v4440_v63  ;;  %v4449_v59 = vadd.f32 %v4448_v9, %v4213_v58  ;;  %v3786_v37 = vpop.f32.mrf.mxu1  ;;  %v15122_v56 = vld [vmem:[#allocation189_spill] sm:$0xff]  ;;  %v15123_v9 = vld [vmem:[#allocation159_spill] sm:$0xff]  ;;  %v15128_v45 = vld [vmem:[#allocation194_spill] sm:$0xff] }
 0x3bf   : > { %v6805_v0 = vadd.f32 %v6804_v23, %v6803_v18  ;;  %v11650_v32 = vadd.f32 %v3781_v19, %v3630_v44  ;;  %v4450_v61 = vsel %vm3832_vm2, %v4214_v15, 0.0  ;;  %v3986_v16 = vsel %vm3832_vm2, %v11631_v6, 0.0  ;;  %v6806_v10 = vpop.f32.mrf.mxu0  ;;  %v15124_v18 = vld [vmem:[#allocation190_spill] sm:$0xff]  ;;  %v15125_v23 = vld [vmem:[#allocation81_spill] sm:$0xff] }
 0x3c0   : > { %v4220_v29 = vmul.f32 %v15121_v54, %v15121_v54  ;;  %4443 = vadd.xlane.f32.xlu1 %v4442_v62  ;;  %v4451_v4 = vadd.f32 %v4450_v61, %v4449_v59  ;;  %v3985_v60 = vadd.f32 %v3984_v43, %v15113_v36  ;;  %v3789_v12 = vpop.f32.mrf.mxu1  ;;  %v4457_v58 = vadd.f32 %v15122_v56, %v4219_v46  ;;  %v15126_v56 = vld [vmem:[#allocation208_spill] sm:$0xff] }
 0x3c1   : > { %15120 = vst [vmem:[#allocation27_spill] sm:$0xff] %v11650_v32  ;;  %v4273_v19 = vmul.f32 %v15123_v9, %v15123_v9  ;;  %v3633_v63 = vadd.f32 %v6805_v0, %v15124_v18  ;;  %v3995_v44 = vsel %vm3832_vm2, %v11650_v32, 0.0  ;;  %v4221_v15 = vmul.f32 %v11650_v32, %v11650_v32  ;;  %v6807_v59 = vpop.f32.mrf.mxu0 }
 0x3c2   : > { %v4227_v62 = vmul.f32 %v15125_v23, %v15125_v23  ;;  %4452 = vadd.xlane.f32.xlu0 %v4451_v4  ;;  %v3987_v43 = vadd.f32 %v3986_v16, %v3985_v60  ;;  %v3994_v37 = vadd.f32 %v3993_v30, %v15121_v54  ;;  %v3791_v46 = vpop.f32.mrf.mxu1  ;;  %v4466_v61 = vadd.f32 %v11329_v8, %v4226_v28  ;;  %v15129_v8 = vld [vmem:[#allocation210_spill] sm:$0xff] }
 0x3c3   : > { %v4063_v0 = vadd.f32 %v15126_v56, %v15123_v9  ;;  %v6808_v18 = vadd.f32 %v6807_v59, %v6806_v10  ;;  %v11672_v6 = vadd.f32 %v3784_v57, %v3633_v63  ;;  %v4459_v36 = vsel %vm3832_vm2, %v4221_v15, 0.0  ;;  %v6809_v60 = vpop.f32.mrf.mxu0  ;;  %v15130_v54 = vld [vmem:[#allocation198_spill] sm:$0xff]  ;;  %v15131_v63 = vld [vmem:[#allocation40_spill] sm:$0xff] }
 0x3c4   : > { %v4002_v32 = vadd.f32 %v11318_v24, %v15119_v47  ;;  %v4233_v4 = vmul.f32 %v15128_v45, %v15128_v45  ;;  %3988 = vadd.xlane.f32.xlu1 %v3987_v43  ;;  %v3996_v30 = vadd.f32 %v3995_v44, %v3994_v37  ;;  %v4458_v16 = vadd.f32 %v4457_v58, %v4220_v29  ;;  %v3792_v46 = vpop.f32.mrf.mxu1 }
 0x3c5   : > { %15127 = vst [vmem:[#allocation31_spill] sm:$0xff] %v11672_v6  ;;  %v4527_v28 = vadd.f32 %v15129_v8, %v4273_v19  ;;  %v3638_v56 = vadd.f32 %v6808_v18, %v15130_v54  ;;  %v4228_v57 = vmul.f32 %v11672_v6, %v11672_v6  ;;  %v11683_v10 = vadd.f32 %v4518_v40, %v4267_v27  ;;  %v6810_v59 = vpop.f32.mrf.mxu0  ;;  %v15133_v27 = vld [vmem:[#allocation197_spill] sm:$0xff] }
 0x3c6   : > { %v4011_v24 = vadd.f32 %v11350_v26, %v15128_v45  ;;  %v4240_v15 = vmul.f32 %v15131_v63, %v15131_v63  ;;  %3997 = vadd.xlane.f32.xlu0 %v3996_v30  ;;  %v4460_v44 = vadd.f32 %v4459_v36, %v4458_v16  ;;  %v4467_v29 = vadd.f32 %v4466_v61, %v4227_v62  ;;  %v3794_v58 = vpop.f32.mrf.mxu1  ;;  %v15134_v62 = vld [vmem:[#allocation74_spill] sm:$0xff]  ;;  %v15135_v61 = vld [vmem:[#allocation205_spill] sm:$0xff] }
 0x3c7   : > { %v6811_v43 = vadd.f32 %v6810_v59, %v6809_v60  ;;  %v11689_v19 = vadd.f32 %v3789_v12, %v3638_v56  ;;  %v4468_v54 = vsel %vm3832_vm2, %v4228_v57, 0.0  ;;  %v4004_v40 = vsel %vm3832_vm2, %v11672_v6, 0.0  ;;  %v6812_v26 = vpop.f32.mrf.mxu0  ;;  %v15136_v57 = vld [vmem:[#allocation82_spill] sm:$0xff]  ;;  %v15138_v6 = vld [vmem:[#allocation209_spill] sm:$0xff] }
 0x3c8   : > { %v4234_v37 = vmul.f32 %v15133_v27, %v15133_v27  ;;  %4461 = vadd.xlane.f32.xlu1 %v4460_v44  ;;  %v4469_v18 = vadd.f32 %v4468_v54, %v4467_v29  ;;  %v4003_v8 = vadd.f32 %v4002_v32, %v15125_v23  ;;  %v3797_v30 = vpop.f32.mrf.mxu1  ;;  %v4475_v36 = vadd.f32 %v11359_v7, %v4233_v4 }
 0x3c9   : > { %15132 = vst [vmem:[#allocation33_spill] sm:$0xff] %v11689_v19  ;;  %v4274_v12 = vmul.f32 %v15134_v62, %v15134_v62  ;;  %v3641_v60 = vadd.f32 %v6811_v43, %v15135_v61  ;;  %v4013_v16 = vsel %vm3832_vm2, %v11689_v19, 0.0  ;;  %v4235_v56 = vmul.f32 %v11689_v19, %v11689_v19  ;;  %v6813_v44 = vpop.f32.mrf.mxu0 }
 0x3ca   : > { %v4241_v59 = vmul.f32 %v15136_v57, %v15136_v57  ;;  %4470 = vadd.xlane.f32.xlu0 %v4469_v18  ;;  %v4005_v32 = vadd.f32 %v4004_v40, %v4003_v8  ;;  %v4012_v29 = vadd.f32 %v4011_v24, %v15133_v27  ;;  %v3799_v7 = vpop.f32.mrf.mxu1  ;;  %v4484_v4 = vadd.f32 %v11443_v50, %v4240_v15 }
 0x3cb   : > { %v11710_v58 = vadd.f32 %v4063_v0, %v15134_v62  ;;  %v6814_v43 = vadd.f32 %v6813_v44, %v6812_v26  ;;  %v11712_v54 = vadd.f32 %v3792_v46, %v3641_v60  ;;  %v4477_v61 = vsel %vm3832_vm2, %v4235_v56, 0.0  ;;  %v6815_v40 = vpop.f32.mrf.mxu0  ;;  %v15139_v0 = vld [vmem:[#allocation26_spill] sm:$0xff]  ;;  %v15140_v46 = vld [vmem:[#allocation213_spill] sm:$0xff] }
 0x3cc   : > { %v4020_v9 = vadd.f32 %v11399_v31, %v15131_v63  ;;  %v4247_v18 = vmul.f32 %v15138_v6, %v15138_v6  ;;  %4006 = vadd.xlane.f32.xlu1 %v4005_v32  ;;  %v4014_v24 = vadd.f32 %v4013_v16, %v4012_v29  ;;  %v4476_v8 = vadd.f32 %v4475_v36, %v4234_v37  ;;  %v3800_v7 = vpop.f32.mrf.mxu1  ;;  %v15141_v56 = vld [vmem:[#allocation42_spill] sm:$0xff] }
 0x3cd   : > { %15137 = vst [vmem:[#allocation37_spill] sm:$0xff] %v11712_v54  ;;  %v11719_v50 = vadd.f32 %v4527_v28, %v4274_v12  ;;  %v4280_v15 = vmul.f32 %v15139_v0, %v15139_v0  ;;  %v3646_v26 = vadd.f32 %v6814_v43, %v15140_v46  ;;  %v4242_v60 = vmul.f32 %v11712_v54, %v11712_v54  ;;  %v6816_v32 = vpop.f32.mrf.mxu0  ;;  %v15143_v46 = vld [vmem:[#allocation212_spill] sm:$0xff] }
 0x3ce   : > { %v4029_v31 = vadd.f32 %v11470_v38, %v15138_v6  ;;  %v4254_v44 = vmul.f32 %v15141_v56, %v15141_v56  ;;  %4015 = vadd.xlane.f32.xlu0 %v4014_v24  ;;  %v4478_v37 = vadd.f32 %v4477_v61, %v4476_v8  ;;  %v4485_v36 = vadd.f32 %v4484_v4, %v4241_v59  ;;  %v3802_v28 = vpop.f32.mrf.mxu1  ;;  %v15144_v4 = vld [vmem:[#allocation211_spill] sm:$0xff]  ;;  %v15145_v61 = vld [vmem:[#allocation217_spill] sm:$0xff] }
 0x3cf   : > { %v6817_v12 = vadd.f32 %v6816_v32, %v6815_v40  ;;  %v11730_v16 = vadd.f32 %v3797_v30, %v3646_v26  ;;  %v4486_v29 = vsel %vm3832_vm2, %v4242_v60, 0.0  ;;  %v4022_v43 = vsel %vm3832_vm2, %v11712_v54, 0.0  ;;  %v6818_v38 = vpop.f32.mrf.mxu0  ;;  %v15146_v60 = vld [vmem:[#allocation83_spill] sm:$0xff]  ;;  %v15147_v28 = vld [vmem:[#allocation214_spill] sm:$0xff] }
 0x3d0   : > { %v4248_v62 = vmul.f32 %v15143_v46, %v15143_v46  ;;  %4479 = vadd.xlane.f32.xlu1 %v4478_v37  ;;  %v4487_v63 = vadd.f32 %v4486_v29, %v4485_v36  ;;  %v4021_v6 = vadd.f32 %v4020_v9, %v15136_v57  ;;  %v3805_v24 = vpop.f32.mrf.mxu1  ;;  %v4493_v59 = vadd.f32 %v11479_v42, %v4247_v18  ;;  %v15149_v54 = vld [vmem:[#allocation218_spill] sm:$0xff] }
 0x3d1   : > { %15142 = vst [vmem:[#allocation35_spill] sm:$0xff] %v11730_v16  ;;  %v4072_v30 = vadd.f32 %v15144_v4, %v15139_v0  ;;  %v3649_v40 = vadd.f32 %v6817_v12, %v15145_v61  ;;  %v4031_v8 = vsel %vm3832_vm2, %v11730_v16, 0.0  ;;  %v4249_v26 = vmul.f32 %v11730_v16, %v11730_v16  ;;  %v6819_v37 = vpop.f32.mrf.mxu0 }
 0x3d2   : > { %v4255_v32 = vmul.f32 %v15146_v60, %v15146_v60  ;;  %4488 = vadd.xlane.f32.xlu0 %v4487_v63  ;;  %v4023_v9 = vadd.f32 %v4022_v43, %v4021_v6  ;;  %v4030_v36 = vadd.f32 %v4029_v31, %v15143_v46  ;;  %v3807_v42 = vpop.f32.mrf.mxu1  ;;  %v4502_v18 = vadd.f32 %v11563_v55, %v4254_v44 }
 0x3d3   : > { %v4536_v29 = vadd.f32 %v15147_v28, %v4280_v15  ;;  %v6820_v12 = vadd.f32 %v6819_v37, %v6818_v38  ;;  %v11751_v4 = vadd.f32 %v3800_v7, %v3649_v40  ;;  %v4495_v61 = vsel %vm3832_vm2, %v4249_v26, 0.0  ;;  %v6821_v63 = vpop.f32.mrf.mxu0  ;;  %v15150_v42 = vld [vmem:[#allocation75_spill] sm:$0xff]  ;;  %v15151_v15 = vld [vmem:[#allocation220_spill] sm:$0xff] }
 0x3d4   : > { %v4038_v0 = vadd.f32 %v11519_v17, %v15141_v56  ;;  %v4261_v57 = vmul.f32 %v15149_v54, %v15149_v54  ;;  %4024 = vadd.xlane.f32.xlu1 %v4023_v9  ;;  %v4032_v6 = vadd.f32 %v4031_v8, %v4030_v36  ;;  %v4494_v31 = vadd.f32 %v4493_v59, %v4248_v62  ;;  %v3808_v43 = vpop.f32.mrf.mxu1  ;;  %v15152_v40 = vld [vmem:[#allocation84_spill] sm:$0xff] }
 0x3d5   : > { %15148 = vst [vmem:[#allocation200_spill] sm:$0xff] %v11751_v4  ;;  %v11759_v55 = vadd.f32 %v4072_v30, %v15150_v42  ;;  %v4281_v7 = vmul.f32 %v15150_v42, %v15150_v42  ;;  %v3654_v44 = vadd.f32 %v6820_v12, %v15151_v15  ;;  %v4256_v38 = vmul.f32 %v11751_v4, %v11751_v4  ;;  %v6822_v8 = vpop.f32.mrf.mxu0  ;;  %v15154_v12 = vld [vmem:[#allocation219_spill] sm:$0xff] }
 0x3d6   : > { %v4047_v17 = vadd.f32 %v11590_v51, %v15149_v54  ;;  %v4268_v26 = vmul.f32 %v15152_v40, %v15152_v40  ;;  %4033 = vadd.xlane.f32.xlu0 %v4032_v6  ;;  %v4496_v62 = vadd.f32 %v4495_v61, %v4494_v31  ;;  %v4503_v59 = vadd.f32 %v4502_v18, %v4255_v32  ;;  %v3810_v30 = vpop.f32.mrf.mxu1  ;;  %v15155_v18 = vld [vmem:[#allocation76_spill] sm:$0xff]  ;;  %v15156_v61 = vld [vmem:[#allocation221_spill] sm:$0xff] }
 0x3d7   : > { %v6823_v37 = vadd.f32 %v6822_v8, %v6821_v63  ;;  %v11770_v9 = vadd.f32 %v3805_v24, %v3654_v44  ;;  %v4504_v36 = vsel %vm3832_vm2, %v4256_v38, 0.0  ;;  %v4040_v28 = vsel %vm3832_vm2, %v11751_v4, 0.0  ;;  %v6824_v51 = vpop.f32.mrf.mxu0  ;;  %v15157_v38 = vld [vmem:[#allocation85_spill] sm:$0xff]  ;;  %v15158_v30 = vld [vmem:[#allocation215_spill] sm:$0xff] }
 0x3d8   : > { %v4262_v15 = vmul.f32 %v15154_v12, %v15154_v12  ;;  %4497 = vadd.xlane.f32.xlu1 %v4496_v62  ;;  %v4505_v42 = vadd.f32 %v4504_v36, %v4503_v59  ;;  %v4039_v56 = vadd.f32 %v4038_v0, %v15146_v60  ;;  %v3813_v6 = vpop.f32.mrf.mxu1  ;;  %v4511_v32 = vadd.f32 %v11599_v41, %v4261_v57 }
 0x3d9   : > { %15153 = vst [vmem:[#allocation39_spill] sm:$0xff] %v11770_v9  ;;  %v4287_v24 = vmul.f32 %v15155_v18, %v15155_v18  ;;  %v3657_v63 = vadd.f32 %v6823_v37, %v15156_v61  ;;  %v4049_v31 = vsel %vm3832_vm2, %v11770_v9, 0.0  ;;  %v4263_v44 = vmul.f32 %v11770_v9, %v11770_v9  ;;  %v6825_v62 = vpop.f32.mrf.mxu0  ;;  %v15160_v9 = vld [vmem:[#allocation222_spill] sm:$0xff] }
 0x3da   : > { %v4269_v8 = vmul.f32 %v15157_v38, %v15157_v38  ;;  %4506 = vadd.xlane.f32.xlu0 %v4505_v42  ;;  %v4041_v0 = vadd.f32 %v4040_v28, %v4039_v56  ;;  %v4048_v59 = vadd.f32 %v4047_v17, %v15154_v12  ;;  %v3815_v41 = vpop.f32.mrf.mxu1  ;;  %v4520_v57 = vadd.f32 %v11683_v10, %v4268_v26  ;;  %v15161_v10 = vld [vmem:[#allocation216_spill] sm:$0xff]  ;;  %v15162_v12 = vld [vmem:[#allocation223_spill] sm:$0xff] }
 0x3db   : > { %v4081_v37 = vadd.f32 %v15158_v30, %v15155_v18  ;;  %v6826_v36 = vadd.f32 %v6825_v62, %v6824_v51  ;;  %v11792_v61 = vadd.f32 %v3808_v43, %v3657_v63  ;;  %v4513_v4 = vsel %vm3832_vm2, %v4263_v44, 0.0  ;;  %v6827_v56 = vpop.f32.mrf.mxu0 }
 0x3dc   : > { %v4056_v60 = vadd.f32 %v11639_v22, %v15152_v40  ;;  %v4275_v42 = vmul.f32 %v15160_v9, %v15160_v9  ;;  %4042 = vadd.xlane.f32.xlu1 %v4041_v0  ;;  %v4050_v17 = vadd.f32 %v4049_v31, %v4048_v59  ;;  %v4512_v28 = vadd.f32 %v4511_v32, %v4262_v15  ;;  %v3816_v41 = vpop.f32.mrf.mxu1  ;;  %v15163_v22 = vld [vmem:[#allocation88_spill] sm:$0xff] }
 0x3dd   : > { %15159 = vst [vmem:[#allocation201_spill] sm:$0xff] %v11792_v61  ;;  %v4545_v26 = vadd.f32 %v15161_v10, %v4287_v24  ;;  %v3662_v30 = vadd.f32 %v6826_v36, %v15162_v12  ;;  %v4270_v43 = vmul.f32 %v11792_v61, %v11792_v61  ;;  %v4537_v51 = vadd.f32 %v4536_v29, %v4281_v7  ;;  %v6828_v62 = vpop.f32.mrf.mxu0  ;;  %v15165_v29 = vld [vmem:[#allocation86_spill] sm:$0xff] }
 0x3de   : > { %v4065_v63 = vadd.f32 %v11710_v58, %v15160_v9  ;;  %v4282_v44 = vmul.f32 %v15163_v22, %v15163_v22  ;;  %4051 = vadd.xlane.f32.xlu0 %v4050_v17  ;;  %v4514_v0 = vadd.f32 %v4513_v4, %v4512_v28  ;;  %v4521_v31 = vadd.f32 %v4520_v57, %v4269_v8  ;;  %v3818_v15 = vpop.f32.mrf.mxu1  ;;  %v15166_v8 = vld [vmem:[#allocation30_spill] sm:$0xff]  ;;  %v15167_v57 = vld [vmem:[#allocation224_spill] sm:$0xff] }
 0x3df   : > { %v6829_v32 = vadd.f32 %v6828_v62, %v6827_v56  ;;  %v11807_v59 = vadd.f32 %v3813_v6, %v3662_v30  ;;  %v4522_v12 = vsel %vm3832_vm2, %v4270_v43, 0.0  ;;  %v4058_v24 = vsel %vm3832_vm2, %v11792_v61, 0.0  ;;  %v6830_v58 = vpop.f32.mrf.mxu0  ;;  %v15168_v43 = vld [vmem:[#allocation89_spill] sm:$0xff] }
 0x3e0   : > { %v4276_v7 = vmul.f32 %v15165_v29, %v15165_v29  ;;  %4515 = vadd.xlane.f32.xlu1 %v4514_v0  ;;  %v4523_v36 = vadd.f32 %v4522_v12, %v4521_v31  ;;  %v4057_v10 = vadd.f32 %v4056_v60, %v15157_v38  ;;  %v3821_v17 = vpop.f32.mrf.mxu1  ;;  %v4529_v4 = vadd.f32 %v11719_v50, %v4275_v42  ;;  %v15170_v61 = vld [vmem:[#allocation225_spill] sm:$0xff] }
 0x3e1   : > { %15164 = vst [vmem:[#allocation43_spill] sm:$0xff] %v11807_v59  ;;  %v4288_v6 = vmul.f32 %v15166_v8, %v15166_v8  ;;  %v3665_v56 = vadd.f32 %v6829_v32, %v15167_v57  ;;  %v4067_v28 = vsel %vm3832_vm2, %v11807_v59, 0.0  ;;  %v4277_v30 = vmul.f32 %v11807_v59, %v11807_v59  ;;  %v6831_v0 = vpop.f32.mrf.mxu0 }
 0x3e2   : > { %v4283_v62 = vmul.f32 %v15168_v43, %v15168_v43  ;;  %4524 = vadd.xlane.f32.xlu0 %v4523_v36  ;;  %v4059_v60 = vadd.f32 %v4058_v24, %v4057_v10  ;;  %v4066_v31 = vadd.f32 %v4065_v63, %v15165_v29  ;;  %v4538_v50 = vadd.f32 %v4537_v51, %v4282_v44  ;;  %v3823_v42 = vpop.f32.mrf.mxu1  ;;  %v15171_v51 = vld [vmem:[#allocation227_spill] sm:$0xff] }
 0x3e3   : > { %v4082_v15 = vadd.f32 %v4081_v37, %v15166_v8  ;;  %v6832_v12 = vadd.f32 %v6831_v0, %v6830_v58  ;;  %v11827_v32 = vadd.f32 %v3816_v41, %v3665_v56  ;;  %v4531_v57 = vsel %vm3832_vm2, %v4277_v30, 0.0  ;;  %v6833_v10 = vpop.f32.mrf.mxu0 }
 0x3e4   : > { %v4074_v18 = vadd.f32 %v11759_v55, %v15163_v22  ;;  %v4289_v38 = vmul.f32 %v15170_v61, %v15170_v61  ;;  %4060 = vadd.xlane.f32.xlu1 %v4059_v60  ;;  %v4068_v36 = vadd.f32 %v4067_v28, %v4066_v31  ;;  %v4530_v24 = vadd.f32 %v4529_v4, %v4276_v7  ;;  %v3824_v63 = vpop.f32.mrf.mxu1  ;;  %v15173_v4 = vld [vmem:[#allocation226_spill] sm:$0xff] }
 0x3e5   : > { %15169 = vst [vmem:[#allocation41_spill] sm:$0xff] %v11827_v32  ;;  %v3670_v44 = vadd.f32 %v6832_v12, %v15171_v51  ;;  %v4284_v37 = vmul.f32 %v11827_v32, %v11827_v32  ;;  %v4546_v41 = vadd.f32 %v4545_v26, %v4288_v6  ;;  %v4083_v58 = vadd.f32 %v4082_v15, %v15170_v61  ;;  %v6834_v55 = vpop.f32.mrf.mxu0 }
 0x3e6   : > { %4069 = vadd.xlane.f32.xlu0 %v4068_v36  ;;  %v4532_v56 = vadd.f32 %v4531_v57, %v4530_v24  ;;  %v4539_v30 = vadd.f32 %v4538_v50, %v4283_v62  ;;  %v3825_v0 = vpop.f32.mrf.mxu1  ;;  %v4076_v7 = vsel %vm3832_vm2, %v11827_v32, 0.0  ;;  %v4290_v60 = vmul.f32 %v15173_v4, %v15173_v4 }
 0x3e7   : > { %v11838_v42 = vadd.f32 %v3821_v17, %v3670_v44  ;;  %v4540_v28 = vsel %vm3832_vm2, %v4284_v37, 0.0  ;;  %v4075_v26 = vadd.f32 %v4074_v18, %v15168_v43  ;;  %v4547_v6 = vadd.f32 %v4546_v41, %v4289_v38 }
 0x3e8   : > { %4533 = vadd.xlane.f32.xlu1 %v4532_v56  ;;  %v4541_v31 = vadd.f32 %v4540_v28, %v4539_v30  ;;  %v4084_v15 = vadd.f32 %v4083_v58, %v15173_v4 }
 0x3e9   : > { %15172 = vst [vmem:[#allocation49_spill] sm:$0xff] %v11838_v42  ;;  %v4085_v62 = vsel %vm3832_vm2, %v11838_v42, 0.0  ;;  %v4291_v17 = vmul.f32 %v11838_v42, %v11838_v42  ;;  %v4077_v50 = vadd.f32 %v4076_v7, %v4075_v26  ;;  %v4548_v36 = vadd.f32 %v4547_v6, %v4290_v60 }
 0x3ea   : > { %4542 = vadd.xlane.f32.xlu0 %v4541_v31  ;;  %v4086_v57 = vadd.f32 %v4085_v62, %v4084_v15 }
 0x3eb   : > { %v4549_v12 = vsel %vm3832_vm2, %v4291_v17, 0.0 }
 0x3ec   : > { %4078 = vadd.xlane.f32.xlu1 %v4077_v50  ;;  %v4550_v24 = vadd.f32 %v4549_v12, %v4548_v36 }
 0x3ee   : > { %4087 = vadd.xlane.f32.xlu0 %v4086_v57 }
 0x3f0   : > { %4551 = vadd.xlane.f32.xlu1 %v4550_v24 }
 0x405   : > { %v3836_v18 = vpop.xlane.xlu0 %3835 }
 0x406   : > { %v4553_v38 = vmul.f32 0.0012755102, %v3836_v18 }
 0x407   : > { %v4300_v10 = vpop.xlane.xlu1 %4299 }
 0x408   : > { %v4611_v63 = vmul.f32 %v4553_v38, %v4553_v38  ;;  %v4582_v51 = vmul.f32 0.0012755102, %v4300_v10 }
 0x409   : > { %v3845_v44 = vpop.xlane.xlu0 %3844 }
 0x40a   : > { %v4640_v37 = vsub.f32 %v4582_v51, %v4611_v63  ;;  %v4554_v41 = vmul.f32 0.0012755102, %v3845_v44  ;;  %v11869_v63 = vld [vmem:[%s11860_s24] sm:$0xff] }
 0x40c   : > { %v4698_v56 = vadd.f32 1e-05, %v4640_v37  ;;  %v4612_v55 = vmul.f32 %v4554_v41, %v4554_v41 }
 0x40d   : > { %v3854_v30 = vpop.xlane.xlu1 %3853  ;;  %v4309_v58 = vpop.xlane.xlu0 %4308 }
 0x40e   : > { %6857 = vrsqrt.f32 %v4698_v56  ;;  %v11852_v0 = vmul.f32 0.0012755102, %v3854_v30  ;;  %v4583_v28 = vmul.f32 0.0012755102, %v4309_v58 }
 0x410   : > { %v4641_v7 = vsub.f32 %v4583_v28, %v4612_v55  ;;  %v4613_v31 = vmul.f32 %v11852_v0, %v11852_v0 }
 0x411   : > { %v4318_v60 = vpop.xlane.xlu1 %4317 }
 0x412   : > { %v4699_v26 = vadd.f32 1e-05, %v4641_v7  ;;  %v4584_v6 = vmul.f32 0.0012755102, %v4318_v60 }
 0x413   : > { %v4327_v62 = vpop.xlane.xlu0 %4326 }
 0x414   : > { %6859 = vrsqrt.f32 %v4699_v26  ;;  %v4642_v17 = vsub.f32 %v4584_v6, %v4613_v31  ;;  %v4585_v36 = vmul.f32 0.0012755102, %v4327_v62  ;;  %v11877_v62 = vld [vmem:[%s11860_s24 + $0x8] sm:$0xff] }
 0x415   : > { %v3863_v50 = vpop.xlane.xlu1 %3862 }
 0x416   : > { %v4700_v15 = vadd.f32 1e-05, %v4642_v17  ;;  %v11862_v12 = vmul.f32 0.0012755102, %v3863_v50 }
 0x417   : > { %v3872_v57 = vpop.xlane.xlu0 %3871 }
 0x418   : > { %6861 = vrsqrt.f32 %v4700_v15  ;;  %v4614_v24 = vmul.f32 %v11862_v12, %v11862_v12  ;;  %v11866_v18 = vmul.f32 0.0012755102, %v3872_v57 }
 0x419   : > { %v4336_v10 = vpop.xlane.xlu1 %4335 }
 0x41a   : > { %v4643_v51 = vsub.f32 %v4585_v36, %v4614_v24  ;;  %v4615_v44 = vmul.f32 %v11866_v18, %v11866_v18  ;;  %v4586_v37 = vmul.f32 0.0012755102, %v4336_v10 }
 0x41b   : > { %v6858_v56 = vpop.eup %6857  ;;  %v4345_v30 = vpop.xlane.xlu0 %4344 }
 0x41c   : > { %v4701_v58 = vadd.f32 1e-05, %v4643_v51  ;;  %v4644_v55 = vsub.f32 %v4586_v37, %v4615_v44  ;;  %v4756_v28 = vmul.f32 %v6858_v56, %v11869_v63  ;;  %v4587_v17 = vmul.f32 0.0012755102, %v4345_v30 }
 0x41d   : > { %v3881_v7 = vpop.xlane.xlu1 %3880 }
 0x41e   : > { %v4702_v60 = vadd.f32 1e-05, %v4644_v55  ;;  %v11874_v31 = vmul.f32 0.0012755102, %v3881_v7  ;;  %5164 = vperm.xlu1 %6849, %v4756_v28   ;;  %v4785_v26 = vmul.f32 %v4756_v28, %v4553_v38  ;;  %6863 = vrsqrt.f32 %v4701_v58  ;;  %v11888_v28 = vld [vmem:[%s11860_s24 + $0x10] sm:$0xff] }
 0x41f   : > { %v3890_v6 = vpop.xlane.xlu0 %3889 }
 0x420   : > { %6865 = vrsqrt.f32 %v4702_v60  ;;  %v4616_v50 = vmul.f32 %v11874_v31, %v11874_v31  ;;  %v11881_v15 = vmul.f32 0.0012755102, %v3890_v6  ;;  %4843 = vrot.lane.b32.xlu0 %v4785_v26, %s6928_s25 }
 0x421   : > { %v6860_v57 = vpop.eup %6859  ;;  %v4354_v36 = vpop.xlane.xlu1 %4353 }
 0x422   : > { %v4645_v24 = vsub.f32 %v4587_v17, %v4616_v50  ;;  %v4617_v38 = vmul.f32 %v11881_v15, %v11881_v15  ;;  %v4588_v10 = vmul.f32 0.0012755102, %v4354_v36  ;;  %v4757_v51 = vmul.f32 %v6860_v57, %v11877_v62 }
 0x423   : > { %v4363_v44 = vpop.xlane.xlu0 %4362 }
 0x424   : > { %v4703_v37 = vadd.f32 1e-05, %v4645_v24  ;;  %v4646_v56 = vsub.f32 %v4588_v10, %v4617_v38  ;;  %5169 = vperm.xlu0 %6850, %v4757_v51   ;;  %v4786_v30 = vmul.f32 %v4757_v51, %v4554_v41  ;;  %v4589_v26 = vmul.f32 0.0012755102, %v4363_v44  ;;  %v11901_v44 = vld [vmem:[%s11860_s24 + $0x18] sm:$0xff] }
 0x425   : > { %v6862_v58 = vpop.eup %6861  ;;  %v3899_v55 = vpop.xlane.xlu1 %3898 }
 0x426   : > { %v4704_v7 = vadd.f32 1e-05, %v4646_v56  ;;  %v11890_v60 = vmul.f32 0.0012755102, %v3899_v55  ;;  %4845 = vrot.lane.b32.xlu1 %v4786_v30, %s6928_s25  ;;  %6867 = vrsqrt.f32 %v4703_v37  ;;  %v4758_v41 = vmul.f32 %v6862_v58, %v11888_v28  ;;  %v11905_v55 = vld [vmem:[%s11860_s24 + $0x20] sm:$0xff] }
 0x427   : > { %v3908_v6 = vpop.xlane.xlu0 %3907 }
 0x428   : > { %6869 = vrsqrt.f32 %v4704_v7  ;;  %v4618_v17 = vmul.f32 %v11890_v60, %v11890_v60  ;;  %v11895_v50 = vmul.f32 0.0012755102, %v3908_v6  ;;  %v4787_v30 = vmul.f32 %v4758_v41, %v11852_v0 }
 0x429   : > { %v4372_v57 = vpop.xlane.xlu1 %4371 }
 0x42a   : > { %v4647_v36 = vsub.f32 %v4589_v26, %v4618_v17  ;;  %v4619_v24 = vmul.f32 %v11895_v50, %v11895_v50  ;;  %v4590_v38 = vmul.f32 0.0012755102, %v4372_v57  ;;  %5174 = vperm.xlu1 %6849, %v4758_v41  }
 0x42b   : > { %v4381_v10 = vpop.xlane.xlu0 %4380  ;;  %v6864_v51 = vpop.eup %6863 }
 0x42c   : > { %v4705_v37 = vadd.f32 1e-05, %v4647_v36  ;;  %v4648_v56 = vsub.f32 %v4590_v38, %v4619_v24  ;;  %v4759_v26 = vmul.f32 %v6864_v51, %v11901_v44  ;;  %v4591_v36 = vmul.f32 0.0012755102, %v4381_v10 }
 0x42d   : > { %v6866_v7 = vpop.eup %6865  ;;  %v3917_v6 = vpop.xlane.xlu1 %3916 }
 0x42e   : > { %v4706_v58 = vadd.f32 1e-05, %v4648_v56  ;;  %v11907_v42 = vmul.f32 0.0012755102, %v3917_v6  ;;  %4847 = vrot.lane.b32.xlu1 %v4787_v30, %s6928_s25  ;;  %6871 = vrsqrt.f32 %v4705_v37  ;;  %v4760_v57 = vmul.f32 %v6866_v7, %v11905_v55  ;;  %v11921_v6 = vld [vmem:[%s11860_s24 + $0x28] sm:$0xff] }
 0x42f   : > { %v3926_v17 = vpop.xlane.xlu0 %3925  ;;  %v4788_v10 = vmul.f32 %v4759_v26, %v11862_v12 }
 0x430   : > { %6873 = vrsqrt.f32 %v4706_v58  ;;  %v4620_v0 = vmul.f32 %v11907_v42, %v11907_v42  ;;  %v11914_v41 = vmul.f32 0.0012755102, %v3926_v17  ;;  %5184 = vperm.xlu0 %6850, %v4760_v57   ;;  %v4789_v30 = vmul.f32 %v4760_v57, %v11866_v18  ;;  %v11924_v17 = vld [vmem:[%s11860_s24 + $0x30] sm:$0xff] }
 0x431   : > { %v4390_v24 = vpop.xlane.xlu1 %4389 }
 0x432   : > { %v4649_v38 = vsub.f32 %v4591_v36, %v4620_v0  ;;  %v4621_v56 = vmul.f32 %v11914_v41, %v11914_v41  ;;  %v4592_v51 = vmul.f32 0.0012755102, %v4390_v24  ;;  %5179 = vperm.xlu1 %6849, %v4759_v26  }
 0x433   : > { %v4399_v37 = vpop.xlane.xlu0 %4398  ;;  %v6868_v7 = vpop.eup %6867 }
 0x434   : > { %v4707_v58 = vadd.f32 1e-05, %v4649_v38  ;;  %v4650_v4 = vsub.f32 %v4592_v51, %v4621_v56  ;;  %4851 = vrot.lane.b32.xlu0 %v4789_v30, %s6928_s25  ;;  %v4761_v18 = vmul.f32 %v6868_v7, %v11921_v6  ;;  %v4593_v26 = vmul.f32 0.0012755102, %v4399_v37 }
 0x435   : > { %v6870_v61 = vpop.eup %6869  ;;  %v3935_v36 = vpop.xlane.xlu1 %3934 }
 0x436   : > { %v4708_v0 = vadd.f32 1e-05, %v4650_v4  ;;  %v11927_v8 = vmul.f32 0.0012755102, %v3935_v36  ;;  %4849 = vrot.lane.b32.xlu1 %v4788_v10, %s6928_s25  ;;  %6875 = vrsqrt.f32 %v4707_v58  ;;  %v4762_v12 = vmul.f32 %v6870_v61, %v11924_v17  ;;  %v11941_v58 = vld [vmem:[%s11860_s24 + $0x38] sm:$0xff] }
 0x437   : > { %v3944_v57 = vpop.xlane.xlu0 %3943  ;;  %v4790_v37 = vmul.f32 %v4761_v18, %v11874_v31 }
 0x438   : > { %6877 = vrsqrt.f32 %v4708_v0  ;;  %v4622_v24 = vmul.f32 %v11927_v8, %v11927_v8  ;;  %v11934_v38 = vmul.f32 0.0012755102, %v3944_v57  ;;  %5194 = vperm.xlu0 %6850, %v4762_v12   ;;  %v4791_v10 = vmul.f32 %v4762_v12, %v11881_v15  ;;  %v11944_v57 = vld [vmem:[%s11860_s24 + $0x40] sm:$0xff] }
 0x439   : > { %v4408_v4 = vpop.xlane.xlu1 %4407 }
 0x43a   : > { %v4651_v56 = vsub.f32 %v4593_v26, %v4622_v24  ;;  %v4623_v51 = vmul.f32 %v11934_v38, %v11934_v38  ;;  %v4594_v30 = vmul.f32 0.0012755102, %v4408_v4  ;;  %5189 = vperm.xlu1 %6849, %v4761_v18  }
 0x43b   : > { %v4417_v7 = vpop.xlane.xlu0 %4416  ;;  %v6872_v61 = vpop.eup %6871 }
 0x43c   : > { %v4709_v36 = vadd.f32 1e-05, %v4651_v56  ;;  %v4652_v0 = vsub.f32 %v4594_v30, %v4623_v51  ;;  %4855 = vrot.lane.b32.xlu0 %v4791_v10, %s6928_s25  ;;  %v4763_v15 = vmul.f32 %v6872_v61, %v11941_v58  ;;  %v4595_v18 = vmul.f32 0.0012755102, %v4417_v7 }
 0x43d   : > { %v6874_v32 = vpop.eup %6873  ;;  %v3953_v26 = vpop.xlane.xlu1 %3952 }
 0x43e   : > { %v4710_v24 = vadd.f32 1e-05, %v4652_v0  ;;  %v11947_v43 = vmul.f32 0.0012755102, %v3953_v26  ;;  %4853 = vrot.lane.b32.xlu1 %v4790_v37, %s6928_s25  ;;  %6879 = vrsqrt.f32 %v4709_v36  ;;  %v4764_v31 = vmul.f32 %v6874_v32, %v11944_v57  ;;  %v11961_v0 = vld [vmem:[%s11860_s24 + $0x48] sm:$0xff] }
 0x43f   : > { %v3962_v12 = vpop.xlane.xlu0 %3961  ;;  %v4792_v7 = vmul.f32 %v4763_v15, %v11890_v60 }
 0x440   : > { %6881 = vrsqrt.f32 %v4710_v24  ;;  %v4624_v4 = vmul.f32 %v11947_v43, %v11947_v43  ;;  %v11954_v56 = vmul.f32 0.0012755102, %v3962_v12  ;;  %5204 = vperm.xlu0 %6850, %v4764_v31   ;;  %v4793_v36 = vmul.f32 %v4764_v31, %v11895_v50  ;;  %v11964_v12 = vld [vmem:[%s11860_s24 + $0x50] sm:$0xff] }
 0x441   : > { %v4426_v51 = vpop.xlane.xlu1 %4425 }
 0x442   : > { %v4653_v30 = vsub.f32 %v4595_v18, %v4624_v4  ;;  %v4625_v10 = vmul.f32 %v11954_v56, %v11954_v56  ;;  %v4596_v61 = vmul.f32 0.0012755102, %v4426_v51  ;;  %5199 = vperm.xlu1 %6849, %v4763_v15  }
 0x443   : > { %v4435_v37 = vpop.xlane.xlu0 %4434  ;;  %v6876_v32 = vpop.eup %6875 }
 0x444   : > { %v4711_v26 = vadd.f32 1e-05, %v4653_v30  ;;  %v4654_v24 = vsub.f32 %v4596_v61, %v4625_v10  ;;  %4859 = vrot.lane.b32.xlu0 %v4793_v36, %s6928_s25  ;;  %v4765_v50 = vmul.f32 %v6876_v32, %v11961_v0  ;;  %v4597_v15 = vmul.f32 0.0012755102, %v4435_v37 }
 0x445   : > { %v6878_v22 = vpop.eup %6877  ;;  %v3971_v18 = vpop.xlane.xlu1 %3970 }
 0x446   : > { %v4712_v4 = vadd.f32 1e-05, %v4654_v24  ;;  %v11967_v40 = vmul.f32 0.0012755102, %v3971_v18  ;;  %4857 = vrot.lane.b32.xlu1 %v4792_v7, %s6928_s25  ;;  %6883 = vrsqrt.f32 %v4711_v26  ;;  %v4766_v60 = vmul.f32 %v6878_v22, %v11964_v12  ;;  %v11981_v24 = vld [vmem:[%s11860_s24 + $0x58] sm:$0xff] }
 0x447   : > { %v3980_v31 = vpop.xlane.xlu0 %3979  ;;  %v4794_v37 = vmul.f32 %v4765_v50, %v11907_v42 }
 0x448   : > { %6885 = vrsqrt.f32 %v4712_v4  ;;  %v4626_v51 = vmul.f32 %v11967_v40, %v11967_v40  ;;  %v11974_v30 = vmul.f32 0.0012755102, %v3980_v31  ;;  %5214 = vperm.xlu0 %6850, %v4766_v60   ;;  %v4795_v26 = vmul.f32 %v4766_v60, %v11914_v41  ;;  %v11984_v31 = vld [vmem:[%s11860_s24 + $0x60] sm:$0xff] }
 0x449   : > { %v4444_v10 = vpop.xlane.xlu1 %4443 }
 0x44a   : > { %v4655_v61 = vsub.f32 %v4597_v15, %v4626_v51  ;;  %v4627_v36 = vmul.f32 %v11974_v30, %v11974_v30  ;;  %v4598_v32 = vmul.f32 0.0012755102, %v4444_v10  ;;  %5209 = vperm.xlu1 %6849, %v4765_v50  }
 0x44b   : > { %v4453_v7 = vpop.xlane.xlu0 %4452  ;;  %v6880_v22 = vpop.eup %6879 }
 0x44c   : > { %v4713_v18 = vadd.f32 1e-05, %v4655_v61  ;;  %v4656_v4 = vsub.f32 %v4598_v32, %v4627_v36  ;;  %4863 = vrot.lane.b32.xlu0 %v4795_v26, %s6928_s25  ;;  %v4767_v41 = vmul.f32 %v6880_v22, %v11981_v24  ;;  %v4599_v50 = vmul.f32 0.0012755102, %v4453_v7 }
 0x44d   : > { %v6882_v59 = vpop.eup %6881  ;;  %v3989_v15 = vpop.xlane.xlu1 %3988 }
 0x44e   : > { %v4714_v51 = vadd.f32 1e-05, %v4656_v4  ;;  %v11987_v29 = vmul.f32 0.0012755102, %v3989_v15  ;;  %4861 = vrot.lane.b32.xlu1 %v4794_v37, %s6928_s25  ;;  %6887 = vrsqrt.f32 %v4713_v18  ;;  %v4768_v42 = vmul.f32 %v6882_v59, %v11984_v31  ;;  %v12001_v4 = vld [vmem:[%s11860_s24 + $0x68] sm:$0xff] }
 0x44f   : > { %v3998_v60 = vpop.xlane.xlu0 %3997  ;;  %v4796_v7 = vmul.f32 %v4767_v41, %v11927_v8 }
 0x450   : > { %6889 = vrsqrt.f32 %v4714_v51  ;;  %v4628_v10 = vmul.f32 %v11987_v29, %v11987_v29  ;;  %v11994_v61 = vmul.f32 0.0012755102, %v3998_v60  ;;  %5224 = vperm.xlu0 %6850, %v4768_v42   ;;  %v4797_v18 = vmul.f32 %v4768_v42, %v11934_v38  ;;  %v12004_v60 = vld [vmem:[%s11860_s24 + $0x70] sm:$0xff] }
 0x451   : > { %v4462_v36 = vpop.xlane.xlu1 %4461 }
 0x452   : > { %v4657_v32 = vsub.f32 %v4599_v50, %v4628_v10  ;;  %v4629_v26 = vmul.f32 %v11994_v61, %v11994_v61  ;;  %v4600_v22 = vmul.f32 0.0012755102, %v4462_v36  ;;  %5219 = vperm.xlu1 %6849, %v4767_v41  }
 0x453   : > { %v4471_v37 = vpop.xlane.xlu0 %4470  ;;  %v6884_v59 = vpop.eup %6883 }
 0x454   : > { %v4715_v15 = vadd.f32 1e-05, %v4657_v32  ;;  %v4658_v51 = vsub.f32 %v4600_v22, %v4629_v26  ;;  %4867 = vrot.lane.b32.xlu0 %v4797_v18, %s6928_s25  ;;  %v4769_v38 = vmul.f32 %v6884_v59, %v12001_v4  ;;  %v4601_v41 = vmul.f32 0.0012755102, %v4471_v37 }
 0x455   : > { %v6886_v9 = vpop.eup %6885  ;;  %v4007_v50 = vpop.xlane.xlu1 %4006 }
 0x456   : > { %v4716_v10 = vadd.f32 1e-05, %v4658_v51  ;;  %v12007_v54 = vmul.f32 0.0012755102, %v4007_v50  ;;  %4865 = vrot.lane.b32.xlu1 %v4796_v7, %s6928_s25  ;;  %6891 = vrsqrt.f32 %v4715_v15  ;;  %v4770_v8 = vmul.f32 %v6886_v9, %v12004_v60  ;;  %v12021_v51 = vld [vmem:[%s11860_s24 + $0x78] sm:$0xff] }
 0x457   : > { %v4016_v42 = vpop.xlane.xlu0 %4015  ;;  %v4798_v37 = vmul.f32 %v4769_v38, %v11947_v43 }
 0x458   : > { %6893 = vrsqrt.f32 %v4716_v10  ;;  %v4630_v36 = vmul.f32 %v12007_v54, %v12007_v54  ;;  %v12014_v32 = vmul.f32 0.0012755102, %v4016_v42  ;;  %5234 = vperm.xlu0 %6850, %v4770_v8   ;;  %v4799_v15 = vmul.f32 %v4770_v8, %v11954_v56  ;;  %v12024_v42 = vld [vmem:[%s11860_s24 + $0x80] sm:$0xff] }
 0x459   : > { %v4480_v26 = vpop.xlane.xlu1 %4479 }
 0x45a   : > { %v4659_v22 = vsub.f32 %v4601_v41, %v4630_v36  ;;  %v4631_v18 = vmul.f32 %v12014_v32, %v12014_v32  ;;  %v4602_v59 = vmul.f32 0.0012755102, %v4480_v26  ;;  %5229 = vperm.xlu1 %6849, %v4769_v38  }
 0x45b   : > { %v4489_v7 = vpop.xlane.xlu0 %4488  ;;  %v6888_v9 = vpop.eup %6887 }
 0x45c   : > { %v4717_v50 = vadd.f32 1e-05, %v4659_v22  ;;  %v4660_v10 = vsub.f32 %v4602_v59, %v4631_v18  ;;  %4871 = vrot.lane.b32.xlu0 %v4799_v15, %s6928_s25  ;;  %v4771_v56 = vmul.f32 %v6888_v9, %v12021_v51  ;;  %v4603_v38 = vmul.f32 0.0012755102, %v4489_v7 }
 0x45d   : > { %v6890_v16 = vpop.eup %6889  ;;  %v4025_v41 = vpop.xlane.xlu1 %4024 }
 0x45e   : > { %v4718_v36 = vadd.f32 1e-05, %v4660_v10  ;;  %v12027_v46 = vmul.f32 0.0012755102, %v4025_v41  ;;  %4869 = vrot.lane.b32.xlu1 %v4798_v37, %s6928_s25  ;;  %6895 = vrsqrt.f32 %v4717_v50  ;;  %v4772_v43 = vmul.f32 %v6890_v16, %v12024_v42  ;;  %v12041_v10 = vld [vmem:[%s11860_s24 + $0x88] sm:$0xff] }
 0x45f   : > { %v4034_v8 = vpop.xlane.xlu0 %4033  ;;  %v4800_v7 = vmul.f32 %v4771_v56, %v11967_v40 }
 0x460   : > { %6897 = vrsqrt.f32 %v4718_v36  ;;  %v4632_v26 = vmul.f32 %v12027_v46, %v12027_v46  ;;  %v12034_v22 = vmul.f32 0.0012755102, %v4034_v8  ;;  %5244 = vperm.xlu0 %6850, %v4772_v43   ;;  %v4801_v50 = vmul.f32 %v4772_v43, %v11974_v30  ;;  %v12044_v8 = vld [vmem:[%s11860_s24 + $0x90] sm:$0xff] }
 0x461   : > { %v4498_v18 = vpop.xlane.xlu1 %4497 }
 0x462   : > { %v4661_v59 = vsub.f32 %v4603_v38, %v4632_v26  ;;  %v4633_v15 = vmul.f32 %v12034_v22, %v12034_v22  ;;  %v4604_v9 = vmul.f32 0.0012755102, %v4498_v18  ;;  %5239 = vperm.xlu1 %6849, %v4771_v56  }
 0x463   : > { %v4507_v37 = vpop.xlane.xlu0 %4506  ;;  %v6892_v16 = vpop.eup %6891 }
 0x464   : > { %v4719_v41 = vadd.f32 1e-05, %v4661_v59  ;;  %v4662_v36 = vsub.f32 %v4604_v9, %v4633_v15  ;;  %4875 = vrot.lane.b32.xlu0 %v4801_v50, %s6928_s25  ;;  %v4773_v30 = vmul.f32 %v6892_v16, %v12041_v10  ;;  %v4605_v56 = vmul.f32 0.0012755102, %v4507_v37 }
 0x465   : > { %v6894_v23 = vpop.eup %6893  ;;  %v4043_v38 = vpop.xlane.xlu1 %4042 }
 0x466   : > { %v4720_v26 = vadd.f32 1e-05, %v4662_v36  ;;  %v12047_v47 = vmul.f32 0.0012755102, %v4043_v38  ;;  %4873 = vrot.lane.b32.xlu1 %v4800_v7, %s6928_s25  ;;  %6899 = vrsqrt.f32 %v4719_v41  ;;  %v4774_v40 = vmul.f32 %v6894_v23, %v12044_v8  ;;  %v12061_v36 = vld [vmem:[%s11860_s24 + $0x98] sm:$0xff] }
 0x467   : > { %v4052_v43 = vpop.xlane.xlu0 %4051  ;;  %v4802_v37 = vmul.f32 %v4773_v30, %v11987_v29  ;;  %15174 = vst [vmem:[#allocation55_spill] sm:$0xff] %v12061_v36 }
 0x468   : > { %6901 = vrsqrt.f32 %v4720_v26  ;;  %v4634_v18 = vmul.f32 %v12047_v47, %v12047_v47  ;;  %v12054_v59 = vmul.f32 0.0012755102, %v4052_v43  ;;  %5254 = vperm.xlu0 %6850, %v4774_v40   ;;  %v4803_v41 = vmul.f32 %v4774_v40, %v11994_v61  ;;  %v12064_v43 = vld [vmem:[%s11860_s24 + $0xa0] sm:$0xff] }
 0x469   : > { %v4516_v15 = vpop.xlane.xlu1 %4515  ;;  %15175 = vst [vmem:[#allocation53_spill] sm:$0xff] %v12064_v43 }
 0x46a   : > { %v4663_v9 = vsub.f32 %v4605_v56, %v4634_v18  ;;  %v4635_v50 = vmul.f32 %v12054_v59, %v12054_v59  ;;  %v4606_v16 = vmul.f32 0.0012755102, %v4516_v15  ;;  %5249 = vperm.xlu1 %6849, %v4773_v30  }
 0x46b   : > { %v4525_v7 = vpop.xlane.xlu0 %4524  ;;  %v6896_v23 = vpop.eup %6895 }
 0x46c   : > { %v4721_v38 = vadd.f32 1e-05, %v4663_v9  ;;  %v4664_v26 = vsub.f32 %v4606_v16, %v4635_v50  ;;  %4879 = vrot.lane.b32.xlu0 %v4803_v41, %s6928_s25  ;;  %v4775_v61 = vmul.f32 %v6896_v23, %v12061_v36  ;;  %v4607_v30 = vmul.f32 0.0012755102, %v4525_v7 }
 0x46d   : > { %v6898_v19 = vpop.eup %6897  ;;  %v4061_v56 = vpop.xlane.xlu1 %4060 }
 0x46e   : > { %v4722_v18 = vadd.f32 1e-05, %v4664_v26  ;;  %v12067_v27 = vmul.f32 0.0012755102, %v4061_v56  ;;  %4877 = vrot.lane.b32.xlu1 %v4802_v37, %s6928_s25  ;;  %6903 = vrsqrt.f32 %v4721_v38  ;;  %v4776_v29 = vmul.f32 %v6898_v19, %v12064_v43  ;;  %v12081_v26 = vld [vmem:[%s11860_s24 + $0xa8] sm:$0xff]  ;;  %v4973_v43 = vld [vmem:[%s12143_s29 + $0x70] sm:$0xff] }
 0x46f   : > { %v4070_v40 = vpop.xlane.xlu0 %4069  ;;  %v4804_v7 = vmul.f32 %v4775_v61, %v12007_v54  ;;  %15176 = vst [vmem:[#allocation202_spill] sm:$0xff] %v12081_v26 }
 0x470   : > { %6905 = vrsqrt.f32 %v4722_v18  ;;  %v4636_v15 = vmul.f32 %v12067_v27, %v12067_v27  ;;  %v12074_v9 = vmul.f32 0.0012755102, %v4070_v40  ;;  %5264 = vperm.xlu0 %6850, %v4776_v29   ;;  %v4805_v38 = vmul.f32 %v4776_v29, %v12014_v32  ;;  %v12084_v40 = vld [vmem:[%s11860_s24 + $0xb0] sm:$0xff] }
 0x471   : > { %v4534_v50 = vpop.xlane.xlu1 %4533  ;;  %15177 = vst [vmem:[#allocation61_spill] sm:$0xff] %v12084_v40 }
 0x472   : > { %v4665_v16 = vsub.f32 %v4607_v30, %v4636_v15  ;;  %v4637_v41 = vmul.f32 %v12074_v9, %v12074_v9  ;;  %v4608_v23 = vmul.f32 0.0012755102, %v4534_v50  ;;  %5259 = vperm.xlu1 %6849, %v4775_v61  }
 0x473   : > { %v4543_v37 = vpop.xlane.xlu0 %4542  ;;  %v6900_v19 = vpop.eup %6899 }
 0x474   : > { %v4723_v56 = vadd.f32 1e-05, %v4665_v16  ;;  %v4666_v18 = vsub.f32 %v4608_v23, %v4637_v41  ;;  %4883 = vrot.lane.b32.xlu0 %v4805_v38, %s6928_s25  ;;  %v4777_v32 = vmul.f32 %v6900_v19, %v12081_v26  ;;  %v4609_v61 = vmul.f32 0.0012755102, %v4543_v37 }
 0x475   : > { %v6902_v45 = vpop.eup %6901  ;;  %v4079_v30 = vpop.xlane.xlu1 %4078 }
 0x476   : > { %v4724_v15 = vadd.f32 1e-05, %v4666_v18  ;;  %v4580_v39 = vmul.f32 0.0012755102, %v4079_v30  ;;  %4881 = vrot.lane.b32.xlu1 %v4804_v7, %s6928_s25  ;;  %6907 = vrsqrt.f32 %v4723_v56  ;;  %v4778_v54 = vmul.f32 %v6902_v45, %v12084_v40  ;;  %v12092_v30 = vld [vmem:[%s11860_s24 + $0xc0] sm:$0xff]  ;;  %v15202_v40 = vld [vmem:[#allocation169_spill] sm:$0xff] }
 0x477   : > { %v4088_v29 = vpop.xlane.xlu0 %4087  ;;  %15178 = vst [vmem:[#allocation203_spill] sm:$0xff] %v12092_v30  ;;  %v4806_v56 = vmul.f32 %v4777_v32, %v12027_v46 }
 0x478   : > { %6909 = vrsqrt.f32 %v4724_v15  ;;  %v4638_v50 = vmul.f32 %v4580_v39, %v4580_v39  ;;  %v4581_v16 = vmul.f32 0.0012755102, %v4088_v29  ;;  %5274 = vperm.xlu0 %6850, %v4778_v54   ;;  %v4807_v7 = vmul.f32 %v4778_v54, %v12034_v22 }
 0x479   : > { %v4552_v41 = vpop.xlane.xlu1 %4551 }
 0x47a   : > { %v4667_v23 = vsub.f32 %v4609_v61, %v4638_v50  ;;  %v4639_v38 = vmul.f32 %v4581_v16, %v4581_v16  ;;  %v4610_v18 = vmul.f32 0.0012755102, %v4552_v41  ;;  %5269 = vperm.xlu1 %6849, %v4777_v32   ;;  %v4695_v32 = vld [vmem:[%s11860_s24 + $0xd0] sm:$0xff] }
 0x47b   : > { %v6904_v19 = vpop.eup %6903 }
 0x47c   : > { %v4725_v45 = vadd.f32 1e-05, %v4667_v23  ;;  %v4668_v15 = vsub.f32 %v4610_v18, %v4639_v38  ;;  %4887 = vrot.lane.b32.xlu0 %v4807_v7, %s6928_s25  ;;  %v4779_v22 = vmul.f32 %v6904_v19, %v12096_v49  ;;  %v4694_v23 = vld [vmem:[%s11860_s24 + $0xc8] sm:$0xff]  ;;  %v4697_v19 = vld [vmem:[%s11860_s24 + $0xe0] sm:$0xff] }
 0x47d   : > { %v6906_v37 = vpop.eup %6905  ;;  %v15193_v49 = vld [vmem:[#allocation119_spill] sm:$0xff] }
 0x47e   : > { %v4726_v29 = vadd.f32 1e-05, %v4668_v15  ;;  %4885 = vrot.lane.b32.xlu1 %v4806_v56, %s6928_s25  ;;  %v4780_v61 = vmul.f32 %v6906_v37, %v12092_v30  ;;  %6911 = vrsqrt.f32 %v4725_v45  ;;  %v4808_v50 = vmul.f32 %v4779_v22, %v12047_v47  ;;  %v4696_v15 = vld [vmem:[%s11860_s24 + $0xd8] sm:$0xff] }
 0x480   : > { %6913 = vrsqrt.f32 %v4726_v29  ;;  %5284 = vperm.xlu0 %6850, %v4780_v61   ;;  %v4809_v46 = vmul.f32 %v4780_v61, %v12054_v59 }
 0x482   : > { %5279 = vperm.xlu1 %6849, %v4779_v22  }
 0x483   : > { %v6908_v54 = vpop.eup %6907 }
 0x484   : > { %4891 = vrot.lane.b32.xlu0 %v4809_v46, %s6928_s25  ;;  %v4781_v18 = vmul.f32 %v6908_v54, %v4694_v23 }
 0x485   : > { %v6910_v41 = vpop.eup %6909 }
 0x486   : > { %4889 = vrot.lane.b32.xlu1 %v4808_v50, %s6928_s25  ;;  %v4782_v38 = vmul.f32 %v6910_v41, %v4695_v32  ;;  %v4810_v59 = vmul.f32 %v4781_v18, %v12067_v27 }
 0x488   : > { %5294 = vperm.xlu0 %6850, %v4782_v38   ;;  %v4811_v7 = vmul.f32 %v4782_v38, %v12074_v9  ;;  %v6929_v9 = vmov 1  }
 0x48a   : > { %5289 = vperm.xlu1 %6849, %v4781_v18  }
 0x48b   : > { %v6912_v56 = vpop.eup %6911 }
 0x48c   : > { %4895 = vrot.lane.b32.xlu0 %v4811_v7, %s6928_s25  ;;  %v4783_v37 = vmul.f32 %v6912_v56, %v4696_v15 }
 0x48d   : > { %v6914_v45 = vpop.eup %6913 }
 0x48e   : > { %4893 = vrot.lane.b32.xlu1 %v4810_v59, %s6928_s25  ;;  %v4784_v47 = vmul.f32 %v6914_v45, %v4697_v19  ;;  %v4812_v61 = vmul.f32 %v4783_v37, %v4580_v39 }
 0x490   : > { %v4813_v29 = vmul.f32 %v4784_v47, %v4581_v16 }
 0x492   : > { %5299 = vperm.xlu1 %6849, %v4783_v37   ;;  %4899 = vrot.lane.b32.xlu0 %v4813_v29, %s6928_s25  ;;  %v4844_v22 = vpop.permute.xlu0 %4843  ;;  %v15180_v37 = vld [vmem:[#allocation116_spill] sm:$0xff] }
 0x493   : > { %v4930_v27 = vsub.f32 %v11869_v63, %v4844_v22  ;;  %v15181_v22 = vld [vmem:[#allocation117_spill] sm:$0xff] }
 0x496   : > { %4897 = vrot.lane.b32.xlu1 %v4812_v61, %s6928_s25  ;;  %5304 = vperm.xlu0 %6850, %v4784_v47  }
 0x497   : > { %6851 = vset.pattern.permute.xlu1 %v6929_v9 }
 0x499   : > { %v5165_v46 = vpop.permute.xlu1 %5164 }
 0x49a   : > { %5715 = vperm.xlu1 %6851, %v4930_v27   ;;  %6852 = vset.pattern.permute.xlu0 %v6929_v9  ;;  %v5307_v29 = vmul.f32 %v5165_v46, %v15180_v37  ;;  %v5308_v9 = vmul.f32 %v5165_v46, %v15181_v22  ;;  %v15182_v27 = vld [vmem:[#allocation166_spill] sm:$0xff] }
 0x49d   : > { %v4846_v32 = vpop.permute.xlu1 %4845 }
 0x49e   : > { %v4931_v54 = vsub.f32 %v11877_v62, %v4846_v32  ;;  %v5309_v32 = vmul.f32 %v5165_v46, %v15182_v27 }
 0x49f   : > { %v5170_v50 = vpop.permute.xlu0 %5169 }
 0x4a0   : > { %5720 = vperm.xlu0 %6852, %v4931_v54   ;;  %v15183_v54 = vld [vmem:[#allocation167_spill] sm:$0xff]  ;;  %v5315_v30 = vmul.f32 %v5170_v50, %v15193_v49 }
 0x4a5   : > { %v12118_v16 = vpop.permute.xlu1 %5174 }
 0x4a6   : > { %v5324_v35 = vmul.f32 %v12118_v16, %v15202_v40  ;;  %v5325_v36 = vmul.f32 %v12118_v16, %v15203_v34 }
 0x4a9   : > { %v4848_v41 = vpop.permute.xlu1 %4847 }
 0x4aa   : > { %v4932_v39 = vsub.f32 %v11888_v28, %v4848_v41  ;;  %v5310_v41 = vmul.f32 %v5165_v46, %v15183_v54  ;;  %v15192_v54 = vld [vmem:[#allocation118_spill] sm:$0xff] }
 0x4ab   : > { %v12121_v23 = vpop.permute.xlu0 %5184 }
 0x4ac   : > { %5725 = vperm.xlu1 %6851, %v4932_v39   ;;  %v15184_v39 = vld [vmem:[#allocation91_spill] sm:$0xff] }
 0x4ad   : > { %v12123_v38 = vpop.permute.xlu1 %5179 }
 0x4af   : > { %v4852_v63 = vpop.permute.xlu0 %4851 }
 0x4b0   : > { %v4934_v18 = vsub.f32 %v11905_v55, %v4852_v63  ;;  %v5311_v63 = vmul.f32 %v5165_v46, %v15184_v39  ;;  %v5314_v39 = vmul.f32 %v5170_v50, %v15192_v54 }
 0x4b1   : > { %v4850_v7 = vpop.permute.xlu1 %4849 }
 0x4b2   : > { %v4933_v62 = vsub.f32 %v11901_v44, %v4850_v7  ;;  %5735 = vperm.xlu0 %6852, %v4934_v18   ;;  %v4959_v18 = vld [vmem:[%s12143_s29] sm:$0xff]  ;;  %v4960_v7 = vld [vmem:[%s12143_s29 + $0x8] sm:$0xff] }
 0x4b3   : > { %v12127_v19 = vpop.permute.xlu0 %5194  ;;  %v12163_v37 = vadd.f32 %v5307_v29, %v4959_v18 }
 0x4b4   : > { %5730 = vperm.xlu1 %6851, %v4933_v62  }
 0x4b5   : > { %v12129_v56 = vpop.permute.xlu1 %5189  ;;  %15187 = vst [vmem:[#allocation174_spill] sm:$0xff] %v12163_v37 }
 0x4b7   : > { %v4856_v28 = vpop.permute.xlu0 %4855 }
 0x4b8   : > { %v4936_v59 = vsub.f32 %v11924_v17, %v4856_v28  ;;  %v4962_v28 = vld [vmem:[%s12143_s29 + $0x18] sm:$0xff] }
 0x4b9   : > { %v4854_v45 = vpop.permute.xlu1 %4853 }
 0x4ba   : > { %v4935_v15 = vsub.f32 %v11921_v6, %v4854_v45  ;;  %5745 = vperm.xlu0 %6852, %v4936_v59   ;;  %v4963_v59 = vld [vmem:[%s12143_s29 + $0x20] sm:$0xff]  ;;  %v15185_v45 = vld [vmem:[#allocation92_spill] sm:$0xff] }
 0x4bb   : > { %v12134_v47 = vpop.permute.xlu0 %5204  ;;  %v12171_v27 = vadd.f32 %v5311_v63, %v4963_v59  ;;  %v15197_v63 = vld [vmem:[#allocation3_spill] sm:$0xff]  ;;  %v15198_v59 = vld [vmem:[#allocation192_spill] sm:$0xff] }
 0x4bc   : > { %5740 = vperm.xlu1 %6851, %v4935_v15   ;;  %v5312_v15 = vmul.f32 %v5165_v46, %v15185_v45  ;;  %v15194_v45 = vld [vmem:[#allocation168_spill] sm:$0xff] }
 0x4bd   : > { %v12136_v55 = vpop.permute.xlu1 %5199  ;;  %15191 = vst [vmem:[#allocation178_spill] sm:$0xff] %v12171_v27  ;;  %v5316_v26 = vmul.f32 %v5170_v50, %v15194_v45  ;;  %v4967_v45 = vld [vmem:[%s12143_s29 + $0x40] sm:$0xff]  ;;  %v4969_v27 = vld [vmem:[%s12143_s29 + $0x50] sm:$0xff] }
 0x4be   : > { %v12212_v48 = vadd.f32 %v5315_v30, %v4967_v45  ;;  %v15212_v30 = vld [vmem:[#allocation94_spill] sm:$0xff]  ;;  %v15217_v45 = vld [vmem:[#allocation124_spill] sm:$0xff] }
 0x4bf   : > { %v4860_v44 = vpop.permute.xlu0 %4859 }
 0x4c0   : > { %v4938_v6 = vsub.f32 %v11944_v57, %v4860_v44  ;;  %v4961_v57 = vld [vmem:[%s12143_s29 + $0x10] sm:$0xff]  ;;  %v15186_v44 = vld [vmem:[#allocation191_spill] sm:$0xff]  ;;  %15206 = vst [vmem:[#allocation188_spill] sm:$0xff] %v12212_v48  ;;  %v4983_v48 = vld [vmem:[%s12143_s29 + $0xc0] sm:$0xff] }
 0x4c1   : > { %v4858_v17 = vpop.permute.xlu1 %4857  ;;  %v12167_v22 = vadd.f32 %v5309_v32, %v4961_v57  ;;  %v4965_v32 = vld [vmem:[%s12143_s29 + $0x30] sm:$0xff] }
 0x4c2   : > { %v4937_v61 = vsub.f32 %v11941_v58, %v4858_v17  ;;  %5755 = vperm.xlu0 %6852, %v4938_v6   ;;  %v5313_v17 = vmul.f32 %v5165_v46, %v15186_v44  ;;  %v12165_v6 = vadd.f32 %v5308_v9, %v4960_v7  ;;  %v15195_v46 = vld [vmem:[#allocation44_spill] sm:$0xff]  ;;  %v4964_v9 = vld [vmem:[%s12143_s29 + $0x28] sm:$0xff]  ;;  %v5320_v44 = vmul.f32 %v5170_v50, %v15198_v59  ;;  %v4970_v59 = vld [vmem:[%s12143_s29 + $0x58] sm:$0xff] }
 0x4c3   : > { %v12154_v62 = vpop.permute.xlu0 %5214  ;;  %15189 = vst [vmem:[#allocation177_spill] sm:$0xff] %v12167_v22  ;;  %v5317_v29 = vmul.f32 %v5170_v50, %v15195_v46  ;;  %v15196_v7 = vld [vmem:[#allocation60_spill] sm:$0xff]  ;;  %v4968_v46 = vld [vmem:[%s12143_s29 + $0x48] sm:$0xff] }
 0x4c4   : > { %5750 = vperm.xlu1 %6851, %v4937_v61   ;;  %15188 = vst [vmem:[#allocation204_spill] sm:$0xff] %v12165_v6  ;;  %v12169_v61 = vadd.f32 %v5310_v41, %v4962_v28  ;;  %v4966_v41 = vld [vmem:[%s12143_s29 + $0x38] sm:$0xff]  ;;  %v5318_v57 = vmul.f32 %v5170_v50, %v15196_v7  ;;  %v5319_v28 = vmul.f32 %v5170_v50, %v15197_v63  ;;  %v15201_v7 = vld [vmem:[#allocation46_spill] sm:$0xff] }
 0x4c5   : > { %v12159_v58 = vpop.permute.xlu1 %5209  ;;  %v15200_v6 = vld [vmem:[#allocation121_spill] sm:$0xff]  ;;  %v5323_v63 = vmul.f32 %v12118_v16, %v15201_v7  ;;  %v12214_v40 = vadd.f32 %v5316_v26, %v4968_v46  ;;  %v12216_v34 = vadd.f32 %v5317_v29, %v4969_v27  ;;  %v5327_v26 = vmul.f32 %v12118_v16, %v15212_v30  ;;  %v4979_v46 = vld [vmem:[%s12143_s29 + $0xa0] sm:$0xff] }
 0x4c6   : > { %15190 = vst [vmem:[#allocation186_spill] sm:$0xff] %v12169_v61  ;;  %v15199_v61 = vld [vmem:[#allocation120_spill] sm:$0xff]  ;;  %v5322_v37 = vmul.f32 %v12118_v16, %v15200_v6  ;;  %v12203_v6 = vadd.f32 %v5313_v17, %v4965_v32  ;;  %v4974_v7 = vld [vmem:[%s12143_s29 + $0x78] sm:$0xff]  ;;  %v5326_v17 = vmul.f32 %v12118_v16, %v15038_v53  ;;  %v15216_v53 = vld [vmem:[#allocation87_spill] sm:$0xff] }
 0x4c7   : > { %v4864_v18 = vpop.permute.xlu0 %4863  ;;  %v5321_v22 = vmul.f32 %v12118_v16, %v15199_v61  ;;  %v12201_v61 = vadd.f32 %v5312_v15, %v4964_v9  ;;  %15207 = vst [vmem:[#allocation206_spill] sm:$0xff] %v12214_v40  ;;  %15208 = vst [vmem:[#allocation182_spill] sm:$0xff] %v12216_v34  ;;  %v4976_v15 = vld [vmem:[%s12143_s29 + $0x88] sm:$0xff]  ;;  %v4977_v9 = vld [vmem:[%s12143_s29 + $0x90] sm:$0xff]  ;;  %v12285_v40 = vadd.f32 %v5327_v26, %v4979_v46 }
 0x4c8   : > { %v4940_v54 = vsub.f32 %v11964_v12, %v4864_v18  ;;  %v4971_v12 = vld [vmem:[%s12143_s29 + $0x60] sm:$0xff]  ;;  %v4972_v18 = vld [vmem:[%s12143_s29 + $0x68] sm:$0xff]  ;;  %15204 = vst [vmem:[#allocation187_spill] sm:$0xff] %v12203_v6  ;;  %v12234_v29 = vadd.f32 %v5322_v37, %v4974_v7  ;;  %v12246_v16 = vadd.f32 %v5325_v36, %v4977_v9  ;;  %v4989_v36 = vld [vmem:[%s12143_s29 + $0xf0] sm:$0xff]  ;;  %v5341_v9 = vmul.f32 %v12121_v23, %v11370_v21 }
 0x4c9   : > { %v4862_v49 = vpop.permute.xlu1 %4861  ;;  %v12232_v27 = vadd.f32 %v5321_v22, %v4973_v43  ;;  %v15220_v43 = vld [vmem:[#allocation50_spill] sm:$0xff] }
 0x4ca   : > { %v4939_v50 = vsub.f32 %v11961_v0, %v4862_v49  ;;  %5765 = vperm.xlu0 %6852, %v4940_v54   ;;  %v12210_v49 = vadd.f32 %v5314_v39, %v4966_v41  ;;  %v12224_v54 = vadd.f32 %v5318_v57, %v4970_v59  ;;  %v12228_v39 = vadd.f32 %v5320_v44, %v4972_v18  ;;  %v4978_v44 = vld [vmem:[%s12143_s29 + $0x98] sm:$0xff]  ;;  %v15223_v30 = vld [vmem:[#allocation122_spill] sm:$0xff] }
 0x4cb   : > { %v12208_v0 = vpop.permute.xlu0 %5224  ;;  %15213 = vst [vmem:[#allocation190_spill] sm:$0xff] %v12232_v27  ;;  %15214 = vst [vmem:[#allocation208_spill] sm:$0xff] %v12234_v29  ;;  %v12236_v41 = vadd.f32 %v5323_v63, %v4975_v11  ;;  %v5335_v57 = vmul.f32 %v12121_v23, %v15216_v53  ;;  %v12244_v59 = vadd.f32 %v5324_v35, %v4976_v15  ;;  %v15221_v11 = vld [vmem:[#allocation171_spill] sm:$0xff]  ;;  %v4987_v35 = vld [vmem:[%s12143_s29 + $0xe0] sm:$0xff] }
 0x4cc   : > { %5760 = vperm.xlu1 %6851, %v4939_v50   ;;  %15205 = vst [vmem:[#allocation181_spill] sm:$0xff] %v12210_v49  ;;  %15209 = vst [vmem:[#allocation207_spill] sm:$0xff] %v12224_v54  ;;  %v12226_v50 = vadd.f32 %v5319_v28, %v4971_v12  ;;  %v5336_v28 = vmul.f32 %v12121_v23, %v15217_v45  ;;  %v5337_v37 = vmul.f32 %v12121_v23, %v15220_v43  ;;  %v15222_v63 = vld [vmem:[#allocation15_spill] sm:$0xff]  ;;  %v15226_v27 = vld [vmem:[#allocation48_spill] sm:$0xff] }
 0x4cd   : > { %v12222_v32 = vpop.permute.xlu1 %5219  ;;  %15211 = vst [vmem:[#allocation189_spill] sm:$0xff] %v12228_v39  ;;  %15215 = vst [vmem:[#allocation210_spill] sm:$0xff] %v12236_v41  ;;  %v5338_v22 = vmul.f32 %v12121_v23, %v15221_v11  ;;  %v5339_v12 = vmul.f32 %v12121_v23, %v15222_v63  ;;  %v5340_v18 = vmul.f32 %v12121_v23, %v15047_v13  ;;  %v4988_v15 = vld [vmem:[%s12143_s29 + $0xe8] sm:$0xff]  ;;  %v4990_v13 = vld [vmem:[%s12143_s29 + $0xf8] sm:$0xff] }
 0x4ce   : > { %15210 = vst [vmem:[#allocation185_spill] sm:$0xff] %v12226_v50  ;;  %15218 = vst [vmem:[#allocation198_spill] sm:$0xff] %v12244_v59  ;;  %v5328_v53 = vmul.f32 %v12123_v38, %v15223_v30  ;;  %v15224_v45 = vld [vmem:[#allocation123_spill] sm:$0xff]  ;;  %v15225_v41 = vld [vmem:[#allocation170_spill] sm:$0xff]  ;;  %v5331_v21 = vmul.f32 %v12123_v38, %v15226_v27  ;;  %v5333_v50 = vmul.f32 %v12123_v38, %v15041_v3 }
 0x4cf   : > { %15219 = vst [vmem:[#allocation205_spill] sm:$0xff] %v12246_v16  ;;  %v4868_v7 = vpop.permute.xlu0 %4867  ;;  %v5329_v43 = vmul.f32 %v12123_v38, %v15224_v45  ;;  %v4991_v16 = vld [vmem:[%s12143_s29 + $0x100] sm:$0xff]  ;;  %v4992_v59 = vld [vmem:[%s12143_s29 + $0x108] sm:$0xff]  ;;  %v5330_v29 = vmul.f32 %v12123_v38, %v15225_v41  ;;  %v15227_v23 = vld [vmem:[#allocation9_spill] sm:$0xff]  ;;  %v12283_v41 = vadd.f32 %v5326_v17, %v4978_v44  ;;  %v12296_v3 = vadd.f32 %v5337_v37, %v4989_v36 }
 0x4d0   : > { %v4942_v11 = vsub.f32 %v11984_v31, %v4868_v7  ;;  %v5332_v30 = vmul.f32 %v12123_v38, %v15227_v23  ;;  %v4993_v39 = vld [vmem:[%s12143_s29 + $0x110] sm:$0xff]  ;;  %v4980_v31 = vld [vmem:[%s12143_s29 + $0xa8] sm:$0xff]  ;;  %v15228_v54 = vld [vmem:[#allocation193_spill] sm:$0xff]  ;;  %v12298_v6 = vadd.f32 %v5338_v22, %v4990_v13  ;;  %v12305_v26 = vadd.f32 %v5340_v18, %v4992_v59 }
 0x4d1   : > { %v4866_v63 = vpop.permute.xlu1 %4865  ;;  %v4981_v7 = vld [vmem:[%s12143_s29 + $0xb0] sm:$0xff]  ;;  %v5334_v34 = vmul.f32 %v12123_v38, %v15228_v54  ;;  %v4982_v27 = vld [vmem:[%s12143_s29 + $0xb8] sm:$0xff]  ;;  %v4984_v23 = vld [vmem:[%s12143_s29 + $0xc8] sm:$0xff]  ;;  %15229 = vst [vmem:[#allocation213_spill] sm:$0xff] %v12296_v3  ;;  %v12303_v54 = vadd.f32 %v5339_v12, %v4991_v16  ;;  %v12307_v44 = vadd.f32 %v5341_v9, %v4993_v39  ;;  %v12309_v46 = vadd.f32 %v5328_v53, %v4980_v31 }
 0x4d2   : > { %v4941_v45 = vsub.f32 %v11981_v24, %v4866_v63  ;;  %5775 = vperm.xlu0 %6852, %v4942_v11   ;;  %v12292_v24 = vadd.f32 %v5335_v57, %v4987_v35  ;;  %v12294_v63 = vadd.f32 %v5336_v28, %v4988_v15  ;;  %15230 = vst [vmem:[#allocation211_spill] sm:$0xff] %v12298_v6  ;;  %v4985_v38 = vld [vmem:[%s12143_s29 + $0xd0] sm:$0xff]  ;;  %15232 = vst [vmem:[#allocation214_spill] sm:$0xff] %v12305_v26  ;;  %v15239_v35 = vld [vmem:[#allocation90_spill] sm:$0xff] }
 0x4d3   : > { %v12290_v49 = vpop.permute.xlu0 %5234  ;;  %15231 = vst [vmem:[#allocation217_spill] sm:$0xff] %v12303_v54  ;;  %15233 = vst [vmem:[#allocation220_spill] sm:$0xff] %v12307_v44  ;;  %v12311_v57 = vadd.f32 %v5329_v43, %v4981_v7  ;;  %v12313_v28 = vadd.f32 %v5330_v29, %v4982_v27  ;;  %v12315_v37 = vadd.f32 %v5331_v21, %v4983_v48  ;;  %v15240_v59 = vld [vmem:[#allocation128_spill] sm:$0xff]  ;;  %v15241_v12 = vld [vmem:[#allocation54_spill] sm:$0xff] }
 0x4d4   : > { %5770 = vperm.xlu1 %6851, %v4941_v45   ;;  %15234 = vst [vmem:[#allocation221_spill] sm:$0xff] %v12309_v46  ;;  %v12317_v22 = vadd.f32 %v5332_v30, %v4984_v23  ;;  %v5349_v16 = vmul.f32 %v12127_v19, %v15239_v35  ;;  %v5350_v39 = vmul.f32 %v12127_v19, %v15240_v59  ;;  %v4986_v15 = vld [vmem:[%s12143_s29 + $0xd8] sm:$0xff]  ;;  %v5001_v29 = vld [vmem:[%s12143_s29 + $0x150] sm:$0xff]  ;;  %v15243_v9 = vld [vmem:[#allocation127_spill] sm:$0xff] }
 0x4d5   : > { %v12301_v17 = vpop.permute.xlu1 %5229  ;;  %15235 = vst [vmem:[#allocation215_spill] sm:$0xff] %v12311_v57  ;;  %15236 = vst [vmem:[#allocation216_spill] sm:$0xff] %v12313_v28  ;;  %v5351_v18 = vmul.f32 %v12127_v19, %v15241_v12  ;;  %v12326_v36 = vadd.f32 %v5333_v50, %v4985_v38  ;;  %v5352_v48 = vmul.f32 %v12127_v19, %v15243_v9  ;;  %v15244_v43 = vld [vmem:[#allocation29_spill] sm:$0xff]  ;;  %v15245_v13 = vld [vmem:[#allocation7_spill] sm:$0xff] }
 0x4d6   : > { %15237 = vst [vmem:[#allocation223_spill] sm:$0xff] %v12315_v37  ;;  %15238 = vst [vmem:[#allocation224_spill] sm:$0xff] %v12317_v22  ;;  %v5353_v53 = vmul.f32 %v12127_v19, %v15052_v14  ;;  %v5354_v11 = vmul.f32 %v12127_v19, %v15244_v43  ;;  %v5355_v21 = vmul.f32 %v12127_v19, %v15245_v13  ;;  %v5002_v45 = vld [vmem:[%s12143_s29 + $0x158] sm:$0xff]  ;;  %v5003_v50 = vld [vmem:[%s12143_s29 + $0x160] sm:$0xff] }
 0x4d7   : > { %15242 = vst [vmem:[#allocation227_spill] sm:$0xff] %v12326_v36  ;;  %v4872_v30 = vpop.permute.xlu0 %4871  ;;  %v5004_v31 = vld [vmem:[%s12143_s29 + $0x168] sm:$0xff]  ;;  %v15246_v7 = vld [vmem:[#allocation125_spill] sm:$0xff]  ;;  %v15247_v23 = vld [vmem:[#allocation126_spill] sm:$0xff]  ;;  %v12362_v44 = vadd.f32 %v5334_v34, %v4986_v15  ;;  %v12364_v26 = vadd.f32 %v5349_v16, %v5001_v29 }
 0x4d8   : > { %v5342_v27 = vmul.f32 %v12129_v56, %v15246_v7  ;;  %v5343_v38 = vmul.f32 %v12129_v56, %v15247_v23  ;;  %v15248_v14 = vld [vmem:[#allocation172_spill] sm:$0xff]  ;;  %v4944_v59 = vsub.f32 %v12004_v60, %v4872_v30  ;;  %v5006_v9 = vld [vmem:[%s12143_s29 + $0x178] sm:$0xff]  ;;  %v5007_v43 = vld [vmem:[%s12143_s29 + $0x180] sm:$0xff] }
 0x4d9   : > { %v5344_v35 = vmul.f32 %v12129_v56, %v15248_v14  ;;  %v4870_v12 = vpop.permute.xlu1 %4869  ;;  %v5005_v19 = vld [vmem:[%s12143_s29 + $0x170] sm:$0xff]  ;;  %v15250_v22 = vld [vmem:[#allocation21_spill] sm:$0xff]  ;;  %v15251_v37 = vld [vmem:[#allocation23_spill] sm:$0xff] }
 0x4da   : > { %v15249_v13 = vld [vmem:[#allocation52_spill] sm:$0xff]  ;;  %v5346_v7 = vmul.f32 %v12129_v56, %v15250_v22  ;;  %v5347_v23 = vmul.f32 %v12129_v56, %v15251_v37  ;;  %v4943_v14 = vsub.f32 %v12001_v4, %v4870_v12  ;;  %v4994_v28 = vld [vmem:[%s12143_s29 + $0x118] sm:$0xff]  ;;  %v4995_v60 = vld [vmem:[%s12143_s29 + $0x120] sm:$0xff]  ;;  %5785 = vperm.xlu0 %6852, %v4944_v59   ;;  %v12373_v4 = vadd.f32 %v5351_v18, %v5003_v50 }
 0x4db   : > { %v5345_v36 = vmul.f32 %v12129_v56, %v15249_v13  ;;  %v4996_v30 = vld [vmem:[%s12143_s29 + $0x128] sm:$0xff]  ;;  %v15252_v57 = vld [vmem:[#allocation62_spill] sm:$0xff]  ;;  %v12366_v13 = vadd.f32 %v5350_v39, %v5002_v45  ;;  %v4997_v22 = vld [vmem:[%s12143_s29 + $0x130] sm:$0xff]  ;;  %v12371_v37 = vpop.permute.xlu0 %5244  ;;  %v12375_v12 = vadd.f32 %v5352_v48, %v5004_v31  ;;  %v12377_v3 = vadd.f32 %v5353_v53, %v5005_v19 }
 0x4dc   : > { %v5348_v46 = vmul.f32 %v12129_v56, %v15252_v57  ;;  %v4998_v54 = vld [vmem:[%s12143_s29 + $0x138] sm:$0xff]  ;;  %v4999_v6 = vld [vmem:[%s12143_s29 + $0x140] sm:$0xff]  ;;  %5780 = vperm.xlu1 %6851, %v4943_v14   ;;  %v12379_v56 = vadd.f32 %v5354_v11, %v5006_v9  ;;  %v12383_v57 = vadd.f32 %v5355_v21, %v5007_v43  ;;  %v12385_v16 = vadd.f32 %v5342_v27, %v4994_v28  ;;  %v5000_v48 = vld [vmem:[%s12143_s29 + $0x148] sm:$0xff] }
 0x4dd   : > { %v12381_v34 = vpop.permute.xlu1 %5239  ;;  %v12387_v39 = vadd.f32 %v5343_v38, %v4995_v60  ;;  %v12389_v15 = vadd.f32 %v5344_v35, %v4996_v30  ;;  %v15258_v18 = vld [vmem:[#allocation134_spill] sm:$0xff]  ;;  %v12394_v53 = vadd.f32 %v5345_v36, %v4997_v22  ;;  %v12396_v11 = vadd.f32 %v5346_v7, %v4998_v54  ;;  %v15262_v21 = vld [vmem:[#allocation93_spill] sm:$0xff]  ;;  %v15263_v50 = vld [vmem:[#allocation56_spill] sm:$0xff] }
 0x4de   : > { %15253 = vst [vmem:[#allocation116_spill] sm:$0xff] %v12379_v56  ;;  %15254 = vst [vmem:[#allocation117_spill] sm:$0xff] %v12383_v57  ;;  %v5363_v29 = vmul.f32 %v12134_v47, %v15258_v18  ;;  %v12398_v45 = vadd.f32 %v5347_v23, %v4999_v6  ;;  %v5364_v28 = vmul.f32 %v12134_v47, %v15262_v21  ;;  %v15264_v27 = vld [vmem:[#allocation133_spill] sm:$0xff]  ;;  %v5015_v36 = vld [vmem:[%s12143_s29 + $0x1c0] sm:$0xff] }
 0x4df   : > { %15255 = vst [vmem:[#allocation166_spill] sm:$0xff] %v12385_v16  ;;  %15256 = vst [vmem:[#allocation167_spill] sm:$0xff] %v12387_v39  ;;  %v5365_v31 = vmul.f32 %v12134_v47, %v15263_v50  ;;  %v5366_v38 = vmul.f32 %v12134_v47, %v15264_v27  ;;  %v5367_v35 = vmul.f32 %v12134_v47, %v15063_v1  ;;  %v5016_v59 = vld [vmem:[%s12143_s29 + $0x1c8] sm:$0xff]  ;;  %v5017_v54 = vld [vmem:[%s12143_s29 + $0x1d0] sm:$0xff]  ;;  %v4876_v14 = vpop.permute.xlu0 %4875 }
 0x4e0   : > { %15257 = vst [vmem:[#allocation91_spill] sm:$0xff] %v12389_v15  ;;  %15259 = vst [vmem:[#allocation92_spill] sm:$0xff] %v12394_v53  ;;  %v5368_v6 = vmul.f32 %v12134_v47, %v15067_v25  ;;  %v5369_v19 = vmul.f32 %v12134_v47, %v11449_v20  ;;  %v15265_v9 = vld [vmem:[#allocation130_spill] sm:$0xff]  ;;  %v15266_v7 = vld [vmem:[#allocation132_spill] sm:$0xff]  ;;  %v5360_v20 = vmul.f32 %v12136_v55, %v15055_v2 }
 0x4e1   : > { %15260 = vst [vmem:[#allocation191_spill] sm:$0xff] %v12396_v11  ;;  %15261 = vst [vmem:[#allocation118_spill] sm:$0xff] %v12398_v45  ;;  %v5356_v43 = vmul.f32 %v12136_v55, %v15265_v9  ;;  %v5357_v23 = vmul.f32 %v12136_v55, %v15266_v7  ;;  %v5018_v1 = vld [vmem:[%s12143_s29 + $0x1d8] sm:$0xff]  ;;  %v5019_v60 = vld [vmem:[%s12143_s29 + $0x1e0] sm:$0xff]  ;;  %v4946_v47 = vsub.f32 %v12024_v42, %v4876_v14  ;;  %v4874_v50 = vpop.permute.xlu1 %4873 }
 0x4e2   : > { %v5020_v30 = vld [vmem:[%s12143_s29 + $0x1e8] sm:$0xff]  ;;  %v15267_v22 = vld [vmem:[#allocation129_spill] sm:$0xff]  ;;  %v5021_v27 = vld [vmem:[%s12143_s29 + $0x1f0] sm:$0xff]  ;;  %v5361_v45 = vmul.f32 %v12136_v55, %v15060_v52  ;;  %v4945_v53 = vsub.f32 %v12021_v51, %v4874_v50  ;;  %v12442_v42 = vadd.f32 %v5363_v29, %v5015_v36  ;;  %v12444_v14 = vadd.f32 %v5364_v28, %v5016_v59 }
 0x4e3   : > { %v5358_v18 = vmul.f32 %v12136_v55, %v15267_v22  ;;  %v15268_v25 = vld [vmem:[#allocation131_spill] sm:$0xff]  ;;  %v5009_v7 = vld [vmem:[%s12143_s29 + $0x190] sm:$0xff]  ;;  %v5010_v15 = vld [vmem:[%s12143_s29 + $0x198] sm:$0xff]  ;;  %5795 = vperm.xlu0 %6852, %v4946_v47   ;;  %v12446_v16 = vadd.f32 %v5365_v31, %v5017_v54  ;;  %v12448_v57 = vadd.f32 %v5366_v38, %v5018_v1  ;;  %v12454_v51 = vadd.f32 %v5367_v35, %v5019_v60 }
 0x4e4   : > { %v5359_v21 = vmul.f32 %v12136_v55, %v15268_v25  ;;  %v5008_v9 = vld [vmem:[%s12143_s29 + $0x188] sm:$0xff]  ;;  %v12437_v25 = vadd.f32 %v5348_v46, %v5000_v48  ;;  %v5011_v2 = vld [vmem:[%s12143_s29 + $0x1a0] sm:$0xff]  ;;  %v5013_v52 = vld [vmem:[%s12143_s29 + $0x1b0] sm:$0xff]  ;;  %5790 = vperm.xlu1 %6851, %v4945_v53   ;;  %v12456_v46 = vadd.f32 %v5368_v6, %v5020_v30  ;;  %v12458_v48 = vadd.f32 %v5369_v19, %v5021_v27 }
 0x4e5   : > { %v15269_v11 = vld [vmem:[#allocation195_spill] sm:$0xff]  ;;  %v5014_v56 = vld [vmem:[%s12143_s29 + $0x1b8] sm:$0xff]  ;;  %15270 = vst [vmem:[#allocation119_spill] sm:$0xff] %v12454_v51  ;;  %v12460_v29 = vadd.f32 %v5356_v43, %v5008_v9  ;;  %v12464_v28 = vadd.f32 %v5357_v23, %v5009_v7  ;;  %v12466_v31 = vadd.f32 %v5358_v18, %v5010_v15  ;;  %v15279_v59 = vld [vmem:[#allocation98_spill] sm:$0xff]  ;;  %v12476_v6 = vadd.f32 %v5361_v45, %v5013_v52 }
 0x4e6   : > { %v5362_v22 = vmul.f32 %v12136_v55, %v15269_v11  ;;  %v5012_v39 = vld [vmem:[%s12143_s29 + $0x1a8] sm:$0xff]  ;;  %v12452_v55 = vpop.permute.xlu0 %5254  ;;  %15271 = vst [vmem:[#allocation168_spill] sm:$0xff] %v12456_v46  ;;  %15272 = vst [vmem:[#allocation44_spill] sm:$0xff] %v12458_v48  ;;  %v12462_v11 = vpop.permute.xlu1 %5249  ;;  %v12468_v38 = vadd.f32 %v5359_v21, %v5011_v2  ;;  %v15278_v35 = vld [vmem:[#allocation97_spill] sm:$0xff]  ;;  %v5378_v54 = vmul.f32 %v12154_v62, %v15279_v59 }
 0x4e7   : > { %15273 = vst [vmem:[#allocation60_spill] sm:$0xff] %v12460_v29  ;;  %15274 = vst [vmem:[#allocation3_spill] sm:$0xff] %v12464_v28  ;;  %v12470_v53 = vadd.f32 %v5360_v20, %v5012_v39  ;;  %v5377_v36 = vmul.f32 %v12154_v62, %v15278_v35  ;;  %v5029_v43 = vld [vmem:[%s12143_s29 + $0x230] sm:$0xff]  ;;  %v15283_v1 = vld [vmem:[#allocation137_spill] sm:$0xff]  ;;  %v5382_v18 = vmul.f32 %v12154_v62, %v15076_v33 }
 0x4e8   : > { %15275 = vst [vmem:[#allocation192_spill] sm:$0xff] %v12466_v31  ;;  %15276 = vst [vmem:[#allocation120_spill] sm:$0xff] %v12468_v38  ;;  %v12478_v19 = vadd.f32 %v5362_v22, %v5014_v56  ;;  %v15282_v15 = vld [vmem:[#allocation136_spill] sm:$0xff]  ;;  %v5380_v39 = vmul.f32 %v12154_v62, %v15283_v1  ;;  %v15284_v60 = vld [vmem:[#allocation51_spill] sm:$0xff]  ;;  %v5383_v20 = vmul.f32 %v12154_v62, %v11490_v5 }
 0x4e9   : > { %15277 = vst [vmem:[#allocation121_spill] sm:$0xff] %v12470_v53  ;;  %15280 = vst [vmem:[#allocation46_spill] sm:$0xff] %v12476_v6  ;;  %v5379_v23 = vmul.f32 %v12154_v62, %v15282_v15  ;;  %v5381_v30 = vmul.f32 %v12154_v62, %v15284_v60  ;;  %v5030_v21 = vld [vmem:[%s12143_s29 + $0x238] sm:$0xff]  ;;  %v5031_v45 = vld [vmem:[%s12143_s29 + $0x240] sm:$0xff]  ;;  %v12516_v28 = vadd.f32 %v5377_v36, %v5029_v43 }
 0x4ea   : > { %15281 = vst [vmem:[#allocation169_spill] sm:$0xff] %v12478_v19  ;;  %v5032_v56 = vld [vmem:[%s12143_s29 + $0x248] sm:$0xff]  ;;  %v15286_v27 = vld [vmem:[#allocation96_spill] sm:$0xff]  ;;  %v15287_v7 = vld [vmem:[#allocation58_spill] sm:$0xff]  ;;  %v4880_v2 = vpop.permute.xlu0 %4879 }
 0x4eb   : > { %v15285_v47 = vld [vmem:[#allocation95_spill] sm:$0xff]  ;;  %v5371_v9 = vmul.f32 %v12159_v58, %v15286_v27  ;;  %v5372_v22 = vmul.f32 %v12159_v58, %v15287_v7  ;;  %v5033_v33 = vld [vmem:[%s12143_s29 + $0x250] sm:$0xff]  ;;  %v5034_v52 = vld [vmem:[%s12143_s29 + $0x258] sm:$0xff]  ;;  %v4878_v27 = vpop.permute.xlu1 %4877 }
 0x4ec   : > { %v5370_v50 = vmul.f32 %v12159_v58, %v15285_v47  ;;  %v5035_v35 = vld [vmem:[%s12143_s29 + $0x260] sm:$0xff]  ;;  %v15288_v59 = vld [vmem:[#allocation135_spill] sm:$0xff]  ;;  %v15289_v5 = vld [vmem:[#allocation45_spill] sm:$0xff]  ;;  %v4948_v47 = vsub.f32 %v12044_v8, %v4880_v2  ;;  %v4947_v31 = vsub.f32 %v12041_v10, %v4878_v27  ;;  %v12525_v8 = vadd.f32 %v5380_v39, %v5032_v56 }
 0x4ed   : > { %v5373_v15 = vmul.f32 %v12159_v58, %v15288_v59  ;;  %v5374_v62 = vmul.f32 %v12159_v58, %v15289_v5  ;;  %v15290_v1 = vld [vmem:[#allocation47_spill] sm:$0xff]  ;;  %v5022_v7 = vld [vmem:[%s12143_s29 + $0x1f8] sm:$0xff]  ;;  %v5023_v19 = vld [vmem:[%s12143_s29 + $0x200] sm:$0xff]  ;;  %v12518_v59 = vadd.f32 %v5378_v54, %v5030_v21  ;;  %v12527_v2 = vadd.f32 %v5381_v30, %v5033_v33 }
 0x4ee   : > { %v5375_v60 = vmul.f32 %v12159_v58, %v15290_v1  ;;  %v5024_v6 = vld [vmem:[%s12143_s29 + $0x208] sm:$0xff]  ;;  %v15291_v53 = vld [vmem:[#allocation196_spill] sm:$0xff]  ;;  %v5026_v29 = vld [vmem:[%s12143_s29 + $0x218] sm:$0xff]  ;;  %5805 = vperm.xlu0 %6852, %v4948_v47   ;;  %v12523_v1 = vadd.f32 %v5379_v23, %v5031_v45  ;;  %15294 = vst [vmem:[#allocation87_spill] sm:$0xff] %v12525_v8  ;;  %v12529_v46 = vadd.f32 %v5382_v18, %v5034_v52 }
 0x4ef   : > { %v5376_v38 = vmul.f32 %v12159_v58, %v15291_v53  ;;  %15292 = vst [vmem:[#allocation5_spill] sm:$0xff] %v12518_v59  ;;  %v5025_v5 = vld [vmem:[%s12143_s29 + $0x210] sm:$0xff]  ;;  %v5027_v48 = vld [vmem:[%s12143_s29 + $0x220] sm:$0xff]  ;;  %15295 = vst [vmem:[#allocation124_spill] sm:$0xff] %v12527_v2  ;;  %v12532_v58 = vpop.permute.xlu0 %5264  ;;  %5800 = vperm.xlu1 %6851, %v4947_v31   ;;  %v12534_v10 = vadd.f32 %v5383_v20, %v5035_v35  ;;  %v12536_v53 = vadd.f32 %v5370_v50, %v5022_v7  ;;  %v12544_v39 = vpop.permute.xlu1 %5259 }
 0x4f0   : > { %15293 = vst [vmem:[#allocation94_spill] sm:$0xff] %v12523_v1  ;;  %15296 = vst [vmem:[#allocation50_spill] sm:$0xff] %v12529_v46  ;;  %v5028_v51 = vld [vmem:[%s12143_s29 + $0x228] sm:$0xff]  ;;  %v12538_v36 = vadd.f32 %v5371_v9, %v5023_v19  ;;  %v12540_v54 = vadd.f32 %v5372_v22, %v5024_v6  ;;  %v12546_v30 = vadd.f32 %v5373_v15, %v5025_v5  ;;  %v15305_v21 = vld [vmem:[#allocation101_spill] sm:$0xff] }
 0x4f1   : > { %15297 = vst [vmem:[#allocation171_spill] sm:$0xff] %v12534_v10  ;;  %15298 = vst [vmem:[#allocation15_spill] sm:$0xff] %v12536_v53  ;;  %v15301_v43 = vld [vmem:[#allocation143_spill] sm:$0xff]  ;;  %v12548_v31 = vadd.f32 %v5374_v62, %v5026_v29  ;;  %v12550_v18 = vadd.f32 %v5375_v60, %v5027_v48  ;;  %v5392_v19 = vmul.f32 %v12208_v0, %v15305_v21  ;;  %v15307_v56 = vld [vmem:[#allocation140_spill] sm:$0xff] }
 0x4f2   : > { %15299 = vst [vmem:[#allocation122_spill] sm:$0xff] %v12538_v36  ;;  %15300 = vst [vmem:[#allocation123_spill] sm:$0xff] %v12540_v54  ;;  %v5391_v23 = vmul.f32 %v12208_v0, %v15301_v43  ;;  %v15306_v45 = vld [vmem:[#allocation139_spill] sm:$0xff]  ;;  %v5394_v20 = vmul.f32 %v12208_v0, %v15307_v56  ;;  %v12558_v50 = vadd.f32 %v5376_v38, %v5028_v51  ;;  %v5043_v9 = vld [vmem:[%s12143_s29 + $0x2a0] sm:$0xff] }
 0x4f3   : > { %15302 = vst [vmem:[#allocation170_spill] sm:$0xff] %v12546_v30  ;;  %15303 = vst [vmem:[#allocation48_spill] sm:$0xff] %v12548_v31  ;;  %v5393_v6 = vmul.f32 %v12208_v0, %v15306_v45  ;;  %v5044_v22 = vld [vmem:[%s12143_s29 + $0x2a8] sm:$0xff]  ;;  %v5045_v29 = vld [vmem:[%s12143_s29 + $0x2b0] sm:$0xff]  ;;  %v4882_v36 = vpop.permute.xlu1 %4881 }
 0x4f4   : > { %15304 = vst [vmem:[#allocation9_spill] sm:$0xff] %v12550_v18  ;;  %15308 = vst [vmem:[#allocation193_spill] sm:$0xff] %v12558_v50  ;;  %v15309_v33 = vld [vmem:[#allocation111_spill] sm:$0xff]  ;;  %v15310_v52 = vld [vmem:[#allocation77_spill] sm:$0xff]  ;;  %v12590_v53 = vadd.f32 %v5391_v23, %v5043_v9  ;;  %v12596_v8 = vadd.f32 %v5392_v19, %v5044_v22 }
 0x4f5   : > { %v5395_v48 = vmul.f32 %v12208_v0, %v15309_v33  ;;  %v5396_v35 = vmul.f32 %v12208_v0, %v15310_v52  ;;  %v15311_v15 = vld [vmem:[#allocation13_spill] sm:$0xff]  ;;  %v15312_v60 = vld [vmem:[#allocation99_spill] sm:$0xff]  ;;  %v5047_v38 = vld [vmem:[%s12143_s29 + $0x2c0] sm:$0xff]  ;;  %v4884_v52 = vpop.permute.xlu0 %4883  ;;  %v12598_v1 = vadd.f32 %v5393_v6, %v5045_v29 }
 0x4f6   : > { %v5397_v62 = vmul.f32 %v12208_v0, %v15311_v15  ;;  %v5384_v47 = vmul.f32 %v12222_v32, %v15312_v60  ;;  %v5046_v51 = vld [vmem:[%s12143_s29 + $0x2b8] sm:$0xff]  ;;  %v5048_v27 = vld [vmem:[%s12143_s29 + $0x2c8] sm:$0xff]  ;;  %v15313_v7 = vld [vmem:[#allocation100_spill] sm:$0xff]  ;;  %15320 = vst [vmem:[#allocation90_spill] sm:$0xff] %v12590_v53 }
 0x4f7   : > { %v5385_v5 = vmul.f32 %v12222_v32, %v15313_v7  ;;  %v15314_v43 = vld [vmem:[#allocation138_spill] sm:$0xff]  ;;  %v15316_v33 = vld [vmem:[#allocation57_spill] sm:$0xff]  ;;  %v5049_v15 = vld [vmem:[%s12143_s29 + $0x2d0] sm:$0xff]  ;;  %15322 = vst [vmem:[#allocation128_spill] sm:$0xff] %v12596_v8  ;;  %v12600_v59 = vadd.f32 %v5394_v20, %v5046_v51 }
 0x4f8   : > { %v5386_v21 = vmul.f32 %v12222_v32, %v15314_v43  ;;  %v15315_v45 = vld [vmem:[#allocation2_spill] sm:$0xff]  ;;  %v5388_v0 = vmul.f32 %v12222_v32, %v15316_v33  ;;  %v5036_v60 = vld [vmem:[%s12143_s29 + $0x268] sm:$0xff]  ;;  %v5037_v50 = vld [vmem:[%s12143_s29 + $0x270] sm:$0xff]  ;;  %15323 = vst [vmem:[#allocation54_spill] sm:$0xff] %v12598_v1  ;;  %v12607_v23 = vadd.f32 %v5397_v62, %v5049_v15 }
 0x4f9   : > { %v5387_v56 = vmul.f32 %v12222_v32, %v15315_v45  ;;  %v15317_v18 = vld [vmem:[#allocation59_spill] sm:$0xff]  ;;  %v15319_v54 = vld [vmem:[#allocation53_spill] sm:$0xff]  ;;  %v5039_v10 = vld [vmem:[%s12143_s29 + $0x280] sm:$0xff]  ;;  %15324 = vst [vmem:[#allocation127_spill] sm:$0xff] %v12600_v59  ;;  %v12610_v9 = vadd.f32 %v5384_v47, %v5036_v60 }
 0x4fa   : > { %v5389_v31 = vmul.f32 %v12222_v32, %v15317_v18  ;;  %v15318_v30 = vld [vmem:[#allocation63_spill] sm:$0xff]  ;;  %v4950_v43 = vsub.f32 %v15319_v54, %v4884_v52  ;;  %v5038_v45 = vld [vmem:[%s12143_s29 + $0x278] sm:$0xff]  ;;  %v5041_v18 = vld [vmem:[%s12143_s29 + $0x290] sm:$0xff]  ;;  %v12605_v54 = vadd.f32 %v5396_v35, %v5048_v27  ;;  %15327 = vst [vmem:[#allocation125_spill] sm:$0xff] %v12607_v23  ;;  %v12612_v52 = vpop.permute.xlu0 %5274 }
 0x4fb   : > { %v5390_v7 = vmul.f32 %v12222_v32, %v15318_v30  ;;  %v5040_v33 = vld [vmem:[%s12143_s29 + $0x288] sm:$0xff]  ;;  %v12603_v32 = vadd.f32 %v5395_v48, %v5047_v38  ;;  %v5042_v30 = vld [vmem:[%s12143_s29 + $0x298] sm:$0xff]  ;;  %15328 = vst [vmem:[#allocation126_spill] sm:$0xff] %v12610_v9  ;;  %v12618_v19 = vadd.f32 %v5387_v56, %v5039_v10  ;;  %v15333_v20 = vld [vmem:[#allocation8_spill] sm:$0xff] }
 0x4fc   : > { %v15321_v46 = vld [vmem:[#allocation55_spill] sm:$0xff]  ;;  %5815 = vperm.xlu0 %6852, %v4950_v43   ;;  %15326 = vst [vmem:[#allocation7_spill] sm:$0xff] %v12605_v54  ;;  %v12620_v6 = vadd.f32 %v5388_v0, %v5040_v33  ;;  %v5405_v22 = vmul.f32 %v12290_v49, %v15333_v20  ;;  %v15334_v29 = vld [vmem:[#allocation102_spill] sm:$0xff]  ;;  %v12630_v62 = vadd.f32 %v5389_v31, %v5041_v18  ;;  %v5057_v10 = vld [vmem:[%s12143_s29 + $0x310] sm:$0xff] }
 0x4fd   : > { %v4949_v2 = vsub.f32 %v15321_v46, %v4882_v36  ;;  %15325 = vst [vmem:[#allocation29_spill] sm:$0xff] %v12603_v32  ;;  %v12614_v46 = vadd.f32 %v5385_v5, %v5037_v50  ;;  %v12616_v36 = vadd.f32 %v5386_v21, %v5038_v45  ;;  %15331 = vst [vmem:[#allocation21_spill] sm:$0xff] %v12618_v19  ;;  %v15335_v35 = vld [vmem:[#allocation142_spill] sm:$0xff]  ;;  %v12628_v50 = vpop.permute.xlu1 %5269  ;;  %v15337_v47 = vld [vmem:[#allocation64_spill] sm:$0xff] }
 0x4fe   : > { %15332 = vst [vmem:[#allocation23_spill] sm:$0xff] %v12620_v6  ;;  %v5406_v48 = vmul.f32 %v12290_v49, %v15334_v29  ;;  %15336 = vst [vmem:[#allocation62_spill] sm:$0xff] %v12630_v62  ;;  %v5408_v51 = vmul.f32 %v12290_v49, %v15337_v47  ;;  %v15338_v38 = vld [vmem:[#allocation175_spill] sm:$0xff]  ;;  %v15339_v5 = vld [vmem:[#allocation176_spill] sm:$0xff]  ;;  %v12639_v56 = vadd.f32 %v5390_v7, %v5042_v30  ;;  %v4888_v6 = vpop.permute.xlu0 %4887 }
 0x4ff   : > { %5810 = vperm.xlu1 %6851, %v4949_v2   ;;  %15329 = vst [vmem:[#allocation172_spill] sm:$0xff] %v12614_v46  ;;  %15330 = vst [vmem:[#allocation52_spill] sm:$0xff] %v12616_v36  ;;  %v5407_v2 = vmul.f32 %v12290_v49, %v15335_v35  ;;  %v5409_v27 = vmul.f32 %v12290_v49, %v15338_v38  ;;  %v5410_v21 = vmul.f32 %v12290_v49, %v15339_v5  ;;  %v5058_v0 = vld [vmem:[%s12143_s29 + $0x318] sm:$0xff]  ;;  %v5059_v15 = vld [vmem:[%s12143_s29 + $0x320] sm:$0xff] }
 0x500   : > { %15340 = vst [vmem:[#allocation134_spill] sm:$0xff] %v12639_v56  ;;  %v5060_v60 = vld [vmem:[%s12143_s29 + $0x328] sm:$0xff]  ;;  %v15342_v45 = vld [vmem:[#allocation145_spill] sm:$0xff]  ;;  %v15343_v18 = vld [vmem:[#allocation146_spill] sm:$0xff]  ;;  %v12667_v54 = vadd.f32 %v5405_v22, %v5057_v10 }
 0x501   : > { %v15341_v31 = vld [vmem:[#allocation19_spill] sm:$0xff]  ;;  %v5398_v33 = vmul.f32 %v12301_v17, %v15342_v45  ;;  %v5399_v20 = vmul.f32 %v12301_v17, %v15343_v18  ;;  %v15344_v29 = vld [vmem:[#allocation141_spill] sm:$0xff]  ;;  %v5061_v7 = vld [vmem:[%s12143_s29 + $0x330] sm:$0xff]  ;;  %v4886_v23 = vpop.permute.xlu1 %4885 }
 0x502   : > { %v5411_v43 = vmul.f32 %v12290_v49, %v15341_v31  ;;  %v5400_v35 = vmul.f32 %v12301_v17, %v15344_v29  ;;  %v5062_v30 = vld [vmem:[%s12143_s29 + $0x338] sm:$0xff]  ;;  %v5063_v47 = vld [vmem:[%s12143_s29 + $0x340] sm:$0xff]  ;;  %v15345_v38 = vld [vmem:[#allocation4_spill] sm:$0xff] }
 0x503   : > { %v5401_v5 = vmul.f32 %v12301_v17, %v15345_v38  ;;  %v15346_v56 = vld [vmem:[#allocation32_spill] sm:$0xff]  ;;  %v15347_v31 = vld [vmem:[#allocation161_spill] sm:$0xff]  ;;  %v15348_v62 = vld [vmem:[#allocation11_spill] sm:$0xff]  ;;  %v12669_v38 = vadd.f32 %v5406_v48, %v5058_v0  ;;  %v12680_v8 = vadd.f32 %v5410_v21, %v5062_v30 }
 0x504   : > { %v5402_v49 = vmul.f32 %v12301_v17, %v15346_v56  ;;  %v5403_v45 = vmul.f32 %v12301_v17, %v15347_v31  ;;  %v5404_v18 = vmul.f32 %v12301_v17, %v15348_v62  ;;  %v5050_v29 = vld [vmem:[%s12143_s29 + $0x2d8] sm:$0xff]  ;;  %v5051_v19 = vld [vmem:[%s12143_s29 + $0x2e0] sm:$0xff]  ;;  %v5052_v36 = vld [vmem:[%s12143_s29 + $0x2e8] sm:$0xff]  ;;  %v12671_v56 = vadd.f32 %v5407_v2, %v5059_v15 }
 0x505   : > { %v15349_v46 = vld [vmem:[#allocation61_spill] sm:$0xff]  ;;  %15350 = vst [vmem:[#allocation93_spill] sm:$0xff] %v12669_v38  ;;  %v5053_v32 = vld [vmem:[%s12143_s29 + $0x2f0] sm:$0xff]  ;;  %v15352_v59 = vld [vmem:[#allocation202_spill] sm:$0xff]  ;;  %v12676_v17 = vadd.f32 %v5408_v51, %v5060_v60  ;;  %v12678_v62 = vadd.f32 %v5409_v27, %v5061_v7  ;;  %v12686_v22 = vadd.f32 %v5398_v33, %v5050_v29  ;;  %v12688_v48 = vadd.f32 %v5399_v20, %v5051_v19  ;;  %v12696_v27 = vpop.permute.xlu0 %5284  ;;  %v12708_v33 = vpop.permute.xlu1 %5279 }
 0x506   : > { %v4952_v9 = vsub.f32 %v15349_v46, %v4888_v6  ;;  %15351 = vst [vmem:[#allocation56_spill] sm:$0xff] %v12671_v56  ;;  %v5054_v31 = vld [vmem:[%s12143_s29 + $0x2f8] sm:$0xff]  ;;  %v4951_v1 = vsub.f32 %v15352_v59, %v4886_v23  ;;  %15355 = vst [vmem:[#allocation132_spill] sm:$0xff] %v12680_v8  ;;  %v5055_v53 = vld [vmem:[%s12143_s29 + $0x300] sm:$0xff]  ;;  %v12683_v46 = vadd.f32 %v5411_v43, %v5063_v47 }
 0x507   : > { %15353 = vst [vmem:[#allocation133_spill] sm:$0xff] %v12676_v17  ;;  %15354 = vst [vmem:[#allocation130_spill] sm:$0xff] %v12678_v62  ;;  %v5056_v6 = vld [vmem:[%s12143_s29 + $0x308] sm:$0xff]  ;;  %v12690_v2 = vadd.f32 %v5400_v35, %v5052_v36  ;;  %v15360_v59 = vld [vmem:[#allocation12_spill] sm:$0xff]  ;;  %v12700_v21 = vadd.f32 %v5402_v49, %v5054_v31  ;;  %v12710_v20 = vadd.f32 %v5403_v45, %v5055_v53 }
 0x508   : > { %5825 = vperm.xlu0 %6852, %v4952_v9   ;;  %15356 = vst [vmem:[#allocation129_spill] sm:$0xff] %v12683_v46  ;;  %15357 = vst [vmem:[#allocation131_spill] sm:$0xff] %v12686_v22  ;;  %v5419_v23 = vmul.f32 %v12371_v37, %v15360_v59  ;;  %v15361_v10 = vld [vmem:[#allocation103_spill] sm:$0xff]  ;;  %5820 = vperm.xlu1 %6851, %v4951_v1   ;;  %v12698_v9 = vadd.f32 %v5401_v5, %v5053_v32  ;;  %v15364_v19 = vld [vmem:[#allocation65_spill] sm:$0xff] }
 0x509   : > { %15358 = vst [vmem:[#allocation195_spill] sm:$0xff] %v12688_v48  ;;  %15359 = vst [vmem:[#allocation97_spill] sm:$0xff] %v12690_v2  ;;  %v5420_v51 = vmul.f32 %v12371_v37, %v15361_v10  ;;  %v5421_v36 = vmul.f32 %v12371_v37, %v15364_v19  ;;  %v15365_v0 = vld [vmem:[#allocation66_spill] sm:$0xff]  ;;  %v15366_v60 = vld [vmem:[#allocation179_spill] sm:$0xff]  ;;  %v12721_v31 = vadd.f32 %v5404_v18, %v5056_v6  ;;  %v4890_v62 = vpop.permute.xlu1 %4889 }
 0x50a   : > { %15362 = vst [vmem:[#allocation98_spill] sm:$0xff] %v12698_v9  ;;  %15363 = vst [vmem:[#allocation136_spill] sm:$0xff] %v12700_v21  ;;  %v5422_v15 = vmul.f32 %v12371_v37, %v15365_v0  ;;  %v5423_v43 = vmul.f32 %v12371_v37, %v15366_v60  ;;  %v5071_v1 = vld [vmem:[%s12143_s29 + $0x380] sm:$0xff]  ;;  %v5072_v32 = vld [vmem:[%s12143_s29 + $0x388] sm:$0xff] }
 0x50b   : > { %15367 = vst [vmem:[#allocation137_spill] sm:$0xff] %v12710_v20  ;;  %v5073_v35 = vld [vmem:[%s12143_s29 + $0x390] sm:$0xff]  ;;  %v15369_v47 = vld [vmem:[#allocation25_spill] sm:$0xff]  ;;  %15371 = vst [vmem:[#allocation51_spill] sm:$0xff] %v12721_v31  ;;  %v12741_v48 = vadd.f32 %v5419_v23, %v5071_v1 }
 0x50c   : > { %v15368_v7 = vld [vmem:[#allocation180_spill] sm:$0xff]  ;;  %v5425_v5 = vmul.f32 %v12371_v37, %v15369_v47  ;;  %v15370_v49 = vld [vmem:[#allocation149_spill] sm:$0xff]  ;;  %v5075_v53 = vld [vmem:[%s12143_s29 + $0x3a0] sm:$0xff]  ;;  %v12749_v17 = vadd.f32 %v5421_v36, %v5073_v35 }
 0x50d   : > { %v5424_v30 = vmul.f32 %v12371_v37, %v15368_v7  ;;  %v5412_v29 = vmul.f32 %v12381_v34, %v15370_v49  ;;  %v5074_v59 = vld [vmem:[%s12143_s29 + $0x398] sm:$0xff]  ;;  %v5076_v45 = vld [vmem:[%s12143_s29 + $0x3a8] sm:$0xff]  ;;  %v15372_v10 = vld [vmem:[#allocation150_spill] sm:$0xff]  ;;  %15378 = vst [vmem:[#allocation95_spill] sm:$0xff] %v12741_v48 }
 0x50e   : > { %v5413_v19 = vmul.f32 %v12381_v34, %v15372_v10  ;;  %v15373_v0 = vld [vmem:[#allocation6_spill] sm:$0xff]  ;;  %v15374_v7 = vld [vmem:[#allocation144_spill] sm:$0xff]  ;;  %v5064_v6 = vld [vmem:[%s12143_s29 + $0x348] sm:$0xff]  ;;  %v4892_v10 = vpop.permute.xlu0 %4891  ;;  %15381 = vst [vmem:[#allocation58_spill] sm:$0xff] %v12749_v17  ;;  %v12751_v56 = vadd.f32 %v5422_v15, %v5074_v59 }
 0x50f   : > { %v5414_v60 = vmul.f32 %v12381_v34, %v15373_v0  ;;  %v5415_v37 = vmul.f32 %v12381_v34, %v15374_v7  ;;  %v15375_v47 = vld [vmem:[#allocation78_spill] sm:$0xff]  ;;  %v5077_v18 = vld [vmem:[%s12143_s29 + $0x3b0] sm:$0xff]  ;;  %v15376_v20 = vld [vmem:[#allocation79_spill] sm:$0xff]  ;;  %v12743_v0 = vadd.f32 %v5420_v51, %v5072_v32  ;;  %v12761_v1 = vadd.f32 %v5412_v29, %v5064_v6 }
 0x510   : > { %v5416_v49 = vmul.f32 %v12381_v34, %v15375_v47  ;;  %v5065_v31 = vld [vmem:[%s12143_s29 + $0x350] sm:$0xff]  ;;  %v5417_v21 = vmul.f32 %v12381_v34, %v15376_v20  ;;  %v15377_v9 = vld [vmem:[#allocation17_spill] sm:$0xff]  ;;  %v5067_v22 = vld [vmem:[%s12143_s29 + $0x360] sm:$0xff]  ;;  %15382 = vst [vmem:[#allocation135_spill] sm:$0xff] %v12751_v56  ;;  %v12753_v20 = vadd.f32 %v5423_v43, %v5075_v53  ;;  %v12758_v23 = vadd.f32 %v5425_v5, %v5077_v18 }
 0x511   : > { %v5418_v2 = vmul.f32 %v12381_v34, %v15377_v9  ;;  %15379 = vst [vmem:[#allocation96_spill] sm:$0xff] %v12743_v0  ;;  %v5066_v7 = vld [vmem:[%s12143_s29 + $0x358] sm:$0xff]  ;;  %v5068_v46 = vld [vmem:[%s12143_s29 + $0x368] sm:$0xff]  ;;  %v12756_v9 = vadd.f32 %v5424_v30, %v5076_v45  ;;  %v5069_v51 = vld [vmem:[%s12143_s29 + $0x370] sm:$0xff]  ;;  %v12768_v15 = vadd.f32 %v5415_v37, %v5067_v22 }
 0x512   : > { %v15380_v47 = vld [vmem:[#allocation203_spill] sm:$0xff]  ;;  %15383 = vst [vmem:[#allocation45_spill] sm:$0xff] %v12753_v20  ;;  %v15384_v38 = vld [vmem:[#allocation173_spill] sm:$0xff]  ;;  %15386 = vst [vmem:[#allocation196_spill] sm:$0xff] %v12758_v23  ;;  %v12766_v36 = vadd.f32 %v5414_v60, %v5066_v7  ;;  %v12780_v59 = vpop.permute.xlu0 %5294  ;;  %v12791_v18 = vadd.f32 %v5417_v21, %v5069_v51 }
 0x513   : > { %v4954_v8 = vsub.f32 %v15380_v47, %v4892_v10  ;;  %v4953_v34 = vsub.f32 %v15384_v38, %v4890_v62  ;;  %15385 = vst [vmem:[#allocation47_spill] sm:$0xff] %v12756_v9  ;;  %15387 = vst [vmem:[#allocation143_spill] sm:$0xff] %v12761_v1  ;;  %v5070_v32 = vld [vmem:[%s12143_s29 + $0x378] sm:$0xff]  ;;  %v12764_v10 = vadd.f32 %v5413_v19, %v5065_v31  ;;  %v15392_v62 = vld [vmem:[#allocation104_spill] sm:$0xff] }
 0x514   : > { %15389 = vst [vmem:[#allocation139_spill] sm:$0xff] %v12766_v36  ;;  %15390 = vst [vmem:[#allocation140_spill] sm:$0xff] %v12768_v15  ;;  %v12770_v38 = vadd.f32 %v5416_v49, %v5068_v46  ;;  %v5433_v43 = vmul.f32 %v12452_v55, %v15392_v62  ;;  %v15393_v35 = vld [vmem:[#allocation18_spill] sm:$0xff]  ;;  %v15394_v5 = vld [vmem:[#allocation148_spill] sm:$0xff]  ;;  %v12789_v49 = vpop.permute.xlu1 %5289 }
 0x515   : > { %5835 = vperm.xlu0 %6852, %v4954_v8   ;;  %15388 = vst [vmem:[#allocation101_spill] sm:$0xff] %v12764_v10  ;;  %v5434_v30 = vmul.f32 %v12452_v55, %v15393_v35  ;;  %v5435_v8 = vmul.f32 %v12452_v55, %v15394_v5  ;;  %v15395_v29 = vld [vmem:[#allocation67_spill] sm:$0xff]  ;;  %5830 = vperm.xlu1 %6851, %v4953_v34   ;;  %v5085_v46 = vld [vmem:[%s12143_s29 + $0x3f0] sm:$0xff]  ;;  %15399 = vst [vmem:[#allocation77_spill] sm:$0xff] %v12791_v18 }
 0x516   : > { %15391 = vst [vmem:[#allocation111_spill] sm:$0xff] %v12770_v38  ;;  %v5436_v31 = vmul.f32 %v12452_v55, %v15395_v29  ;;  %v15396_v22 = vld [vmem:[#allocation183_spill] sm:$0xff]  ;;  %v15397_v45 = vld [vmem:[#allocation184_spill] sm:$0xff]  ;;  %v5086_v6 = vld [vmem:[%s12143_s29 + $0x3f8] sm:$0xff]  ;;  %v4896_v10 = vpop.permute.xlu0 %4895  ;;  %v12818_v1 = vadd.f32 %v5433_v43, %v5085_v46 }
 0x517   : > { %v5437_v53 = vmul.f32 %v12452_v55, %v15396_v22  ;;  %v5438_v19 = vmul.f32 %v12452_v55, %v15397_v45  ;;  %v15398_v60 = vld [vmem:[#allocation27_spill] sm:$0xff]  ;;  %v5087_v7 = vld [vmem:[%s12143_s29 + $0x400] sm:$0xff]  ;;  %v15400_v34 = vld [vmem:[#allocation152_spill] sm:$0xff]  ;;  %v12820_v23 = vadd.f32 %v5434_v30, %v5086_v6 }
 0x518   : > { %v5439_v37 = vmul.f32 %v12452_v55, %v15398_v60  ;;  %v5088_v47 = vld [vmem:[%s12143_s29 + $0x408] sm:$0xff]  ;;  %v5426_v62 = vmul.f32 %v12462_v11, %v15400_v34  ;;  %v15401_v35 = vld [vmem:[#allocation154_spill] sm:$0xff]  ;;  %v12802_v55 = vadd.f32 %v5418_v2, %v5070_v32  ;;  %v5089_v45 = vld [vmem:[%s12143_s29 + $0x410] sm:$0xff]  ;;  %15408 = vst [vmem:[#allocation99_spill] sm:$0xff] %v12818_v1  ;;  %v12822_v9 = vadd.f32 %v5435_v8, %v5087_v7 }
 0x519   : > { %v5427_v5 = vmul.f32 %v12462_v11, %v15401_v35  ;;  %v15402_v29 = vld [vmem:[#allocation10_spill] sm:$0xff]  ;;  %v5090_v21 = vld [vmem:[%s12143_s29 + $0x418] sm:$0xff]  ;;  %v15404_v60 = vld [vmem:[#allocation147_spill] sm:$0xff]  ;;  %15409 = vst [vmem:[#allocation100_spill] sm:$0xff] %v12820_v23 }
 0x51a   : > { %v5428_v22 = vmul.f32 %v12462_v11, %v15402_v29  ;;  %15403 = vst [vmem:[#allocation13_spill] sm:$0xff] %v12802_v55  ;;  %v5091_v51 = vld [vmem:[%s12143_s29 + $0x420] sm:$0xff]  ;;  %v5429_v18 = vmul.f32 %v12462_v11, %v15404_v60  ;;  %v15405_v38 = vld [vmem:[#allocation36_spill] sm:$0xff]  ;;  %v15407_v36 = vld [vmem:[#allocation199_spill] sm:$0xff]  ;;  %v12824_v60 = vadd.f32 %v5436_v31, %v5088_v47  ;;  %v12831_v17 = vadd.f32 %v5438_v19, %v5090_v21 }
 0x51b   : > { %v5430_v34 = vmul.f32 %v12462_v11, %v15405_v38  ;;  %v15406_v15 = vld [vmem:[#allocation164_spill] sm:$0xff]  ;;  %v5432_v29 = vmul.f32 %v12462_v11, %v15407_v36  ;;  %v5078_v2 = vld [vmem:[%s12143_s29 + $0x3b8] sm:$0xff]  ;;  %v5079_v32 = vld [vmem:[%s12143_s29 + $0x3c0] sm:$0xff]  ;;  %15410 = vst [vmem:[#allocation138_spill] sm:$0xff] %v12822_v9  ;;  %v12829_v36 = vadd.f32 %v5437_v53, %v5089_v45  ;;  %v12833_v0 = vadd.f32 %v5439_v37, %v5091_v51 }
 0x51c   : > { %v5431_v35 = vmul.f32 %v12462_v11, %v15406_v15  ;;  %v5080_v55 = vld [vmem:[%s12143_s29 + $0x3c8] sm:$0xff]  ;;  %15411 = vst [vmem:[#allocation2_spill] sm:$0xff] %v12824_v60  ;;  %v5081_v38 = vld [vmem:[%s12143_s29 + $0x3d0] sm:$0xff]  ;;  %v5082_v20 = vld [vmem:[%s12143_s29 + $0x3d8] sm:$0xff]  ;;  %v4894_v11 = vpop.permute.xlu1 %4893  ;;  %v12836_v46 = vadd.f32 %v5426_v62, %v5078_v2  ;;  %v12838_v8 = vadd.f32 %v5427_v5, %v5079_v32  ;;  %v4900_v32 = vpop.permute.xlu0 %4899 }
 0x51d   : > { %v6915_v15 = vld [vmem:[%s11860_s24 + $0xd0] sm:$0xff]  ;;  %15412 = vst [vmem:[#allocation57_spill] sm:$0xff] %v12829_v36  ;;  %15413 = vst [vmem:[#allocation59_spill] sm:$0xff] %v12831_v17  ;;  %v6916_v43 = vld [vmem:[%s11860_s24 + $0xc8] sm:$0xff]  ;;  %v12840_v31 = vadd.f32 %v5428_v22, %v5080_v55  ;;  %v12848_v47 = vadd.f32 %v5429_v18, %v5081_v38  ;;  %v12850_v62 = vadd.f32 %v5430_v34, %v5082_v20 }
 0x51e   : > { %v4956_v56 = vsub.f32 %v6915_v15, %v4896_v10  ;;  %15414 = vst [vmem:[#allocation63_spill] sm:$0xff] %v12833_v0  ;;  %v4955_v30 = vsub.f32 %v6916_v43, %v4894_v11  ;;  %15415 = vst [vmem:[#allocation53_spill] sm:$0xff] %v12836_v46  ;;  %v15418_v6 = vld [vmem:[#allocation20_spill] sm:$0xff]  ;;  %v15419_v53 = vld [vmem:[#allocation106_spill] sm:$0xff] }
 0x51f   : > { %15416 = vst [vmem:[#allocation55_spill] sm:$0xff] %v12838_v8  ;;  %15417 = vst [vmem:[#allocation8_spill] sm:$0xff] %v12840_v31  ;;  %v5447_v10 = vmul.f32 %v12532_v58, %v15418_v6  ;;  %v5448_v19 = vmul.f32 %v12532_v58, %v15419_v53  ;;  %v5083_v37 = vld [vmem:[%s12143_s29 + $0x3e0] sm:$0xff]  ;;  %v5084_v7 = vld [vmem:[%s12143_s29 + $0x3e8] sm:$0xff] }
 0x520   : > { %5845 = vperm.xlu0 %6852, %v4956_v56   ;;  %15420 = vst [vmem:[#allocation102_spill] sm:$0xff] %v12848_v47  ;;  %15421 = vst [vmem:[#allocation142_spill] sm:$0xff] %v12850_v62  ;;  %v15422_v5 = vld [vmem:[#allocation151_spill] sm:$0xff]  ;;  %v15423_v55 = vld [vmem:[#allocation153_spill] sm:$0xff]  ;;  %5840 = vperm.xlu1 %6851, %v4955_v30  }
 0x521   : > { %v5449_v22 = vmul.f32 %v12532_v58, %v15422_v5  ;;  %v5450_v45 = vmul.f32 %v12532_v58, %v15423_v55  ;;  %v15424_v21 = vld [vmem:[#allocation194_spill] sm:$0xff]  ;;  %v15425_v56 = vld [vmem:[#allocation197_spill] sm:$0xff]  ;;  %v5100_v20 = vld [vmem:[%s12143_s29 + $0x468] sm:$0xff] }
 0x522   : > { %v5451_v51 = vmul.f32 %v12532_v58, %v15424_v21  ;;  %v5452_v2 = vmul.f32 %v12532_v58, %v15425_v56  ;;  %v5099_v18 = vld [vmem:[%s12143_s29 + $0x460] sm:$0xff]  ;;  %v5101_v34 = vld [vmem:[%s12143_s29 + $0x470] sm:$0xff]  ;;  %v15426_v38 = vld [vmem:[#allocation33_spill] sm:$0xff]  ;;  %v12870_v21 = vpop.permute.xlu1 %5299 }
 0x523   : > { %v5453_v15 = vmul.f32 %v12532_v58, %v15426_v38  ;;  %v15427_v11 = vld [vmem:[#allocation105_spill] sm:$0xff]  ;;  %v15428_v6 = vld [vmem:[#allocation156_spill] sm:$0xff]  ;;  %v6917_v5 = vld [vmem:[%s11860_s24 + $0xe0] sm:$0xff]  ;;  %v12899_v9 = vadd.f32 %v5449_v22, %v5101_v34 }
 0x524   : > { %v5440_v43 = vmul.f32 %v12544_v39, %v15427_v11  ;;  %v5441_v53 = vmul.f32 %v12544_v39, %v15428_v6  ;;  %v4958_v55 = vsub.f32 %v6917_v5, %v4900_v32  ;;  %v5102_v30 = vld [vmem:[%s12143_s29 + $0x478] sm:$0xff]  ;;  %v5103_v56 = vld [vmem:[%s12143_s29 + $0x480] sm:$0xff]  ;;  %v5104_v62 = vld [vmem:[%s12143_s29 + $0x488] sm:$0xff]  ;;  %v12881_v6 = vadd.f32 %v5431_v35, %v5083_v37 }
 0x525   : > { %v15429_v47 = vld [vmem:[#allocation68_spill] sm:$0xff]  ;;  %v15430_v58 = vld [vmem:[#allocation14_spill] sm:$0xff]  ;;  %v5092_v5 = vld [vmem:[%s12143_s29 + $0x428] sm:$0xff]  ;;  %v12901_v23 = vadd.f32 %v5450_v45, %v5102_v30  ;;  %v12903_v1 = vadd.f32 %v5451_v51, %v5103_v56 }
 0x526   : > { %v5442_v31 = vmul.f32 %v12544_v39, %v15429_v47  ;;  %v5443_v38 = vmul.f32 %v12544_v39, %v15430_v58  ;;  %v15431_v11 = vld [vmem:[#allocation80_spill] sm:$0xff]  ;;  %15432 = vst [vmem:[#allocation64_spill] sm:$0xff] %v12881_v6  ;;  %v15433_v0 = vld [vmem:[#allocation81_spill] sm:$0xff]  ;;  %v15434_v36 = vld [vmem:[#allocation31_spill] sm:$0xff]  ;;  %5855 = vperm.xlu0 %6852, %v4958_v55   ;;  %v12890_v47 = vadd.f32 %v5432_v29, %v5084_v7 }
 0x527   : > { %v5444_v8 = vmul.f32 %v12544_v39, %v15431_v11  ;;  %v5105_v32 = vld [vmem:[%s12143_s29 + $0x490] sm:$0xff]  ;;  %v5445_v17 = vmul.f32 %v12544_v39, %v15433_v0  ;;  %v5446_v60 = vmul.f32 %v12544_v39, %v15434_v36  ;;  %v12892_v58 = vadd.f32 %v5447_v10, %v5099_v18  ;;  %v5094_v11 = vld [vmem:[%s12143_s29 + $0x438] sm:$0xff]  ;;  %v5095_v35 = vld [vmem:[%s12143_s29 + $0x440] sm:$0xff]  ;;  %15435 = vst [vmem:[#allocation175_spill] sm:$0xff] %v12901_v23  ;;  %v4898_v39 = vpop.permute.xlu1 %4897 }
 0x528   : > { %v5093_v46 = vld [vmem:[%s12143_s29 + $0x430] sm:$0xff]  ;;  %v5096_v37 = vld [vmem:[%s12143_s29 + $0x448] sm:$0xff]  ;;  %v12897_v6 = vadd.f32 %v5448_v19, %v5100_v20  ;;  %15436 = vst [vmem:[#allocation176_spill] sm:$0xff] %v12903_v1  ;;  %v5098_v48 = vld [vmem:[%s12143_s29 + $0x458] sm:$0xff]  ;;  %v12907_v36 = vadd.f32 %v5452_v2, %v5104_v62  ;;  %v12909_v29 = vadd.f32 %v5453_v15, %v5105_v32  ;;  %v12911_v10 = vadd.f32 %v5440_v43, %v5092_v5 }
 0x529   : > { %v5097_v0 = vld [vmem:[%s12143_s29 + $0x450] sm:$0xff]  ;;  %v12913_v7 = vadd.f32 %v5441_v53, %v5093_v46  ;;  %v6918_v18 = vld [vmem:[%s11860_s24 + $0xd8] sm:$0xff]  ;;  %v12916_v20 = vadd.f32 %v5442_v31, %v5094_v11  ;;  %v12918_v22 = vadd.f32 %v5443_v38, %v5095_v35  ;;  %v12920_v45 = vadd.f32 %v5444_v8, %v5096_v37  ;;  %v15448_v46 = vld [vmem:[#allocation155_spill] sm:$0xff] }
 0x52a   : > { %15437 = vst [vmem:[#allocation19_spill] sm:$0xff] %v12907_v36  ;;  %15438 = vst [vmem:[#allocation145_spill] sm:$0xff] %v12909_v29  ;;  %v4957_v19 = vsub.f32 %v6918_v18, %v4898_v39  ;;  %v15444_v51 = vld [vmem:[#allocation108_spill] sm:$0xff]  ;;  %v15445_v55 = vld [vmem:[#allocation109_spill] sm:$0xff]  ;;  %v12926_v2 = vadd.f32 %v5445_v17, %v5097_v0  ;;  %v12928_v15 = vadd.f32 %v5446_v60, %v5098_v48 }
 0x52b   : > { %15439 = vst [vmem:[#allocation146_spill] sm:$0xff] %v12911_v10  ;;  %15440 = vst [vmem:[#allocation141_spill] sm:$0xff] %v12913_v7  ;;  %v5461_v34 = vmul.f32 %v12612_v52, %v15444_v51  ;;  %v5462_v62 = vmul.f32 %v12612_v52, %v15445_v55  ;;  %v5463_v31 = vmul.f32 %v12612_v52, %v15448_v46  ;;  %v15449_v43 = vld [vmem:[#allocation70_spill] sm:$0xff]  ;;  %v15450_v8 = vld [vmem:[#allocation209_spill] sm:$0xff]  ;;  %v5716_v0 = vpop.permute.xlu1 %5715 }
 0x52c   : > { %15441 = vst [vmem:[#allocation4_spill] sm:$0xff] %v12916_v20  ;;  %15442 = vst [vmem:[#allocation32_spill] sm:$0xff] %v12918_v22  ;;  %v5464_v53 = vmul.f32 %v12612_v52, %v15449_v43  ;;  %v5465_v30 = vmul.f32 %v12612_v52, %v15450_v8  ;;  %v15451_v56 = vld [vmem:[#allocation212_spill] sm:$0xff]  ;;  %5850 = vperm.xlu1 %6851, %v4957_v19   ;;  %v15452_v32 = vld [vmem:[#allocation35_spill] sm:$0xff] }
 0x52d   : > { %15443 = vst [vmem:[#allocation161_spill] sm:$0xff] %v12920_v45  ;;  %15446 = vst [vmem:[#allocation11_spill] sm:$0xff] %v12926_v2  ;;  %v5466_v38 = vmul.f32 %v12612_v52, %v15451_v56  ;;  %v5467_v17 = vmul.f32 %v12612_v52, %v15452_v32  ;;  %v15453_v5 = vld [vmem:[#allocation107_spill] sm:$0xff]  ;;  %v15454_v60 = vld [vmem:[#allocation158_spill] sm:$0xff] }
 0x52e   : > { %15447 = vst [vmem:[#allocation61_spill] sm:$0xff] %v12928_v15  ;;  %v12942_v48 = vmul.f32 %v12628_v50, %v15453_v5  ;;  %v12946_v11 = vmul.f32 %v12628_v50, %v15454_v60  ;;  %v15455_v35 = vld [vmem:[#allocation69_spill] sm:$0xff]  ;;  %v15456_v39 = vld [vmem:[#allocation174_spill] sm:$0xff]  ;;  %v15457_v19 = vld [vmem:[#allocation204_spill] sm:$0xff]  ;;  %v12968_v5 = vpop.permute.xlu0 %5304 }
 0x52f   : > { %v12950_v37 = vmul.f32 %v12628_v50, %v15455_v35  ;;  %v5858_v18 = vadd.f32 %v5716_v0, %v15456_v39  ;;  %v5859_v52 = vadd.f32 %v5716_v0, %v15457_v19  ;;  %v15458_v51 = vld [vmem:[#allocation177_spill] sm:$0xff]  ;;  %v15459_v46 = vld [vmem:[#allocation186_spill] sm:$0xff]  ;;  %v5113_v8 = vld [vmem:[%s12143_s29 + $0x4d0] sm:$0xff]  ;;  %v5863_v39 = vadd.f32 %v5716_v0, %v12201_v61 }
 0x530   : > { %v5860_v55 = vadd.f32 %v5716_v0, %v15458_v51  ;;  %v5861_v43 = vadd.f32 %v5716_v0, %v15459_v46  ;;  %v15460_v56 = vld [vmem:[#allocation16_spill] sm:$0xff]  ;;  %v15461_v60 = vld [vmem:[#allocation178_spill] sm:$0xff]  ;;  %v15462_v19 = vld [vmem:[#allocation187_spill] sm:$0xff] }
 0x531   : > { %v12966_v32 = vmul.f32 %v12628_v50, %v15460_v56  ;;  %v5862_v35 = vadd.f32 %v5716_v0, %v15461_v60  ;;  %v5864_v51 = vadd.f32 %v5716_v0, %v15462_v19  ;;  %v5114_v46 = vld [vmem:[%s12143_s29 + $0x4d8] sm:$0xff]  ;;  %v5115_v15 = vld [vmem:[%s12143_s29 + $0x4e0] sm:$0xff]  ;;  %v5116_v2 = vld [vmem:[%s12143_s29 + $0x4e8] sm:$0xff]  ;;  %v6061_v45 = vmax.f32 %v5858_v18, 0.0 }
 0x532   : > { %v6062_v22 = vmax.f32 %v5859_v52, 0.0  ;;  %v6063_v56 = vmax.f32 %v5860_v55, 0.0  ;;  %v6064_v20 = vmax.f32 %v5861_v43, 0.0  ;;  %v5117_v7 = vld [vmem:[%s12143_s29 + $0x4f0] sm:$0xff]  ;;  %v5118_v60 = vld [vmem:[%s12143_s29 + $0x4f8] sm:$0xff]  ;;  %v6066_v19 = vmax.f32 %v5863_v39, 0.0 }
 0x533   : > { %v15463_v10 = vld [vmem:[#allocation40_spill] sm:$0xff]  ;;  %v6065_v0 = vmax.f32 %v5862_v35, 0.0  ;;  %v6067_v29 = vmax.f32 %v5864_v51, 0.0  ;;  %v15464_v36 = vld [vmem:[#allocation82_spill] sm:$0xff]  ;;  %v15465_v18 = vld [vmem:[#allocation37_spill] sm:$0xff]  ;;  %6264 = vst [vmem:[%s12962_s8] sm:$0xff] %v6061_v45  ;;  %v12993_v43 = vadd.f32 %v5461_v34, %v5113_v8  ;;  %v13007_v45 = vadd.f32 %v5466_v38, %v5118_v60 }
 0x534   : > { %v5458_v61 = vmul.f32 %v12628_v50, %v15463_v10  ;;  %v12982_v1 = vmul.f32 %v12628_v50, %v15464_v36  ;;  %v12986_v52 = vmul.f32 %v12628_v50, %v15465_v18  ;;  %6265 = vst [vmem:[%s12962_s8 + $0x8] sm:$0xff] %v6062_v22  ;;  %6266 = vst [vmem:[%s12962_s8 + $0x10] sm:$0xff] %v6063_v56  ;;  %v5119_v55 = vld [vmem:[%s12143_s29 + $0x500] sm:$0xff]  ;;  %v5721_v36 = vpop.permute.xlu0 %5720  ;;  %v15472_v34 = vld [vmem:[#allocation181_spill] sm:$0xff] }
 0x535   : > { %6267 = vst [vmem:[%s12962_s8 + $0x18] sm:$0xff] %v6064_v20  ;;  %15466 = vst [vmem:[#allocation202_spill] sm:$0xff] %v12993_v43  ;;  %v12995_v10 = vadd.f32 %v5462_v62, %v5114_v46  ;;  %v13001_v50 = vadd.f32 %v5463_v31, %v5115_v15  ;;  %v13003_v22 = vadd.f32 %v5464_v53, %v5116_v2  ;;  %v15473_v62 = vld [vmem:[#allocation188_spill] sm:$0xff]  ;;  %v15474_v39 = vld [vmem:[#allocation206_spill] sm:$0xff] }
 0x536   : > { %6268 = vst [vmem:[%s12962_s8 + $0x20] sm:$0xff] %v6065_v0  ;;  %6269 = vst [vmem:[%s12962_s8 + $0x28] sm:$0xff] %v6066_v19  ;;  %v13005_v20 = vadd.f32 %v5465_v30, %v5117_v7  ;;  %v5865_v8 = vadd.f32 %v5721_v36, %v15472_v34  ;;  %v5866_v35 = vadd.f32 %v5721_v36, %v15473_v62  ;;  %v15475_v46 = vld [vmem:[#allocation182_spill] sm:$0xff]  ;;  %v5106_v56 = vld [vmem:[%s12143_s29 + $0x498] sm:$0xff] }
 0x537   : > { %15467 = vst [vmem:[#allocation12_spill] sm:$0xff] %v12995_v10  ;;  %6270 = vst.msk [vmem:[%s12962_s8 + $0x30] sm:$0xff] %vm3832_vm2, %v6067_v29  ;;  %v5867_v51 = vadd.f32 %v5721_v36, %v15474_v39  ;;  %v5868_v29 = vadd.f32 %v5721_v36, %v15475_v46  ;;  %v5107_v0 = vld [vmem:[%s12143_s29 + $0x4a0] sm:$0xff]  ;;  %v15476_v19 = vld [vmem:[#allocation207_spill] sm:$0xff]  ;;  %v13018_v30 = vadd.f32 %v5467_v17, %v5119_v55 }
 0x538   : > { %15468 = vst [vmem:[#allocation103_spill] sm:$0xff] %v13001_v50  ;;  %15469 = vst [vmem:[#allocation65_spill] sm:$0xff] %v13003_v22  ;;  %v5869_v15 = vadd.f32 %v5721_v36, %v15476_v19  ;;  %v15477_v31 = vld [vmem:[#allocation185_spill] sm:$0xff]  ;;  %v5108_v38 = vld [vmem:[%s12143_s29 + $0x4a8] sm:$0xff]  ;;  %v6068_v34 = vmax.f32 %v5865_v8, 0.0  ;;  %v6069_v62 = vmax.f32 %v5866_v35, 0.0 }
 0x539   : > { %15470 = vst [vmem:[#allocation66_spill] sm:$0xff] %v13005_v20  ;;  %15471 = vst [vmem:[#allocation179_spill] sm:$0xff] %v13007_v45  ;;  %v5870_v2 = vadd.f32 %v5721_v36, %v15477_v31  ;;  %v15478_v7 = vld [vmem:[#allocation189_spill] sm:$0xff]  ;;  %v5109_v60 = vld [vmem:[%s12143_s29 + $0x4b0] sm:$0xff]  ;;  %v6070_v39 = vmax.f32 %v5867_v51, 0.0  ;;  %v6071_v46 = vmax.f32 %v5868_v29, 0.0  ;;  %v13024_v31 = vadd.f32 %v12942_v48, %v5106_v56 }
 0x53a   : > { %v5871_v53 = vadd.f32 %v5721_v36, %v15478_v7  ;;  %15479 = vst [vmem:[#allocation180_spill] sm:$0xff] %v13018_v30  ;;  %v5110_v18 = vld [vmem:[%s12143_s29 + $0x4b8] sm:$0xff]  ;;  %v6072_v45 = vmax.f32 %v5869_v15, 0.0  ;;  %6271 = vst [vmem:[%s12962_s8 + $0x38] sm:$0xff] %v6068_v34  ;;  %v5111_v17 = vld [vmem:[%s12143_s29 + $0x4c0] sm:$0xff]  ;;  %v13033_v36 = vadd.f32 %v12946_v11, %v5107_v0  ;;  %v13036_v8 = vadd.f32 %v12950_v37, %v5108_v38 }
 0x53b   : > { %v6073_v19 = vmax.f32 %v5870_v2, 0.0  ;;  %15480 = vst [vmem:[#allocation25_spill] sm:$0xff] %v13024_v31  ;;  %6272 = vst [vmem:[%s12962_s8 + $0x40] sm:$0xff] %v6069_v62  ;;  %v5112_v55 = vld [vmem:[%s12143_s29 + $0x4c8] sm:$0xff]  ;;  %v13039_v48 = vadd.f32 %v12966_v32, %v5109_v60  ;;  %v13041_v35 = vadd.f32 %v5458_v61, %v5110_v18  ;;  %v15485_v51 = vld [vmem:[#allocation28_spill] sm:$0xff] }
 0x53c   : > { %v6074_v20 = vmax.f32 %v5871_v53, 0.0  ;;  %6273 = vst [vmem:[%s12962_s8 + $0x48] sm:$0xff] %v6070_v39  ;;  %6274 = vst [vmem:[%s12962_s8 + $0x50] sm:$0xff] %v6071_v46  ;;  %v5475_v29 = vmul.f32 %v12696_v27, %v15485_v51  ;;  %v15486_v56 = vld [vmem:[#allocation112_spill] sm:$0xff]  ;;  %v15487_v2 = vld [vmem:[#allocation22_spill] sm:$0xff] }
 0x53d   : > { %15481 = vst [vmem:[#allocation149_spill] sm:$0xff] %v13033_v36  ;;  %15482 = vst [vmem:[#allocation150_spill] sm:$0xff] %v13036_v8  ;;  %v5476_v15 = vmul.f32 %v12696_v27, %v15486_v56  ;;  %v5477_v11 = vmul.f32 %v12696_v27, %v15487_v2  ;;  %v15488_v0 = vld [vmem:[#allocation157_spill] sm:$0xff]  ;;  %v5127_v32 = vld [vmem:[%s12143_s29 + $0x540] sm:$0xff] }
 0x53e   : > { %15483 = vst [vmem:[#allocation6_spill] sm:$0xff] %v13039_v48  ;;  %15484 = vst [vmem:[#allocation144_spill] sm:$0xff] %v13041_v35  ;;  %v5478_v37 = vmul.f32 %v12696_v27, %v15488_v0  ;;  %v5128_v61 = vld [vmem:[%s12143_s29 + $0x548] sm:$0xff]  ;;  %v5129_v7 = vld [vmem:[%s12143_s29 + $0x550] sm:$0xff] }
 0x53f   : > { %6275 = vst [vmem:[%s12962_s8 + $0x58] sm:$0xff] %v6072_v45  ;;  %6276 = vst [vmem:[%s12962_s8 + $0x60] sm:$0xff] %v6073_v19  ;;  %v15489_v53 = vld [vmem:[#allocation218_spill] sm:$0xff]  ;;  %v15490_v60 = vld [vmem:[#allocation219_spill] sm:$0xff]  ;;  %v13095_v10 = vadd.f32 %v5476_v15, %v5128_v61  ;;  %v13097_v43 = vadd.f32 %v5477_v11, %v5129_v7 }
 0x540   : > { %6277 = vst.msk [vmem:[%s12962_s8 + $0x68] sm:$0xff] %vm3832_vm2, %v6074_v20  ;;  %v5479_v38 = vmul.f32 %v12696_v27, %v15489_v53  ;;  %v5480_v18 = vmul.f32 %v12696_v27, %v15490_v60  ;;  %v15491_v34 = vld [vmem:[#allocation39_spill] sm:$0xff]  ;;  %v15492_v39 = vld [vmem:[#allocation160_spill] sm:$0xff]  ;;  %v5130_v20 = vld [vmem:[%s12143_s29 + $0x558] sm:$0xff] }
 0x541   : > { %v5481_v62 = vmul.f32 %v12696_v27, %v15491_v34  ;;  %v5468_v45 = vmul.f32 %v12708_v33, %v15492_v39  ;;  %v5131_v46 = vld [vmem:[%s12143_s29 + $0x560] sm:$0xff]  ;;  %v5132_v19 = vld [vmem:[%s12143_s29 + $0x568] sm:$0xff]  ;;  %v15495_v53 = vld [vmem:[#allocation72_spill] sm:$0xff] }
 0x542   : > { %v15493_v51 = vld [vmem:[#allocation110_spill] sm:$0xff]  ;;  %v15494_v2 = vld [vmem:[#allocation71_spill] sm:$0xff]  ;;  %v5471_v60 = vmul.f32 %v12708_v33, %v15495_v53  ;;  %v5133_v34 = vld [vmem:[%s12143_s29 + $0x570] sm:$0xff]  ;;  %v13101_v23 = vadd.f32 %v5479_v38, %v5131_v46 }
 0x543   : > { %v5469_v56 = vmul.f32 %v12708_v33, %v15493_v51  ;;  %v5470_v0 = vmul.f32 %v12708_v33, %v15494_v2  ;;  %v15496_v35 = vld [vmem:[#allocation42_spill] sm:$0xff]  ;;  %v5120_v48 = vld [vmem:[%s12143_s29 + $0x508] sm:$0xff]  ;;  %v5121_v39 = vld [vmem:[%s12143_s29 + $0x510] sm:$0xff]  ;;  %v13085_v51 = vadd.f32 %v12982_v1, %v5111_v17  ;;  %v13088_v2 = vadd.f32 %v12986_v52, %v5112_v55  ;;  %v5726_v17 = vpop.permute.xlu1 %5725 }
 0x544   : > { %v5472_v27 = vmul.f32 %v12708_v33, %v15496_v35  ;;  %v15497_v8 = vld [vmem:[#allocation83_spill] sm:$0xff]  ;;  %v15498_v31 = vld [vmem:[#allocation200_spill] sm:$0xff]  ;;  %v5122_v53 = vld [vmem:[%s12143_s29 + $0x518] sm:$0xff]  ;;  %v13093_v35 = vadd.f32 %v5475_v29, %v5127_v32  ;;  %v13105_v1 = vadd.f32 %v5481_v62, %v5133_v34 }
 0x545   : > { %v5473_v36 = vmul.f32 %v12708_v33, %v15497_v8  ;;  %v5474_v30 = vmul.f32 %v12708_v33, %v15498_v31  ;;  %v5123_v22 = vld [vmem:[%s12143_s29 + $0x520] sm:$0xff]  ;;  %v5124_v50 = vld [vmem:[%s12143_s29 + $0x528] sm:$0xff]  ;;  %v13099_v8 = vadd.f32 %v5478_v37, %v5130_v20  ;;  %v13103_v33 = vadd.f32 %v5480_v18, %v5132_v19  ;;  %v5125_v52 = vld [vmem:[%s12143_s29 + $0x530] sm:$0xff] }
 0x546   : > { %v13108_v31 = vadd.f32 %v5468_v45, %v5120_v48  ;;  %v13110_v55 = vadd.f32 %v5469_v56, %v5121_v39  ;;  %v13112_v29 = vadd.f32 %v5470_v0, %v5122_v53  ;;  %v13114_v15 = vadd.f32 %v5471_v60, %v5123_v22  ;;  %v15504_v37 = vld [vmem:[#allocation190_spill] sm:$0xff]  ;;  %v15505_v61 = vld [vmem:[#allocation208_spill] sm:$0xff]  ;;  %v5126_v46 = vld [vmem:[%s12143_s29 + $0x538] sm:$0xff] }
 0x547   : > { %v13116_v11 = vadd.f32 %v5472_v27, %v5124_v50  ;;  %v5872_v32 = vadd.f32 %v5726_v17, %v15504_v37  ;;  %v5873_v7 = vadd.f32 %v5726_v17, %v15505_v61  ;;  %v15506_v38 = vld [vmem:[#allocation210_spill] sm:$0xff]  ;;  %v15508_v48 = vld [vmem:[#allocation205_spill] sm:$0xff]  ;;  %v5877_v19 = vadd.f32 %v5726_v17, %v12283_v41  ;;  %v15511_v41 = vld [vmem:[#allocation115_spill] sm:$0xff] }
 0x548   : > { %15499 = vst [vmem:[#allocation78_spill] sm:$0xff] %v13108_v31  ;;  %15500 = vst [vmem:[#allocation79_spill] sm:$0xff] %v13110_v55  ;;  %v5874_v18 = vadd.f32 %v5726_v17, %v15506_v38  ;;  %v15507_v62 = vld [vmem:[#allocation198_spill] sm:$0xff]  ;;  %v5876_v45 = vadd.f32 %v5726_v17, %v15508_v48  ;;  %v5878_v22 = vadd.f32 %v5726_v17, %v12285_v40  ;;  %v15518_v48 = vld [vmem:[#allocation113_spill] sm:$0xff] }
 0x549   : > { %15501 = vst [vmem:[#allocation17_spill] sm:$0xff] %v13112_v29  ;;  %15502 = vst [vmem:[#allocation203_spill] sm:$0xff] %v13114_v15  ;;  %v5875_v20 = vadd.f32 %v5726_v17, %v15507_v62  ;;  %v13126_v50 = vadd.f32 %v5473_v36, %v5125_v52  ;;  %v6075_v56 = vmax.f32 %v5872_v32, 0.0  ;;  %v6076_v0 = vmax.f32 %v5873_v7, 0.0  ;;  %v15512_v40 = vld [vmem:[#allocation34_spill] sm:$0xff]  ;;  %v15513_v52 = vld [vmem:[#allocation159_spill] sm:$0xff] }
 0x54a   : > { %15503 = vst [vmem:[#allocation173_spill] sm:$0xff] %v13116_v11  ;;  %v6077_v60 = vmax.f32 %v5874_v18, 0.0  ;;  %v6079_v34 = vmax.f32 %v5876_v45, 0.0  ;;  %v6080_v39 = vmax.f32 %v5877_v19, 0.0  ;;  %v6081_v53 = vmax.f32 %v5878_v22, 0.0  ;;  %v15514_v32 = vld [vmem:[#allocation74_spill] sm:$0xff] }
 0x54b   : > { %15509 = vst [vmem:[#allocation104_spill] sm:$0xff] %v13126_v50  ;;  %v6078_v27 = vmax.f32 %v5875_v20, 0.0  ;;  %v13128_v37 = vadd.f32 %v5474_v30, %v5126_v46  ;;  %v13132_v61 = vmul.f32 %v12780_v59, %v15511_v41  ;;  %v13136_v36 = vmul.f32 %v12780_v59, %v15512_v40  ;;  %6278 = vst [vmem:[%s12962_s8 + $0x70] sm:$0xff] %v6075_v56  ;;  %v15515_v30 = vld [vmem:[#allocation222_spill] sm:$0xff]  ;;  %v15517_v20 = vld [vmem:[#allocation43_spill] sm:$0xff] }
 0x54c   : > { %v13140_v17 = vmul.f32 %v12780_v59, %v15513_v52  ;;  %v13144_v7 = vmul.f32 %v12780_v59, %v15514_v32  ;;  %6279 = vst [vmem:[%s12962_s8 + $0x78] sm:$0xff] %v6076_v0  ;;  %6280 = vst [vmem:[%s12962_s8 + $0x80] sm:$0xff] %v6077_v60  ;;  %v13152_v38 = vmul.f32 %v12780_v59, %v15515_v30  ;;  %v15516_v18 = vld [vmem:[#allocation86_spill] sm:$0xff]  ;;  %v15520_v56 = vld [vmem:[#allocation73_spill] sm:$0xff] }
 0x54d   : > { %15510 = vst [vmem:[#allocation18_spill] sm:$0xff] %v13128_v37  ;;  %6281 = vst [vmem:[%s12962_s8 + $0x88] sm:$0xff] %v6078_v27  ;;  %v13156_v62 = vmul.f32 %v12780_v59, %v15516_v18  ;;  %v13160_v46 = vmul.f32 %v12780_v59, %v15517_v20  ;;  %v13164_v45 = vmul.f32 %v12789_v49, %v15518_v48  ;;  %v15519_v19 = vld [vmem:[#allocation114_spill] sm:$0xff]  ;;  %v15521_v60 = vld [vmem:[#allocation24_spill] sm:$0xff]  ;;  %v5731_v18 = vpop.permute.xlu1 %5730 }
 0x54e   : > { %6282 = vst [vmem:[%s12962_s8 + $0x90] sm:$0xff] %v6079_v34  ;;  %6283 = vst [vmem:[%s12962_s8 + $0x98] sm:$0xff] %v6080_v39  ;;  %v13172_v22 = vmul.f32 %v12789_v49, %v15519_v19  ;;  %v13176_v0 = vmul.f32 %v12789_v49, %v15520_v56  ;;  %v13180_v59 = vmul.f32 %v12789_v49, %v15521_v60  ;;  %v15522_v27 = vld [vmem:[#allocation84_spill] sm:$0xff]  ;;  %v5736_v34 = vpop.permute.xlu0 %5735  ;;  %v15523_v40 = vld [vmem:[#allocation213_spill] sm:$0xff] }
 0x54f   : > { %6284 = vst.msk [vmem:[%s12962_s8 + $0xa0] sm:$0xff] %vm3832_vm2, %v6081_v53  ;;  %v13184_v41 = vmul.f32 %v12789_v49, %v15522_v27  ;;  %v5886_v39 = vadd.f32 %v5736_v34, %v12292_v24  ;;  %v5887_v53 = vadd.f32 %v5736_v34, %v12294_v63  ;;  %v5888_v52 = vadd.f32 %v5736_v34, %v15523_v40  ;;  %v15524_v32 = vld [vmem:[#allocation211_spill] sm:$0xff]  ;;  %v15525_v20 = vld [vmem:[#allocation217_spill] sm:$0xff]  ;;  %v15526_v19 = vld [vmem:[#allocation214_spill] sm:$0xff] }
 0x550   : > { %v5889_v30 = vadd.f32 %v5736_v34, %v15524_v32  ;;  %v5890_v48 = vadd.f32 %v5736_v34, %v15525_v20  ;;  %v5891_v56 = vadd.f32 %v5736_v34, %v15526_v19  ;;  %v15527_v60 = vld [vmem:[#allocation220_spill] sm:$0xff]  ;;  %v15528_v37 = vld [vmem:[#allocation221_spill] sm:$0xff]  ;;  %v15529_v55 = vld [vmem:[#allocation215_spill] sm:$0xff] }
 0x551   : > { %v5892_v27 = vadd.f32 %v5736_v34, %v15527_v60  ;;  %v5879_v50 = vadd.f32 %v5731_v18, %v15528_v37  ;;  %v6089_v24 = vmax.f32 %v5886_v39, 0.0  ;;  %v6090_v63 = vmax.f32 %v5887_v53, 0.0  ;;  %v15530_v34 = vld [vmem:[#allocation216_spill] sm:$0xff]  ;;  %v15531_v39 = vld [vmem:[#allocation223_spill] sm:$0xff]  ;;  %v15534_v31 = vld [vmem:[#allocation85_spill] sm:$0xff] }
 0x552   : > { %v6091_v11 = vmax.f32 %v5888_v52, 0.0  ;;  %v6092_v40 = vmax.f32 %v5889_v30, 0.0  ;;  %v6093_v15 = vmax.f32 %v5890_v48, 0.0  ;;  %v6094_v32 = vmax.f32 %v5891_v56, 0.0  ;;  %v15532_v53 = vld [vmem:[#allocation224_spill] sm:$0xff]  ;;  %v15533_v52 = vld [vmem:[#allocation227_spill] sm:$0xff] }
 0x553   : > { %v6095_v29 = vmax.f32 %v5892_v27, 0.0  ;;  %v5880_v20 = vadd.f32 %v5731_v18, %v15529_v55  ;;  %6292 = vst [vmem:[%s12962_s8 + $0xe0] sm:$0xff] %v6089_v24  ;;  %6293 = vst [vmem:[%s12962_s8 + $0xe8] sm:$0xff] %v6090_v63  ;;  %v5881_v37 = vadd.f32 %v5731_v18, %v15530_v34  ;;  %v5882_v19 = vadd.f32 %v5731_v18, %v15531_v39  ;;  %v5141_v48 = vld [vmem:[%s12143_s29 + $0x5b0] sm:$0xff]  ;;  %v5142_v56 = vld [vmem:[%s12143_s29 + $0x5b8] sm:$0xff] }
 0x554   : > { %6294 = vst [vmem:[%s12962_s8 + $0xf0] sm:$0xff] %v6091_v11  ;;  %6295 = vst [vmem:[%s12962_s8 + $0xf8] sm:$0xff] %v6092_v40  ;;  %v5883_v60 = vadd.f32 %v5731_v18, %v15532_v53  ;;  %v5884_v30 = vadd.f32 %v5731_v18, %v15533_v52  ;;  %v13207_v27 = vmul.f32 %v12789_v49, %v15534_v31  ;;  %v6082_v11 = vmax.f32 %v5879_v50, 0.0  ;;  %v15535_v53 = vld [vmem:[#allocation201_spill] sm:$0xff] }
 0x555   : > { %6296 = vst [vmem:[%s12962_s8 + $0x100] sm:$0xff] %v6093_v15  ;;  %6297 = vst [vmem:[%s12962_s8 + $0x108] sm:$0xff] %v6094_v32  ;;  %v5885_v55 = vadd.f32 %v5731_v18, %v12362_v44  ;;  %v6083_v24 = vmax.f32 %v5880_v20, 0.0  ;;  %v6084_v63 = vmax.f32 %v5881_v37, 0.0  ;;  %v6085_v40 = vmax.f32 %v5882_v19, 0.0  ;;  %v5741_v37 = vpop.permute.xlu1 %5740 }
 0x556   : > { %6298 = vst.msk [vmem:[%s12962_s8 + $0x110] sm:$0xff] %vm3832_vm2, %v6095_v29  ;;  %v6086_v34 = vmax.f32 %v5883_v60, 0.0  ;;  %v6087_v39 = vmax.f32 %v5884_v30, 0.0  ;;  %v13216_v31 = vmul.f32 %v12789_v49, %v15535_v53  ;;  %6285 = vst [vmem:[%s12962_s8 + $0xa8] sm:$0xff] %v6082_v11  ;;  %v5746_v29 = vpop.permute.xlu0 %5745  ;;  %v13221_v32 = vadd.f32 %v13132_v61, %v5141_v48  ;;  %v15537_v60 = vld [vmem:[#allocation117_spill] sm:$0xff] }
 0x557   : > { %v6088_v15 = vmax.f32 %v5885_v55, 0.0  ;;  %6286 = vst [vmem:[%s12962_s8 + $0xb0] sm:$0xff] %v6083_v24  ;;  %v13224_v44 = vadd.f32 %v13136_v36, %v5142_v56  ;;  %6287 = vst [vmem:[%s12962_s8 + $0xb8] sm:$0xff] %v6084_v63  ;;  %v5900_v50 = vadd.f32 %v5746_v29, %v12364_v26  ;;  %v5901_v49 = vadd.f32 %v5746_v29, %v12366_v13  ;;  %v15536_v36 = vld [vmem:[#allocation116_spill] sm:$0xff]  ;;  %v15538_v26 = vld [vmem:[#allocation166_spill] sm:$0xff] }
 0x558   : > { %6288 = vst [vmem:[%s12962_s8 + $0xc0] sm:$0xff] %v6085_v40  ;;  %6289 = vst [vmem:[%s12962_s8 + $0xc8] sm:$0xff] %v6086_v34  ;;  %v5902_v18 = vadd.f32 %v5746_v29, %v12373_v4  ;;  %v5903_v20 = vadd.f32 %v5746_v29, %v12375_v12  ;;  %v5904_v61 = vadd.f32 %v5746_v29, %v12377_v3  ;;  %v5143_v56 = vld [vmem:[%s12143_s29 + $0x5c0] sm:$0xff]  ;;  %v15539_v24 = vld [vmem:[#allocation167_spill] sm:$0xff] }
 0x559   : > { %6290 = vst [vmem:[%s12962_s8 + $0xd0] sm:$0xff] %v6087_v39  ;;  %6291 = vst.msk [vmem:[%s12962_s8 + $0xd8] sm:$0xff] %vm3832_vm2, %v6088_v15  ;;  %v5905_v19 = vadd.f32 %v5746_v29, %v15536_v36  ;;  %v5906_v52 = vadd.f32 %v5746_v29, %v15537_v60  ;;  %v5893_v30 = vadd.f32 %v5741_v37, %v15538_v26  ;;  %v6103_v13 = vmax.f32 %v5900_v50, 0.0  ;;  %v15540_v40 = vld [vmem:[#allocation91_spill] sm:$0xff]  ;;  %v15541_v39 = vld [vmem:[#allocation92_spill] sm:$0xff] }
 0x55a   : > { %v6104_v48 = vmax.f32 %v5901_v49, 0.0  ;;  %v6105_v4 = vmax.f32 %v5902_v18, 0.0  ;;  %v6106_v12 = vmax.f32 %v5903_v20, 0.0  ;;  %v6107_v55 = vmax.f32 %v5904_v61, 0.0  ;;  %v15542_v15 = vld [vmem:[#allocation191_spill] sm:$0xff]  ;;  %v15543_v50 = vld [vmem:[#allocation118_spill] sm:$0xff] }
 0x55b   : > { %v6108_v11 = vmax.f32 %v5905_v19, 0.0  ;;  %v6109_v3 = vmax.f32 %v5906_v52, 0.0  ;;  %v5894_v63 = vadd.f32 %v5741_v37, %v15539_v24  ;;  %6306 = vst [vmem:[%s12962_s8 + $0x150] sm:$0xff] %v6103_v13  ;;  %v5895_v34 = vadd.f32 %v5741_v37, %v15540_v40  ;;  %v5144_v18 = vld [vmem:[%s12143_s29 + $0x5c8] sm:$0xff]  ;;  %v5145_v20 = vld [vmem:[%s12143_s29 + $0x5d0] sm:$0xff]  ;;  %v5146_v61 = vld [vmem:[%s12143_s29 + $0x5d8] sm:$0xff] }
 0x55c   : > { %6307 = vst [vmem:[%s12962_s8 + $0x158] sm:$0xff] %v6104_v48  ;;  %6308 = vst [vmem:[%s12962_s8 + $0x160] sm:$0xff] %v6105_v4  ;;  %v5896_v53 = vadd.f32 %v5741_v37, %v15541_v39  ;;  %v5897_v29 = vadd.f32 %v5741_v37, %v15542_v15  ;;  %v5898_v49 = vadd.f32 %v5741_v37, %v15543_v50  ;;  %v6096_v19 = vmax.f32 %v5893_v30, 0.0  ;;  %v15545_v24 = vld [vmem:[#allocation168_spill] sm:$0xff]  ;;  %v5147_v15 = vld [vmem:[%s12143_s29 + $0x5e0] sm:$0xff] }
 0x55d   : > { %6309 = vst [vmem:[%s12962_s8 + $0x168] sm:$0xff] %v6106_v12  ;;  %6310 = vst [vmem:[%s12962_s8 + $0x170] sm:$0xff] %v6107_v55  ;;  %v5899_v36 = vadd.f32 %v5741_v37, %v12437_v25  ;;  %v6097_v60 = vmax.f32 %v5894_v63, 0.0  ;;  %v13259_v52 = vadd.f32 %v13140_v17, %v5143_v56  ;;  %v6098_v26 = vmax.f32 %v5895_v34, 0.0  ;;  %v5756_v55 = vpop.permute.xlu0 %5755  ;;  %v15546_v40 = vld [vmem:[#allocation44_spill] sm:$0xff] }
 0x55e   : > { %6311 = vst [vmem:[%s12962_s8 + $0x178] sm:$0xff] %v6108_v11  ;;  %6312 = vst.msk [vmem:[%s12962_s8 + $0x180] sm:$0xff] %vm3832_vm2, %v6109_v3  ;;  %v6099_v13 = vmax.f32 %v5896_v53, 0.0  ;;  %v6100_v48 = vmax.f32 %v5897_v29, 0.0  ;;  %v6101_v4 = vmax.f32 %v5898_v49, 0.0  ;;  %v13264_v11 = vadd.f32 %v13144_v7, %v5144_v18  ;;  %v5751_v3 = vpop.permute.xlu1 %5750  ;;  %v15548_v18 = vld [vmem:[#allocation3_spill] sm:$0xff] }
 0x55f   : > { %v6102_v12 = vmax.f32 %v5899_v36, 0.0  ;;  %6299 = vst [vmem:[%s12962_s8 + $0x118] sm:$0xff] %v6096_v19  ;;  %6300 = vst [vmem:[%s12962_s8 + $0x120] sm:$0xff] %v6097_v60  ;;  %v13267_v25 = vadd.f32 %v13152_v38, %v5145_v20  ;;  %v13270_v37 = vadd.f32 %v13156_v62, %v5146_v61  ;;  %v5914_v17 = vadd.f32 %v5756_v55, %v12442_v42  ;;  %v15544_v38 = vld [vmem:[#allocation119_spill] sm:$0xff]  ;;  %v15547_v42 = vld [vmem:[#allocation60_spill] sm:$0xff] }
 0x560   : > { %6301 = vst [vmem:[%s12962_s8 + $0x128] sm:$0xff] %v6098_v26  ;;  %6302 = vst [vmem:[%s12962_s8 + $0x130] sm:$0xff] %v6099_v13  ;;  %v5915_v30 = vadd.f32 %v5756_v55, %v12444_v14  ;;  %v5916_v56 = vadd.f32 %v5756_v55, %v12446_v16  ;;  %v5917_v7 = vadd.f32 %v5756_v55, %v12448_v57  ;;  %v15549_v61 = vld [vmem:[#allocation192_spill] sm:$0xff]  ;;  %v15551_v26 = vld [vmem:[#allocation121_spill] sm:$0xff] }
 0x561   : > { %6303 = vst [vmem:[%s12962_s8 + $0x138] sm:$0xff] %v6100_v48  ;;  %6304 = vst [vmem:[%s12962_s8 + $0x140] sm:$0xff] %v6101_v4  ;;  %v5918_v62 = vadd.f32 %v5756_v55, %v15544_v38  ;;  %v5919_v63 = vadd.f32 %v5756_v55, %v15545_v24  ;;  %v5920_v34 = vadd.f32 %v5756_v55, %v15546_v40  ;;  %v6117_v14 = vmax.f32 %v5914_v17, 0.0  ;;  %v15550_v19 = vld [vmem:[#allocation120_spill] sm:$0xff]  ;;  %v15552_v48 = vld [vmem:[#allocation46_spill] sm:$0xff] }
 0x562   : > { %6305 = vst.msk [vmem:[%s12962_s8 + $0x148] sm:$0xff] %vm3832_vm2, %v6102_v12  ;;  %v5907_v39 = vadd.f32 %v5751_v3, %v15547_v42  ;;  %v6118_v53 = vmax.f32 %v5915_v30, 0.0  ;;  %v6119_v16 = vmax.f32 %v5916_v56, 0.0  ;;  %v6120_v57 = vmax.f32 %v5917_v7, 0.0  ;;  %v5134_v12 = vld [vmem:[%s12143_s29 + $0x578] sm:$0xff]  ;;  %v5135_v55 = vld [vmem:[%s12143_s29 + $0x580] sm:$0xff] }
 0x563   : > { %v6121_v29 = vmax.f32 %v5918_v62, 0.0  ;;  %v6122_v50 = vmax.f32 %v5919_v63, 0.0  ;;  %v6123_v49 = vmax.f32 %v5920_v34, 0.0  ;;  %v5908_v20 = vadd.f32 %v5751_v3, %v15548_v18  ;;  %6320 = vst [vmem:[%s12962_s8 + $0x1c0] sm:$0xff] %v6117_v14  ;;  %v5136_v17 = vld [vmem:[%s12143_s29 + $0x588] sm:$0xff]  ;;  %v15553_v30 = vld [vmem:[#allocation169_spill] sm:$0xff]  ;;  %v5766_v14 = vpop.permute.xlu0 %5765 }
 0x564   : > { %6321 = vst [vmem:[%s12962_s8 + $0x1c8] sm:$0xff] %v6118_v53  ;;  %6322 = vst [vmem:[%s12962_s8 + $0x1d0] sm:$0xff] %v6119_v16  ;;  %v5909_v36 = vadd.f32 %v5751_v3, %v15549_v61  ;;  %v5910_v60 = vadd.f32 %v5751_v3, %v15550_v19  ;;  %v5911_v13 = vadd.f32 %v5751_v3, %v15551_v26  ;;  %v6110_v7 = vmax.f32 %v5907_v39, 0.0  ;;  %v15554_v16 = vld [vmem:[#allocation5_spill] sm:$0xff]  ;;  %v15558_v18 = vld [vmem:[#allocation50_spill] sm:$0xff] }
 0x565   : > { %6323 = vst [vmem:[%s12962_s8 + $0x1d8] sm:$0xff] %v6120_v57  ;;  %v5912_v4 = vadd.f32 %v5751_v3, %v15552_v48  ;;  %6324 = vst [vmem:[%s12962_s8 + $0x1e0] sm:$0xff] %v6121_v29  ;;  %v5913_v56 = vadd.f32 %v5751_v3, %v15553_v30  ;;  %v6111_v38 = vmax.f32 %v5908_v20, 0.0  ;;  %v13305_v62 = vadd.f32 %v13160_v46, %v5147_v15  ;;  %v15555_v15 = vld [vmem:[#allocation94_spill] sm:$0xff]  ;;  %v15559_v61 = vld [vmem:[#allocation171_spill] sm:$0xff] }
 0x566   : > { %6325 = vst [vmem:[%s12962_s8 + $0x1e8] sm:$0xff] %v6122_v50  ;;  %6326 = vst.msk [vmem:[%s12962_s8 + $0x1f0] sm:$0xff] %vm3832_vm2, %v6123_v49  ;;  %v6112_v24 = vmax.f32 %v5909_v36, 0.0  ;;  %v6113_v63 = vmax.f32 %v5910_v60, 0.0  ;;  %v6114_v40 = vmax.f32 %v5911_v13, 0.0  ;;  %v13310_v53 = vadd.f32 %v13164_v45, %v5134_v12  ;;  %v15556_v50 = vld [vmem:[#allocation87_spill] sm:$0xff]  ;;  %v5761_v49 = vpop.permute.xlu1 %5760 }
 0x567   : > { %v6115_v34 = vmax.f32 %v5912_v4, 0.0  ;;  %v6116_v42 = vmax.f32 %v5913_v56, 0.0  ;;  %6313 = vst [vmem:[%s12962_s8 + $0x188] sm:$0xff] %v6110_v7  ;;  %6314 = vst [vmem:[%s12962_s8 + $0x190] sm:$0xff] %v6111_v38  ;;  %v13313_v3 = vadd.f32 %v13172_v22, %v5135_v55  ;;  %v13316_v39 = vadd.f32 %v13176_v0, %v5136_v17  ;;  %v15557_v22 = vld [vmem:[#allocation124_spill] sm:$0xff]  ;;  %v15561_v30 = vld [vmem:[#allocation122_spill] sm:$0xff] }
 0x568   : > { %6315 = vst [vmem:[%s12962_s8 + $0x198] sm:$0xff] %v6112_v24  ;;  %6316 = vst [vmem:[%s12962_s8 + $0x1a0] sm:$0xff] %v6113_v63  ;;  %v5928_v46 = vadd.f32 %v5766_v14, %v12516_v28  ;;  %v5929_v57 = vadd.f32 %v5766_v14, %v15554_v16  ;;  %v5930_v29 = vadd.f32 %v5766_v14, %v15555_v15  ;;  %v15560_v28 = vld [vmem:[#allocation15_spill] sm:$0xff]  ;;  %v5137_v4 = vld [vmem:[%s12143_s29 + $0x590] sm:$0xff] }
 0x569   : > { %6317 = vst [vmem:[%s12962_s8 + $0x1a8] sm:$0xff] %v6114_v40  ;;  %6318 = vst [vmem:[%s12962_s8 + $0x1b0] sm:$0xff] %v6115_v34  ;;  %v5931_v45 = vadd.f32 %v5766_v14, %v15556_v50  ;;  %v5932_v0 = vadd.f32 %v5766_v14, %v15557_v22  ;;  %v5933_v20 = vadd.f32 %v5766_v14, %v15558_v18  ;;  %v15562_v7 = vld [vmem:[#allocation123_spill] sm:$0xff]  ;;  %v15563_v24 = vld [vmem:[#allocation170_spill] sm:$0xff] }
 0x56a   : > { %6319 = vst.msk [vmem:[%s12962_s8 + $0x1b8] sm:$0xff] %vm3832_vm2, %v6116_v42  ;;  %v5934_v36 = vadd.f32 %v5766_v14, %v15559_v61  ;;  %v5921_v19 = vadd.f32 %v5761_v49, %v15560_v28  ;;  %v6131_v60 = vmax.f32 %v5928_v46, 0.0  ;;  %v6132_v26 = vmax.f32 %v5929_v57, 0.0  ;;  %v15564_v40 = vld [vmem:[#allocation48_spill] sm:$0xff]  ;;  %v15565_v42 = vld [vmem:[#allocation9_spill] sm:$0xff]  ;;  %v5139_v16 = vld [vmem:[%s12143_s29 + $0x5a0] sm:$0xff]  ;;  %v5776_v28 = vpop.permute.xlu0 %5775 }
 0x56b   : > { %v6133_v13 = vmax.f32 %v5930_v29, 0.0  ;;  %v6134_v48 = vmax.f32 %v5931_v45, 0.0  ;;  %v6135_v12 = vmax.f32 %v5932_v0, 0.0  ;;  %v6136_v55 = vmax.f32 %v5933_v20, 0.0  ;;  %v5138_v46 = vld [vmem:[%s12143_s29 + $0x598] sm:$0xff]  ;;  %v5140_v57 = vld [vmem:[%s12143_s29 + $0x5a8] sm:$0xff] }
 0x56c   : > { %v6137_v17 = vmax.f32 %v5934_v36, 0.0  ;;  %v5922_v56 = vadd.f32 %v5761_v49, %v15561_v30  ;;  %6334 = vst [vmem:[%s12962_s8 + $0x230] sm:$0xff] %v6131_v60  ;;  %6335 = vst [vmem:[%s12962_s8 + $0x238] sm:$0xff] %v6132_v26  ;;  %v5923_v38 = vadd.f32 %v5761_v49, %v15562_v7  ;;  %v5924_v63 = vadd.f32 %v5761_v49, %v15563_v24  ;;  %v15566_v15 = vld [vmem:[#allocation193_spill] sm:$0xff]  ;;  %v15572_v30 = vld [vmem:[#allocation7_spill] sm:$0xff] }
 0x56d   : > { %6336 = vst [vmem:[%s12962_s8 + $0x240] sm:$0xff] %v6133_v13  ;;  %6337 = vst [vmem:[%s12962_s8 + $0x248] sm:$0xff] %v6134_v48  ;;  %v5925_v34 = vadd.f32 %v5761_v49, %v15564_v40  ;;  %v5926_v14 = vadd.f32 %v5761_v49, %v15565_v42  ;;  %v5927_v29 = vadd.f32 %v5761_v49, %v15566_v15  ;;  %v6124_v50 = vmax.f32 %v5921_v19, 0.0  ;;  %v15568_v13 = vld [vmem:[#allocation128_spill] sm:$0xff]  ;;  %v15573_v7 = vld [vmem:[#allocation125_spill] sm:$0xff] }
 0x56e   : > { %6338 = vst [vmem:[%s12962_s8 + $0x250] sm:$0xff] %v6135_v12  ;;  %6339 = vst [vmem:[%s12962_s8 + $0x258] sm:$0xff] %v6136_v55  ;;  %v6125_v45 = vmax.f32 %v5922_v56, 0.0  ;;  %v13351_v22 = vadd.f32 %v13180_v59, %v5137_v4  ;;  %v6126_v0 = vmax.f32 %v5923_v38, 0.0  ;;  %v6127_v18 = vmax.f32 %v5924_v63, 0.0  ;;  %v15567_v59 = vld [vmem:[#allocation90_spill] sm:$0xff] }
 0x56f   : > { %6340 = vst.msk [vmem:[%s12962_s8 + $0x260] sm:$0xff] %vm3832_vm2, %v6137_v17  ;;  %v6128_v20 = vmax.f32 %v5925_v34, 0.0  ;;  %v6129_v61 = vmax.f32 %v5926_v14, 0.0  ;;  %v6130_v36 = vmax.f32 %v5927_v29, 0.0  ;;  %6327 = vst [vmem:[%s12962_s8 + $0x1f8] sm:$0xff] %v6124_v50  ;;  %v13356_v60 = vadd.f32 %v13184_v41, %v5138_v46  ;;  %v15569_v4 = vld [vmem:[#allocation54_spill] sm:$0xff]  ;;  %v5771_v17 = vpop.permute.xlu1 %5770 }
 0x570   : > { %6328 = vst [vmem:[%s12962_s8 + $0x200] sm:$0xff] %v6125_v45  ;;  %v13359_v49 = vadd.f32 %v13207_v27, %v5139_v16  ;;  %v13362_v19 = vadd.f32 %v13216_v31, %v5140_v57  ;;  %6329 = vst [vmem:[%s12962_s8 + $0x208] sm:$0xff] %v6126_v0  ;;  %v5942_v26 = vadd.f32 %v5776_v28, %v15567_v59  ;;  %v15570_v55 = vld [vmem:[#allocation127_spill] sm:$0xff]  ;;  %v15571_v27 = vld [vmem:[#allocation29_spill] sm:$0xff] }
 0x571   : > { %6330 = vst [vmem:[%s12962_s8 + $0x210] sm:$0xff] %v6127_v18  ;;  %6331 = vst [vmem:[%s12962_s8 + $0x218] sm:$0xff] %v6128_v20  ;;  %v5943_v48 = vadd.f32 %v5776_v28, %v15568_v13  ;;  %v5944_v12 = vadd.f32 %v5776_v28, %v15569_v4  ;;  %v5945_v41 = vadd.f32 %v5776_v28, %v15570_v55  ;;  %v15574_v24 = vld [vmem:[#allocation126_spill] sm:$0xff]  ;;  %v15575_v15 = vld [vmem:[#allocation172_spill] sm:$0xff] }
 0x572   : > { %6332 = vst [vmem:[%s12962_s8 + $0x220] sm:$0xff] %v6129_v61  ;;  %6333 = vst.msk [vmem:[%s12962_s8 + $0x228] sm:$0xff] %vm3832_vm2, %v6130_v36  ;;  %v5946_v31 = vadd.f32 %v5776_v28, %v15571_v27  ;;  %v5947_v56 = vadd.f32 %v5776_v28, %v15572_v30  ;;  %v5948_v38 = vadd.f32 %v5776_v28, %v15573_v7  ;;  %v6145_v40 = vmax.f32 %v5942_v26, 0.0  ;;  %v15576_v50 = vld [vmem:[#allocation52_spill] sm:$0xff]  ;;  %v15577_v0 = vld [vmem:[#allocation21_spill] sm:$0xff] }
 0x573   : > { %v5935_v63 = vadd.f32 %v5771_v17, %v15574_v24  ;;  %v6146_v34 = vmax.f32 %v5943_v48, 0.0  ;;  %v6147_v42 = vmax.f32 %v5944_v12, 0.0  ;;  %v6148_v14 = vmax.f32 %v5945_v41, 0.0  ;;  %v15578_v20 = vld [vmem:[#allocation23_spill] sm:$0xff]  ;;  %v15579_v36 = vld [vmem:[#allocation62_spill] sm:$0xff] }
 0x574   : > { %v6149_v46 = vmax.f32 %v5946_v31, 0.0  ;;  %v6150_v16 = vmax.f32 %v5947_v56, 0.0  ;;  %v6151_v57 = vmax.f32 %v5948_v38, 0.0  ;;  %v5936_v29 = vadd.f32 %v5771_v17, %v15575_v15  ;;  %6348 = vst [vmem:[%s12962_s8 + $0x2a0] sm:$0xff] %v6145_v40  ;;  %v15580_v59 = vld [vmem:[#allocation162_spill] sm:$0xff]  ;;  %v15582_v30 = vld [vmem:[#allocation163_spill] sm:$0xff]  ;;  %v5786_v40 = vpop.permute.xlu0 %5785 }
 0x575   : > { %6349 = vst [vmem:[%s12962_s8 + $0x2a8] sm:$0xff] %v6146_v34  ;;  %6350 = vst [vmem:[%s12962_s8 + $0x2b0] sm:$0xff] %v6147_v42  ;;  %v5937_v45 = vadd.f32 %v5771_v17, %v15576_v50  ;;  %v5938_v18 = vadd.f32 %v5771_v17, %v15577_v0  ;;  %v5939_v61 = vadd.f32 %v5771_v17, %v15578_v20  ;;  %v15581_v13 = vld [vmem:[#allocation134_spill] sm:$0xff]  ;;  %v6138_v4 = vmax.f32 %v5935_v63, 0.0  ;;  %v15584_v24 = vld [vmem:[#allocation75_spill] sm:$0xff] }
 0x576   : > { %6351 = vst [vmem:[%s12962_s8 + $0x2b8] sm:$0xff] %v6148_v14  ;;  %v5940_v28 = vadd.f32 %v5771_v17, %v15579_v36  ;;  %v13389_v26 = vmul.f32 %v12870_v21, %v15580_v59  ;;  %6352 = vst [vmem:[%s12962_s8 + $0x2c0] sm:$0xff] %v6149_v46  ;;  %v5941_v48 = vadd.f32 %v5771_v17, %v15581_v13  ;;  %v6139_v12 = vmax.f32 %v5936_v29, 0.0  ;;  %v15583_v7 = vld [vmem:[#allocation26_spill] sm:$0xff]  ;;  %v15585_v42 = vld [vmem:[#allocation93_spill] sm:$0xff]  ;;  %v5781_v29 = vpop.permute.xlu1 %5780 }
 0x577   : > { %6353 = vst [vmem:[%s12962_s8 + $0x2c8] sm:$0xff] %v6150_v16  ;;  %6354 = vst.msk [vmem:[%s12962_s8 + $0x2d0] sm:$0xff] %vm3832_vm2, %v6151_v57  ;;  %v6140_v55 = vmax.f32 %v5937_v45, 0.0  ;;  %v6141_v41 = vmax.f32 %v5938_v18, 0.0  ;;  %v6142_v27 = vmax.f32 %v5939_v61, 0.0  ;;  %v13398_v56 = vmul.f32 %v12870_v21, %v15582_v30  ;;  %v15586_v46 = vld [vmem:[#allocation56_spill] sm:$0xff] }
 0x578   : > { %v6143_v31 = vmax.f32 %v5940_v28, 0.0  ;;  %v13402_v38 = vmul.f32 %v12870_v21, %v15583_v7  ;;  %v13406_v17 = vmul.f32 %v12870_v21, %v15584_v24  ;;  %v6144_v63 = vmax.f32 %v5941_v48, 0.0  ;;  %6341 = vst [vmem:[%s12962_s8 + $0x268] sm:$0xff] %v6138_v4  ;;  %6342 = vst [vmem:[%s12962_s8 + $0x270] sm:$0xff] %v6139_v12  ;;  %v15587_v57 = vld [vmem:[#allocation133_spill] sm:$0xff]  ;;  %v15588_v50 = vld [vmem:[#allocation130_spill] sm:$0xff] }
 0x579   : > { %6343 = vst [vmem:[%s12962_s8 + $0x278] sm:$0xff] %v6140_v55  ;;  %6344 = vst [vmem:[%s12962_s8 + $0x280] sm:$0xff] %v6141_v41  ;;  %v5956_v34 = vadd.f32 %v5786_v40, %v12667_v54  ;;  %v5957_v14 = vadd.f32 %v5786_v40, %v15585_v42  ;;  %v5958_v16 = vadd.f32 %v5786_v40, %v15586_v46  ;;  %v15589_v0 = vld [vmem:[#allocation132_spill] sm:$0xff]  ;;  %v15590_v20 = vld [vmem:[#allocation129_spill] sm:$0xff] }
 0x57a   : > { %6345 = vst [vmem:[%s12962_s8 + $0x288] sm:$0xff] %v6142_v27  ;;  %6346 = vst [vmem:[%s12962_s8 + $0x290] sm:$0xff] %v6143_v31  ;;  %v5959_v15 = vadd.f32 %v5786_v40, %v15587_v57  ;;  %v5960_v45 = vadd.f32 %v5786_v40, %v15588_v50  ;;  %v5961_v18 = vadd.f32 %v5786_v40, %v15589_v0  ;;  %v15591_v54 = vld [vmem:[#allocation131_spill] sm:$0xff]  ;;  %v15593_v31 = vld [vmem:[#allocation97_spill] sm:$0xff] }
 0x57b   : > { %6347 = vst.msk [vmem:[%s12962_s8 + $0x298] sm:$0xff] %vm3832_vm2, %v6144_v63  ;;  %v5962_v61 = vadd.f32 %v5786_v40, %v15590_v20  ;;  %v5949_v36 = vadd.f32 %v5781_v29, %v15591_v54  ;;  %v6159_v28 = vmax.f32 %v5956_v34, 0.0  ;;  %v6160_v59 = vmax.f32 %v5957_v14, 0.0  ;;  %v15592_v41 = vld [vmem:[#allocation195_spill] sm:$0xff]  ;;  %v15594_v7 = vld [vmem:[#allocation98_spill] sm:$0xff]  ;;  %v15595_v63 = vld [vmem:[#allocation136_spill] sm:$0xff] }
 0x57c   : > { %v6161_v13 = vmax.f32 %v5958_v16, 0.0  ;;  %v6162_v48 = vmax.f32 %v5959_v15, 0.0  ;;  %v6163_v4 = vmax.f32 %v5960_v45, 0.0  ;;  %v6164_v12 = vmax.f32 %v5961_v18, 0.0  ;;  %v15596_v34 = vld [vmem:[#allocation137_spill] sm:$0xff]  ;;  %v5148_v14 = vld [vmem:[%s12143_s29 + $0x5e8] sm:$0xff] }
 0x57d   : > { %v6165_v55 = vmax.f32 %v5962_v61, 0.0  ;;  %v5950_v27 = vadd.f32 %v5781_v29, %v15592_v41  ;;  %6362 = vst [vmem:[%s12962_s8 + $0x310] sm:$0xff] %v6159_v28  ;;  %6363 = vst [vmem:[%s12962_s8 + $0x318] sm:$0xff] %v6160_v59  ;;  %v5951_v30 = vadd.f32 %v5781_v29, %v15593_v31  ;;  %v5952_v24 = vadd.f32 %v5781_v29, %v15594_v7  ;;  %v15597_v46 = vld [vmem:[#allocation88_spill] sm:$0xff]  ;;  %v15598_v57 = vld [vmem:[#allocation51_spill] sm:$0xff]  ;;  %v5791_v7 = vpop.permute.xlu1 %5790 }
 0x57e   : > { %6364 = vst [vmem:[%s12962_s8 + $0x320] sm:$0xff] %v6161_v13  ;;  %6365 = vst [vmem:[%s12962_s8 + $0x328] sm:$0xff] %v6162_v48  ;;  %v5953_v40 = vadd.f32 %v5781_v29, %v15595_v63  ;;  %v5954_v42 = vadd.f32 %v5781_v29, %v15596_v34  ;;  %v13436_v16 = vmul.f32 %v12870_v21, %v15597_v46  ;;  %v6152_v50 = vmax.f32 %v5949_v36, 0.0  ;;  %v15599_v54 = vld [vmem:[#allocation89_spill] sm:$0xff]  ;;  %v15606_v63 = vld [vmem:[#allocation47_spill] sm:$0xff] }
 0x57f   : > { %6366 = vst [vmem:[%s12962_s8 + $0x330] sm:$0xff] %v6163_v4  ;;  %6367 = vst [vmem:[%s12962_s8 + $0x338] sm:$0xff] %v6164_v12  ;;  %v5955_v15 = vadd.f32 %v5781_v29, %v15598_v57  ;;  %v6153_v45 = vmax.f32 %v5950_v27, 0.0  ;;  %v6154_v0 = vmax.f32 %v5951_v30, 0.0  ;;  %v6155_v18 = vmax.f32 %v5952_v24, 0.0  ;;  %v15600_v59 = vld [vmem:[#allocation41_spill] sm:$0xff]  ;;  %v5796_v29 = vpop.permute.xlu0 %5795 }
 0x580   : > { %6368 = vst.msk [vmem:[%s12962_s8 + $0x340] sm:$0xff] %vm3832_vm2, %v6165_v55  ;;  %v6156_v20 = vmax.f32 %v5953_v40, 0.0  ;;  %v6157_v61 = vmax.f32 %v5954_v42, 0.0  ;;  %v13445_v28 = vmul.f32 %v12870_v21, %v15599_v54  ;;  %v13449_v13 = vmul.f32 %v12870_v21, %v15600_v59  ;;  %6355 = vst [vmem:[%s12962_s8 + $0x2d8] sm:$0xff] %v6152_v50  ;;  %v15601_v4 = vld [vmem:[#allocation95_spill] sm:$0xff]  ;;  %v15602_v55 = vld [vmem:[#allocation96_spill] sm:$0xff] }
 0x581   : > { %v6158_v48 = vmax.f32 %v5955_v15, 0.0  ;;  %6356 = vst [vmem:[%s12962_s8 + $0x2e0] sm:$0xff] %v6153_v45  ;;  %v13454_v36 = vadd.f32 %v13389_v26, %v5148_v14  ;;  %6357 = vst [vmem:[%s12962_s8 + $0x2e8] sm:$0xff] %v6154_v0  ;;  %v5970_v12 = vadd.f32 %v5796_v29, %v15601_v4  ;;  %v5971_v41 = vadd.f32 %v5796_v29, %v15602_v55  ;;  %v15603_v27 = vld [vmem:[#allocation58_spill] sm:$0xff]  ;;  %v15604_v21 = vld [vmem:[#allocation135_spill] sm:$0xff] }
 0x582   : > { %6358 = vst [vmem:[%s12962_s8 + $0x2f0] sm:$0xff] %v6155_v18  ;;  %6359 = vst [vmem:[%s12962_s8 + $0x2f8] sm:$0xff] %v6156_v20  ;;  %v5972_v31 = vadd.f32 %v5796_v29, %v15603_v27  ;;  %v5973_v30 = vadd.f32 %v5796_v29, %v15604_v21  ;;  %v15605_v26 = vld [vmem:[#allocation45_spill] sm:$0xff]  ;;  %v5975_v40 = vadd.f32 %v5796_v29, %v15606_v63  ;;  %v15607_v34 = vld [vmem:[#allocation196_spill] sm:$0xff] }
 0x583   : > { %6360 = vst [vmem:[%s12962_s8 + $0x300] sm:$0xff] %v6157_v61  ;;  %6361 = vst.msk [vmem:[%s12962_s8 + $0x308] sm:$0xff] %vm3832_vm2, %v6158_v48  ;;  %v5974_v24 = vadd.f32 %v5796_v29, %v15605_v26  ;;  %v5976_v42 = vadd.f32 %v5796_v29, %v15607_v34  ;;  %v15608_v14 = vld [vmem:[#allocation143_spill] sm:$0xff]  ;;  %v6173_v57 = vmax.f32 %v5970_v12, 0.0  ;;  %v6174_v15 = vmax.f32 %v5971_v41, 0.0  ;;  %v5149_v0 = vld [vmem:[%s12143_s29 + $0x5f0] sm:$0xff] }
 0x584   : > { %v5963_v46 = vadd.f32 %v5791_v7, %v15608_v14  ;;  %v6175_v50 = vmax.f32 %v5972_v31, 0.0  ;;  %v6176_v45 = vmax.f32 %v5973_v30, 0.0  ;;  %v6178_v20 = vmax.f32 %v5975_v40, 0.0  ;;  %v15609_v54 = vld [vmem:[#allocation101_spill] sm:$0xff]  ;;  %v15610_v48 = vld [vmem:[#allocation139_spill] sm:$0xff]  ;;  %v15611_v4 = vld [vmem:[#allocation140_spill] sm:$0xff] }
 0x585   : > { %v6177_v18 = vmax.f32 %v5974_v24, 0.0  ;;  %v6179_v61 = vmax.f32 %v5976_v42, 0.0  ;;  %v5964_v59 = vadd.f32 %v5791_v7, %v15609_v54  ;;  %6376 = vst [vmem:[%s12962_s8 + $0x380] sm:$0xff] %v6173_v57  ;;  %6377 = vst [vmem:[%s12962_s8 + $0x388] sm:$0xff] %v6174_v15  ;;  %v5965_v29 = vadd.f32 %v5791_v7, %v15610_v48  ;;  %v15612_v55 = vld [vmem:[#allocation111_spill] sm:$0xff]  ;;  %v15613_v27 = vld [vmem:[#allocation77_spill] sm:$0xff] }
 0x586   : > { %6378 = vst [vmem:[%s12962_s8 + $0x390] sm:$0xff] %v6175_v50  ;;  %6379 = vst [vmem:[%s12962_s8 + $0x398] sm:$0xff] %v6176_v45  ;;  %v5966_v12 = vadd.f32 %v5791_v7, %v15611_v4  ;;  %v5967_v41 = vadd.f32 %v5791_v7, %v15612_v55  ;;  %v5968_v31 = vadd.f32 %v5791_v7, %v15613_v27  ;;  %v5150_v21 = vld [vmem:[%s12143_s29 + $0x5f8] sm:$0xff]  ;;  %v5151_v30 = vld [vmem:[%s12143_s29 + $0x600] sm:$0xff]  ;;  %v6166_v40 = vmax.f32 %v5963_v46, 0.0  ;;  %v5801_v4 = vpop.permute.xlu1 %5800 }
 0x587   : > { %v5152_v26 = vld [vmem:[%s12143_s29 + $0x608] sm:$0xff]  ;;  %6380 = vst [vmem:[%s12962_s8 + $0x3a0] sm:$0xff] %v6177_v18  ;;  %6381 = vst [vmem:[%s12962_s8 + $0x3a8] sm:$0xff] %v6178_v20  ;;  %v15614_v24 = vld [vmem:[#allocation13_spill] sm:$0xff]  ;;  %v6167_v34 = vmax.f32 %v5964_v59, 0.0  ;;  %v13489_v42 = vadd.f32 %v13398_v56, %v5149_v0  ;;  %v6168_v14 = vmax.f32 %v5965_v29, 0.0  ;;  %v5806_v18 = vpop.permute.xlu0 %5805  ;;  %v13494_v20 = vadd.f32 %v13402_v38, %v5150_v21 }
 0x588   : > { %6382 = vst.msk [vmem:[%s12962_s8 + $0x3b0] sm:$0xff] %vm3832_vm2, %v6179_v61  ;;  %v5969_v63 = vadd.f32 %v5791_v7, %v15614_v24  ;;  %v6169_v57 = vmax.f32 %v5966_v12, 0.0  ;;  %v6170_v15 = vmax.f32 %v5967_v41, 0.0  ;;  %v6171_v50 = vmax.f32 %v5968_v31, 0.0  ;;  %6369 = vst [vmem:[%s12962_s8 + $0x348] sm:$0xff] %v6166_v40  ;;  %v15615_v56 = vld [vmem:[#allocation99_spill] sm:$0xff] }
 0x589   : > { %6370 = vst [vmem:[%s12962_s8 + $0x350] sm:$0xff] %v6167_v34  ;;  %v13497_v7 = vadd.f32 %v13406_v17, %v5151_v30  ;;  %v13500_v46 = vadd.f32 %v13436_v16, %v5152_v26  ;;  %6371 = vst [vmem:[%s12962_s8 + $0x358] sm:$0xff] %v6168_v14  ;;  %v5984_v0 = vadd.f32 %v5806_v18, %v15615_v56  ;;  %v15616_v61 = vld [vmem:[#allocation100_spill] sm:$0xff]  ;;  %v15617_v59 = vld [vmem:[#allocation138_spill] sm:$0xff] }
 0x58a   : > { %v6172_v45 = vmax.f32 %v5969_v63, 0.0  ;;  %6372 = vst [vmem:[%s12962_s8 + $0x360] sm:$0xff] %v6169_v57  ;;  %6373 = vst [vmem:[%s12962_s8 + $0x368] sm:$0xff] %v6170_v15  ;;  %v5985_v54 = vadd.f32 %v5806_v18, %v15616_v61  ;;  %v5986_v48 = vadd.f32 %v5806_v18, %v15617_v59  ;;  %v15618_v29 = vld [vmem:[#allocation2_spill] sm:$0xff]  ;;  %v15619_v17 = vld [vmem:[#allocation57_spill] sm:$0xff] }
 0x58b   : > { %6374 = vst [vmem:[%s12962_s8 + $0x370] sm:$0xff] %v6171_v50  ;;  %v5987_v38 = vadd.f32 %v5806_v18, %v15618_v29  ;;  %v5988_v16 = vadd.f32 %v5806_v18, %v15619_v17  ;;  %v15620_v12 = vld [vmem:[#allocation59_spill] sm:$0xff]  ;;  %v15622_v31 = vld [vmem:[#allocation53_spill] sm:$0xff]  ;;  %v6187_v30 = vmax.f32 %v5984_v0, 0.0  ;;  %v5153_v40 = vld [vmem:[%s12143_s29 + $0x610] sm:$0xff] }
 0x58c   : > { %6375 = vst.msk [vmem:[%s12962_s8 + $0x378] sm:$0xff] %vm3832_vm2, %v6172_v45  ;;  %v5989_v55 = vadd.f32 %v5806_v18, %v15620_v12  ;;  %v15621_v41 = vld [vmem:[#allocation63_spill] sm:$0xff]  ;;  %v5977_v21 = vadd.f32 %v5801_v4, %v15622_v31  ;;  %v6188_v26 = vmax.f32 %v5985_v54, 0.0  ;;  %v6189_v24 = vmax.f32 %v5986_v48, 0.0  ;;  %v15624_v45 = vld [vmem:[#allocation8_spill] sm:$0xff]  ;;  %v15625_v56 = vld [vmem:[#allocation102_spill] sm:$0xff] }
 0x58d   : > { %v5990_v27 = vadd.f32 %v5806_v18, %v15621_v41  ;;  %v6190_v63 = vmax.f32 %v5987_v38, 0.0  ;;  %v6191_v34 = vmax.f32 %v5988_v16, 0.0  ;;  %v15623_v15 = vld [vmem:[#allocation55_spill] sm:$0xff]  ;;  %6390 = vst [vmem:[%s12962_s8 + $0x3f0] sm:$0xff] %v6187_v30  ;;  %v5979_v18 = vadd.f32 %v5801_v4, %v15624_v45  ;;  %v15626_v61 = vld [vmem:[#allocation142_spill] sm:$0xff]  ;;  %v15627_v59 = vld [vmem:[#allocation64_spill] sm:$0xff] }
 0x58e   : > { %v6192_v14 = vmax.f32 %v5989_v55, 0.0  ;;  %v5978_v50 = vadd.f32 %v5801_v4, %v15623_v15  ;;  %6391 = vst [vmem:[%s12962_s8 + $0x3f8] sm:$0xff] %v6188_v26  ;;  %6392 = vst [vmem:[%s12962_s8 + $0x400] sm:$0xff] %v6189_v24  ;;  %v5980_v0 = vadd.f32 %v5801_v4, %v15625_v56  ;;  %v5981_v54 = vadd.f32 %v5801_v4, %v15626_v61  ;;  %v5154_v29 = vld [vmem:[%s12143_s29 + $0x618] sm:$0xff]  ;;  %v15629_v24 = vld [vmem:[#allocation38_spill] sm:$0xff]  ;;  %v5811_v15 = vpop.permute.xlu1 %5810 }
 0x58f   : > { %v6193_v57 = vmax.f32 %v5990_v27, 0.0  ;;  %6393 = vst [vmem:[%s12962_s8 + $0x408] sm:$0xff] %v6190_v63  ;;  %v5982_v48 = vadd.f32 %v5801_v4, %v15627_v59  ;;  %6394 = vst [vmem:[%s12962_s8 + $0x410] sm:$0xff] %v6191_v34  ;;  %v5983_v38 = vadd.f32 %v5801_v4, %v12890_v47  ;;  %v6180_v17 = vmax.f32 %v5977_v21, 0.0  ;;  %v15628_v30 = vld [vmem:[#allocation165_spill] sm:$0xff]  ;;  %v5816_v21 = vpop.permute.xlu0 %5815  ;;  %v15632_v45 = vld [vmem:[#allocation19_spill] sm:$0xff] }
 0x590   : > { %6395 = vst [vmem:[%s12962_s8 + $0x418] sm:$0xff] %v6192_v14  ;;  %v6181_v16 = vmax.f32 %v5978_v50, 0.0  ;;  %v13533_v12 = vadd.f32 %v13445_v28, %v5153_v40  ;;  %v6182_v55 = vmax.f32 %v5979_v18, 0.0  ;;  %v6183_v41 = vmax.f32 %v5980_v0, 0.0  ;;  %v15630_v14 = vld [vmem:[#allocation175_spill] sm:$0xff]  ;;  %v15633_v56 = vld [vmem:[#allocation145_spill] sm:$0xff] }
 0x591   : > { %6396 = vst.msk [vmem:[%s12962_s8 + $0x420] sm:$0xff] %vm3832_vm2, %v6193_v57  ;;  %v6184_v27 = vmax.f32 %v5981_v54, 0.0  ;;  %v6185_v31 = vmax.f32 %v5982_v48, 0.0  ;;  %v13537_v26 = vmul.f32 %v12968_v5, %v15628_v30  ;;  %v13541_v47 = vmul.f32 %v12968_v5, %v15629_v24  ;;  %6383 = vst [vmem:[%s12962_s8 + $0x3b8] sm:$0xff] %v6180_v17  ;;  %v15635_v17 = vld [vmem:[#allocation141_spill] sm:$0xff] }
 0x592   : > { %v6186_v4 = vmax.f32 %v5983_v38, 0.0  ;;  %6384 = vst [vmem:[%s12962_s8 + $0x3c0] sm:$0xff] %v6181_v16  ;;  %v13546_v28 = vadd.f32 %v13449_v13, %v5154_v29  ;;  %6385 = vst [vmem:[%s12962_s8 + $0x3c8] sm:$0xff] %v6182_v55  ;;  %v5998_v63 = vadd.f32 %v5816_v21, %v12892_v58  ;;  %v5999_v40 = vadd.f32 %v5816_v21, %v12897_v6  ;;  %v15631_v13 = vld [vmem:[#allocation176_spill] sm:$0xff]  ;;  %v15634_v58 = vld [vmem:[#allocation146_spill] sm:$0xff] }
 0x593   : > { %6386 = vst [vmem:[%s12962_s8 + $0x3d0] sm:$0xff] %v6183_v41  ;;  %6387 = vst [vmem:[%s12962_s8 + $0x3d8] sm:$0xff] %v6184_v27  ;;  %v6000_v34 = vadd.f32 %v5816_v21, %v12899_v9  ;;  %v6001_v57 = vadd.f32 %v5816_v21, %v15630_v14  ;;  %v6002_v50 = vadd.f32 %v5816_v21, %v15631_v13  ;;  %v15636_v55 = vld [vmem:[#allocation4_spill] sm:$0xff]  ;;  %v15638_v30 = vld [vmem:[#allocation161_spill] sm:$0xff] }
 0x594   : > { %6388 = vst [vmem:[%s12962_s8 + $0x3e0] sm:$0xff] %v6185_v31  ;;  %6389 = vst.msk [vmem:[%s12962_s8 + $0x3e8] sm:$0xff] %vm3832_vm2, %v6186_v4  ;;  %v6003_v18 = vadd.f32 %v5816_v21, %v15632_v45  ;;  %v6004_v0 = vadd.f32 %v5816_v21, %v15633_v56  ;;  %v5991_v61 = vadd.f32 %v5811_v15, %v15634_v58  ;;  %v6201_v6 = vmax.f32 %v5998_v63, 0.0  ;;  %v15637_v27 = vld [vmem:[#allocation32_spill] sm:$0xff]  ;;  %v15639_v4 = vld [vmem:[#allocation11_spill] sm:$0xff] }
 0x595   : > { %v6202_v54 = vmax.f32 %v5999_v40, 0.0  ;;  %v6203_v9 = vmax.f32 %v6000_v34, 0.0  ;;  %v6204_v59 = vmax.f32 %v6001_v57, 0.0  ;;  %v6205_v48 = vmax.f32 %v6002_v50, 0.0  ;;  %v15640_v63 = vld [vmem:[#allocation76_spill] sm:$0xff]  ;;  %v15641_v34 = vld [vmem:[#allocation61_spill] sm:$0xff] }
 0x596   : > { %v6206_v29 = vmax.f32 %v6003_v18, 0.0  ;;  %v6207_v38 = vmax.f32 %v6004_v0, 0.0  ;;  %v5992_v16 = vadd.f32 %v5811_v15, %v15635_v17  ;;  %6404 = vst [vmem:[%s12962_s8 + $0x460] sm:$0xff] %v6201_v6  ;;  %v5993_v41 = vadd.f32 %v5811_v15, %v15636_v55  ;;  %v15642_v0 = vld [vmem:[#allocation30_spill] sm:$0xff]  ;;  %v15643_v6 = vld [vmem:[#allocation225_spill] sm:$0xff] }
 0x597   : > { %6405 = vst [vmem:[%s12962_s8 + $0x468] sm:$0xff] %v6202_v54  ;;  %6406 = vst [vmem:[%s12962_s8 + $0x470] sm:$0xff] %v6203_v9  ;;  %v5994_v31 = vadd.f32 %v5811_v15, %v15637_v27  ;;  %v5995_v24 = vadd.f32 %v5811_v15, %v15638_v30  ;;  %v5996_v21 = vadd.f32 %v5811_v15, %v15639_v4  ;;  %v6194_v57 = vmax.f32 %v5991_v61, 0.0  ;;  %v15644_v9 = vld [vmem:[#allocation226_spill] sm:$0xff]  ;;  %v15650_v4 = vld [vmem:[#allocation179_spill] sm:$0xff] }
 0x598   : > { %6407 = vst [vmem:[%s12962_s8 + $0x478] sm:$0xff] %v6204_v59  ;;  %v13573_v40 = vmul.f32 %v12968_v5, %v15640_v63  ;;  %6408 = vst [vmem:[%s12962_s8 + $0x480] sm:$0xff] %v6205_v48  ;;  %v5997_v14 = vadd.f32 %v5811_v15, %v15641_v34  ;;  %v6195_v13 = vmax.f32 %v5992_v16, 0.0  ;;  %v6196_v50 = vmax.f32 %v5993_v41, 0.0  ;;  %v5826_v59 = vpop.permute.xlu0 %5825  ;;  %v15645_v48 = vld [vmem:[#allocation202_spill] sm:$0xff]  ;;  %v15647_v16 = vld [vmem:[#allocation103_spill] sm:$0xff] }
 0x599   : > { %6409 = vst [vmem:[%s12962_s8 + $0x488] sm:$0xff] %v6206_v29  ;;  %6410 = vst.msk [vmem:[%s12962_s8 + $0x490] sm:$0xff] %vm3832_vm2, %v6207_v38  ;;  %v6197_v45 = vmax.f32 %v5994_v31, 0.0  ;;  %v6198_v18 = vmax.f32 %v5995_v24, 0.0  ;;  %v6199_v56 = vmax.f32 %v5996_v21, 0.0  ;;  %v13582_v58 = vmul.f32 %v12968_v5, %v15642_v0  ;;  %v15646_v38 = vld [vmem:[#allocation12_spill] sm:$0xff]  ;;  %v5821_v31 = vpop.permute.xlu1 %5820 }
 0x59a   : > { %v13586_v54 = vmul.f32 %v12968_v5, %v15643_v6  ;;  %v13590_v15 = vmul.f32 %v12968_v5, %v15644_v9  ;;  %v6200_v61 = vmax.f32 %v5997_v14, 0.0  ;;  %6397 = vst [vmem:[%s12962_s8 + $0x428] sm:$0xff] %v6194_v57  ;;  %6398 = vst [vmem:[%s12962_s8 + $0x430] sm:$0xff] %v6195_v13  ;;  %v6012_v29 = vadd.f32 %v5826_v59, %v15645_v48  ;;  %v15648_v41 = vld [vmem:[#allocation65_spill] sm:$0xff]  ;;  %v15649_v30 = vld [vmem:[#allocation66_spill] sm:$0xff] }
 0x59b   : > { %6399 = vst [vmem:[%s12962_s8 + $0x438] sm:$0xff] %v6196_v50  ;;  %6400 = vst [vmem:[%s12962_s8 + $0x440] sm:$0xff] %v6197_v45  ;;  %v6013_v17 = vadd.f32 %v5826_v59, %v15646_v38  ;;  %v6014_v55 = vadd.f32 %v5826_v59, %v15647_v16  ;;  %v6015_v27 = vadd.f32 %v5826_v59, %v15648_v41  ;;  %v15651_v63 = vld [vmem:[#allocation180_spill] sm:$0xff]  ;;  %v15652_v14 = vld [vmem:[#allocation25_spill] sm:$0xff] }
 0x59c   : > { %6401 = vst [vmem:[%s12962_s8 + $0x448] sm:$0xff] %v6198_v18  ;;  %6402 = vst [vmem:[%s12962_s8 + $0x450] sm:$0xff] %v6199_v56  ;;  %v6016_v24 = vadd.f32 %v5826_v59, %v15649_v30  ;;  %v6017_v21 = vadd.f32 %v5826_v59, %v15650_v4  ;;  %v6018_v34 = vadd.f32 %v5826_v59, %v15651_v63  ;;  %v6215_v13 = vmax.f32 %v6012_v29, 0.0  ;;  %v15653_v9 = vld [vmem:[#allocation149_spill] sm:$0xff]  ;;  %v15654_v59 = vld [vmem:[#allocation150_spill] sm:$0xff] }
 0x59d   : > { %6403 = vst.msk [vmem:[%s12962_s8 + $0x458] sm:$0xff] %vm3832_vm2, %v6200_v61  ;;  %v6005_v57 = vadd.f32 %v5821_v31, %v15652_v14  ;;  %v6216_v50 = vmax.f32 %v6013_v17, 0.0  ;;  %v6217_v45 = vmax.f32 %v6014_v55, 0.0  ;;  %v6218_v18 = vmax.f32 %v6015_v27, 0.0  ;;  %v15655_v29 = vld [vmem:[#allocation6_spill] sm:$0xff]  ;;  %v15656_v17 = vld [vmem:[#allocation144_spill] sm:$0xff] }
 0x59e   : > { %v6219_v56 = vmax.f32 %v6016_v24, 0.0  ;;  %v6220_v0 = vmax.f32 %v6017_v21, 0.0  ;;  %v6221_v6 = vmax.f32 %v6018_v34, 0.0  ;;  %v6006_v61 = vadd.f32 %v5821_v31, %v15653_v9  ;;  %6418 = vst [vmem:[%s12962_s8 + $0x4d0] sm:$0xff] %v6215_v13  ;;  %v5155_v41 = vld [vmem:[%s12143_s29 + $0x620] sm:$0xff]  ;;  %v5156_v27 = vld [vmem:[%s12143_s29 + $0x628] sm:$0xff] }
 0x59f   : > { %6419 = vst [vmem:[%s12962_s8 + $0x4d8] sm:$0xff] %v6216_v50  ;;  %6420 = vst [vmem:[%s12962_s8 + $0x4e0] sm:$0xff] %v6217_v45  ;;  %v6007_v48 = vadd.f32 %v5821_v31, %v15654_v59  ;;  %v6008_v38 = vadd.f32 %v5821_v31, %v15655_v29  ;;  %v6009_v16 = vadd.f32 %v5821_v31, %v15656_v17  ;;  %v5157_v30 = vld [vmem:[%s12143_s29 + $0x630] sm:$0xff]  ;;  %v15657_v24 = vld [vmem:[#allocation49_spill] sm:$0xff]  ;;  %v6208_v63 = vmax.f32 %v6005_v57, 0.0 }
 0x5a0   : > { %6421 = vst [vmem:[%s12962_s8 + $0x4e8] sm:$0xff] %v6218_v18  ;;  %v6010_v55 = vadd.f32 %v5821_v31, %v13085_v51  ;;  %v13622_v4 = vmul.f32 %v12968_v5, %v15657_v24  ;;  %6422 = vst [vmem:[%s12962_s8 + $0x4f0] sm:$0xff] %v6219_v56  ;;  %v6011_v21 = vadd.f32 %v5821_v31, %v13088_v2  ;;  %v6209_v51 = vmax.f32 %v6006_v61, 0.0  ;;  %v5836_v5 = vpop.permute.xlu0 %5835  ;;  %v15659_v17 = vld [vmem:[#allocation79_spill] sm:$0xff]  ;;  %v15663_v24 = vld [vmem:[#allocation104_spill] sm:$0xff] }
 0x5a1   : > { %6423 = vst [vmem:[%s12962_s8 + $0x4f8] sm:$0xff] %v6220_v0  ;;  %6424 = vst.msk [vmem:[%s12962_s8 + $0x500] sm:$0xff] %vm3832_vm2, %v6221_v6  ;;  %v6210_v34 = vmax.f32 %v6007_v48, 0.0  ;;  %v6211_v14 = vmax.f32 %v6008_v38, 0.0  ;;  %v6212_v13 = vmax.f32 %v6009_v16, 0.0  ;;  %v13632_v18 = vadd.f32 %v13537_v26, %v5155_v41  ;;  %v5831_v6 = vpop.permute.xlu1 %5830  ;;  %v5158_v48 = vld [vmem:[%s12143_s29 + $0x638] sm:$0xff] }
 0x5a2   : > { %v6213_v50 = vmax.f32 %v6010_v55, 0.0  ;;  %v6214_v45 = vmax.f32 %v6011_v21, 0.0  ;;  %6411 = vst [vmem:[%s12962_s8 + $0x498] sm:$0xff] %v6208_v63  ;;  %6412 = vst [vmem:[%s12962_s8 + $0x4a0] sm:$0xff] %v6209_v51  ;;  %v13635_v56 = vadd.f32 %v13541_v47, %v5156_v27  ;;  %v13638_v2 = vadd.f32 %v13573_v40, %v5157_v30  ;;  %v15661_v55 = vld [vmem:[#allocation203_spill] sm:$0xff]  ;;  %v15662_v27 = vld [vmem:[#allocation173_spill] sm:$0xff] }
 0x5a3   : > { %6413 = vst [vmem:[%s12962_s8 + $0x4a8] sm:$0xff] %v6210_v34  ;;  %6414 = vst [vmem:[%s12962_s8 + $0x4b0] sm:$0xff] %v6211_v14  ;;  %v6026_v31 = vadd.f32 %v5836_v5, %v13093_v35  ;;  %v6027_v57 = vadd.f32 %v5836_v5, %v13095_v10  ;;  %v6028_v0 = vadd.f32 %v5836_v5, %v13097_v43  ;;  %v15658_v35 = vld [vmem:[#allocation78_spill] sm:$0xff]  ;;  %v5160_v51 = vld [vmem:[%s12143_s29 + $0x648] sm:$0xff] }
 0x5a4   : > { %6415 = vst [vmem:[%s12962_s8 + $0x4b8] sm:$0xff] %v6212_v13  ;;  %6416 = vst [vmem:[%s12962_s8 + $0x4c0] sm:$0xff] %v6213_v50  ;;  %v6029_v26 = vadd.f32 %v5836_v5, %v13099_v8  ;;  %v6030_v47 = vadd.f32 %v5836_v5, %v13101_v23  ;;  %v6031_v40 = vadd.f32 %v5836_v5, %v13103_v33  ;;  %v5159_v63 = vld [vmem:[%s12143_s29 + $0x640] sm:$0xff]  ;;  %v5161_v34 = vld [vmem:[%s12143_s29 + $0x650] sm:$0xff] }
 0x5a5   : > { %6417 = vst.msk [vmem:[%s12962_s8 + $0x4c8] sm:$0xff] %vm3832_vm2, %v6214_v45  ;;  %v6032_v9 = vadd.f32 %v5836_v5, %v13105_v1  ;;  %v6019_v61 = vadd.f32 %v5831_v6, %v15658_v35  ;;  %v6229_v10 = vmax.f32 %v6026_v31, 0.0  ;;  %v6230_v59 = vmax.f32 %v6027_v57, 0.0  ;;  %v15660_v1 = vld [vmem:[#allocation17_spill] sm:$0xff]  ;;  %v15664_v14 = vld [vmem:[#allocation18_spill] sm:$0xff] }
 0x5a6   : > { %v6231_v43 = vmax.f32 %v6028_v0, 0.0  ;;  %v6232_v8 = vmax.f32 %v6029_v26, 0.0  ;;  %v6233_v29 = vmax.f32 %v6030_v47, 0.0  ;;  %v6234_v38 = vmax.f32 %v6031_v40, 0.0  ;;  %v5846_v40 = vpop.permute.xlu0 %5845 }
 0x5a7   : > { %v6235_v23 = vmax.f32 %v6032_v9, 0.0  ;;  %v6020_v33 = vadd.f32 %v5831_v6, %v15659_v17  ;;  %6432 = vst [vmem:[%s12962_s8 + $0x540] sm:$0xff] %v6229_v10  ;;  %6433 = vst [vmem:[%s12962_s8 + $0x548] sm:$0xff] %v6230_v59  ;;  %v6021_v16 = vadd.f32 %v5831_v6, %v15660_v1  ;;  %v6022_v41 = vadd.f32 %v5831_v6, %v15661_v55 }
 0x5a8   : > { %6434 = vst [vmem:[%s12962_s8 + $0x550] sm:$0xff] %v6231_v43  ;;  %6435 = vst [vmem:[%s12962_s8 + $0x558] sm:$0xff] %v6232_v8  ;;  %v6023_v30 = vadd.f32 %v5831_v6, %v15662_v27  ;;  %v6024_v21 = vadd.f32 %v5831_v6, %v15663_v24  ;;  %v6025_v13 = vadd.f32 %v5831_v6, %v15664_v14  ;;  %v6222_v50 = vmax.f32 %v6019_v61, 0.0  ;;  %v5841_v43 = vpop.permute.xlu1 %5840 }
 0x5a9   : > { %6436 = vst [vmem:[%s12962_s8 + $0x560] sm:$0xff] %v6233_v29  ;;  %6437 = vst [vmem:[%s12962_s8 + $0x568] sm:$0xff] %v6234_v38  ;;  %v6223_v45 = vmax.f32 %v6020_v33, 0.0  ;;  %v5709_v5 = vadd.f32 %v13582_v58, %v5158_v48  ;;  %v6224_v31 = vmax.f32 %v6021_v16, 0.0  ;;  %v6225_v57 = vmax.f32 %v6022_v41, 0.0 }
 0x5aa   : > { %6438 = vst.msk [vmem:[%s12962_s8 + $0x570] sm:$0xff] %vm3832_vm2, %v6235_v23  ;;  %v6226_v0 = vmax.f32 %v6023_v30, 0.0  ;;  %v6227_v26 = vmax.f32 %v6024_v21, 0.0  ;;  %v6228_v47 = vmax.f32 %v6025_v13, 0.0  ;;  %6425 = vst [vmem:[%s12962_s8 + $0x508] sm:$0xff] %v6222_v50  ;;  %v5710_v9 = vadd.f32 %v13586_v54, %v5159_v63 }
 0x5ab   : > { %6426 = vst [vmem:[%s12962_s8 + $0x510] sm:$0xff] %v6223_v45  ;;  %v5711_v6 = vadd.f32 %v13590_v15, %v5160_v51  ;;  %v5712_v35 = vadd.f32 %v13622_v4, %v5161_v34  ;;  %6427 = vst [vmem:[%s12962_s8 + $0x518] sm:$0xff] %v6224_v31  ;;  %v6040_v58 = vadd.f32 %v5846_v40, %v13221_v32 }
 0x5ac   : > { %6428 = vst [vmem:[%s12962_s8 + $0x520] sm:$0xff] %v6225_v57  ;;  %6429 = vst [vmem:[%s12962_s8 + $0x528] sm:$0xff] %v6226_v0  ;;  %v6041_v61 = vadd.f32 %v5846_v40, %v13224_v44  ;;  %v6042_v10 = vadd.f32 %v5846_v40, %v13259_v52  ;;  %v6043_v59 = vadd.f32 %v5846_v40, %v13264_v11  ;;  %v5851_v63 = vpop.permute.xlu1 %5850 }
 0x5ad   : > { %6430 = vst [vmem:[%s12962_s8 + $0x530] sm:$0xff] %v6227_v26  ;;  %6431 = vst.msk [vmem:[%s12962_s8 + $0x538] sm:$0xff] %vm3832_vm2, %v6228_v47  ;;  %v6044_v54 = vadd.f32 %v5846_v40, %v13267_v25  ;;  %v6045_v15 = vadd.f32 %v5846_v40, %v13270_v37  ;;  %v6046_v4 = vadd.f32 %v5846_v40, %v13305_v62  ;;  %v6243_v44 = vmax.f32 %v6040_v58, 0.0  ;;  %v5856_v25 = vpop.permute.xlu0 %5855 }
 0x5ae   : > { %v6033_v32 = vadd.f32 %v5841_v43, %v13310_v53  ;;  %v6244_v8 = vmax.f32 %v6041_v61, 0.0  ;;  %v6245_v52 = vmax.f32 %v6042_v10, 0.0  ;;  %v6246_v11 = vmax.f32 %v6043_v59, 0.0 }
 0x5af   : > { %v6247_v48 = vmax.f32 %v6044_v54, 0.0  ;;  %v6248_v29 = vmax.f32 %v6045_v15, 0.0  ;;  %v6249_v38 = vmax.f32 %v6046_v4, 0.0  ;;  %v6034_v23 = vadd.f32 %v5841_v43, %v13313_v3  ;;  %6446 = vst [vmem:[%s12962_s8 + $0x5b0] sm:$0xff] %v6243_v44 }
 0x5b0   : > { %6447 = vst [vmem:[%s12962_s8 + $0x5b8] sm:$0xff] %v6244_v8  ;;  %6448 = vst [vmem:[%s12962_s8 + $0x5c0] sm:$0xff] %v6245_v52  ;;  %v6035_v37 = vadd.f32 %v5841_v43, %v13316_v39  ;;  %v6036_v62 = vadd.f32 %v5841_v43, %v13351_v22  ;;  %v6037_v53 = vadd.f32 %v5841_v43, %v13356_v60  ;;  %v6236_v33 = vmax.f32 %v6033_v32, 0.0 }
 0x5b1   : > { %6449 = vst [vmem:[%s12962_s8 + $0x5c8] sm:$0xff] %v6246_v11  ;;  %v6038_v17 = vadd.f32 %v5841_v43, %v13359_v49  ;;  %6450 = vst [vmem:[%s12962_s8 + $0x5d0] sm:$0xff] %v6247_v48  ;;  %v6039_v3 = vadd.f32 %v5841_v43, %v13362_v19  ;;  %v6237_v39 = vmax.f32 %v6034_v23, 0.0  ;;  %v6054_v1 = vadd.f32 %v5856_v25, %v13632_v18 }
 0x5b2   : > { %6451 = vst [vmem:[%s12962_s8 + $0x5d8] sm:$0xff] %v6248_v29  ;;  %6452 = vst.msk [vmem:[%s12962_s8 + $0x5e0] sm:$0xff] %vm3832_vm2, %v6249_v38  ;;  %v6238_v22 = vmax.f32 %v6035_v37, 0.0  ;;  %v6239_v16 = vmax.f32 %v6036_v62, 0.0  ;;  %v6240_v55 = vmax.f32 %v6037_v53, 0.0  ;;  %v6055_v41 = vadd.f32 %v5856_v25, %v13635_v56 }
 0x5b3   : > { %v6241_v60 = vmax.f32 %v6038_v17, 0.0  ;;  %v6242_v49 = vmax.f32 %v6039_v3, 0.0  ;;  %6439 = vst [vmem:[%s12962_s8 + $0x578] sm:$0xff] %v6236_v33  ;;  %6440 = vst [vmem:[%s12962_s8 + $0x580] sm:$0xff] %v6237_v39  ;;  %v6056_v27 = vadd.f32 %v5856_v25, %v13638_v2  ;;  %v6057_v30 = vadd.f32 %v5856_v25, %v5709_v5 }
 0x5b4   : > { %6441 = vst [vmem:[%s12962_s8 + $0x588] sm:$0xff] %v6238_v22  ;;  %6442 = vst [vmem:[%s12962_s8 + $0x590] sm:$0xff] %v6239_v16  ;;  %v6058_v19 = vadd.f32 %v5856_v25, %v5710_v9  ;;  %v6059_v18 = vadd.f32 %v5856_v25, %v5711_v6  ;;  %v6060_v24 = vadd.f32 %v5856_v25, %v5712_v35  ;;  %v6257_v21 = vmax.f32 %v6054_v1, 0.0 }
 0x5b5   : > { %6443 = vst [vmem:[%s12962_s8 + $0x598] sm:$0xff] %v6240_v55  ;;  %6444 = vst [vmem:[%s12962_s8 + $0x5a0] sm:$0xff] %v6241_v60  ;;  %v6258_v51 = vmax.f32 %v6055_v41, 0.0  ;;  %v6259_v56 = vmax.f32 %v6056_v27, 0.0  ;;  %v6260_v2 = vmax.f32 %v6057_v30, 0.0  ;;  %v6047_v34 = vadd.f32 %v5851_v63, %v13454_v36 }
 0x5b6   : > { %6445 = vst.msk [vmem:[%s12962_s8 + $0x5a8] sm:$0xff] %vm3832_vm2, %v6242_v49  ;;  %v6261_v14 = vmax.f32 %v6058_v19, 0.0  ;;  %v6262_v13 = vmax.f32 %v6059_v18, 0.0  ;;  %v6263_v50 = vmax.f32 %v6060_v24, 0.0  ;;  %6460 = vst [vmem:[%s12962_s8 + $0x620] sm:$0xff] %v6257_v21  ;;  %v6048_v45 = vadd.f32 %v5851_v63, %v13489_v42 }
 0x5b7   : > { %6461 = vst [vmem:[%s12962_s8 + $0x628] sm:$0xff] %v6258_v51  ;;  %6462 = vst [vmem:[%s12962_s8 + $0x630] sm:$0xff] %v6259_v56  ;;  %v6049_v5 = vadd.f32 %v5851_v63, %v13494_v20  ;;  %v6050_v31 = vadd.f32 %v5851_v63, %v13497_v7  ;;  %v6051_v57 = vadd.f32 %v5851_v63, %v13500_v46  ;;  %v6250_v0 = vmax.f32 %v6047_v34, 0.0 }
 0x5b8   : > { %6463 = vst [vmem:[%s12962_s8 + $0x638] sm:$0xff] %v6260_v2  ;;  %v6052_v36 = vadd.f32 %v5851_v63, %v13533_v12  ;;  %6464 = vst [vmem:[%s12962_s8 + $0x640] sm:$0xff] %v6261_v14  ;;  %v6053_v42 = vadd.f32 %v5851_v63, %v13546_v28  ;;  %v6251_v20 = vmax.f32 %v6048_v45, 0.0 }
 0x5b9   : > { %6465 = vst [vmem:[%s12962_s8 + $0x648] sm:$0xff] %v6262_v13  ;;  %6466 = vst.msk [vmem:[%s12962_s8 + $0x650] sm:$0xff] %vm3832_vm2, %v6263_v50  ;;  %v6252_v26 = vmax.f32 %v6049_v5, 0.0  ;;  %v6253_v47 = vmax.f32 %v6050_v31, 0.0  ;;  %v6254_v7 = vmax.f32 %v6051_v57, 0.0 }
 0x5ba   : > { %v6255_v40 = vmax.f32 %v6052_v36, 0.0  ;;  %v6256_v9 = vmax.f32 %v6053_v42, 0.0  ;;  %6453 = vst [vmem:[%s12962_s8 + $0x5e8] sm:$0xff] %v6250_v0  ;;  %6454 = vst [vmem:[%s12962_s8 + $0x5f0] sm:$0xff] %v6251_v20 }
 0x5bb   : > { %6455 = vst [vmem:[%s12962_s8 + $0x5f8] sm:$0xff] %v6252_v26  ;;  %6456 = vst [vmem:[%s12962_s8 + $0x600] sm:$0xff] %v6253_v47 }
 0x5bc   : > { %6457 = vst [vmem:[%s12962_s8 + $0x608] sm:$0xff] %v6254_v7  ;;  %6458 = vst [vmem:[%s12962_s8 + $0x610] sm:$0xff] %v6255_v40 }
 0x5bd   : > { %6459 = vst.msk [vmem:[%s12962_s8 + $0x618] sm:$0xff] %vm3832_vm2, %v6256_v9 }
 0x5be PF: > { %s15_s18 = sadd.s32 1, %s6925_s18  }
 0x5bf   : > { %p12_p4 = scmp.ge.s32.totalorder %s15_s18, 5  }
 0x5c1   :  { %14 = sbr.rel (!%p12_p4) target bundleno = 1 (0x1), region = 76 }

</bundles_post_ra>
